<compile_context>
chip_gen: v5e
topology: v5e:2x2
jax: 0.10.0
libtpu: 0.0.40
codegen_flags: <defaults>
</compile_context>

<pallas_src>
import functools
import math

import jax
import jax.numpy as jnp
from jax import lax
from jax.experimental import pallas as pl
from jax.experimental.pallas import tpu as pltpu

N_BISECT_ITERS = 16          # brackets tau to ~2^-17 of an interval < 1
N_NEWTON_ITERS = 2           # quadratic refinement; exact renorm absorbs rest
LN_EPS = 1e-5                # torch.nn.LayerNorm default eps
MXU_DTYPE = jnp.bfloat16     # matmul-input dtype (f32 accumulation everywhere)


def _pick_tile(n, preferred):
    """Largest convenient row tile <= preferred that divides n (else full n)."""
    for t in (preferred, 512, 256, 128, 64, 32, 16, 8):
        if t <= preferred and t <= n and n % t == 0:
            return t
    return n


# --------------------- fused qkv projection (one MXU pass) ---------------------

def _qkv_proj_kernel(x_ref, w_ref, b_ref, q_ref, k_ref, v_ref, *, e):
    x = x_ref[...].astype(MXU_DTYPE)                       # cast in-kernel
    acc = jnp.dot(x, w_ref[...], preferred_element_type=jnp.float32) + b_ref[...]
    q_ref[...] = acc[:, 0:e].astype(q_ref.dtype)
    k_ref[...] = acc[:, e:2 * e].astype(k_ref.dtype)
    v_ref[...] = acc[:, 2 * e:3 * e].astype(v_ref.dtype)


def qkv_proj_pallas(x, w_fused, b_fused):
    n, e_in = x.shape
    e3 = w_fused.shape[1]
    e = e3 // 3
    tile_m = _pick_tile(n, 512)
    out_sds = jax.ShapeDtypeStruct((n, e), MXU_DTYPE)
    return pl.pallas_call(
        functools.partial(_qkv_proj_kernel, e=e),
        out_shape=(out_sds, out_sds, out_sds),
        grid=(n // tile_m,),
        in_specs=[
            pl.BlockSpec((tile_m, e_in), lambda i: (i, 0)),
            pl.BlockSpec((e_in, e3), lambda i: (0, 0)),     # resident fused weight
            pl.BlockSpec((1, e3), lambda i: (0, 0)),
        ],
        out_specs=(pl.BlockSpec((tile_m, e), lambda i: (i, 0)),) * 3,
        compiler_params=pltpu.CompilerParams(dimension_semantics=("parallel",)),
    )(x, w_fused, b_fused)


# ----------------- fused LayerNorm + output projection (row-tiled) -----------------

def _ln_proj_kernel(x_ref, g_ref, beta_ref, w_ref, b_ref, o_ref):
    x = x_ref[...].astype(jnp.float32)                     # bf16 handoff -> f32 stats
    mu = jnp.mean(x, axis=-1, keepdims=True)
    xc = x - mu
    var = jnp.mean(xc * xc, axis=-1, keepdims=True)        # biased, like torch LN
    y = xc * lax.rsqrt(var + LN_EPS) * g_ref[...] + beta_ref[...]
    o_ref[...] = (jnp.dot(y.astype(MXU_DTYPE), w_ref[...],
                          preferred_element_type=jnp.float32)
                  + b_ref[...]).astype(o_ref.dtype)


def ln_proj_pallas(x, gamma_row, beta_row, w_t, b_row):
    n, e_in = x.shape
    e_out = w_t.shape[1]
    tile_m = _pick_tile(n, 512)
    return pl.pallas_call(
        _ln_proj_kernel,
        out_shape=jax.ShapeDtypeStruct((n, e_out), jnp.float32),
        grid=(n // tile_m,),
        in_specs=[
            pl.BlockSpec((tile_m, e_in), lambda i: (i, 0)),
            pl.BlockSpec((1, e_in), lambda i: (0, 0)),
            pl.BlockSpec((1, e_in), lambda i: (0, 0)),
            pl.BlockSpec((e_in, e_out), lambda i: (0, 0)),
            pl.BlockSpec((1, e_out), lambda i: (0, 0)),
        ],
        out_specs=pl.BlockSpec((tile_m, e_out), lambda i: (i, 0)),
        compiler_params=pltpu.CompilerParams(dimension_semantics=("parallel",)),
    )(x, gamma_row, beta_row, w_t, b_row)


# -------- attention chunk: per-head scores + span mask + entmax_bisect + PV --------

def _entmax_p(z, inv_am1):
    # clamp(z, min=0) ** (1/(alpha-1)) with an exact zero branch
    safe = jnp.where(z > 0.0, z, 1.0)
    return jnp.where(z > 0.0, jnp.exp(inv_am1 * jnp.log(safe)), 0.0)


def _attn_chunk_kernel(q_ref, k_ref, v_ref, alpha_ref, span_ref, o_ref,
                       *, num_heads, head_dim, tile_q):
    sk = k_ref.shape[1]
    inv_scale = 1.0 / math.sqrt(head_dim)
    log_inv_d = math.log(1.0 / sk)

    # chunk-local relative positions (matches the reference's rel_pos convention)
    q_off = pl.program_id(1) * tile_q
    ri = lax.broadcasted_iota(jnp.int32, (tile_q, sk), 0) + q_off
    ci = lax.broadcasted_iota(jnp.int32, (tile_q, sk), 1)
    rel = jnp.abs(ri - ci).astype(jnp.float32)

    for h in range(num_heads):                      # static head loop (no dyn lane ofs)
        hs, he = h * head_dim, (h + 1) * head_dim
        alpha_h = alpha_ref[h]                      # per-head entmax alpha (SMEM)
        span_h = span_ref[h]                        # per-head attention span (SMEM)
        am1 = jnp.maximum(alpha_h - 1.0, 1e-4)      # guard: bisection needs alpha > 1
        inv_am1 = 1.0 / am1

        qh = q_ref[0, :, hs:he]                     # (tile_q, Dh) bf16
        kh = k_ref[0, :, hs:he]                     # (sk, Dh)     bf16
        vh = v_ref[0, :, hs:he]                     # (sk, Dh)     bf16

        scores = lax.dot_general(qh, kh, (((1,), (1,)), ((), ())),
                                 preferred_element_type=jnp.float32) * inv_scale
        scores = jnp.where(rel > span_h, -jnp.inf, scores)

        # ---- entmax_bisect over the key axis ----
        X = scores * am1
        max_val = jnp.max(X, axis=-1, keepdims=True)
        tau_lo = max_val - 1.0                                    # 1 ** (alpha-1)
        gp_inv_d = jnp.exp(jnp.full_like(max_val, am1 * log_inv_d))  # (1/d)**(alpha-1)
        dm0 = (max_val - gp_inv_d) - tau_lo

        # f(tau_lo) >= 0 always, so the bracket-update predicate is just f_m >= 0.
        def bisect(_, carry):
            t_lo, dm = carry
            dm = dm * 0.5
            tm = t_lo + dm
            p = _entmax_p(X - tm, inv_am1)
            f = jnp.sum(p, axis=-1, keepdims=True) - 1.0
            t_lo = jnp.where(f >= 0.0, tm, t_lo)
            return (t_lo, dm)

        tau, _ = lax.fori_loop(0, N_BISECT_ITERS, bisect, (tau_lo, dm0),
                               unroll=True)

        # Newton refinement from the lower bracket: f is convex & decreasing, so
        # each step stays on the f>=0 side (no overshoot).
        for _ in range(N_NEWTON_ITERS):
            z = X - tau
            pos = z > 0.0
            zs = jnp.where(pos, z, 1.0)
            p = jnp.where(pos, jnp.exp(inv_am1 * jnp.log(zs)), 0.0)
            f = jnp.sum(p, axis=-1, keepdims=True) - 1.0
            dsum = jnp.sum(jnp.where(pos, p / zs, 0.0), axis=-1, keepdims=True)
            tau = tau + f / (inv_am1 * jnp.maximum(dsum, 1e-30))

        p = _entmax_p(X - tau, inv_am1)
        p = p / jnp.sum(p, axis=-1, keepdims=True)      # exact renorm (ensure_sum_one)

        out_h = jnp.dot(p.astype(MXU_DTYPE), vh, preferred_element_type=jnp.float32)
        o_ref[0, :, hs:he] = out_h.astype(o_ref.dtype)  # lane-dense (tile_q,E) block


def attention_chunk_pallas(q, k, v, alpha, span, *, num_heads):
    b, sq, e = q.shape
    sk = k.shape[1]
    dh = e // num_heads
    tile_q = _pick_tile(sq, 128)          # cap working set (tile_q, sk) f32
    kernel = functools.partial(_attn_chunk_kernel, num_heads=num_heads,
                               head_dim=dh, tile_q=tile_q)
    return pl.pallas_call(
        kernel,
        out_shape=jax.ShapeDtypeStruct((b, sq, e), MXU_DTYPE),
        grid=(b, sq // tile_q),
        in_specs=[
            pl.BlockSpec((1, tile_q, e), lambda i, j: (i, j, 0)),   # q tile
            pl.BlockSpec((1, sk, e), lambda i, j: (i, 0, 0)),       # k window (resident)
            pl.BlockSpec((1, sk, e), lambda i, j: (i, 0, 0)),       # v window (resident)
            pl.BlockSpec(memory_space=pltpu.SMEM),                  # alpha (H,)
            pl.BlockSpec(memory_space=pltpu.SMEM),                  # span  (H,)
        ],
        out_specs=pl.BlockSpec((1, tile_q, e), lambda i, j: (i, j, 0)),
        compiler_params=pltpu.CompilerParams(
            dimension_semantics=("parallel", "parallel")),
    )(q, k, v, alpha, span)


# ------------------------------ params & forward ------------------------------

def init_params(key, embed_dim, num_heads):
    ks = jax.random.split(key, 6)
    scale = 1.0 / math.sqrt(embed_dim)
    return {
        "w_qkv": jax.random.uniform(ks[0], (3 * embed_dim, embed_dim),
                                    jnp.float32, -scale, scale),
        "b_qkv": jax.random.uniform(ks[1], (3 * embed_dim,), jnp.float32, -scale, scale),
        "w_o": jax.random.uniform(ks[2], (embed_dim, embed_dim),
                                  jnp.float32, -scale, scale),
        "b_o": jax.random.uniform(ks[3], (embed_dim,), jnp.float32, -scale, scale),
        "gamma": jnp.ones((embed_dim,), jnp.float32),
        "beta": jnp.zeros((embed_dim,), jnp.float32),
        "alpha": 1.5 + 0.05 * jax.random.normal(ks[4], (num_heads,), jnp.float32),
        "span": 100.0 + 1.0 * jax.random.normal(ks[5], (num_heads,), jnp.float32),
    }


def prepare_params(params, num_heads):
    """Host-side prep: build the fused (E,3E) qkv weight whose output columns are
    head-interleaved [q | k | v] exactly matching the reference's
    reshape(B,S,H,3Dh) + chunk(3) head split; cast MXU operands to bf16."""
    e = params["w_o"].shape[0]
    h = num_heads
    dh = e // h
    w_t = params["w_qkv"].T.reshape(e, h, 3, dh)          # feature f = h*3Dh + c*Dh + d
    b_t = params["b_qkv"].reshape(h, 3, dh)
    w_fused = jnp.concatenate([w_t[:, :, c, :].reshape(e, e) for c in range(3)], axis=1)
    b_fused = jnp.concatenate([b_t[:, c, :].reshape(e) for c in range(3)]).reshape(1, 3 * e)
    return {
        "w_qkv": w_fused.astype(MXU_DTYPE),
        "b_qkv": b_fused.astype(jnp.float32),
        "w_o_t": params["w_o"].T.astype(MXU_DTYPE),
        "b_o": params["b_o"].reshape(1, e).astype(jnp.float32),
        "gamma": params["gamma"].reshape(1, e).astype(jnp.float32),
        "beta": params["beta"].reshape(1, e).astype(jnp.float32),
        "alpha": params["alpha"].astype(jnp.float32),
        "span": params["span"].astype(jnp.float32),
    }


@functools.partial(jax.jit, static_argnames=("num_heads", "attention_window", "span_val"))
def mix_adaptive_attention_forward(x, prep, *, num_heads, attention_window, span_val):
    B, S, E = x.shape
    N = B * S

    # fused qkv projection -> q/k/v already in head-interleaved (B, S, E) layout
    q2d, k2d, v2d = qkv_proj_pallas(x.reshape(N, E), prep["w_qkv"], prep["b_qkv"])
    q = q2d.reshape(B, S, E)
    k = k2d.reshape(B, S, E)
    v = v2d.reshape(B, S, E)

    chunks = []
    for q_start in range(0, S, attention_window):
        q_end = min(q_start + attention_window, S)
        k_start = max(0, q_start - span_val)
        k_end = min(S, q_end + span_val)
        chunks.append(attention_chunk_pallas(
            q[:, q_start:q_end], k[:, k_start:k_end], v[:, k_start:k_end],
            prep["alpha"], prep["span"], num_heads=num_heads))
    attn = chunks[0] if len(chunks) == 1 else jnp.concatenate(chunks, axis=1)

    # fused LayerNorm + output projection (bf16 handoff, f32 LN stats)
    out = ln_proj_pallas(attn.reshape(N, E), prep["gamma"], prep["beta"],
                         prep["w_o_t"], prep["b_o"])
    return out.reshape(B, S, E)


if __name__ == "__main__":
    key = jax.random.PRNGKey(0)
    kx, kp = jax.random.split(key)

    B, S, E, H = 2, 8, 32, 4          # embed_dim=32, num_heads=4, head_dim=8
    x = jax.random.normal(kx, (B, S, E), jnp.float32)
    params = init_params(kp, E, H)
    prep = prepare_params(params, H)

    # eval-mode semantics: key window widened by int(span.mean()), computed once
    # at setup (like the reference's int(span.mean().item())).
    span_val = int(float(jnp.mean(params["span"])))

    out = mix_adaptive_attention_forward(x, prep, num_heads=H,
                                         attention_window=1024, span_val=span_val)
    out = jax.block_until_ready(out)
    assert out.shape == (B, S, E)
    assert bool(jnp.all(jnp.isfinite(out)))
    print("KERNEL_OK")
</pallas_src>

<mosaic_0001>
module attributes {stable_mosaic.version = 11 : i64} {
  func.func @_ln_proj_kernel(%arg0: i32, %arg1: memref<16x32xbf16, #tpu.memory_space<vmem>>, %arg2: memref<1x32xf32, #tpu.memory_space<vmem>>, %arg3: memref<1x32xf32, #tpu.memory_space<vmem>>, %arg4: memref<32x32xbf16, #tpu.memory_space<vmem>>, %arg5: memref<1x32xf32, #tpu.memory_space<vmem>>, %arg6: memref<16x32xf32, #tpu.memory_space<vmem>>) attributes {dimension_semantics = [#tpu.dimension_semantics<parallel>], iteration_bounds = array<i64: 1>, scalar_prefetch = 0 : i64, scratch_operands = 0 : i64, tpu.core_type = #tpu.core_type<tc>, window_params = [{transform_indices = @transform_0, window_bounds = array<i64: 16, 32>}, {pipeline_mode = #tpu.pipeline_mode<synchronous>, transform_indices = @transform_1, window_bounds = array<i64: 1, 32>}, {pipeline_mode = #tpu.pipeline_mode<synchronous>, transform_indices = @transform_2, window_bounds = array<i64: 1, 32>}, {pipeline_mode = #tpu.pipeline_mode<synchronous>, transform_indices = @transform_3, window_bounds = array<i64: 32, 32>}, {pipeline_mode = #tpu.pipeline_mode<synchronous>, transform_indices = @transform_4, window_bounds = array<i64: 1, 32>}, {transform_indices = @transform_5, window_bounds = array<i64: 16, 32>}]} {
    %c0 = arith.constant 0 : index
    %c0_0 = arith.constant 0 : index
    %0 = vector.load %arg1[%c0, %c0_0] : memref<16x32xbf16, #tpu.memory_space<vmem>>, vector<16x32xbf16>
    %1 = arith.extf %0 : vector<16x32xbf16> to vector<16x32xf32>
    %cst = arith.constant dense<0.000000e+00> : vector<16xf32>
    %2 = vector.multi_reduction <add>, %1, %cst [1] : vector<16x32xf32> to vector<16xf32>
    %3 = vector.shape_cast %2 : vector<16xf32> to vector<16x1xf32>
    %cst_1 = arith.constant 3.200000e+01 : f32
    %4 = vector.broadcast %cst_1 : f32 to vector<16x1xf32>
    %5 = arith.divf %3, %4 : vector<16x1xf32>
    %6 = vector.broadcast %5 : vector<16x1xf32> to vector<16x32xf32>
    %7 = arith.subf %1, %6 : vector<16x32xf32>
    %8 = arith.mulf %7, %7 : vector<16x32xf32>
    %cst_2 = arith.constant dense<0.000000e+00> : vector<16xf32>
    %9 = vector.multi_reduction <add>, %8, %cst_2 [1] : vector<16x32xf32> to vector<16xf32>
    %10 = vector.shape_cast %9 : vector<16xf32> to vector<16x1xf32>
    %cst_3 = arith.constant 3.200000e+01 : f32
    %11 = vector.broadcast %cst_3 : f32 to vector<16x1xf32>
    %12 = arith.divf %10, %11 : vector<16x1xf32>
    %cst_4 = arith.constant 9.99999974E-6 : f32
    %13 = vector.broadcast %cst_4 : f32 to vector<16x1xf32>
    %14 = arith.addf %12, %13 : vector<16x1xf32>
    %15 = math.rsqrt %14 : vector<16x1xf32>
    %16 = vector.broadcast %15 : vector<16x1xf32> to vector<16x32xf32>
    %17 = arith.mulf %7, %16 : vector<16x32xf32>
    %c0_5 = arith.constant 0 : index
    %c0_6 = arith.constant 0 : index
    %18 = vector.load %arg2[%c0_5, %c0_6] : memref<1x32xf32, #tpu.memory_space<vmem>>, vector<1x32xf32>
    %19 = vector.broadcast %18 : vector<1x32xf32> to vector<16x32xf32>
    %20 = arith.mulf %17, %19 : vector<16x32xf32>
    %c0_7 = arith.constant 0 : index
    %c0_8 = arith.constant 0 : index
    %21 = vector.load %arg3[%c0_7, %c0_8] : memref<1x32xf32, #tpu.memory_space<vmem>>, vector<1x32xf32>
    %22 = vector.broadcast %21 : vector<1x32xf32> to vector<16x32xf32>
    %23 = arith.addf %20, %22 : vector<16x32xf32>
    %24 = arith.truncf %23 : vector<16x32xf32> to vector<16x32xbf16>
    %c0_9 = arith.constant 0 : index
    %c0_10 = arith.constant 0 : index
    %25 = vector.load %arg4[%c0_9, %c0_10] : memref<32x32xbf16, #tpu.memory_space<vmem>>, vector<32x32xbf16>
    %cst_11 = arith.constant dense<0.000000e+00> : vector<16x32xf32>
    %26 = tpu.matmul %24, %25, %cst_11 {dimension_numbers = #tpu.dot_dimension_numbers<[1], [0], [0], [1], [0, 0, 1, 1], [], []>} : vector<16x32xbf16>, vector<32x32xbf16>, vector<16x32xf32> -> vector<16x32xf32>
    %c0_12 = arith.constant 0 : index
    %c0_13 = arith.constant 0 : index
    %27 = vector.load %arg5[%c0_12, %c0_13] : memref<1x32xf32, #tpu.memory_space<vmem>>, vector<1x32xf32>
    %28 = vector.broadcast %27 : vector<1x32xf32> to vector<16x32xf32>
    %29 = arith.addf %26, %28 : vector<16x32xf32>
    %c0_14 = arith.constant 0 : index
    %c0_15 = arith.constant 0 : index
    %30 = vector.load %arg6[%c0_14, %c0_15] : memref<16x32xf32, #tpu.memory_space<vmem>>, vector<16x32xf32>
    tpu.vector_store %arg6[%c0_14, %c0_15], %29 {strides = array<i32>} : memref<16x32xf32, #tpu.memory_space<vmem>>, vector<16x32xf32>,
    return
  }
  func.func @transform_0(%arg0: i32) -> (i32, i32) {
    %c0_i32 = arith.constant 0 : i32
    %c0_i32_0 = arith.constant 0 : i32
    return %arg0, %c0_i32 : i32, i32
  }
  func.func @transform_1(%arg0: i32) -> (i32, i32) {
    %c0_i32 = arith.constant 0 : i32
    %c0_i32_0 = arith.constant 0 : i32
    %c0_i32_1 = arith.constant 0 : i32
    return %c0_i32, %c0_i32_0 : i32, i32
  }
  func.func @transform_2(%arg0: i32) -> (i32, i32) {
    %c0_i32 = arith.constant 0 : i32
    %c0_i32_0 = arith.constant 0 : i32
    %c0_i32_1 = arith.constant 0 : i32
    return %c0_i32, %c0_i32_0 : i32, i32
  }
  func.func @transform_3(%arg0: i32) -> (i32, i32) {
    %c0_i32 = arith.constant 0 : i32
    %c0_i32_0 = arith.constant 0 : i32
    %c0_i32_1 = arith.constant 0 : i32
    return %c0_i32, %c0_i32_0 : i32, i32
  }
  func.func @transform_4(%arg0: i32) -> (i32, i32) {
    %c0_i32 = arith.constant 0 : i32
    %c0_i32_0 = arith.constant 0 : i32
    %c0_i32_1 = arith.constant 0 : i32
    return %c0_i32, %c0_i32_0 : i32, i32
  }
  func.func @transform_5(%arg0: i32) -> (i32, i32) {
    %c0_i32 = arith.constant 0 : i32
    %c0_i32_0 = arith.constant 0 : i32
    return %arg0, %c0_i32 : i32, i32
  }
}

module attributes {stable_mosaic.version = 11 : i64} {
  func.func @_qkv_proj_kernel(%arg0: i32, %arg1: memref<16x32xf32, #tpu.memory_space<vmem>>, %arg2: memref<32x96xbf16, #tpu.memory_space<vmem>>, %arg3: memref<1x96xf32, #tpu.memory_space<vmem>>, %arg4: memref<16x32xbf16, #tpu.memory_space<vmem>>, %arg5: memref<16x32xbf16, #tpu.memory_space<vmem>>, %arg6: memref<16x32xbf16, #tpu.memory_space<vmem>>) attributes {dimension_semantics = [#tpu.dimension_semantics<parallel>], iteration_bounds = array<i64: 1>, scalar_prefetch = 0 : i64, scratch_operands = 0 : i64, tpu.core_type = #tpu.core_type<tc>, window_params = [{transform_indices = @transform_0, window_bounds = array<i64: 16, 32>}, {pipeline_mode = #tpu.pipeline_mode<synchronous>, transform_indices = @transform_1, window_bounds = array<i64: 32, 96>}, {pipeline_mode = #tpu.pipeline_mode<synchronous>, transform_indices = @transform_2, window_bounds = array<i64: 1, 96>}, {transform_indices = @transform_3, window_bounds = array<i64: 16, 32>}, {transform_indices = @transform_4, window_bounds = array<i64: 16, 32>}, {transform_indices = @transform_5, window_bounds = array<i64: 16, 32>}]} {
    %c0 = arith.constant 0 : index
    %c0_0 = arith.constant 0 : index
    %0 = vector.load %arg1[%c0, %c0_0] : memref<16x32xf32, #tpu.memory_space<vmem>>, vector<16x32xf32>
    %1 = arith.truncf %0 : vector<16x32xf32> to vector<16x32xbf16>
    %c0_1 = arith.constant 0 : index
    %c0_2 = arith.constant 0 : index
    %2 = vector.load %arg2[%c0_1, %c0_2] : memref<32x96xbf16, #tpu.memory_space<vmem>>, vector<32x96xbf16>
    %cst = arith.constant dense<0.000000e+00> : vector<16x96xf32>
    %3 = tpu.matmul %1, %2, %cst {dimension_numbers = #tpu.dot_dimension_numbers<[1], [0], [0], [1], [0, 0, 1, 1], [], []>} : vector<16x32xbf16>, vector<32x96xbf16>, vector<16x96xf32> -> vector<16x96xf32>
    %c0_3 = arith.constant 0 : index
    %c0_4 = arith.constant 0 : index
    %4 = vector.load %arg3[%c0_3, %c0_4] : memref<1x96xf32, #tpu.memory_space<vmem>>, vector<1x96xf32>
    %5 = vector.broadcast %4 : vector<1x96xf32> to vector<16x96xf32>
    %6 = arith.addf %3, %5 : vector<16x96xf32>
    %7 = vector.extract_strided_slice %6 {offsets = [0, 0], sizes = [16, 32], strides = [1, 1]} : vector<16x96xf32> to vector<16x32xf32>
    %8 = arith.truncf %7 : vector<16x32xf32> to vector<16x32xbf16>
    %c0_5 = arith.constant 0 : index
    %c0_6 = arith.constant 0 : index
    %9 = vector.load %arg4[%c0_5, %c0_6] : memref<16x32xbf16, #tpu.memory_space<vmem>>, vector<16x32xbf16>
    tpu.vector_store %arg4[%c0_5, %c0_6], %8 {strides = array<i32>} : memref<16x32xbf16, #tpu.memory_space<vmem>>, vector<16x32xbf16>,
    %10 = vector.extract_strided_slice %6 {offsets = [0, 32], sizes = [16, 32], strides = [1, 1]} : vector<16x96xf32> to vector<16x32xf32>
    %11 = arith.truncf %10 : vector<16x32xf32> to vector<16x32xbf16>
    %c0_7 = arith.constant 0 : index
    %c0_8 = arith.constant 0 : index
    %12 = vector.load %arg5[%c0_7, %c0_8] : memref<16x32xbf16, #tpu.memory_space<vmem>>, vector<16x32xbf16>
    tpu.vector_store %arg5[%c0_7, %c0_8], %11 {strides = array<i32>} : memref<16x32xbf16, #tpu.memory_space<vmem>>, vector<16x32xbf16>,
    %13 = vector.extract_strided_slice %6 {offsets = [0, 64], sizes = [16, 32], strides = [1, 1]} : vector<16x96xf32> to vector<16x32xf32>
    %14 = arith.truncf %13 : vector<16x32xf32> to vector<16x32xbf16>
    %c0_9 = arith.constant 0 : index
    %c0_10 = arith.constant 0 : index
    %15 = vector.load %arg6[%c0_9, %c0_10] : memref<16x32xbf16, #tpu.memory_space<vmem>>, vector<16x32xbf16>
    tpu.vector_store %arg6[%c0_9, %c0_10], %14 {strides = array<i32>} : memref<16x32xbf16, #tpu.memory_space<vmem>>, vector<16x32xbf16>,
    return
  }
  func.func @transform_0(%arg0: i32) -> (i32, i32) {
    %c0_i32 = arith.constant 0 : i32
    %c0_i32_0 = arith.constant 0 : i32
    return %arg0, %c0_i32 : i32, i32
  }
  func.func @transform_1(%arg0: i32) -> (i32, i32) {
    %c0_i32 = arith.constant 0 : i32
    %c0_i32_0 = arith.constant 0 : i32
    %c0_i32_1 = arith.constant 0 : i32
    return %c0_i32, %c0_i32_0 : i32, i32
  }
  func.func @transform_2(%arg0: i32) -> (i32, i32) {
    %c0_i32 = arith.constant 0 : i32
    %c0_i32_0 = arith.constant 0 : i32
    %c0_i32_1 = arith.constant 0 : i32
    return %c0_i32, %c0_i32_0 : i32, i32
  }
  func.func @transform_3(%arg0: i32) -> (i32, i32) {
    %c0_i32 = arith.constant 0 : i32
    %c0_i32_0 = arith.constant 0 : i32
    return %arg0, %c0_i32 : i32, i32
  }
  func.func @transform_4(%arg0: i32) -> (i32, i32) {
    %c0_i32 = arith.constant 0 : i32
    %c0_i32_0 = arith.constant 0 : i32
    return %arg0, %c0_i32 : i32, i32
  }
  func.func @transform_5(%arg0: i32) -> (i32, i32) {
    %c0_i32 = arith.constant 0 : i32
    %c0_i32_0 = arith.constant 0 : i32
    return %arg0, %c0_i32 : i32, i32
  }
}

module attributes {stable_mosaic.version = 11 : i64} {
  func.func @_attn_chunk_kernel(%arg0: i32, %arg1: i32, %arg2: memref<1x8x32xbf16, #tpu.memory_space<vmem>>, %arg3: memref<1x8x32xbf16, #tpu.memory_space<vmem>>, %arg4: memref<1x8x32xbf16, #tpu.memory_space<vmem>>, %arg5: memref<4xf32, #tpu.memory_space<smem>>, %arg6: memref<4xf32, #tpu.memory_space<smem>>, %arg7: memref<1x8x32xbf16, #tpu.memory_space<vmem>>) attributes {dimension_semantics = [#tpu.dimension_semantics<parallel>, #tpu.dimension_semantics<parallel>], iteration_bounds = array<i64: 2, 1>, scalar_prefetch = 0 : i64, scratch_operands = 0 : i64, tpu.core_type = #tpu.core_type<tc>, window_params = [{transform_indices = @transform_0, window_bounds = array<i64: 1, 8, 32>}, {transform_indices = @transform_1, window_bounds = array<i64: 1, 8, 32>}, {transform_indices = @transform_2, window_bounds = array<i64: 1, 8, 32>}, {transform_indices = @transform_3, window_bounds = array<i64: 4>}, {transform_indices = @transform_4, window_bounds = array<i64: 4>}, {transform_indices = @transform_5, window_bounds = array<i64: 1, 8, 32>}]} {
    %c8_i32 = arith.constant 8 : i32
    %0 = arith.muli %arg1, %c8_i32 : i32
    %1 = tpu.iota {dimensions = array<i32: 0>} : vector<8x8xi32>
    %2 = vector.broadcast %0 : i32 to vector<8x8xi32>
    %3 = arith.addi %1, %2 : vector<8x8xi32>
    %4 = tpu.iota {dimensions = array<i32: 1>} : vector<8x8xi32>
    %5 = arith.subi %3, %4 : vector<8x8xi32>
    %6 = math.absi %5 : vector<8x8xi32>
    %7 = arith.sitofp %6 : vector<8x8xi32> to vector<8x8xf32>
    %c0 = arith.constant 0 : index
    %8 = memref.load %arg5[%c0] : memref<4xf32, #tpu.memory_space<smem>>
    %c0_0 = arith.constant 0 : index
    %9 = memref.load %arg6[%c0_0] : memref<4xf32, #tpu.memory_space<smem>>
    %cst = arith.constant 1.000000e+00 : f32
    %10 = arith.subf %8, %cst : f32
    %cst_1 = arith.constant 9.99999974E-5 : f32
    %11 = arith.maximumf %10, %cst_1 : f32
    %cst_2 = arith.constant 1.000000e+00 : f32
    %12 = arith.divf %cst_2, %11 : f32
    %c0_3 = arith.constant 0 : index
    %c0_4 = arith.constant 0 : index
    %c0_5 = arith.constant 0 : index
    %13 = vector.load %arg2[%c0_3, %c0_4, %c0_5] : memref<1x8x32xbf16, #tpu.memory_space<vmem>>, vector<1x8x8xbf16>
    %14 = vector.shape_cast %13 : vector<1x8x8xbf16> to vector<8x8xbf16>
    %c0_6 = arith.constant 0 : index
    %c0_7 = arith.constant 0 : index
    %c0_8 = arith.constant 0 : index
    %15 = vector.load %arg3[%c0_6, %c0_7, %c0_8] : memref<1x8x32xbf16, #tpu.memory_space<vmem>>, vector<1x8x8xbf16>
    %16 = vector.shape_cast %15 : vector<1x8x8xbf16> to vector<8x8xbf16>
    %c0_9 = arith.constant 0 : index
    %c0_10 = arith.constant 0 : index
    %c0_11 = arith.constant 0 : index
    %17 = vector.load %arg4[%c0_9, %c0_10, %c0_11] : memref<1x8x32xbf16, #tpu.memory_space<vmem>>, vector<1x8x8xbf16>
    %18 = vector.shape_cast %17 : vector<1x8x8xbf16> to vector<8x8xbf16>
    %cst_12 = arith.constant dense<0.000000e+00> : vector<8x8xf32>
    %19 = tpu.matmul %14, %16, %cst_12 {dimension_numbers = #tpu.dot_dimension_numbers<[1], [1], [0], [0], [0, 0, 1, 0], [], []>} : vector<8x8xbf16>, vector<8x8xbf16>, vector<8x8xf32> -> vector<8x8xf32>
    %cst_13 = arith.constant 0.353553385 : f32
    %20 = vector.broadcast %cst_13 : f32 to vector<8x8xf32>
    %21 = arith.mulf %19, %20 : vector<8x8xf32>
    %22 = vector.broadcast %9 : f32 to vector<8x8xf32>
    %23 = arith.cmpf ogt, %7, %22 : vector<8x8xf32>
    %cst_14 = arith.constant 0xFF800000 : f32
    %24 = vector.broadcast %cst_14 : f32 to vector<8x8xf32>
    %25 = arith.select %23, %24, %21 : vector<8x8xi1>, vector<8x8xf32>
    %26 = vector.broadcast %11 : f32 to vector<8x8xf32>
    %27 = arith.mulf %25, %26 : vector<8x8xf32>
    %cst_15 = arith.constant dense<0xFF800000> : vector<8xf32>
    %28 = vector.multi_reduction <maximumf>, %27, %cst_15 [1] : vector<8x8xf32> to vector<8xf32>
    %29 = vector.shape_cast %28 : vector<8xf32> to vector<8x1xf32>
    %cst_16 = arith.constant 1.000000e+00 : f32
    %30 = vector.broadcast %cst_16 : f32 to vector<8x1xf32>
    %31 = arith.subf %29, %30 : vector<8x1xf32>
    %cst_17 = arith.constant -2.07944155 : f32
    %32 = arith.mulf %11, %cst_17 : f32
    %33 = vector.broadcast %32 : f32 to vector<8x1xf32>
    %34 = math.exp %33 : vector<8x1xf32>
    %35 = arith.subf %29, %34 : vector<8x1xf32>
    %36 = arith.subf %35, %31 : vector<8x1xf32>
    %c0_i32 = arith.constant 0 : i32
    %cst_18 = arith.constant 5.000000e-01 : f32
    %37 = vector.broadcast %cst_18 : f32 to vector<8x1xf32>
    %38 = arith.mulf %36, %37 : vector<8x1xf32>
    %39 = arith.addf %31, %38 : vector<8x1xf32>
    %40 = vector.broadcast %39 : vector<8x1xf32> to vector<8x8xf32>
    %41 = arith.subf %27, %40 : vector<8x8xf32>
    %cst_19 = arith.constant 0.000000e+00 : f32
    %42 = vector.broadcast %cst_19 : f32 to vector<8x8xf32>
    %43 = arith.cmpf ogt, %41, %42 : vector<8x8xf32>
    %cst_20 = arith.constant 1.000000e+00 : f32
    %44 = vector.broadcast %cst_20 : f32 to vector<8x8xf32>
    %45 = arith.select %43, %41, %44 : vector<8x8xi1>, vector<8x8xf32>
    %cst_21 = arith.constant 0.000000e+00 : f32
    %46 = vector.broadcast %cst_21 : f32 to vector<8x8xf32>
    %47 = arith.cmpf ogt, %41, %46 : vector<8x8xf32>
    %48 = math.log %45 : vector<8x8xf32>
    %49 = vector.broadcast %12 : f32 to vector<8x8xf32>
    %50 = arith.mulf %49, %48 : vector<8x8xf32>
    %51 = math.exp %50 : vector<8x8xf32>
    %cst_22 = arith.constant 0.000000e+00 : f32
    %52 = vector.broadcast %cst_22 : f32 to vector<8x8xf32>
    %53 = arith.select %47, %51, %52 : vector<8x8xi1>, vector<8x8xf32>
    %cst_23 = arith.constant dense<0.000000e+00> : vector<8xf32>
    %54 = vector.multi_reduction <add>, %53, %cst_23 [1] : vector<8x8xf32> to vector<8xf32>
    %55 = vector.shape_cast %54 : vector<8xf32> to vector<8x1xf32>
    %cst_24 = arith.constant 1.000000e+00 : f32
    %56 = vector.broadcast %cst_24 : f32 to vector<8x1xf32>
    %57 = arith.subf %55, %56 : vector<8x1xf32>
    %cst_25 = arith.constant 0.000000e+00 : f32
    %58 = vector.broadcast %cst_25 : f32 to vector<8x1xf32>
    %59 = arith.cmpf oge, %57, %58 : vector<8x1xf32>
    %60 = arith.select %59, %39, %31 : vector<8x1xi1>, vector<8x1xf32>
    %c1_i32 = arith.constant 1 : i32
    %cst_26 = arith.constant 5.000000e-01 : f32
    %61 = vector.broadcast %cst_26 : f32 to vector<8x1xf32>
    %62 = arith.mulf %38, %61 : vector<8x1xf32>
    %63 = arith.addf %60, %62 : vector<8x1xf32>
    %64 = vector.broadcast %63 : vector<8x1xf32> to vector<8x8xf32>
    %65 = arith.subf %27, %64 : vector<8x8xf32>
    %cst_27 = arith.constant 0.000000e+00 : f32
    %66 = vector.broadcast %cst_27 : f32 to vector<8x8xf32>
    %67 = arith.cmpf ogt, %65, %66 : vector<8x8xf32>
    %cst_28 = arith.constant 1.000000e+00 : f32
    %68 = vector.broadcast %cst_28 : f32 to vector<8x8xf32>
    %69 = arith.select %67, %65, %68 : vector<8x8xi1>, vector<8x8xf32>
    %cst_29 = arith.constant 0.000000e+00 : f32
    %70 = vector.broadcast %cst_29 : f32 to vector<8x8xf32>
    %71 = arith.cmpf ogt, %65, %70 : vector<8x8xf32>
    %72 = math.log %69 : vector<8x8xf32>
    %73 = vector.broadcast %12 : f32 to vector<8x8xf32>
    %74 = arith.mulf %73, %72 : vector<8x8xf32>
    %75 = math.exp %74 : vector<8x8xf32>
    %cst_30 = arith.constant 0.000000e+00 : f32
    %76 = vector.broadcast %cst_30 : f32 to vector<8x8xf32>
    %77 = arith.select %71, %75, %76 : vector<8x8xi1>, vector<8x8xf32>
    %cst_31 = arith.constant dense<0.000000e+00> : vector<8xf32>
    %78 = vector.multi_reduction <add>, %77, %cst_31 [1] : vector<8x8xf32> to vector<8xf32>
    %79 = vector.shape_cast %78 : vector<8xf32> to vector<8x1xf32>
    %cst_32 = arith.constant 1.000000e+00 : f32
    %80 = vector.broadcast %cst_32 : f32 to vector<8x1xf32>
    %81 = arith.subf %79, %80 : vector<8x1xf32>
    %cst_33 = arith.constant 0.000000e+00 : f32
    %82 = vector.broadcast %cst_33 : f32 to vector<8x1xf32>
    %83 = arith.cmpf oge, %81, %82 : vector<8x1xf32>
    %84 = arith.select %83, %63, %60 : vector<8x1xi1>, vector<8x1xf32>
    %c2_i32 = arith.constant 2 : i32
    %cst_34 = arith.constant 5.000000e-01 : f32
    %85 = vector.broadcast %cst_34 : f32 to vector<8x1xf32>
    %86 = arith.mulf %62, %85 : vector<8x1xf32>
    %87 = arith.addf %84, %86 : vector<8x1xf32>
    %88 = vector.broadcast %87 : vector<8x1xf32> to vector<8x8xf32>
    %89 = arith.subf %27, %88 : vector<8x8xf32>
    %cst_35 = arith.constant 0.000000e+00 : f32
    %90 = vector.broadcast %cst_35 : f32 to vector<8x8xf32>
    %91 = arith.cmpf ogt, %89, %90 : vector<8x8xf32>
    %cst_36 = arith.constant 1.000000e+00 : f32
    %92 = vector.broadcast %cst_36 : f32 to vector<8x8xf32>
    %93 = arith.select %91, %89, %92 : vector<8x8xi1>, vector<8x8xf32>
    %cst_37 = arith.constant 0.000000e+00 : f32
    %94 = vector.broadcast %cst_37 : f32 to vector<8x8xf32>
    %95 = arith.cmpf ogt, %89, %94 : vector<8x8xf32>
    %96 = math.log %93 : vector<8x8xf32>
    %97 = vector.broadcast %12 : f32 to vector<8x8xf32>
    %98 = arith.mulf %97, %96 : vector<8x8xf32>
    %99 = math.exp %98 : vector<8x8xf32>
    %cst_38 = arith.constant 0.000000e+00 : f32
    %100 = vector.broadcast %cst_38 : f32 to vector<8x8xf32>
    %101 = arith.select %95, %99, %100 : vector<8x8xi1>, vector<8x8xf32>
    %cst_39 = arith.constant dense<0.000000e+00> : vector<8xf32>
    %102 = vector.multi_reduction <add>, %101, %cst_39 [1] : vector<8x8xf32> to vector<8xf32>
    %103 = vector.shape_cast %102 : vector<8xf32> to vector<8x1xf32>
    %cst_40 = arith.constant 1.000000e+00 : f32
    %104 = vector.broadcast %cst_40 : f32 to vector<8x1xf32>
    %105 = arith.subf %103, %104 : vector<8x1xf32>
    %cst_41 = arith.constant 0.000000e+00 : f32
    %106 = vector.broadcast %cst_41 : f32 to vector<8x1xf32>
    %107 = arith.cmpf oge, %105, %106 : vector<8x1xf32>
    %108 = arith.select %107, %87, %84 : vector<8x1xi1>, vector<8x1xf32>
    %c3_i32 = arith.constant 3 : i32
    %cst_42 = arith.constant 5.000000e-01 : f32
    %109 = vector.broadcast %cst_42 : f32 to vector<8x1xf32>
    %110 = arith.mulf %86, %109 : vector<8x1xf32>
    %111 = arith.addf %108, %110 : vector<8x1xf32>
    %112 = vector.broadcast %111 : vector<8x1xf32> to vector<8x8xf32>
    %113 = arith.subf %27, %112 : vector<8x8xf32>
    %cst_43 = arith.constant 0.000000e+00 : f32
    %114 = vector.broadcast %cst_43 : f32 to vector<8x8xf32>
    %115 = arith.cmpf ogt, %113, %114 : vector<8x8xf32>
    %cst_44 = arith.constant 1.000000e+00 : f32
    %116 = vector.broadcast %cst_44 : f32 to vector<8x8xf32>
    %117 = arith.select %115, %113, %116 : vector<8x8xi1>, vector<8x8xf32>
    %cst_45 = arith.constant 0.000000e+00 : f32
    %118 = vector.broadcast %cst_45 : f32 to vector<8x8xf32>
    %119 = arith.cmpf ogt, %113, %118 : vector<8x8xf32>
    %120 = math.log %117 : vector<8x8xf32>
    %121 = vector.broadcast %12 : f32 to vector<8x8xf32>
    %122 = arith.mulf %121, %120 : vector<8x8xf32>
    %123 = math.exp %122 : vector<8x8xf32>
    %cst_46 = arith.constant 0.000000e+00 : f32
    %124 = vector.broadcast %cst_46 : f32 to vector<8x8xf32>
    %125 = arith.select %119, %123, %124 : vector<8x8xi1>, vector<8x8xf32>
    %cst_47 = arith.constant dense<0.000000e+00> : vector<8xf32>
    %126 = vector.multi_reduction <add>, %125, %cst_47 [1] : vector<8x8xf32> to vector<8xf32>
    %127 = vector.shape_cast %126 : vector<8xf32> to vector<8x1xf32>
    %cst_48 = arith.constant 1.000000e+00 : f32
    %128 = vector.broadcast %cst_48 : f32 to vector<8x1xf32>
    %129 = arith.subf %127, %128 : vector<8x1xf32>
    %cst_49 = arith.constant 0.000000e+00 : f32
    %130 = vector.broadcast %cst_49 : f32 to vector<8x1xf32>
    %131 = arith.cmpf oge, %129, %130 : vector<8x1xf32>
    %132 = arith.select %131, %111, %108 : vector<8x1xi1>, vector<8x1xf32>
    %c4_i32 = arith.constant 4 : i32
    %cst_50 = arith.constant 5.000000e-01 : f32
    %133 = vector.broadcast %cst_50 : f32 to vector<8x1xf32>
    %134 = arith.mulf %110, %133 : vector<8x1xf32>
    %135 = arith.addf %132, %134 : vector<8x1xf32>
    %136 = vector.broadcast %135 : vector<8x1xf32> to vector<8x8xf32>
    %137 = arith.subf %27, %136 : vector<8x8xf32>
    %cst_51 = arith.constant 0.000000e+00 : f32
    %138 = vector.broadcast %cst_51 : f32 to vector<8x8xf32>
    %139 = arith.cmpf ogt, %137, %138 : vector<8x8xf32>
    %cst_52 = arith.constant 1.000000e+00 : f32
    %140 = vector.broadcast %cst_52 : f32 to vector<8x8xf32>
    %141 = arith.select %139, %137, %140 : vector<8x8xi1>, vector<8x8xf32>
    %cst_53 = arith.constant 0.000000e+00 : f32
    %142 = vector.broadcast %cst_53 : f32 to vector<8x8xf32>
    %143 = arith.cmpf ogt, %137, %142 : vector<8x8xf32>
    %144 = math.log %141 : vector<8x8xf32>
    %145 = vector.broadcast %12 : f32 to vector<8x8xf32>
    %146 = arith.mulf %145, %144 : vector<8x8xf32>
    %147 = math.exp %146 : vector<8x8xf32>
    %cst_54 = arith.constant 0.000000e+00 : f32
    %148 = vector.broadcast %cst_54 : f32 to vector<8x8xf32>
    %149 = arith.select %143, %147, %148 : vector<8x8xi1>, vector<8x8xf32>
    %cst_55 = arith.constant dense<0.000000e+00> : vector<8xf32>
    %150 = vector.multi_reduction <add>, %149, %cst_55 [1] : vector<8x8xf32> to vector<8xf32>
    %151 = vector.shape_cast %150 : vector<8xf32> to vector<8x1xf32>
    %cst_56 = arith.constant 1.000000e+00 : f32
    %152 = vector.broadcast %cst_56 : f32 to vector<8x1xf32>
    %153 = arith.subf %151, %152 : vector<8x1xf32>
    %cst_57 = arith.constant 0.000000e+00 : f32
    %154 = vector.broadcast %cst_57 : f32 to vector<8x1xf32>
    %155 = arith.cmpf oge, %153, %154 : vector<8x1xf32>
    %156 = arith.select %155, %135, %132 : vector<8x1xi1>, vector<8x1xf32>
    %c5_i32 = arith.constant 5 : i32
    %cst_58 = arith.constant 5.000000e-01 : f32
    %157 = vector.broadcast %cst_58 : f32 to vector<8x1xf32>
    %158 = arith.mulf %134, %157 : vector<8x1xf32>
    %159 = arith.addf %156, %158 : vector<8x1xf32>
    %160 = vector.broadcast %159 : vector<8x1xf32> to vector<8x8xf32>
    %161 = arith.subf %27, %160 : vector<8x8xf32>
    %cst_59 = arith.constant 0.000000e+00 : f32
    %162 = vector.broadcast %cst_59 : f32 to vector<8x8xf32>
    %163 = arith.cmpf ogt, %161, %162 : vector<8x8xf32>
    %cst_60 = arith.constant 1.000000e+00 : f32
    %164 = vector.broadcast %cst_60 : f32 to vector<8x8xf32>
    %165 = arith.select %163, %161, %164 : vector<8x8xi1>, vector<8x8xf32>
    %cst_61 = arith.constant 0.000000e+00 : f32
    %166 = vector.broadcast %cst_61 : f32 to vector<8x8xf32>
    %167 = arith.cmpf ogt, %161, %166 : vector<8x8xf32>
    %168 = math.log %165 : vector<8x8xf32>
    %169 = vector.broadcast %12 : f32 to vector<8x8xf32>
    %170 = arith.mulf %169, %168 : vector<8x8xf32>
    %171 = math.exp %170 : vector<8x8xf32>
    %cst_62 = arith.constant 0.000000e+00 : f32
    %172 = vector.broadcast %cst_62 : f32 to vector<8x8xf32>
    %173 = arith.select %167, %171, %172 : vector<8x8xi1>, vector<8x8xf32>
    %cst_63 = arith.constant dense<0.000000e+00> : vector<8xf32>
    %174 = vector.multi_reduction <add>, %173, %cst_63 [1] : vector<8x8xf32> to vector<8xf32>
    %175 = vector.shape_cast %174 : vector<8xf32> to vector<8x1xf32>
    %cst_64 = arith.constant 1.000000e+00 : f32
    %176 = vector.broadcast %cst_64 : f32 to vector<8x1xf32>
    %177 = arith.subf %175, %176 : vector<8x1xf32>
    %cst_65 = arith.constant 0.000000e+00 : f32
    %178 = vector.broadcast %cst_65 : f32 to vector<8x1xf32>
    %179 = arith.cmpf oge, %177, %178 : vector<8x1xf32>
    %180 = arith.select %179, %159, %156 : vector<8x1xi1>, vector<8x1xf32>
    %c6_i32 = arith.constant 6 : i32
    %cst_66 = arith.constant 5.000000e-01 : f32
    %181 = vector.broadcast %cst_66 : f32 to vector<8x1xf32>
    %182 = arith.mulf %158, %181 : vector<8x1xf32>
    %183 = arith.addf %180, %182 : vector<8x1xf32>
    %184 = vector.broadcast %183 : vector<8x1xf32> to vector<8x8xf32>
    %185 = arith.subf %27, %184 : vector<8x8xf32>
    %cst_67 = arith.constant 0.000000e+00 : f32
    %186 = vector.broadcast %cst_67 : f32 to vector<8x8xf32>
    %187 = arith.cmpf ogt, %185, %186 : vector<8x8xf32>
    %cst_68 = arith.constant 1.000000e+00 : f32
    %188 = vector.broadcast %cst_68 : f32 to vector<8x8xf32>
    %189 = arith.select %187, %185, %188 : vector<8x8xi1>, vector<8x8xf32>
    %cst_69 = arith.constant 0.000000e+00 : f32
    %190 = vector.broadcast %cst_69 : f32 to vector<8x8xf32>
    %191 = arith.cmpf ogt, %185, %190 : vector<8x8xf32>
    %192 = math.log %189 : vector<8x8xf32>
    %193 = vector.broadcast %12 : f32 to vector<8x8xf32>
    %194 = arith.mulf %193, %192 : vector<8x8xf32>
    %195 = math.exp %194 : vector<8x8xf32>
    %cst_70 = arith.constant 0.000000e+00 : f32
    %196 = vector.broadcast %cst_70 : f32 to vector<8x8xf32>
    %197 = arith.select %191, %195, %196 : vector<8x8xi1>, vector<8x8xf32>
    %cst_71 = arith.constant dense<0.000000e+00> : vector<8xf32>
    %198 = vector.multi_reduction <add>, %197, %cst_71 [1] : vector<8x8xf32> to vector<8xf32>
    %199 = vector.shape_cast %198 : vector<8xf32> to vector<8x1xf32>
    %cst_72 = arith.constant 1.000000e+00 : f32
    %200 = vector.broadcast %cst_72 : f32 to vector<8x1xf32>
    %201 = arith.subf %199, %200 : vector<8x1xf32>
    %cst_73 = arith.constant 0.000000e+00 : f32
    %202 = vector.broadcast %cst_73 : f32 to vector<8x1xf32>
    %203 = arith.cmpf oge, %201, %202 : vector<8x1xf32>
    %204 = arith.select %203, %183, %180 : vector<8x1xi1>, vector<8x1xf32>
    %c7_i32 = arith.constant 7 : i32
    %cst_74 = arith.constant 5.000000e-01 : f32
    %205 = vector.broadcast %cst_74 : f32 to vector<8x1xf32>
    %206 = arith.mulf %182, %205 : vector<8x1xf32>
    %207 = arith.addf %204, %206 : vector<8x1xf32>
    %208 = vector.broadcast %207 : vector<8x1xf32> to vector<8x8xf32>
    %209 = arith.subf %27, %208 : vector<8x8xf32>
    %cst_75 = arith.constant 0.000000e+00 : f32
    %210 = vector.broadcast %cst_75 : f32 to vector<8x8xf32>
    %211 = arith.cmpf ogt, %209, %210 : vector<8x8xf32>
    %cst_76 = arith.constant 1.000000e+00 : f32
    %212 = vector.broadcast %cst_76 : f32 to vector<8x8xf32>
    %213 = arith.select %211, %209, %212 : vector<8x8xi1>, vector<8x8xf32>
    %cst_77 = arith.constant 0.000000e+00 : f32
    %214 = vector.broadcast %cst_77 : f32 to vector<8x8xf32>
    %215 = arith.cmpf ogt, %209, %214 : vector<8x8xf32>
    %216 = math.log %213 : vector<8x8xf32>
    %217 = vector.broadcast %12 : f32 to vector<8x8xf32>
    %218 = arith.mulf %217, %216 : vector<8x8xf32>
    %219 = math.exp %218 : vector<8x8xf32>
    %cst_78 = arith.constant 0.000000e+00 : f32
    %220 = vector.broadcast %cst_78 : f32 to vector<8x8xf32>
    %221 = arith.select %215, %219, %220 : vector<8x8xi1>, vector<8x8xf32>
    %cst_79 = arith.constant dense<0.000000e+00> : vector<8xf32>
    %222 = vector.multi_reduction <add>, %221, %cst_79 [1] : vector<8x8xf32> to vector<8xf32>
    %223 = vector.shape_cast %222 : vector<8xf32> to vector<8x1xf32>
    %cst_80 = arith.constant 1.000000e+00 : f32
    %224 = vector.broadcast %cst_80 : f32 to vector<8x1xf32>
    %225 = arith.subf %223, %224 : vector<8x1xf32>
    %cst_81 = arith.constant 0.000000e+00 : f32
    %226 = vector.broadcast %cst_81 : f32 to vector<8x1xf32>
    %227 = arith.cmpf oge, %225, %226 : vector<8x1xf32>
    %228 = arith.select %227, %207, %204 : vector<8x1xi1>, vector<8x1xf32>
    %c8_i32_82 = arith.constant 8 : i32
    %cst_83 = arith.constant 5.000000e-01 : f32
    %229 = vector.broadcast %cst_83 : f32 to vector<8x1xf32>
    %230 = arith.mulf %206, %229 : vector<8x1xf32>
    %231 = arith.addf %228, %230 : vector<8x1xf32>
    %232 = vector.broadcast %231 : vector<8x1xf32> to vector<8x8xf32>
    %233 = arith.subf %27, %232 : vector<8x8xf32>
    %cst_84 = arith.constant 0.000000e+00 : f32
    %234 = vector.broadcast %cst_84 : f32 to vector<8x8xf32>
    %235 = arith.cmpf ogt, %233, %234 : vector<8x8xf32>
    %cst_85 = arith.constant 1.000000e+00 : f32
    %236 = vector.broadcast %cst_85 : f32 to vector<8x8xf32>
    %237 = arith.select %235, %233, %236 : vector<8x8xi1>, vector<8x8xf32>
    %cst_86 = arith.constant 0.000000e+00 : f32
    %238 = vector.broadcast %cst_86 : f32 to vector<8x8xf32>
    %239 = arith.cmpf ogt, %233, %238 : vector<8x8xf32>
    %240 = math.log %237 : vector<8x8xf32>
    %241 = vector.broadcast %12 : f32 to vector<8x8xf32>
    %242 = arith.mulf %241, %240 : vector<8x8xf32>
    %243 = math.exp %242 : vector<8x8xf32>
    %cst_87 = arith.constant 0.000000e+00 : f32
    %244 = vector.broadcast %cst_87 : f32 to vector<8x8xf32>
    %245 = arith.select %239, %243, %244 : vector<8x8xi1>, vector<8x8xf32>
    %cst_88 = arith.constant dense<0.000000e+00> : vector<8xf32>
    %246 = vector.multi_reduction <add>, %245, %cst_88 [1] : vector<8x8xf32> to vector<8xf32>
    %247 = vector.shape_cast %246 : vector<8xf32> to vector<8x1xf32>
    %cst_89 = arith.constant 1.000000e+00 : f32
    %248 = vector.broadcast %cst_89 : f32 to vector<8x1xf32>
    %249 = arith.subf %247, %248 : vector<8x1xf32>
    %cst_90 = arith.constant 0.000000e+00 : f32
    %250 = vector.broadcast %cst_90 : f32 to vector<8x1xf32>
    %251 = arith.cmpf oge, %249, %250 : vector<8x1xf32>
    %252 = arith.select %251, %231, %228 : vector<8x1xi1>, vector<8x1xf32>
    %c9_i32 = arith.constant 9 : i32
    %cst_91 = arith.constant 5.000000e-01 : f32
    %253 = vector.broadcast %cst_91 : f32 to vector<8x1xf32>
    %254 = arith.mulf %230, %253 : vector<8x1xf32>
    %255 = arith.addf %252, %254 : vector<8x1xf32>
    %256 = vector.broadcast %255 : vector<8x1xf32> to vector<8x8xf32>
    %257 = arith.subf %27, %256 : vector<8x8xf32>
    %cst_92 = arith.constant 0.000000e+00 : f32
    %258 = vector.broadcast %cst_92 : f32 to vector<8x8xf32>
    %259 = arith.cmpf ogt, %257, %258 : vector<8x8xf32>
    %cst_93 = arith.constant 1.000000e+00 : f32
    %260 = vector.broadcast %cst_93 : f32 to vector<8x8xf32>
    %261 = arith.select %259, %257, %260 : vector<8x8xi1>, vector<8x8xf32>
    %cst_94 = arith.constant 0.000000e+00 : f32
    %262 = vector.broadcast %cst_94 : f32 to vector<8x8xf32>
    %263 = arith.cmpf ogt, %257, %262 : vector<8x8xf32>
    %264 = math.log %261 : vector<8x8xf32>
    %265 = vector.broadcast %12 : f32 to vector<8x8xf32>
    %266 = arith.mulf %265, %264 : vector<8x8xf32>
    %267 = math.exp %266 : vector<8x8xf32>
    %cst_95 = arith.constant 0.000000e+00 : f32
    %268 = vector.broadcast %cst_95 : f32 to vector<8x8xf32>
    %269 = arith.select %263, %267, %268 : vector<8x8xi1>, vector<8x8xf32>
    %cst_96 = arith.constant dense<0.000000e+00> : vector<8xf32>
    %270 = vector.multi_reduction <add>, %269, %cst_96 [1] : vector<8x8xf32> to vector<8xf32>
    %271 = vector.shape_cast %270 : vector<8xf32> to vector<8x1xf32>
    %cst_97 = arith.constant 1.000000e+00 : f32
    %272 = vector.broadcast %cst_97 : f32 to vector<8x1xf32>
    %273 = arith.subf %271, %272 : vector<8x1xf32>
    %cst_98 = arith.constant 0.000000e+00 : f32
    %274 = vector.broadcast %cst_98 : f32 to vector<8x1xf32>
    %275 = arith.cmpf oge, %273, %274 : vector<8x1xf32>
    %276 = arith.select %275, %255, %252 : vector<8x1xi1>, vector<8x1xf32>
    %c10_i32 = arith.constant 10 : i32
    %cst_99 = arith.constant 5.000000e-01 : f32
    %277 = vector.broadcast %cst_99 : f32 to vector<8x1xf32>
    %278 = arith.mulf %254, %277 : vector<8x1xf32>
    %279 = arith.addf %276, %278 : vector<8x1xf32>
    %280 = vector.broadcast %279 : vector<8x1xf32> to vector<8x8xf32>
    %281 = arith.subf %27, %280 : vector<8x8xf32>
    %cst_100 = arith.constant 0.000000e+00 : f32
    %282 = vector.broadcast %cst_100 : f32 to vector<8x8xf32>
    %283 = arith.cmpf ogt, %281, %282 : vector<8x8xf32>
    %cst_101 = arith.constant 1.000000e+00 : f32
    %284 = vector.broadcast %cst_101 : f32 to vector<8x8xf32>
    %285 = arith.select %283, %281, %284 : vector<8x8xi1>, vector<8x8xf32>
    %cst_102 = arith.constant 0.000000e+00 : f32
    %286 = vector.broadcast %cst_102 : f32 to vector<8x8xf32>
    %287 = arith.cmpf ogt, %281, %286 : vector<8x8xf32>
    %288 = math.log %285 : vector<8x8xf32>
    %289 = vector.broadcast %12 : f32 to vector<8x8xf32>
    %290 = arith.mulf %289, %288 : vector<8x8xf32>
    %291 = math.exp %290 : vector<8x8xf32>
    %cst_103 = arith.constant 0.000000e+00 : f32
    %292 = vector.broadcast %cst_103 : f32 to vector<8x8xf32>
    %293 = arith.select %287, %291, %292 : vector<8x8xi1>, vector<8x8xf32>
    %cst_104 = arith.constant dense<0.000000e+00> : vector<8xf32>
    %294 = vector.multi_reduction <add>, %293, %cst_104 [1] : vector<8x8xf32> to vector<8xf32>
    %295 = vector.shape_cast %294 : vector<8xf32> to vector<8x1xf32>
    %cst_105 = arith.constant 1.000000e+00 : f32
    %296 = vector.broadcast %cst_105 : f32 to vector<8x1xf32>
    %297 = arith.subf %295, %296 : vector<8x1xf32>
    %cst_106 = arith.constant 0.000000e+00 : f32
    %298 = vector.broadcast %cst_106 : f32 to vector<8x1xf32>
    %299 = arith.cmpf oge, %297, %298 : vector<8x1xf32>
    %300 = arith.select %299, %279, %276 : vector<8x1xi1>, vector<8x1xf32>
    %c11_i32 = arith.constant 11 : i32
    %cst_107 = arith.constant 5.000000e-01 : f32
    %301 = vector.broadcast %cst_107 : f32 to vector<8x1xf32>
    %302 = arith.mulf %278, %301 : vector<8x1xf32>
    %303 = arith.addf %300, %302 : vector<8x1xf32>
    %304 = vector.broadcast %303 : vector<8x1xf32> to vector<8x8xf32>
    %305 = arith.subf %27, %304 : vector<8x8xf32>
    %cst_108 = arith.constant 0.000000e+00 : f32
    %306 = vector.broadcast %cst_108 : f32 to vector<8x8xf32>
    %307 = arith.cmpf ogt, %305, %306 : vector<8x8xf32>
    %cst_109 = arith.constant 1.000000e+00 : f32
    %308 = vector.broadcast %cst_109 : f32 to vector<8x8xf32>
    %309 = arith.select %307, %305, %308 : vector<8x8xi1>, vector<8x8xf32>
    %cst_110 = arith.constant 0.000000e+00 : f32
    %310 = vector.broadcast %cst_110 : f32 to vector<8x8xf32>
    %311 = arith.cmpf ogt, %305, %310 : vector<8x8xf32>
    %312 = math.log %309 : vector<8x8xf32>
    %313 = vector.broadcast %12 : f32 to vector<8x8xf32>
    %314 = arith.mulf %313, %312 : vector<8x8xf32>
    %315 = math.exp %314 : vector<8x8xf32>
    %cst_111 = arith.constant 0.000000e+00 : f32
    %316 = vector.broadcast %cst_111 : f32 to vector<8x8xf32>
    %317 = arith.select %311, %315, %316 : vector<8x8xi1>, vector<8x8xf32>
    %cst_112 = arith.constant dense<0.000000e+00> : vector<8xf32>
    %318 = vector.multi_reduction <add>, %317, %cst_112 [1] : vector<8x8xf32> to vector<8xf32>
    %319 = vector.shape_cast %318 : vector<8xf32> to vector<8x1xf32>
    %cst_113 = arith.constant 1.000000e+00 : f32
    %320 = vector.broadcast %cst_113 : f32 to vector<8x1xf32>
    %321 = arith.subf %319, %320 : vector<8x1xf32>
    %cst_114 = arith.constant 0.000000e+00 : f32
    %322 = vector.broadcast %cst_114 : f32 to vector<8x1xf32>
    %323 = arith.cmpf oge, %321, %322 : vector<8x1xf32>
    %324 = arith.select %323, %303, %300 : vector<8x1xi1>, vector<8x1xf32>
    %c12_i32 = arith.constant 12 : i32
    %cst_115 = arith.constant 5.000000e-01 : f32
    %325 = vector.broadcast %cst_115 : f32 to vector<8x1xf32>
    %326 = arith.mulf %302, %325 : vector<8x1xf32>
    %327 = arith.addf %324, %326 : vector<8x1xf32>
    %328 = vector.broadcast %327 : vector<8x1xf32> to vector<8x8xf32>
    %329 = arith.subf %27, %328 : vector<8x8xf32>
    %cst_116 = arith.constant 0.000000e+00 : f32
    %330 = vector.broadcast %cst_116 : f32 to vector<8x8xf32>
    %331 = arith.cmpf ogt, %329, %330 : vector<8x8xf32>
    %cst_117 = arith.constant 1.000000e+00 : f32
    %332 = vector.broadcast %cst_117 : f32 to vector<8x8xf32>
    %333 = arith.select %331, %329, %332 : vector<8x8xi1>, vector<8x8xf32>
    %cst_118 = arith.constant 0.000000e+00 : f32
    %334 = vector.broadcast %cst_118 : f32 to vector<8x8xf32>
    %335 = arith.cmpf ogt, %329, %334 : vector<8x8xf32>
    %336 = math.log %333 : vector<8x8xf32>
    %337 = vector.broadcast %12 : f32 to vector<8x8xf32>
    %338 = arith.mulf %337, %336 : vector<8x8xf32>
    %339 = math.exp %338 : vector<8x8xf32>
    %cst_119 = arith.constant 0.000000e+00 : f32
    %340 = vector.broadcast %cst_119 : f32 to vector<8x8xf32>
    %341 = arith.select %335, %339, %340 : vector<8x8xi1>, vector<8x8xf32>
    %cst_120 = arith.constant dense<0.000000e+00> : vector<8xf32>
    %342 = vector.multi_reduction <add>, %341, %cst_120 [1] : vector<8x8xf32> to vector<8xf32>
    %343 = vector.shape_cast %342 : vector<8xf32> to vector<8x1xf32>
    %cst_121 = arith.constant 1.000000e+00 : f32
    %344 = vector.broadcast %cst_121 : f32 to vector<8x1xf32>
    %345 = arith.subf %343, %344 : vector<8x1xf32>
    %cst_122 = arith.constant 0.000000e+00 : f32
    %346 = vector.broadcast %cst_122 : f32 to vector<8x1xf32>
    %347 = arith.cmpf oge, %345, %346 : vector<8x1xf32>
    %348 = arith.select %347, %327, %324 : vector<8x1xi1>, vector<8x1xf32>
    %c13_i32 = arith.constant 13 : i32
    %cst_123 = arith.constant 5.000000e-01 : f32
    %349 = vector.broadcast %cst_123 : f32 to vector<8x1xf32>
    %350 = arith.mulf %326, %349 : vector<8x1xf32>
    %351 = arith.addf %348, %350 : vector<8x1xf32>
    %352 = vector.broadcast %351 : vector<8x1xf32> to vector<8x8xf32>
    %353 = arith.subf %27, %352 : vector<8x8xf32>
    %cst_124 = arith.constant 0.000000e+00 : f32
    %354 = vector.broadcast %cst_124 : f32 to vector<8x8xf32>
    %355 = arith.cmpf ogt, %353, %354 : vector<8x8xf32>
    %cst_125 = arith.constant 1.000000e+00 : f32
    %356 = vector.broadcast %cst_125 : f32 to vector<8x8xf32>
    %357 = arith.select %355, %353, %356 : vector<8x8xi1>, vector<8x8xf32>
    %cst_126 = arith.constant 0.000000e+00 : f32
    %358 = vector.broadcast %cst_126 : f32 to vector<8x8xf32>
    %359 = arith.cmpf ogt, %353, %358 : vector<8x8xf32>
    %360 = math.log %357 : vector<8x8xf32>
    %361 = vector.broadcast %12 : f32 to vector<8x8xf32>
    %362 = arith.mulf %361, %360 : vector<8x8xf32>
    %363 = math.exp %362 : vector<8x8xf32>
    %cst_127 = arith.constant 0.000000e+00 : f32
    %364 = vector.broadcast %cst_127 : f32 to vector<8x8xf32>
    %365 = arith.select %359, %363, %364 : vector<8x8xi1>, vector<8x8xf32>
    %cst_128 = arith.constant dense<0.000000e+00> : vector<8xf32>
    %366 = vector.multi_reduction <add>, %365, %cst_128 [1] : vector<8x8xf32> to vector<8xf32>
    %367 = vector.shape_cast %366 : vector<8xf32> to vector<8x1xf32>
    %cst_129 = arith.constant 1.000000e+00 : f32
    %368 = vector.broadcast %cst_129 : f32 to vector<8x1xf32>
    %369 = arith.subf %367, %368 : vector<8x1xf32>
    %cst_130 = arith.constant 0.000000e+00 : f32
    %370 = vector.broadcast %cst_130 : f32 to vector<8x1xf32>
    %371 = arith.cmpf oge, %369, %370 : vector<8x1xf32>
    %372 = arith.select %371, %351, %348 : vector<8x1xi1>, vector<8x1xf32>
    %c14_i32 = arith.constant 14 : i32
    %cst_131 = arith.constant 5.000000e-01 : f32
    %373 = vector.broadcast %cst_131 : f32 to vector<8x1xf32>
    %374 = arith.mulf %350, %373 : vector<8x1xf32>
    %375 = arith.addf %372, %374 : vector<8x1xf32>
    %376 = vector.broadcast %375 : vector<8x1xf32> to vector<8x8xf32>
    %377 = arith.subf %27, %376 : vector<8x8xf32>
    %cst_132 = arith.constant 0.000000e+00 : f32
    %378 = vector.broadcast %cst_132 : f32 to vector<8x8xf32>
    %379 = arith.cmpf ogt, %377, %378 : vector<8x8xf32>
    %cst_133 = arith.constant 1.000000e+00 : f32
    %380 = vector.broadcast %cst_133 : f32 to vector<8x8xf32>
    %381 = arith.select %379, %377, %380 : vector<8x8xi1>, vector<8x8xf32>
    %cst_134 = arith.constant 0.000000e+00 : f32
    %382 = vector.broadcast %cst_134 : f32 to vector<8x8xf32>
    %383 = arith.cmpf ogt, %377, %382 : vector<8x8xf32>
    %384 = math.log %381 : vector<8x8xf32>
    %385 = vector.broadcast %12 : f32 to vector<8x8xf32>
    %386 = arith.mulf %385, %384 : vector<8x8xf32>
    %387 = math.exp %386 : vector<8x8xf32>
    %cst_135 = arith.constant 0.000000e+00 : f32
    %388 = vector.broadcast %cst_135 : f32 to vector<8x8xf32>
    %389 = arith.select %383, %387, %388 : vector<8x8xi1>, vector<8x8xf32>
    %cst_136 = arith.constant dense<0.000000e+00> : vector<8xf32>
    %390 = vector.multi_reduction <add>, %389, %cst_136 [1] : vector<8x8xf32> to vector<8xf32>
    %391 = vector.shape_cast %390 : vector<8xf32> to vector<8x1xf32>
    %cst_137 = arith.constant 1.000000e+00 : f32
    %392 = vector.broadcast %cst_137 : f32 to vector<8x1xf32>
    %393 = arith.subf %391, %392 : vector<8x1xf32>
    %cst_138 = arith.constant 0.000000e+00 : f32
    %394 = vector.broadcast %cst_138 : f32 to vector<8x1xf32>
    %395 = arith.cmpf oge, %393, %394 : vector<8x1xf32>
    %396 = arith.select %395, %375, %372 : vector<8x1xi1>, vector<8x1xf32>
    %c15_i32 = arith.constant 15 : i32
    %cst_139 = arith.constant 5.000000e-01 : f32
    %397 = vector.broadcast %cst_139 : f32 to vector<8x1xf32>
    %398 = arith.mulf %374, %397 : vector<8x1xf32>
    %399 = arith.addf %396, %398 : vector<8x1xf32>
    %400 = vector.broadcast %399 : vector<8x1xf32> to vector<8x8xf32>
    %401 = arith.subf %27, %400 : vector<8x8xf32>
    %cst_140 = arith.constant 0.000000e+00 : f32
    %402 = vector.broadcast %cst_140 : f32 to vector<8x8xf32>
    %403 = arith.cmpf ogt, %401, %402 : vector<8x8xf32>
    %cst_141 = arith.constant 1.000000e+00 : f32
    %404 = vector.broadcast %cst_141 : f32 to vector<8x8xf32>
    %405 = arith.select %403, %401, %404 : vector<8x8xi1>, vector<8x8xf32>
    %cst_142 = arith.constant 0.000000e+00 : f32
    %406 = vector.broadcast %cst_142 : f32 to vector<8x8xf32>
    %407 = arith.cmpf ogt, %401, %406 : vector<8x8xf32>
    %408 = math.log %405 : vector<8x8xf32>
    %409 = vector.broadcast %12 : f32 to vector<8x8xf32>
    %410 = arith.mulf %409, %408 : vector<8x8xf32>
    %411 = math.exp %410 : vector<8x8xf32>
    %cst_143 = arith.constant 0.000000e+00 : f32
    %412 = vector.broadcast %cst_143 : f32 to vector<8x8xf32>
    %413 = arith.select %407, %411, %412 : vector<8x8xi1>, vector<8x8xf32>
    %cst_144 = arith.constant dense<0.000000e+00> : vector<8xf32>
    %414 = vector.multi_reduction <add>, %413, %cst_144 [1] : vector<8x8xf32> to vector<8xf32>
    %415 = vector.shape_cast %414 : vector<8xf32> to vector<8x1xf32>
    %cst_145 = arith.constant 1.000000e+00 : f32
    %416 = vector.broadcast %cst_145 : f32 to vector<8x1xf32>
    %417 = arith.subf %415, %416 : vector<8x1xf32>
    %cst_146 = arith.constant 0.000000e+00 : f32
    %418 = vector.broadcast %cst_146 : f32 to vector<8x1xf32>
    %419 = arith.cmpf oge, %417, %418 : vector<8x1xf32>
    %420 = arith.select %419, %399, %396 : vector<8x1xi1>, vector<8x1xf32>
    %421 = vector.broadcast %420 : vector<8x1xf32> to vector<8x8xf32>
    %422 = arith.subf %27, %421 : vector<8x8xf32>
    %cst_147 = arith.constant 0.000000e+00 : f32
    %423 = vector.broadcast %cst_147 : f32 to vector<8x8xf32>
    %424 = arith.cmpf ogt, %422, %423 : vector<8x8xf32>
    %cst_148 = arith.constant 1.000000e+00 : f32
    %425 = vector.broadcast %cst_148 : f32 to vector<8x8xf32>
    %426 = arith.select %424, %422, %425 : vector<8x8xi1>, vector<8x8xf32>
    %427 = math.log %426 : vector<8x8xf32>
    %428 = vector.broadcast %12 : f32 to vector<8x8xf32>
    %429 = arith.mulf %428, %427 : vector<8x8xf32>
    %430 = math.exp %429 : vector<8x8xf32>
    %cst_149 = arith.constant 0.000000e+00 : f32
    %431 = vector.broadcast %cst_149 : f32 to vector<8x8xf32>
    %432 = arith.select %424, %430, %431 : vector<8x8xi1>, vector<8x8xf32>
    %cst_150 = arith.constant dense<0.000000e+00> : vector<8xf32>
    %433 = vector.multi_reduction <add>, %432, %cst_150 [1] : vector<8x8xf32> to vector<8xf32>
    %434 = vector.shape_cast %433 : vector<8xf32> to vector<8x1xf32>
    %cst_151 = arith.constant 1.000000e+00 : f32
    %435 = vector.broadcast %cst_151 : f32 to vector<8x1xf32>
    %436 = arith.subf %434, %435 : vector<8x1xf32>
    %437 = arith.divf %432, %426 : vector<8x8xf32>
    %cst_152 = arith.constant 0.000000e+00 : f32
    %438 = vector.broadcast %cst_152 : f32 to vector<8x8xf32>
    %439 = arith.select %424, %437, %438 : vector<8x8xi1>, vector<8x8xf32>
    %cst_153 = arith.constant dense<0.000000e+00> : vector<8xf32>
    %440 = vector.multi_reduction <add>, %439, %cst_153 [1] : vector<8x8xf32> to vector<8xf32>
    %441 = vector.shape_cast %440 : vector<8xf32> to vector<8x1xf32>
    %cst_154 = arith.constant 1.000000e-30 : f32
    %442 = vector.broadcast %cst_154 : f32 to vector<8x1xf32>
    %443 = arith.maximumf %441, %442 : vector<8x1xf32>
    %444 = vector.broadcast %12 : f32 to vector<8x1xf32>
    %445 = arith.mulf %444, %443 : vector<8x1xf32>
    %446 = arith.divf %436, %445 : vector<8x1xf32>
    %447 = arith.addf %420, %446 : vector<8x1xf32>
    %448 = vector.broadcast %447 : vector<8x1xf32> to vector<8x8xf32>
    %449 = arith.subf %27, %448 : vector<8x8xf32>
    %cst_155 = arith.constant 0.000000e+00 : f32
    %450 = vector.broadcast %cst_155 : f32 to vector<8x8xf32>
    %451 = arith.cmpf ogt, %449, %450 : vector<8x8xf32>
    %cst_156 = arith.constant 1.000000e+00 : f32
    %452 = vector.broadcast %cst_156 : f32 to vector<8x8xf32>
    %453 = arith.select %451, %449, %452 : vector<8x8xi1>, vector<8x8xf32>
    %454 = math.log %453 : vector<8x8xf32>
    %455 = vector.broadcast %12 : f32 to vector<8x8xf32>
    %456 = arith.mulf %455, %454 : vector<8x8xf32>
    %457 = math.exp %456 : vector<8x8xf32>
    %cst_157 = arith.constant 0.000000e+00 : f32
    %458 = vector.broadcast %cst_157 : f32 to vector<8x8xf32>
    %459 = arith.select %451, %457, %458 : vector<8x8xi1>, vector<8x8xf32>
    %cst_158 = arith.constant dense<0.000000e+00> : vector<8xf32>
    %460 = vector.multi_reduction <add>, %459, %cst_158 [1] : vector<8x8xf32> to vector<8xf32>
    %461 = vector.shape_cast %460 : vector<8xf32> to vector<8x1xf32>
    %cst_159 = arith.constant 1.000000e+00 : f32
    %462 = vector.broadcast %cst_159 : f32 to vector<8x1xf32>
    %463 = arith.subf %461, %462 : vector<8x1xf32>
    %464 = arith.divf %459, %453 : vector<8x8xf32>
    %cst_160 = arith.constant 0.000000e+00 : f32
    %465 = vector.broadcast %cst_160 : f32 to vector<8x8xf32>
    %466 = arith.select %451, %464, %465 : vector<8x8xi1>, vector<8x8xf32>
    %cst_161 = arith.constant dense<0.000000e+00> : vector<8xf32>
    %467 = vector.multi_reduction <add>, %466, %cst_161 [1] : vector<8x8xf32> to vector<8xf32>
    %468 = vector.shape_cast %467 : vector<8xf32> to vector<8x1xf32>
    %cst_162 = arith.constant 1.000000e-30 : f32
    %469 = vector.broadcast %cst_162 : f32 to vector<8x1xf32>
    %470 = arith.maximumf %468, %469 : vector<8x1xf32>
    %471 = vector.broadcast %12 : f32 to vector<8x1xf32>
    %472 = arith.mulf %471, %470 : vector<8x1xf32>
    %473 = arith.divf %463, %472 : vector<8x1xf32>
    %474 = arith.addf %447, %473 : vector<8x1xf32>
    %475 = vector.broadcast %474 : vector<8x1xf32> to vector<8x8xf32>
    %476 = arith.subf %27, %475 : vector<8x8xf32>
    %cst_163 = arith.constant 0.000000e+00 : f32
    %477 = vector.broadcast %cst_163 : f32 to vector<8x8xf32>
    %478 = arith.cmpf ogt, %476, %477 : vector<8x8xf32>
    %cst_164 = arith.constant 1.000000e+00 : f32
    %479 = vector.broadcast %cst_164 : f32 to vector<8x8xf32>
    %480 = arith.select %478, %476, %479 : vector<8x8xi1>, vector<8x8xf32>
    %cst_165 = arith.constant 0.000000e+00 : f32
    %481 = vector.broadcast %cst_165 : f32 to vector<8x8xf32>
    %482 = arith.cmpf ogt, %476, %481 : vector<8x8xf32>
    %483 = math.log %480 : vector<8x8xf32>
    %484 = vector.broadcast %12 : f32 to vector<8x8xf32>
    %485 = arith.mulf %484, %483 : vector<8x8xf32>
    %486 = math.exp %485 : vector<8x8xf32>
    %cst_166 = arith.constant 0.000000e+00 : f32
    %487 = vector.broadcast %cst_166 : f32 to vector<8x8xf32>
    %488 = arith.select %482, %486, %487 : vector<8x8xi1>, vector<8x8xf32>
    %cst_167 = arith.constant dense<0.000000e+00> : vector<8xf32>
    %489 = vector.multi_reduction <add>, %488, %cst_167 [1] : vector<8x8xf32> to vector<8xf32>
    %490 = vector.shape_cast %489 : vector<8xf32> to vector<8x1xf32>
    %491 = vector.broadcast %490 : vector<8x1xf32> to vector<8x8xf32>
    %492 = arith.divf %488, %491 : vector<8x8xf32>
    %493 = arith.truncf %492 : vector<8x8xf32> to vector<8x8xbf16>
    %cst_168 = arith.constant dense<0.000000e+00> : vector<8x8xf32>
    %494 = tpu.matmul %493, %18, %cst_168 {dimension_numbers = #tpu.dot_dimension_numbers<[1], [0], [0], [1], [0, 0, 1, 1], [], []>} : vector<8x8xbf16>, vector<8x8xbf16>, vector<8x8xf32> -> vector<8x8xf32>
    %495 = arith.truncf %494 : vector<8x8xf32> to vector<8x8xbf16>
    %c0_169 = arith.constant 0 : index
    %c0_170 = arith.constant 0 : index
    %c0_171 = arith.constant 0 : index
    %496 = vector.load %arg7[%c0_169, %c0_170, %c0_171] : memref<1x8x32xbf16, #tpu.memory_space<vmem>>, vector<1x8x8xbf16>
    %497 = vector.shape_cast %496 : vector<1x8x8xbf16> to vector<8x8xbf16>
    %498 = vector.shape_cast %495 : vector<8x8xbf16> to vector<1x8x8xbf16>
    tpu.vector_store %arg7[%c0_169, %c0_170, %c0_171], %498 {strides = array<i32>} : memref<1x8x32xbf16, #tpu.memory_space<vmem>>, vector<1x8x8xbf16>,
    %c1 = arith.constant 1 : index
    %499 = memref.load %arg5[%c1] : memref<4xf32, #tpu.memory_space<smem>>
    %c1_172 = arith.constant 1 : index
    %500 = memref.load %arg6[%c1_172] : memref<4xf32, #tpu.memory_space<smem>>
    %cst_173 = arith.constant 1.000000e+00 : f32
    %501 = arith.subf %499, %cst_173 : f32
    %cst_174 = arith.constant 9.99999974E-5 : f32
    %502 = arith.maximumf %501, %cst_174 : f32
    %cst_175 = arith.constant 1.000000e+00 : f32
    %503 = arith.divf %cst_175, %502 : f32
    %c0_176 = arith.constant 0 : index
    %c0_177 = arith.constant 0 : index
    %c8 = arith.constant 8 : index
    %504 = vector.load %arg2[%c0_176, %c0_177, %c8] : memref<1x8x32xbf16, #tpu.memory_space<vmem>>, vector<1x8x8xbf16>
    %505 = vector.shape_cast %504 : vector<1x8x8xbf16> to vector<8x8xbf16>
    %c0_178 = arith.constant 0 : index
    %c0_179 = arith.constant 0 : index
    %c8_180 = arith.constant 8 : index
    %506 = vector.load %arg3[%c0_178, %c0_179, %c8_180] : memref<1x8x32xbf16, #tpu.memory_space<vmem>>, vector<1x8x8xbf16>
    %507 = vector.shape_cast %506 : vector<1x8x8xbf16> to vector<8x8xbf16>
    %c0_181 = arith.constant 0 : index
    %c0_182 = arith.constant 0 : index
    %c8_183 = arith.constant 8 : index
    %508 = vector.load %arg4[%c0_181, %c0_182, %c8_183] : memref<1x8x32xbf16, #tpu.memory_space<vmem>>, vector<1x8x8xbf16>
    %509 = vector.shape_cast %508 : vector<1x8x8xbf16> to vector<8x8xbf16>
    %cst_184 = arith.constant dense<0.000000e+00> : vector<8x8xf32>
    %510 = tpu.matmul %505, %507, %cst_184 {dimension_numbers = #tpu.dot_dimension_numbers<[1], [1], [0], [0], [0, 0, 1, 0], [], []>} : vector<8x8xbf16>, vector<8x8xbf16>, vector<8x8xf32> -> vector<8x8xf32>
    %cst_185 = arith.constant 0.353553385 : f32
    %511 = vector.broadcast %cst_185 : f32 to vector<8x8xf32>
    %512 = arith.mulf %510, %511 : vector<8x8xf32>
    %513 = vector.broadcast %500 : f32 to vector<8x8xf32>
    %514 = arith.cmpf ogt, %7, %513 : vector<8x8xf32>
    %cst_186 = arith.constant 0xFF800000 : f32
    %515 = vector.broadcast %cst_186 : f32 to vector<8x8xf32>
    %516 = arith.select %514, %515, %512 : vector<8x8xi1>, vector<8x8xf32>
    %517 = vector.broadcast %502 : f32 to vector<8x8xf32>
    %518 = arith.mulf %516, %517 : vector<8x8xf32>
    %cst_187 = arith.constant dense<0xFF800000> : vector<8xf32>
    %519 = vector.multi_reduction <maximumf>, %518, %cst_187 [1] : vector<8x8xf32> to vector<8xf32>
    %520 = vector.shape_cast %519 : vector<8xf32> to vector<8x1xf32>
    %cst_188 = arith.constant 1.000000e+00 : f32
    %521 = vector.broadcast %cst_188 : f32 to vector<8x1xf32>
    %522 = arith.subf %520, %521 : vector<8x1xf32>
    %cst_189 = arith.constant -2.07944155 : f32
    %523 = arith.mulf %502, %cst_189 : f32
    %524 = vector.broadcast %523 : f32 to vector<8x1xf32>
    %525 = math.exp %524 : vector<8x1xf32>
    %526 = arith.subf %520, %525 : vector<8x1xf32>
    %527 = arith.subf %526, %522 : vector<8x1xf32>
    %c0_i32_190 = arith.constant 0 : i32
    %cst_191 = arith.constant 5.000000e-01 : f32
    %528 = vector.broadcast %cst_191 : f32 to vector<8x1xf32>
    %529 = arith.mulf %527, %528 : vector<8x1xf32>
    %530 = arith.addf %522, %529 : vector<8x1xf32>
    %531 = vector.broadcast %530 : vector<8x1xf32> to vector<8x8xf32>
    %532 = arith.subf %518, %531 : vector<8x8xf32>
    %cst_192 = arith.constant 0.000000e+00 : f32
    %533 = vector.broadcast %cst_192 : f32 to vector<8x8xf32>
    %534 = arith.cmpf ogt, %532, %533 : vector<8x8xf32>
    %cst_193 = arith.constant 1.000000e+00 : f32
    %535 = vector.broadcast %cst_193 : f32 to vector<8x8xf32>
    %536 = arith.select %534, %532, %535 : vector<8x8xi1>, vector<8x8xf32>
    %cst_194 = arith.constant 0.000000e+00 : f32
    %537 = vector.broadcast %cst_194 : f32 to vector<8x8xf32>
    %538 = arith.cmpf ogt, %532, %537 : vector<8x8xf32>
    %539 = math.log %536 : vector<8x8xf32>
    %540 = vector.broadcast %503 : f32 to vector<8x8xf32>
    %541 = arith.mulf %540, %539 : vector<8x8xf32>
    %542 = math.exp %541 : vector<8x8xf32>
    %cst_195 = arith.constant 0.000000e+00 : f32
    %543 = vector.broadcast %cst_195 : f32 to vector<8x8xf32>
    %544 = arith.select %538, %542, %543 : vector<8x8xi1>, vector<8x8xf32>
    %cst_196 = arith.constant dense<0.000000e+00> : vector<8xf32>
    %545 = vector.multi_reduction <add>, %544, %cst_196 [1] : vector<8x8xf32> to vector<8xf32>
    %546 = vector.shape_cast %545 : vector<8xf32> to vector<8x1xf32>
    %cst_197 = arith.constant 1.000000e+00 : f32
    %547 = vector.broadcast %cst_197 : f32 to vector<8x1xf32>
    %548 = arith.subf %546, %547 : vector<8x1xf32>
    %cst_198 = arith.constant 0.000000e+00 : f32
    %549 = vector.broadcast %cst_198 : f32 to vector<8x1xf32>
    %550 = arith.cmpf oge, %548, %549 : vector<8x1xf32>
    %551 = arith.select %550, %530, %522 : vector<8x1xi1>, vector<8x1xf32>
    %c1_i32_199 = arith.constant 1 : i32
    %cst_200 = arith.constant 5.000000e-01 : f32
    %552 = vector.broadcast %cst_200 : f32 to vector<8x1xf32>
    %553 = arith.mulf %529, %552 : vector<8x1xf32>
    %554 = arith.addf %551, %553 : vector<8x1xf32>
    %555 = vector.broadcast %554 : vector<8x1xf32> to vector<8x8xf32>
    %556 = arith.subf %518, %555 : vector<8x8xf32>
    %cst_201 = arith.constant 0.000000e+00 : f32
    %557 = vector.broadcast %cst_201 : f32 to vector<8x8xf32>
    %558 = arith.cmpf ogt, %556, %557 : vector<8x8xf32>
    %cst_202 = arith.constant 1.000000e+00 : f32
    %559 = vector.broadcast %cst_202 : f32 to vector<8x8xf32>
    %560 = arith.select %558, %556, %559 : vector<8x8xi1>, vector<8x8xf32>
    %cst_203 = arith.constant 0.000000e+00 : f32
    %561 = vector.broadcast %cst_203 : f32 to vector<8x8xf32>
    %562 = arith.cmpf ogt, %556, %561 : vector<8x8xf32>
    %563 = math.log %560 : vector<8x8xf32>
    %564 = vector.broadcast %503 : f32 to vector<8x8xf32>
    %565 = arith.mulf %564, %563 : vector<8x8xf32>
    %566 = math.exp %565 : vector<8x8xf32>
    %cst_204 = arith.constant 0.000000e+00 : f32
    %567 = vector.broadcast %cst_204 : f32 to vector<8x8xf32>
    %568 = arith.select %562, %566, %567 : vector<8x8xi1>, vector<8x8xf32>
    %cst_205 = arith.constant dense<0.000000e+00> : vector<8xf32>
    %569 = vector.multi_reduction <add>, %568, %cst_205 [1] : vector<8x8xf32> to vector<8xf32>
    %570 = vector.shape_cast %569 : vector<8xf32> to vector<8x1xf32>
    %cst_206 = arith.constant 1.000000e+00 : f32
    %571 = vector.broadcast %cst_206 : f32 to vector<8x1xf32>
    %572 = arith.subf %570, %571 : vector<8x1xf32>
    %cst_207 = arith.constant 0.000000e+00 : f32
    %573 = vector.broadcast %cst_207 : f32 to vector<8x1xf32>
    %574 = arith.cmpf oge, %572, %573 : vector<8x1xf32>
    %575 = arith.select %574, %554, %551 : vector<8x1xi1>, vector<8x1xf32>
    %c2_i32_208 = arith.constant 2 : i32
    %cst_209 = arith.constant 5.000000e-01 : f32
    %576 = vector.broadcast %cst_209 : f32 to vector<8x1xf32>
    %577 = arith.mulf %553, %576 : vector<8x1xf32>
    %578 = arith.addf %575, %577 : vector<8x1xf32>
    %579 = vector.broadcast %578 : vector<8x1xf32> to vector<8x8xf32>
    %580 = arith.subf %518, %579 : vector<8x8xf32>
    %cst_210 = arith.constant 0.000000e+00 : f32
    %581 = vector.broadcast %cst_210 : f32 to vector<8x8xf32>
    %582 = arith.cmpf ogt, %580, %581 : vector<8x8xf32>
    %cst_211 = arith.constant 1.000000e+00 : f32
    %583 = vector.broadcast %cst_211 : f32 to vector<8x8xf32>
    %584 = arith.select %582, %580, %583 : vector<8x8xi1>, vector<8x8xf32>
    %cst_212 = arith.constant 0.000000e+00 : f32
    %585 = vector.broadcast %cst_212 : f32 to vector<8x8xf32>
    %586 = arith.cmpf ogt, %580, %585 : vector<8x8xf32>
    %587 = math.log %584 : vector<8x8xf32>
    %588 = vector.broadcast %503 : f32 to vector<8x8xf32>
    %589 = arith.mulf %588, %587 : vector<8x8xf32>
    %590 = math.exp %589 : vector<8x8xf32>
    %cst_213 = arith.constant 0.000000e+00 : f32
    %591 = vector.broadcast %cst_213 : f32 to vector<8x8xf32>
    %592 = arith.select %586, %590, %591 : vector<8x8xi1>, vector<8x8xf32>
    %cst_214 = arith.constant dense<0.000000e+00> : vector<8xf32>
    %593 = vector.multi_reduction <add>, %592, %cst_214 [1] : vector<8x8xf32> to vector<8xf32>
    %594 = vector.shape_cast %593 : vector<8xf32> to vector<8x1xf32>
    %cst_215 = arith.constant 1.000000e+00 : f32
    %595 = vector.broadcast %cst_215 : f32 to vector<8x1xf32>
    %596 = arith.subf %594, %595 : vector<8x1xf32>
    %cst_216 = arith.constant 0.000000e+00 : f32
    %597 = vector.broadcast %cst_216 : f32 to vector<8x1xf32>
    %598 = arith.cmpf oge, %596, %597 : vector<8x1xf32>
    %599 = arith.select %598, %578, %575 : vector<8x1xi1>, vector<8x1xf32>
    %c3_i32_217 = arith.constant 3 : i32
    %cst_218 = arith.constant 5.000000e-01 : f32
    %600 = vector.broadcast %cst_218 : f32 to vector<8x1xf32>
    %601 = arith.mulf %577, %600 : vector<8x1xf32>
    %602 = arith.addf %599, %601 : vector<8x1xf32>
    %603 = vector.broadcast %602 : vector<8x1xf32> to vector<8x8xf32>
    %604 = arith.subf %518, %603 : vector<8x8xf32>
    %cst_219 = arith.constant 0.000000e+00 : f32
    %605 = vector.broadcast %cst_219 : f32 to vector<8x8xf32>
    %606 = arith.cmpf ogt, %604, %605 : vector<8x8xf32>
    %cst_220 = arith.constant 1.000000e+00 : f32
    %607 = vector.broadcast %cst_220 : f32 to vector<8x8xf32>
    %608 = arith.select %606, %604, %607 : vector<8x8xi1>, vector<8x8xf32>
    %cst_221 = arith.constant 0.000000e+00 : f32
    %609 = vector.broadcast %cst_221 : f32 to vector<8x8xf32>
    %610 = arith.cmpf ogt, %604, %609 : vector<8x8xf32>
    %611 = math.log %608 : vector<8x8xf32>
    %612 = vector.broadcast %503 : f32 to vector<8x8xf32>
    %613 = arith.mulf %612, %611 : vector<8x8xf32>
    %614 = math.exp %613 : vector<8x8xf32>
    %cst_222 = arith.constant 0.000000e+00 : f32
    %615 = vector.broadcast %cst_222 : f32 to vector<8x8xf32>
    %616 = arith.select %610, %614, %615 : vector<8x8xi1>, vector<8x8xf32>
    %cst_223 = arith.constant dense<0.000000e+00> : vector<8xf32>
    %617 = vector.multi_reduction <add>, %616, %cst_223 [1] : vector<8x8xf32> to vector<8xf32>
    %618 = vector.shape_cast %617 : vector<8xf32> to vector<8x1xf32>
    %cst_224 = arith.constant 1.000000e+00 : f32
    %619 = vector.broadcast %cst_224 : f32 to vector<8x1xf32>
    %620 = arith.subf %618, %619 : vector<8x1xf32>
    %cst_225 = arith.constant 0.000000e+00 : f32
    %621 = vector.broadcast %cst_225 : f32 to vector<8x1xf32>
    %622 = arith.cmpf oge, %620, %621 : vector<8x1xf32>
    %623 = arith.select %622, %602, %599 : vector<8x1xi1>, vector<8x1xf32>
    %c4_i32_226 = arith.constant 4 : i32
    %cst_227 = arith.constant 5.000000e-01 : f32
    %624 = vector.broadcast %cst_227 : f32 to vector<8x1xf32>
    %625 = arith.mulf %601, %624 : vector<8x1xf32>
    %626 = arith.addf %623, %625 : vector<8x1xf32>
    %627 = vector.broadcast %626 : vector<8x1xf32> to vector<8x8xf32>
    %628 = arith.subf %518, %627 : vector<8x8xf32>
    %cst_228 = arith.constant 0.000000e+00 : f32
    %629 = vector.broadcast %cst_228 : f32 to vector<8x8xf32>
    %630 = arith.cmpf ogt, %628, %629 : vector<8x8xf32>
    %cst_229 = arith.constant 1.000000e+00 : f32
    %631 = vector.broadcast %cst_229 : f32 to vector<8x8xf32>
    %632 = arith.select %630, %628, %631 : vector<8x8xi1>, vector<8x8xf32>
    %cst_230 = arith.constant 0.000000e+00 : f32
    %633 = vector.broadcast %cst_230 : f32 to vector<8x8xf32>
    %634 = arith.cmpf ogt, %628, %633 : vector<8x8xf32>
    %635 = math.log %632 : vector<8x8xf32>
    %636 = vector.broadcast %503 : f32 to vector<8x8xf32>
    %637 = arith.mulf %636, %635 : vector<8x8xf32>
    %638 = math.exp %637 : vector<8x8xf32>
    %cst_231 = arith.constant 0.000000e+00 : f32
    %639 = vector.broadcast %cst_231 : f32 to vector<8x8xf32>
    %640 = arith.select %634, %638, %639 : vector<8x8xi1>, vector<8x8xf32>
    %cst_232 = arith.constant dense<0.000000e+00> : vector<8xf32>
    %641 = vector.multi_reduction <add>, %640, %cst_232 [1] : vector<8x8xf32> to vector<8xf32>
    %642 = vector.shape_cast %641 : vector<8xf32> to vector<8x1xf32>
    %cst_233 = arith.constant 1.000000e+00 : f32
    %643 = vector.broadcast %cst_233 : f32 to vector<8x1xf32>
    %644 = arith.subf %642, %643 : vector<8x1xf32>
    %cst_234 = arith.constant 0.000000e+00 : f32
    %645 = vector.broadcast %cst_234 : f32 to vector<8x1xf32>
    %646 = arith.cmpf oge, %644, %645 : vector<8x1xf32>
    %647 = arith.select %646, %626, %623 : vector<8x1xi1>, vector<8x1xf32>
    %c5_i32_235 = arith.constant 5 : i32
    %cst_236 = arith.constant 5.000000e-01 : f32
    %648 = vector.broadcast %cst_236 : f32 to vector<8x1xf32>
    %649 = arith.mulf %625, %648 : vector<8x1xf32>
    %650 = arith.addf %647, %649 : vector<8x1xf32>
    %651 = vector.broadcast %650 : vector<8x1xf32> to vector<8x8xf32>
    %652 = arith.subf %518, %651 : vector<8x8xf32>
    %cst_237 = arith.constant 0.000000e+00 : f32
    %653 = vector.broadcast %cst_237 : f32 to vector<8x8xf32>
    %654 = arith.cmpf ogt, %652, %653 : vector<8x8xf32>
    %cst_238 = arith.constant 1.000000e+00 : f32
    %655 = vector.broadcast %cst_238 : f32 to vector<8x8xf32>
    %656 = arith.select %654, %652, %655 : vector<8x8xi1>, vector<8x8xf32>
    %cst_239 = arith.constant 0.000000e+00 : f32
    %657 = vector.broadcast %cst_239 : f32 to vector<8x8xf32>
    %658 = arith.cmpf ogt, %652, %657 : vector<8x8xf32>
    %659 = math.log %656 : vector<8x8xf32>
    %660 = vector.broadcast %503 : f32 to vector<8x8xf32>
    %661 = arith.mulf %660, %659 : vector<8x8xf32>
    %662 = math.exp %661 : vector<8x8xf32>
    %cst_240 = arith.constant 0.000000e+00 : f32
    %663 = vector.broadcast %cst_240 : f32 to vector<8x8xf32>
    %664 = arith.select %658, %662, %663 : vector<8x8xi1>, vector<8x8xf32>
    %cst_241 = arith.constant dense<0.000000e+00> : vector<8xf32>
    %665 = vector.multi_reduction <add>, %664, %cst_241 [1] : vector<8x8xf32> to vector<8xf32>
    %666 = vector.shape_cast %665 : vector<8xf32> to vector<8x1xf32>
    %cst_242 = arith.constant 1.000000e+00 : f32
    %667 = vector.broadcast %cst_242 : f32 to vector<8x1xf32>
    %668 = arith.subf %666, %667 : vector<8x1xf32>
    %cst_243 = arith.constant 0.000000e+00 : f32
    %669 = vector.broadcast %cst_243 : f32 to vector<8x1xf32>
    %670 = arith.cmpf oge, %668, %669 : vector<8x1xf32>
    %671 = arith.select %670, %650, %647 : vector<8x1xi1>, vector<8x1xf32>
    %c6_i32_244 = arith.constant 6 : i32
    %cst_245 = arith.constant 5.000000e-01 : f32
    %672 = vector.broadcast %cst_245 : f32 to vector<8x1xf32>
    %673 = arith.mulf %649, %672 : vector<8x1xf32>
    %674 = arith.addf %671, %673 : vector<8x1xf32>
    %675 = vector.broadcast %674 : vector<8x1xf32> to vector<8x8xf32>
    %676 = arith.subf %518, %675 : vector<8x8xf32>
    %cst_246 = arith.constant 0.000000e+00 : f32
    %677 = vector.broadcast %cst_246 : f32 to vector<8x8xf32>
    %678 = arith.cmpf ogt, %676, %677 : vector<8x8xf32>
    %cst_247 = arith.constant 1.000000e+00 : f32
    %679 = vector.broadcast %cst_247 : f32 to vector<8x8xf32>
    %680 = arith.select %678, %676, %679 : vector<8x8xi1>, vector<8x8xf32>
    %cst_248 = arith.constant 0.000000e+00 : f32
    %681 = vector.broadcast %cst_248 : f32 to vector<8x8xf32>
    %682 = arith.cmpf ogt, %676, %681 : vector<8x8xf32>
    %683 = math.log %680 : vector<8x8xf32>
    %684 = vector.broadcast %503 : f32 to vector<8x8xf32>
    %685 = arith.mulf %684, %683 : vector<8x8xf32>
    %686 = math.exp %685 : vector<8x8xf32>
    %cst_249 = arith.constant 0.000000e+00 : f32
    %687 = vector.broadcast %cst_249 : f32 to vector<8x8xf32>
    %688 = arith.select %682, %686, %687 : vector<8x8xi1>, vector<8x8xf32>
    %cst_250 = arith.constant dense<0.000000e+00> : vector<8xf32>
    %689 = vector.multi_reduction <add>, %688, %cst_250 [1] : vector<8x8xf32> to vector<8xf32>
    %690 = vector.shape_cast %689 : vector<8xf32> to vector<8x1xf32>
    %cst_251 = arith.constant 1.000000e+00 : f32
    %691 = vector.broadcast %cst_251 : f32 to vector<8x1xf32>
    %692 = arith.subf %690, %691 : vector<8x1xf32>
    %cst_252 = arith.constant 0.000000e+00 : f32
    %693 = vector.broadcast %cst_252 : f32 to vector<8x1xf32>
    %694 = arith.cmpf oge, %692, %693 : vector<8x1xf32>
    %695 = arith.select %694, %674, %671 : vector<8x1xi1>, vector<8x1xf32>
    %c7_i32_253 = arith.constant 7 : i32
    %cst_254 = arith.constant 5.000000e-01 : f32
    %696 = vector.broadcast %cst_254 : f32 to vector<8x1xf32>
    %697 = arith.mulf %673, %696 : vector<8x1xf32>
    %698 = arith.addf %695, %697 : vector<8x1xf32>
    %699 = vector.broadcast %698 : vector<8x1xf32> to vector<8x8xf32>
    %700 = arith.subf %518, %699 : vector<8x8xf32>
    %cst_255 = arith.constant 0.000000e+00 : f32
    %701 = vector.broadcast %cst_255 : f32 to vector<8x8xf32>
    %702 = arith.cmpf ogt, %700, %701 : vector<8x8xf32>
    %cst_256 = arith.constant 1.000000e+00 : f32
    %703 = vector.broadcast %cst_256 : f32 to vector<8x8xf32>
    %704 = arith.select %702, %700, %703 : vector<8x8xi1>, vector<8x8xf32>
    %cst_257 = arith.constant 0.000000e+00 : f32
    %705 = vector.broadcast %cst_257 : f32 to vector<8x8xf32>
    %706 = arith.cmpf ogt, %700, %705 : vector<8x8xf32>
    %707 = math.log %704 : vector<8x8xf32>
    %708 = vector.broadcast %503 : f32 to vector<8x8xf32>
    %709 = arith.mulf %708, %707 : vector<8x8xf32>
    %710 = math.exp %709 : vector<8x8xf32>
    %cst_258 = arith.constant 0.000000e+00 : f32
    %711 = vector.broadcast %cst_258 : f32 to vector<8x8xf32>
    %712 = arith.select %706, %710, %711 : vector<8x8xi1>, vector<8x8xf32>
    %cst_259 = arith.constant dense<0.000000e+00> : vector<8xf32>
    %713 = vector.multi_reduction <add>, %712, %cst_259 [1] : vector<8x8xf32> to vector<8xf32>
    %714 = vector.shape_cast %713 : vector<8xf32> to vector<8x1xf32>
    %cst_260 = arith.constant 1.000000e+00 : f32
    %715 = vector.broadcast %cst_260 : f32 to vector<8x1xf32>
    %716 = arith.subf %714, %715 : vector<8x1xf32>
    %cst_261 = arith.constant 0.000000e+00 : f32
    %717 = vector.broadcast %cst_261 : f32 to vector<8x1xf32>
    %718 = arith.cmpf oge, %716, %717 : vector<8x1xf32>
    %719 = arith.select %718, %698, %695 : vector<8x1xi1>, vector<8x1xf32>
    %c8_i32_262 = arith.constant 8 : i32
    %cst_263 = arith.constant 5.000000e-01 : f32
    %720 = vector.broadcast %cst_263 : f32 to vector<8x1xf32>
    %721 = arith.mulf %697, %720 : vector<8x1xf32>
    %722 = arith.addf %719, %721 : vector<8x1xf32>
    %723 = vector.broadcast %722 : vector<8x1xf32> to vector<8x8xf32>
    %724 = arith.subf %518, %723 : vector<8x8xf32>
    %cst_264 = arith.constant 0.000000e+00 : f32
    %725 = vector.broadcast %cst_264 : f32 to vector<8x8xf32>
    %726 = arith.cmpf ogt, %724, %725 : vector<8x8xf32>
    %cst_265 = arith.constant 1.000000e+00 : f32
    %727 = vector.broadcast %cst_265 : f32 to vector<8x8xf32>
    %728 = arith.select %726, %724, %727 : vector<8x8xi1>, vector<8x8xf32>
    %cst_266 = arith.constant 0.000000e+00 : f32
    %729 = vector.broadcast %cst_266 : f32 to vector<8x8xf32>
    %730 = arith.cmpf ogt, %724, %729 : vector<8x8xf32>
    %731 = math.log %728 : vector<8x8xf32>
    %732 = vector.broadcast %503 : f32 to vector<8x8xf32>
    %733 = arith.mulf %732, %731 : vector<8x8xf32>
    %734 = math.exp %733 : vector<8x8xf32>
    %cst_267 = arith.constant 0.000000e+00 : f32
    %735 = vector.broadcast %cst_267 : f32 to vector<8x8xf32>
    %736 = arith.select %730, %734, %735 : vector<8x8xi1>, vector<8x8xf32>
    %cst_268 = arith.constant dense<0.000000e+00> : vector<8xf32>
    %737 = vector.multi_reduction <add>, %736, %cst_268 [1] : vector<8x8xf32> to vector<8xf32>
    %738 = vector.shape_cast %737 : vector<8xf32> to vector<8x1xf32>
    %cst_269 = arith.constant 1.000000e+00 : f32
    %739 = vector.broadcast %cst_269 : f32 to vector<8x1xf32>
    %740 = arith.subf %738, %739 : vector<8x1xf32>
    %cst_270 = arith.constant 0.000000e+00 : f32
    %741 = vector.broadcast %cst_270 : f32 to vector<8x1xf32>
    %742 = arith.cmpf oge, %740, %741 : vector<8x1xf32>
    %743 = arith.select %742, %722, %719 : vector<8x1xi1>, vector<8x1xf32>
    %c9_i32_271 = arith.constant 9 : i32
    %cst_272 = arith.constant 5.000000e-01 : f32
    %744 = vector.broadcast %cst_272 : f32 to vector<8x1xf32>
    %745 = arith.mulf %721, %744 : vector<8x1xf32>
    %746 = arith.addf %743, %745 : vector<8x1xf32>
    %747 = vector.broadcast %746 : vector<8x1xf32> to vector<8x8xf32>
    %748 = arith.subf %518, %747 : vector<8x8xf32>
    %cst_273 = arith.constant 0.000000e+00 : f32
    %749 = vector.broadcast %cst_273 : f32 to vector<8x8xf32>
    %750 = arith.cmpf ogt, %748, %749 : vector<8x8xf32>
    %cst_274 = arith.constant 1.000000e+00 : f32
    %751 = vector.broadcast %cst_274 : f32 to vector<8x8xf32>
    %752 = arith.select %750, %748, %751 : vector<8x8xi1>, vector<8x8xf32>
    %cst_275 = arith.constant 0.000000e+00 : f32
    %753 = vector.broadcast %cst_275 : f32 to vector<8x8xf32>
    %754 = arith.cmpf ogt, %748, %753 : vector<8x8xf32>
    %755 = math.log %752 : vector<8x8xf32>
    %756 = vector.broadcast %503 : f32 to vector<8x8xf32>
    %757 = arith.mulf %756, %755 : vector<8x8xf32>
    %758 = math.exp %757 : vector<8x8xf32>
    %cst_276 = arith.constant 0.000000e+00 : f32
    %759 = vector.broadcast %cst_276 : f32 to vector<8x8xf32>
    %760 = arith.select %754, %758, %759 : vector<8x8xi1>, vector<8x8xf32>
    %cst_277 = arith.constant dense<0.000000e+00> : vector<8xf32>
    %761 = vector.multi_reduction <add>, %760, %cst_277 [1] : vector<8x8xf32> to vector<8xf32>
    %762 = vector.shape_cast %761 : vector<8xf32> to vector<8x1xf32>
    %cst_278 = arith.constant 1.000000e+00 : f32
    %763 = vector.broadcast %cst_278 : f32 to vector<8x1xf32>
    %764 = arith.subf %762, %763 : vector<8x1xf32>
    %cst_279 = arith.constant 0.000000e+00 : f32
    %765 = vector.broadcast %cst_279 : f32 to vector<8x1xf32>
    %766 = arith.cmpf oge, %764, %765 : vector<8x1xf32>
    %767 = arith.select %766, %746, %743 : vector<8x1xi1>, vector<8x1xf32>
    %c10_i32_280 = arith.constant 10 : i32
    %cst_281 = arith.constant 5.000000e-01 : f32
    %768 = vector.broadcast %cst_281 : f32 to vector<8x1xf32>
    %769 = arith.mulf %745, %768 : vector<8x1xf32>
    %770 = arith.addf %767, %769 : vector<8x1xf32>
    %771 = vector.broadcast %770 : vector<8x1xf32> to vector<8x8xf32>
    %772 = arith.subf %518, %771 : vector<8x8xf32>
    %cst_282 = arith.constant 0.000000e+00 : f32
    %773 = vector.broadcast %cst_282 : f32 to vector<8x8xf32>
    %774 = arith.cmpf ogt, %772, %773 : vector<8x8xf32>
    %cst_283 = arith.constant 1.000000e+00 : f32
    %775 = vector.broadcast %cst_283 : f32 to vector<8x8xf32>
    %776 = arith.select %774, %772, %775 : vector<8x8xi1>, vector<8x8xf32>
    %cst_284 = arith.constant 0.000000e+00 : f32
    %777 = vector.broadcast %cst_284 : f32 to vector<8x8xf32>
    %778 = arith.cmpf ogt, %772, %777 : vector<8x8xf32>
    %779 = math.log %776 : vector<8x8xf32>
    %780 = vector.broadcast %503 : f32 to vector<8x8xf32>
    %781 = arith.mulf %780, %779 : vector<8x8xf32>
    %782 = math.exp %781 : vector<8x8xf32>
    %cst_285 = arith.constant 0.000000e+00 : f32
    %783 = vector.broadcast %cst_285 : f32 to vector<8x8xf32>
    %784 = arith.select %778, %782, %783 : vector<8x8xi1>, vector<8x8xf32>
    %cst_286 = arith.constant dense<0.000000e+00> : vector<8xf32>
    %785 = vector.multi_reduction <add>, %784, %cst_286 [1] : vector<8x8xf32> to vector<8xf32>
    %786 = vector.shape_cast %785 : vector<8xf32> to vector<8x1xf32>
    %cst_287 = arith.constant 1.000000e+00 : f32
    %787 = vector.broadcast %cst_287 : f32 to vector<8x1xf32>
    %788 = arith.subf %786, %787 : vector<8x1xf32>
    %cst_288 = arith.constant 0.000000e+00 : f32
    %789 = vector.broadcast %cst_288 : f32 to vector<8x1xf32>
    %790 = arith.cmpf oge, %788, %789 : vector<8x1xf32>
    %791 = arith.select %790, %770, %767 : vector<8x1xi1>, vector<8x1xf32>
    %c11_i32_289 = arith.constant 11 : i32
    %cst_290 = arith.constant 5.000000e-01 : f32
    %792 = vector.broadcast %cst_290 : f32 to vector<8x1xf32>
    %793 = arith.mulf %769, %792 : vector<8x1xf32>
    %794 = arith.addf %791, %793 : vector<8x1xf32>
    %795 = vector.broadcast %794 : vector<8x1xf32> to vector<8x8xf32>
    %796 = arith.subf %518, %795 : vector<8x8xf32>
    %cst_291 = arith.constant 0.000000e+00 : f32
    %797 = vector.broadcast %cst_291 : f32 to vector<8x8xf32>
    %798 = arith.cmpf ogt, %796, %797 : vector<8x8xf32>
    %cst_292 = arith.constant 1.000000e+00 : f32
    %799 = vector.broadcast %cst_292 : f32 to vector<8x8xf32>
    %800 = arith.select %798, %796, %799 : vector<8x8xi1>, vector<8x8xf32>
    %cst_293 = arith.constant 0.000000e+00 : f32
    %801 = vector.broadcast %cst_293 : f32 to vector<8x8xf32>
    %802 = arith.cmpf ogt, %796, %801 : vector<8x8xf32>
    %803 = math.log %800 : vector<8x8xf32>
    %804 = vector.broadcast %503 : f32 to vector<8x8xf32>
    %805 = arith.mulf %804, %803 : vector<8x8xf32>
    %806 = math.exp %805 : vector<8x8xf32>
    %cst_294 = arith.constant 0.000000e+00 : f32
    %807 = vector.broadcast %cst_294 : f32 to vector<8x8xf32>
    %808 = arith.select %802, %806, %807 : vector<8x8xi1>, vector<8x8xf32>
    %cst_295 = arith.constant dense<0.000000e+00> : vector<8xf32>
    %809 = vector.multi_reduction <add>, %808, %cst_295 [1] : vector<8x8xf32> to vector<8xf32>
    %810 = vector.shape_cast %809 : vector<8xf32> to vector<8x1xf32>
    %cst_296 = arith.constant 1.000000e+00 : f32
    %811 = vector.broadcast %cst_296 : f32 to vector<8x1xf32>
    %812 = arith.subf %810, %811 : vector<8x1xf32>
    %cst_297 = arith.constant 0.000000e+00 : f32
    %813 = vector.broadcast %cst_297 : f32 to vector<8x1xf32>
    %814 = arith.cmpf oge, %812, %813 : vector<8x1xf32>
    %815 = arith.select %814, %794, %791 : vector<8x1xi1>, vector<8x1xf32>
    %c12_i32_298 = arith.constant 12 : i32
    %cst_299 = arith.constant 5.000000e-01 : f32
    %816 = vector.broadcast %cst_299 : f32 to vector<8x1xf32>
    %817 = arith.mulf %793, %816 : vector<8x1xf32>
    %818 = arith.addf %815, %817 : vector<8x1xf32>
    %819 = vector.broadcast %818 : vector<8x1xf32> to vector<8x8xf32>
    %820 = arith.subf %518, %819 : vector<8x8xf32>
    %cst_300 = arith.constant 0.000000e+00 : f32
    %821 = vector.broadcast %cst_300 : f32 to vector<8x8xf32>
    %822 = arith.cmpf ogt, %820, %821 : vector<8x8xf32>
    %cst_301 = arith.constant 1.000000e+00 : f32
    %823 = vector.broadcast %cst_301 : f32 to vector<8x8xf32>
    %824 = arith.select %822, %820, %823 : vector<8x8xi1>, vector<8x8xf32>
    %cst_302 = arith.constant 0.000000e+00 : f32
    %825 = vector.broadcast %cst_302 : f32 to vector<8x8xf32>
    %826 = arith.cmpf ogt, %820, %825 : vector<8x8xf32>
    %827 = math.log %824 : vector<8x8xf32>
    %828 = vector.broadcast %503 : f32 to vector<8x8xf32>
    %829 = arith.mulf %828, %827 : vector<8x8xf32>
    %830 = math.exp %829 : vector<8x8xf32>
    %cst_303 = arith.constant 0.000000e+00 : f32
    %831 = vector.broadcast %cst_303 : f32 to vector<8x8xf32>
    %832 = arith.select %826, %830, %831 : vector<8x8xi1>, vector<8x8xf32>
    %cst_304 = arith.constant dense<0.000000e+00> : vector<8xf32>
    %833 = vector.multi_reduction <add>, %832, %cst_304 [1] : vector<8x8xf32> to vector<8xf32>
    %834 = vector.shape_cast %833 : vector<8xf32> to vector<8x1xf32>
    %cst_305 = arith.constant 1.000000e+00 : f32
    %835 = vector.broadcast %cst_305 : f32 to vector<8x1xf32>
    %836 = arith.subf %834, %835 : vector<8x1xf32>
    %cst_306 = arith.constant 0.000000e+00 : f32
    %837 = vector.broadcast %cst_306 : f32 to vector<8x1xf32>
    %838 = arith.cmpf oge, %836, %837 : vector<8x1xf32>
    %839 = arith.select %838, %818, %815 : vector<8x1xi1>, vector<8x1xf32>
    %c13_i32_307 = arith.constant 13 : i32
    %cst_308 = arith.constant 5.000000e-01 : f32
    %840 = vector.broadcast %cst_308 : f32 to vector<8x1xf32>
    %841 = arith.mulf %817, %840 : vector<8x1xf32>
    %842 = arith.addf %839, %841 : vector<8x1xf32>
    %843 = vector.broadcast %842 : vector<8x1xf32> to vector<8x8xf32>
    %844 = arith.subf %518, %843 : vector<8x8xf32>
    %cst_309 = arith.constant 0.000000e+00 : f32
    %845 = vector.broadcast %cst_309 : f32 to vector<8x8xf32>
    %846 = arith.cmpf ogt, %844, %845 : vector<8x8xf32>
    %cst_310 = arith.constant 1.000000e+00 : f32
    %847 = vector.broadcast %cst_310 : f32 to vector<8x8xf32>
    %848 = arith.select %846, %844, %847 : vector<8x8xi1>, vector<8x8xf32>
    %cst_311 = arith.constant 0.000000e+00 : f32
    %849 = vector.broadcast %cst_311 : f32 to vector<8x8xf32>
    %850 = arith.cmpf ogt, %844, %849 : vector<8x8xf32>
    %851 = math.log %848 : vector<8x8xf32>
    %852 = vector.broadcast %503 : f32 to vector<8x8xf32>
    %853 = arith.mulf %852, %851 : vector<8x8xf32>
    %854 = math.exp %853 : vector<8x8xf32>
    %cst_312 = arith.constant 0.000000e+00 : f32
    %855 = vector.broadcast %cst_312 : f32 to vector<8x8xf32>
    %856 = arith.select %850, %854, %855 : vector<8x8xi1>, vector<8x8xf32>
    %cst_313 = arith.constant dense<0.000000e+00> : vector<8xf32>
    %857 = vector.multi_reduction <add>, %856, %cst_313 [1] : vector<8x8xf32> to vector<8xf32>
    %858 = vector.shape_cast %857 : vector<8xf32> to vector<8x1xf32>
    %cst_314 = arith.constant 1.000000e+00 : f32
    %859 = vector.broadcast %cst_314 : f32 to vector<8x1xf32>
    %860 = arith.subf %858, %859 : vector<8x1xf32>
    %cst_315 = arith.constant 0.000000e+00 : f32
    %861 = vector.broadcast %cst_315 : f32 to vector<8x1xf32>
    %862 = arith.cmpf oge, %860, %861 : vector<8x1xf32>
    %863 = arith.select %862, %842, %839 : vector<8x1xi1>, vector<8x1xf32>
    %c14_i32_316 = arith.constant 14 : i32
    %cst_317 = arith.constant 5.000000e-01 : f32
    %864 = vector.broadcast %cst_317 : f32 to vector<8x1xf32>
    %865 = arith.mulf %841, %864 : vector<8x1xf32>
    %866 = arith.addf %863, %865 : vector<8x1xf32>
    %867 = vector.broadcast %866 : vector<8x1xf32> to vector<8x8xf32>
    %868 = arith.subf %518, %867 : vector<8x8xf32>
    %cst_318 = arith.constant 0.000000e+00 : f32
    %869 = vector.broadcast %cst_318 : f32 to vector<8x8xf32>
    %870 = arith.cmpf ogt, %868, %869 : vector<8x8xf32>
    %cst_319 = arith.constant 1.000000e+00 : f32
    %871 = vector.broadcast %cst_319 : f32 to vector<8x8xf32>
    %872 = arith.select %870, %868, %871 : vector<8x8xi1>, vector<8x8xf32>
    %cst_320 = arith.constant 0.000000e+00 : f32
    %873 = vector.broadcast %cst_320 : f32 to vector<8x8xf32>
    %874 = arith.cmpf ogt, %868, %873 : vector<8x8xf32>
    %875 = math.log %872 : vector<8x8xf32>
    %876 = vector.broadcast %503 : f32 to vector<8x8xf32>
    %877 = arith.mulf %876, %875 : vector<8x8xf32>
    %878 = math.exp %877 : vector<8x8xf32>
    %cst_321 = arith.constant 0.000000e+00 : f32
    %879 = vector.broadcast %cst_321 : f32 to vector<8x8xf32>
    %880 = arith.select %874, %878, %879 : vector<8x8xi1>, vector<8x8xf32>
    %cst_322 = arith.constant dense<0.000000e+00> : vector<8xf32>
    %881 = vector.multi_reduction <add>, %880, %cst_322 [1] : vector<8x8xf32> to vector<8xf32>
    %882 = vector.shape_cast %881 : vector<8xf32> to vector<8x1xf32>
    %cst_323 = arith.constant 1.000000e+00 : f32
    %883 = vector.broadcast %cst_323 : f32 to vector<8x1xf32>
    %884 = arith.subf %882, %883 : vector<8x1xf32>
    %cst_324 = arith.constant 0.000000e+00 : f32
    %885 = vector.broadcast %cst_324 : f32 to vector<8x1xf32>
    %886 = arith.cmpf oge, %884, %885 : vector<8x1xf32>
    %887 = arith.select %886, %866, %863 : vector<8x1xi1>, vector<8x1xf32>
    %c15_i32_325 = arith.constant 15 : i32
    %cst_326 = arith.constant 5.000000e-01 : f32
    %888 = vector.broadcast %cst_326 : f32 to vector<8x1xf32>
    %889 = arith.mulf %865, %888 : vector<8x1xf32>
    %890 = arith.addf %887, %889 : vector<8x1xf32>
    %891 = vector.broadcast %890 : vector<8x1xf32> to vector<8x8xf32>
    %892 = arith.subf %518, %891 : vector<8x8xf32>
    %cst_327 = arith.constant 0.000000e+00 : f32
    %893 = vector.broadcast %cst_327 : f32 to vector<8x8xf32>
    %894 = arith.cmpf ogt, %892, %893 : vector<8x8xf32>
    %cst_328 = arith.constant 1.000000e+00 : f32
    %895 = vector.broadcast %cst_328 : f32 to vector<8x8xf32>
    %896 = arith.select %894, %892, %895 : vector<8x8xi1>, vector<8x8xf32>
    %cst_329 = arith.constant 0.000000e+00 : f32
    %897 = vector.broadcast %cst_329 : f32 to vector<8x8xf32>
    %898 = arith.cmpf ogt, %892, %897 : vector<8x8xf32>
    %899 = math.log %896 : vector<8x8xf32>
    %900 = vector.broadcast %503 : f32 to vector<8x8xf32>
    %901 = arith.mulf %900, %899 : vector<8x8xf32>
    %902 = math.exp %901 : vector<8x8xf32>
    %cst_330 = arith.constant 0.000000e+00 : f32
    %903 = vector.broadcast %cst_330 : f32 to vector<8x8xf32>
    %904 = arith.select %898, %902, %903 : vector<8x8xi1>, vector<8x8xf32>
    %cst_331 = arith.constant dense<0.000000e+00> : vector<8xf32>
    %905 = vector.multi_reduction <add>, %904, %cst_331 [1] : vector<8x8xf32> to vector<8xf32>
    %906 = vector.shape_cast %905 : vector<8xf32> to vector<8x1xf32>
    %cst_332 = arith.constant 1.000000e+00 : f32
    %907 = vector.broadcast %cst_332 : f32 to vector<8x1xf32>
    %908 = arith.subf %906, %907 : vector<8x1xf32>
    %cst_333 = arith.constant 0.000000e+00 : f32
    %909 = vector.broadcast %cst_333 : f32 to vector<8x1xf32>
    %910 = arith.cmpf oge, %908, %909 : vector<8x1xf32>
    %911 = arith.select %910, %890, %887 : vector<8x1xi1>, vector<8x1xf32>
    %912 = vector.broadcast %911 : vector<8x1xf32> to vector<8x8xf32>
    %913 = arith.subf %518, %912 : vector<8x8xf32>
    %cst_334 = arith.constant 0.000000e+00 : f32
    %914 = vector.broadcast %cst_334 : f32 to vector<8x8xf32>
    %915 = arith.cmpf ogt, %913, %914 : vector<8x8xf32>
    %cst_335 = arith.constant 1.000000e+00 : f32
    %916 = vector.broadcast %cst_335 : f32 to vector<8x8xf32>
    %917 = arith.select %915, %913, %916 : vector<8x8xi1>, vector<8x8xf32>
    %918 = math.log %917 : vector<8x8xf32>
    %919 = vector.broadcast %503 : f32 to vector<8x8xf32>
    %920 = arith.mulf %919, %918 : vector<8x8xf32>
    %921 = math.exp %920 : vector<8x8xf32>
    %cst_336 = arith.constant 0.000000e+00 : f32
    %922 = vector.broadcast %cst_336 : f32 to vector<8x8xf32>
    %923 = arith.select %915, %921, %922 : vector<8x8xi1>, vector<8x8xf32>
    %cst_337 = arith.constant dense<0.000000e+00> : vector<8xf32>
    %924 = vector.multi_reduction <add>, %923, %cst_337 [1] : vector<8x8xf32> to vector<8xf32>
    %925 = vector.shape_cast %924 : vector<8xf32> to vector<8x1xf32>
    %cst_338 = arith.constant 1.000000e+00 : f32
    %926 = vector.broadcast %cst_338 : f32 to vector<8x1xf32>
    %927 = arith.subf %925, %926 : vector<8x1xf32>
    %928 = arith.divf %923, %917 : vector<8x8xf32>
    %cst_339 = arith.constant 0.000000e+00 : f32
    %929 = vector.broadcast %cst_339 : f32 to vector<8x8xf32>
    %930 = arith.select %915, %928, %929 : vector<8x8xi1>, vector<8x8xf32>
    %cst_340 = arith.constant dense<0.000000e+00> : vector<8xf32>
    %931 = vector.multi_reduction <add>, %930, %cst_340 [1] : vector<8x8xf32> to vector<8xf32>
    %932 = vector.shape_cast %931 : vector<8xf32> to vector<8x1xf32>
    %cst_341 = arith.constant 1.000000e-30 : f32
    %933 = vector.broadcast %cst_341 : f32 to vector<8x1xf32>
    %934 = arith.maximumf %932, %933 : vector<8x1xf32>
    %935 = vector.broadcast %503 : f32 to vector<8x1xf32>
    %936 = arith.mulf %935, %934 : vector<8x1xf32>
    %937 = arith.divf %927, %936 : vector<8x1xf32>
    %938 = arith.addf %911, %937 : vector<8x1xf32>
    %939 = vector.broadcast %938 : vector<8x1xf32> to vector<8x8xf32>
    %940 = arith.subf %518, %939 : vector<8x8xf32>
    %cst_342 = arith.constant 0.000000e+00 : f32
    %941 = vector.broadcast %cst_342 : f32 to vector<8x8xf32>
    %942 = arith.cmpf ogt, %940, %941 : vector<8x8xf32>
    %cst_343 = arith.constant 1.000000e+00 : f32
    %943 = vector.broadcast %cst_343 : f32 to vector<8x8xf32>
    %944 = arith.select %942, %940, %943 : vector<8x8xi1>, vector<8x8xf32>
    %945 = math.log %944 : vector<8x8xf32>
    %946 = vector.broadcast %503 : f32 to vector<8x8xf32>
    %947 = arith.mulf %946, %945 : vector<8x8xf32>
    %948 = math.exp %947 : vector<8x8xf32>
    %cst_344 = arith.constant 0.000000e+00 : f32
    %949 = vector.broadcast %cst_344 : f32 to vector<8x8xf32>
    %950 = arith.select %942, %948, %949 : vector<8x8xi1>, vector<8x8xf32>
    %cst_345 = arith.constant dense<0.000000e+00> : vector<8xf32>
    %951 = vector.multi_reduction <add>, %950, %cst_345 [1] : vector<8x8xf32> to vector<8xf32>
    %952 = vector.shape_cast %951 : vector<8xf32> to vector<8x1xf32>
    %cst_346 = arith.constant 1.000000e+00 : f32
    %953 = vector.broadcast %cst_346 : f32 to vector<8x1xf32>
    %954 = arith.subf %952, %953 : vector<8x1xf32>
    %955 = arith.divf %950, %944 : vector<8x8xf32>
    %cst_347 = arith.constant 0.000000e+00 : f32
    %956 = vector.broadcast %cst_347 : f32 to vector<8x8xf32>
    %957 = arith.select %942, %955, %956 : vector<8x8xi1>, vector<8x8xf32>
    %cst_348 = arith.constant dense<0.000000e+00> : vector<8xf32>
    %958 = vector.multi_reduction <add>, %957, %cst_348 [1] : vector<8x8xf32> to vector<8xf32>
    %959 = vector.shape_cast %958 : vector<8xf32> to vector<8x1xf32>
    %cst_349 = arith.constant 1.000000e-30 : f32
    %960 = vector.broadcast %cst_349 : f32 to vector<8x1xf32>
    %961 = arith.maximumf %959, %960 : vector<8x1xf32>
    %962 = vector.broadcast %503 : f32 to vector<8x1xf32>
    %963 = arith.mulf %962, %961 : vector<8x1xf32>
    %964 = arith.divf %954, %963 : vector<8x1xf32>
    %965 = arith.addf %938, %964 : vector<8x1xf32>
    %966 = vector.broadcast %965 : vector<8x1xf32> to vector<8x8xf32>
    %967 = arith.subf %518, %966 : vector<8x8xf32>
    %cst_350 = arith.constant 0.000000e+00 : f32
    %968 = vector.broadcast %cst_350 : f32 to vector<8x8xf32>
    %969 = arith.cmpf ogt, %967, %968 : vector<8x8xf32>
    %cst_351 = arith.constant 1.000000e+00 : f32
    %970 = vector.broadcast %cst_351 : f32 to vector<8x8xf32>
    %971 = arith.select %969, %967, %970 : vector<8x8xi1>, vector<8x8xf32>
    %cst_352 = arith.constant 0.000000e+00 : f32
    %972 = vector.broadcast %cst_352 : f32 to vector<8x8xf32>
    %973 = arith.cmpf ogt, %967, %972 : vector<8x8xf32>
    %974 = math.log %971 : vector<8x8xf32>
    %975 = vector.broadcast %503 : f32 to vector<8x8xf32>
    %976 = arith.mulf %975, %974 : vector<8x8xf32>
    %977 = math.exp %976 : vector<8x8xf32>
    %cst_353 = arith.constant 0.000000e+00 : f32
    %978 = vector.broadcast %cst_353 : f32 to vector<8x8xf32>
    %979 = arith.select %973, %977, %978 : vector<8x8xi1>, vector<8x8xf32>
    %cst_354 = arith.constant dense<0.000000e+00> : vector<8xf32>
    %980 = vector.multi_reduction <add>, %979, %cst_354 [1] : vector<8x8xf32> to vector<8xf32>
    %981 = vector.shape_cast %980 : vector<8xf32> to vector<8x1xf32>
    %982 = vector.broadcast %981 : vector<8x1xf32> to vector<8x8xf32>
    %983 = arith.divf %979, %982 : vector<8x8xf32>
    %984 = arith.truncf %983 : vector<8x8xf32> to vector<8x8xbf16>
    %cst_355 = arith.constant dense<0.000000e+00> : vector<8x8xf32>
    %985 = tpu.matmul %984, %509, %cst_355 {dimension_numbers = #tpu.dot_dimension_numbers<[1], [0], [0], [1], [0, 0, 1, 1], [], []>} : vector<8x8xbf16>, vector<8x8xbf16>, vector<8x8xf32> -> vector<8x8xf32>
    %986 = arith.truncf %985 : vector<8x8xf32> to vector<8x8xbf16>
    %c0_356 = arith.constant 0 : index
    %c0_357 = arith.constant 0 : index
    %c8_358 = arith.constant 8 : index
    %987 = vector.load %arg7[%c0_356, %c0_357, %c8_358] : memref<1x8x32xbf16, #tpu.memory_space<vmem>>, vector<1x8x8xbf16>
    %988 = vector.shape_cast %987 : vector<1x8x8xbf16> to vector<8x8xbf16>
    %989 = vector.shape_cast %986 : vector<8x8xbf16> to vector<1x8x8xbf16>
    tpu.vector_store %arg7[%c0_356, %c0_357, %c8_358], %989 {strides = array<i32>} : memref<1x8x32xbf16, #tpu.memory_space<vmem>>, vector<1x8x8xbf16>,
    %c2 = arith.constant 2 : index
    %990 = memref.load %arg5[%c2] : memref<4xf32, #tpu.memory_space<smem>>
    %c2_359 = arith.constant 2 : index
    %991 = memref.load %arg6[%c2_359] : memref<4xf32, #tpu.memory_space<smem>>
    %cst_360 = arith.constant 1.000000e+00 : f32
    %992 = arith.subf %990, %cst_360 : f32
    %cst_361 = arith.constant 9.99999974E-5 : f32
    %993 = arith.maximumf %992, %cst_361 : f32
    %cst_362 = arith.constant 1.000000e+00 : f32
    %994 = arith.divf %cst_362, %993 : f32
    %c0_363 = arith.constant 0 : index
    %c0_364 = arith.constant 0 : index
    %c16 = arith.constant 16 : index
    %995 = vector.load %arg2[%c0_363, %c0_364, %c16] : memref<1x8x32xbf16, #tpu.memory_space<vmem>>, vector<1x8x8xbf16>
    %996 = vector.shape_cast %995 : vector<1x8x8xbf16> to vector<8x8xbf16>
    %c0_365 = arith.constant 0 : index
    %c0_366 = arith.constant 0 : index
    %c16_367 = arith.constant 16 : index
    %997 = vector.load %arg3[%c0_365, %c0_366, %c16_367] : memref<1x8x32xbf16, #tpu.memory_space<vmem>>, vector<1x8x8xbf16>
    %998 = vector.shape_cast %997 : vector<1x8x8xbf16> to vector<8x8xbf16>
    %c0_368 = arith.constant 0 : index
    %c0_369 = arith.constant 0 : index
    %c16_370 = arith.constant 16 : index
    %999 = vector.load %arg4[%c0_368, %c0_369, %c16_370] : memref<1x8x32xbf16, #tpu.memory_space<vmem>>, vector<1x8x8xbf16>
    %1000 = vector.shape_cast %999 : vector<1x8x8xbf16> to vector<8x8xbf16>
    %cst_371 = arith.constant dense<0.000000e+00> : vector<8x8xf32>
    %1001 = tpu.matmul %996, %998, %cst_371 {dimension_numbers = #tpu.dot_dimension_numbers<[1], [1], [0], [0], [0, 0, 1, 0], [], []>} : vector<8x8xbf16>, vector<8x8xbf16>, vector<8x8xf32> -> vector<8x8xf32>
    %cst_372 = arith.constant 0.353553385 : f32
    %1002 = vector.broadcast %cst_372 : f32 to vector<8x8xf32>
    %1003 = arith.mulf %1001, %1002 : vector<8x8xf32>
    %1004 = vector.broadcast %991 : f32 to vector<8x8xf32>
    %1005 = arith.cmpf ogt, %7, %1004 : vector<8x8xf32>
    %cst_373 = arith.constant 0xFF800000 : f32
    %1006 = vector.broadcast %cst_373 : f32 to vector<8x8xf32>
    %1007 = arith.select %1005, %1006, %1003 : vector<8x8xi1>, vector<8x8xf32>
    %1008 = vector.broadcast %993 : f32 to vector<8x8xf32>
    %1009 = arith.mulf %1007, %1008 : vector<8x8xf32>
    %cst_374 = arith.constant dense<0xFF800000> : vector<8xf32>
    %1010 = vector.multi_reduction <maximumf>, %1009, %cst_374 [1] : vector<8x8xf32> to vector<8xf32>
    %1011 = vector.shape_cast %1010 : vector<8xf32> to vector<8x1xf32>
    %cst_375 = arith.constant 1.000000e+00 : f32
    %1012 = vector.broadcast %cst_375 : f32 to vector<8x1xf32>
    %1013 = arith.subf %1011, %1012 : vector<8x1xf32>
    %cst_376 = arith.constant -2.07944155 : f32
    %1014 = arith.mulf %993, %cst_376 : f32
    %1015 = vector.broadcast %1014 : f32 to vector<8x1xf32>
    %1016 = math.exp %1015 : vector<8x1xf32>
    %1017 = arith.subf %1011, %1016 : vector<8x1xf32>
    %1018 = arith.subf %1017, %1013 : vector<8x1xf32>
    %c0_i32_377 = arith.constant 0 : i32
    %cst_378 = arith.constant 5.000000e-01 : f32
    %1019 = vector.broadcast %cst_378 : f32 to vector<8x1xf32>
    %1020 = arith.mulf %1018, %1019 : vector<8x1xf32>
    %1021 = arith.addf %1013, %1020 : vector<8x1xf32>
    %1022 = vector.broadcast %1021 : vector<8x1xf32> to vector<8x8xf32>
    %1023 = arith.subf %1009, %1022 : vector<8x8xf32>
    %cst_379 = arith.constant 0.000000e+00 : f32
    %1024 = vector.broadcast %cst_379 : f32 to vector<8x8xf32>
    %1025 = arith.cmpf ogt, %1023, %1024 : vector<8x8xf32>
    %cst_380 = arith.constant 1.000000e+00 : f32
    %1026 = vector.broadcast %cst_380 : f32 to vector<8x8xf32>
    %1027 = arith.select %1025, %1023, %1026 : vector<8x8xi1>, vector<8x8xf32>
    %cst_381 = arith.constant 0.000000e+00 : f32
    %1028 = vector.broadcast %cst_381 : f32 to vector<8x8xf32>
    %1029 = arith.cmpf ogt, %1023, %1028 : vector<8x8xf32>
    %1030 = math.log %1027 : vector<8x8xf32>
    %1031 = vector.broadcast %994 : f32 to vector<8x8xf32>
    %1032 = arith.mulf %1031, %1030 : vector<8x8xf32>
    %1033 = math.exp %1032 : vector<8x8xf32>
    %cst_382 = arith.constant 0.000000e+00 : f32
    %1034 = vector.broadcast %cst_382 : f32 to vector<8x8xf32>
    %1035 = arith.select %1029, %1033, %1034 : vector<8x8xi1>, vector<8x8xf32>
    %cst_383 = arith.constant dense<0.000000e+00> : vector<8xf32>
    %1036 = vector.multi_reduction <add>, %1035, %cst_383 [1] : vector<8x8xf32> to vector<8xf32>
    %1037 = vector.shape_cast %1036 : vector<8xf32> to vector<8x1xf32>
    %cst_384 = arith.constant 1.000000e+00 : f32
    %1038 = vector.broadcast %cst_384 : f32 to vector<8x1xf32>
    %1039 = arith.subf %1037, %1038 : vector<8x1xf32>
    %cst_385 = arith.constant 0.000000e+00 : f32
    %1040 = vector.broadcast %cst_385 : f32 to vector<8x1xf32>
    %1041 = arith.cmpf oge, %1039, %1040 : vector<8x1xf32>
    %1042 = arith.select %1041, %1021, %1013 : vector<8x1xi1>, vector<8x1xf32>
    %c1_i32_386 = arith.constant 1 : i32
    %cst_387 = arith.constant 5.000000e-01 : f32
    %1043 = vector.broadcast %cst_387 : f32 to vector<8x1xf32>
    %1044 = arith.mulf %1020, %1043 : vector<8x1xf32>
    %1045 = arith.addf %1042, %1044 : vector<8x1xf32>
    %1046 = vector.broadcast %1045 : vector<8x1xf32> to vector<8x8xf32>
    %1047 = arith.subf %1009, %1046 : vector<8x8xf32>
    %cst_388 = arith.constant 0.000000e+00 : f32
    %1048 = vector.broadcast %cst_388 : f32 to vector<8x8xf32>
    %1049 = arith.cmpf ogt, %1047, %1048 : vector<8x8xf32>
    %cst_389 = arith.constant 1.000000e+00 : f32
    %1050 = vector.broadcast %cst_389 : f32 to vector<8x8xf32>
    %1051 = arith.select %1049, %1047, %1050 : vector<8x8xi1>, vector<8x8xf32>
    %cst_390 = arith.constant 0.000000e+00 : f32
    %1052 = vector.broadcast %cst_390 : f32 to vector<8x8xf32>
    %1053 = arith.cmpf ogt, %1047, %1052 : vector<8x8xf32>
    %1054 = math.log %1051 : vector<8x8xf32>
    %1055 = vector.broadcast %994 : f32 to vector<8x8xf32>
    %1056 = arith.mulf %1055, %1054 : vector<8x8xf32>
    %1057 = math.exp %1056 : vector<8x8xf32>
    %cst_391 = arith.constant 0.000000e+00 : f32
    %1058 = vector.broadcast %cst_391 : f32 to vector<8x8xf32>
    %1059 = arith.select %1053, %1057, %1058 : vector<8x8xi1>, vector<8x8xf32>
    %cst_392 = arith.constant dense<0.000000e+00> : vector<8xf32>
    %1060 = vector.multi_reduction <add>, %1059, %cst_392 [1] : vector<8x8xf32> to vector<8xf32>
    %1061 = vector.shape_cast %1060 : vector<8xf32> to vector<8x1xf32>
    %cst_393 = arith.constant 1.000000e+00 : f32
    %1062 = vector.broadcast %cst_393 : f32 to vector<8x1xf32>
    %1063 = arith.subf %1061, %1062 : vector<8x1xf32>
    %cst_394 = arith.constant 0.000000e+00 : f32
    %1064 = vector.broadcast %cst_394 : f32 to vector<8x1xf32>
    %1065 = arith.cmpf oge, %1063, %1064 : vector<8x1xf32>
    %1066 = arith.select %1065, %1045, %1042 : vector<8x1xi1>, vector<8x1xf32>
    %c2_i32_395 = arith.constant 2 : i32
    %cst_396 = arith.constant 5.000000e-01 : f32
    %1067 = vector.broadcast %cst_396 : f32 to vector<8x1xf32>
    %1068 = arith.mulf %1044, %1067 : vector<8x1xf32>
    %1069 = arith.addf %1066, %1068 : vector<8x1xf32>
    %1070 = vector.broadcast %1069 : vector<8x1xf32> to vector<8x8xf32>
    %1071 = arith.subf %1009, %1070 : vector<8x8xf32>
    %cst_397 = arith.constant 0.000000e+00 : f32
    %1072 = vector.broadcast %cst_397 : f32 to vector<8x8xf32>
    %1073 = arith.cmpf ogt, %1071, %1072 : vector<8x8xf32>
    %cst_398 = arith.constant 1.000000e+00 : f32
    %1074 = vector.broadcast %cst_398 : f32 to vector<8x8xf32>
    %1075 = arith.select %1073, %1071, %1074 : vector<8x8xi1>, vector<8x8xf32>
    %cst_399 = arith.constant 0.000000e+00 : f32
    %1076 = vector.broadcast %cst_399 : f32 to vector<8x8xf32>
    %1077 = arith.cmpf ogt, %1071, %1076 : vector<8x8xf32>
    %1078 = math.log %1075 : vector<8x8xf32>
    %1079 = vector.broadcast %994 : f32 to vector<8x8xf32>
    %1080 = arith.mulf %1079, %1078 : vector<8x8xf32>
    %1081 = math.exp %1080 : vector<8x8xf32>
    %cst_400 = arith.constant 0.000000e+00 : f32
    %1082 = vector.broadcast %cst_400 : f32 to vector<8x8xf32>
    %1083 = arith.select %1077, %1081, %1082 : vector<8x8xi1>, vector<8x8xf32>
    %cst_401 = arith.constant dense<0.000000e+00> : vector<8xf32>
    %1084 = vector.multi_reduction <add>, %1083, %cst_401 [1] : vector<8x8xf32> to vector<8xf32>
    %1085 = vector.shape_cast %1084 : vector<8xf32> to vector<8x1xf32>
    %cst_402 = arith.constant 1.000000e+00 : f32
    %1086 = vector.broadcast %cst_402 : f32 to vector<8x1xf32>
    %1087 = arith.subf %1085, %1086 : vector<8x1xf32>
    %cst_403 = arith.constant 0.000000e+00 : f32
    %1088 = vector.broadcast %cst_403 : f32 to vector<8x1xf32>
    %1089 = arith.cmpf oge, %1087, %1088 : vector<8x1xf32>
    %1090 = arith.select %1089, %1069, %1066 : vector<8x1xi1>, vector<8x1xf32>
    %c3_i32_404 = arith.constant 3 : i32
    %cst_405 = arith.constant 5.000000e-01 : f32
    %1091 = vector.broadcast %cst_405 : f32 to vector<8x1xf32>
    %1092 = arith.mulf %1068, %1091 : vector<8x1xf32>
    %1093 = arith.addf %1090, %1092 : vector<8x1xf32>
    %1094 = vector.broadcast %1093 : vector<8x1xf32> to vector<8x8xf32>
    %1095 = arith.subf %1009, %1094 : vector<8x8xf32>
    %cst_406 = arith.constant 0.000000e+00 : f32
    %1096 = vector.broadcast %cst_406 : f32 to vector<8x8xf32>
    %1097 = arith.cmpf ogt, %1095, %1096 : vector<8x8xf32>
    %cst_407 = arith.constant 1.000000e+00 : f32
    %1098 = vector.broadcast %cst_407 : f32 to vector<8x8xf32>
    %1099 = arith.select %1097, %1095, %1098 : vector<8x8xi1>, vector<8x8xf32>
    %cst_408 = arith.constant 0.000000e+00 : f32
    %1100 = vector.broadcast %cst_408 : f32 to vector<8x8xf32>
    %1101 = arith.cmpf ogt, %1095, %1100 : vector<8x8xf32>
    %1102 = math.log %1099 : vector<8x8xf32>
    %1103 = vector.broadcast %994 : f32 to vector<8x8xf32>
    %1104 = arith.mulf %1103, %1102 : vector<8x8xf32>
    %1105 = math.exp %1104 : vector<8x8xf32>
    %cst_409 = arith.constant 0.000000e+00 : f32
    %1106 = vector.broadcast %cst_409 : f32 to vector<8x8xf32>
    %1107 = arith.select %1101, %1105, %1106 : vector<8x8xi1>, vector<8x8xf32>
    %cst_410 = arith.constant dense<0.000000e+00> : vector<8xf32>
    %1108 = vector.multi_reduction <add>, %1107, %cst_410 [1] : vector<8x8xf32> to vector<8xf32>
    %1109 = vector.shape_cast %1108 : vector<8xf32> to vector<8x1xf32>
    %cst_411 = arith.constant 1.000000e+00 : f32
    %1110 = vector.broadcast %cst_411 : f32 to vector<8x1xf32>
    %1111 = arith.subf %1109, %1110 : vector<8x1xf32>
    %cst_412 = arith.constant 0.000000e+00 : f32
    %1112 = vector.broadcast %cst_412 : f32 to vector<8x1xf32>
    %1113 = arith.cmpf oge, %1111, %1112 : vector<8x1xf32>
    %1114 = arith.select %1113, %1093, %1090 : vector<8x1xi1>, vector<8x1xf32>
    %c4_i32_413 = arith.constant 4 : i32
    %cst_414 = arith.constant 5.000000e-01 : f32
    %1115 = vector.broadcast %cst_414 : f32 to vector<8x1xf32>
    %1116 = arith.mulf %1092, %1115 : vector<8x1xf32>
    %1117 = arith.addf %1114, %1116 : vector<8x1xf32>
    %1118 = vector.broadcast %1117 : vector<8x1xf32> to vector<8x8xf32>
    %1119 = arith.subf %1009, %1118 : vector<8x8xf32>
    %cst_415 = arith.constant 0.000000e+00 : f32
    %1120 = vector.broadcast %cst_415 : f32 to vector<8x8xf32>
    %1121 = arith.cmpf ogt, %1119, %1120 : vector<8x8xf32>
    %cst_416 = arith.constant 1.000000e+00 : f32
    %1122 = vector.broadcast %cst_416 : f32 to vector<8x8xf32>
    %1123 = arith.select %1121, %1119, %1122 : vector<8x8xi1>, vector<8x8xf32>
    %cst_417 = arith.constant 0.000000e+00 : f32
    %1124 = vector.broadcast %cst_417 : f32 to vector<8x8xf32>
    %1125 = arith.cmpf ogt, %1119, %1124 : vector<8x8xf32>
    %1126 = math.log %1123 : vector<8x8xf32>
    %1127 = vector.broadcast %994 : f32 to vector<8x8xf32>
    %1128 = arith.mulf %1127, %1126 : vector<8x8xf32>
    %1129 = math.exp %1128 : vector<8x8xf32>
    %cst_418 = arith.constant 0.000000e+00 : f32
    %1130 = vector.broadcast %cst_418 : f32 to vector<8x8xf32>
    %1131 = arith.select %1125, %1129, %1130 : vector<8x8xi1>, vector<8x8xf32>
    %cst_419 = arith.constant dense<0.000000e+00> : vector<8xf32>
    %1132 = vector.multi_reduction <add>, %1131, %cst_419 [1] : vector<8x8xf32> to vector<8xf32>
    %1133 = vector.shape_cast %1132 : vector<8xf32> to vector<8x1xf32>
    %cst_420 = arith.constant 1.000000e+00 : f32
    %1134 = vector.broadcast %cst_420 : f32 to vector<8x1xf32>
    %1135 = arith.subf %1133, %1134 : vector<8x1xf32>
    %cst_421 = arith.constant 0.000000e+00 : f32
    %1136 = vector.broadcast %cst_421 : f32 to vector<8x1xf32>
    %1137 = arith.cmpf oge, %1135, %1136 : vector<8x1xf32>
    %1138 = arith.select %1137, %1117, %1114 : vector<8x1xi1>, vector<8x1xf32>
    %c5_i32_422 = arith.constant 5 : i32
    %cst_423 = arith.constant 5.000000e-01 : f32
    %1139 = vector.broadcast %cst_423 : f32 to vector<8x1xf32>
    %1140 = arith.mulf %1116, %1139 : vector<8x1xf32>
    %1141 = arith.addf %1138, %1140 : vector<8x1xf32>
    %1142 = vector.broadcast %1141 : vector<8x1xf32> to vector<8x8xf32>
    %1143 = arith.subf %1009, %1142 : vector<8x8xf32>
    %cst_424 = arith.constant 0.000000e+00 : f32
    %1144 = vector.broadcast %cst_424 : f32 to vector<8x8xf32>
    %1145 = arith.cmpf ogt, %1143, %1144 : vector<8x8xf32>
    %cst_425 = arith.constant 1.000000e+00 : f32
    %1146 = vector.broadcast %cst_425 : f32 to vector<8x8xf32>
    %1147 = arith.select %1145, %1143, %1146 : vector<8x8xi1>, vector<8x8xf32>
    %cst_426 = arith.constant 0.000000e+00 : f32
    %1148 = vector.broadcast %cst_426 : f32 to vector<8x8xf32>
    %1149 = arith.cmpf ogt, %1143, %1148 : vector<8x8xf32>
    %1150 = math.log %1147 : vector<8x8xf32>
    %1151 = vector.broadcast %994 : f32 to vector<8x8xf32>
    %1152 = arith.mulf %1151, %1150 : vector<8x8xf32>
    %1153 = math.exp %1152 : vector<8x8xf32>
    %cst_427 = arith.constant 0.000000e+00 : f32
    %1154 = vector.broadcast %cst_427 : f32 to vector<8x8xf32>
    %1155 = arith.select %1149, %1153, %1154 : vector<8x8xi1>, vector<8x8xf32>
    %cst_428 = arith.constant dense<0.000000e+00> : vector<8xf32>
    %1156 = vector.multi_reduction <add>, %1155, %cst_428 [1] : vector<8x8xf32> to vector<8xf32>
    %1157 = vector.shape_cast %1156 : vector<8xf32> to vector<8x1xf32>
    %cst_429 = arith.constant 1.000000e+00 : f32
    %1158 = vector.broadcast %cst_429 : f32 to vector<8x1xf32>
    %1159 = arith.subf %1157, %1158 : vector<8x1xf32>
    %cst_430 = arith.constant 0.000000e+00 : f32
    %1160 = vector.broadcast %cst_430 : f32 to vector<8x1xf32>
    %1161 = arith.cmpf oge, %1159, %1160 : vector<8x1xf32>
    %1162 = arith.select %1161, %1141, %1138 : vector<8x1xi1>, vector<8x1xf32>
    %c6_i32_431 = arith.constant 6 : i32
    %cst_432 = arith.constant 5.000000e-01 : f32
    %1163 = vector.broadcast %cst_432 : f32 to vector<8x1xf32>
    %1164 = arith.mulf %1140, %1163 : vector<8x1xf32>
    %1165 = arith.addf %1162, %1164 : vector<8x1xf32>
    %1166 = vector.broadcast %1165 : vector<8x1xf32> to vector<8x8xf32>
    %1167 = arith.subf %1009, %1166 : vector<8x8xf32>
    %cst_433 = arith.constant 0.000000e+00 : f32
    %1168 = vector.broadcast %cst_433 : f32 to vector<8x8xf32>
    %1169 = arith.cmpf ogt, %1167, %1168 : vector<8x8xf32>
    %cst_434 = arith.constant 1.000000e+00 : f32
    %1170 = vector.broadcast %cst_434 : f32 to vector<8x8xf32>
    %1171 = arith.select %1169, %1167, %1170 : vector<8x8xi1>, vector<8x8xf32>
    %cst_435 = arith.constant 0.000000e+00 : f32
    %1172 = vector.broadcast %cst_435 : f32 to vector<8x8xf32>
    %1173 = arith.cmpf ogt, %1167, %1172 : vector<8x8xf32>
    %1174 = math.log %1171 : vector<8x8xf32>
    %1175 = vector.broadcast %994 : f32 to vector<8x8xf32>
    %1176 = arith.mulf %1175, %1174 : vector<8x8xf32>
    %1177 = math.exp %1176 : vector<8x8xf32>
    %cst_436 = arith.constant 0.000000e+00 : f32
    %1178 = vector.broadcast %cst_436 : f32 to vector<8x8xf32>
    %1179 = arith.select %1173, %1177, %1178 : vector<8x8xi1>, vector<8x8xf32>
    %cst_437 = arith.constant dense<0.000000e+00> : vector<8xf32>
    %1180 = vector.multi_reduction <add>, %1179, %cst_437 [1] : vector<8x8xf32> to vector<8xf32>
    %1181 = vector.shape_cast %1180 : vector<8xf32> to vector<8x1xf32>
    %cst_438 = arith.constant 1.000000e+00 : f32
    %1182 = vector.broadcast %cst_438 : f32 to vector<8x1xf32>
    %1183 = arith.subf %1181, %1182 : vector<8x1xf32>
    %cst_439 = arith.constant 0.000000e+00 : f32
    %1184 = vector.broadcast %cst_439 : f32 to vector<8x1xf32>
    %1185 = arith.cmpf oge, %1183, %1184 : vector<8x1xf32>
    %1186 = arith.select %1185, %1165, %1162 : vector<8x1xi1>, vector<8x1xf32>
    %c7_i32_440 = arith.constant 7 : i32
    %cst_441 = arith.constant 5.000000e-01 : f32
    %1187 = vector.broadcast %cst_441 : f32 to vector<8x1xf32>
    %1188 = arith.mulf %1164, %1187 : vector<8x1xf32>
    %1189 = arith.addf %1186, %1188 : vector<8x1xf32>
    %1190 = vector.broadcast %1189 : vector<8x1xf32> to vector<8x8xf32>
    %1191 = arith.subf %1009, %1190 : vector<8x8xf32>
    %cst_442 = arith.constant 0.000000e+00 : f32
    %1192 = vector.broadcast %cst_442 : f32 to vector<8x8xf32>
    %1193 = arith.cmpf ogt, %1191, %1192 : vector<8x8xf32>
    %cst_443 = arith.constant 1.000000e+00 : f32
    %1194 = vector.broadcast %cst_443 : f32 to vector<8x8xf32>
    %1195 = arith.select %1193, %1191, %1194 : vector<8x8xi1>, vector<8x8xf32>
    %cst_444 = arith.constant 0.000000e+00 : f32
    %1196 = vector.broadcast %cst_444 : f32 to vector<8x8xf32>
    %1197 = arith.cmpf ogt, %1191, %1196 : vector<8x8xf32>
    %1198 = math.log %1195 : vector<8x8xf32>
    %1199 = vector.broadcast %994 : f32 to vector<8x8xf32>
    %1200 = arith.mulf %1199, %1198 : vector<8x8xf32>
    %1201 = math.exp %1200 : vector<8x8xf32>
    %cst_445 = arith.constant 0.000000e+00 : f32
    %1202 = vector.broadcast %cst_445 : f32 to vector<8x8xf32>
    %1203 = arith.select %1197, %1201, %1202 : vector<8x8xi1>, vector<8x8xf32>
    %cst_446 = arith.constant dense<0.000000e+00> : vector<8xf32>
    %1204 = vector.multi_reduction <add>, %1203, %cst_446 [1] : vector<8x8xf32> to vector<8xf32>
    %1205 = vector.shape_cast %1204 : vector<8xf32> to vector<8x1xf32>
    %cst_447 = arith.constant 1.000000e+00 : f32
    %1206 = vector.broadcast %cst_447 : f32 to vector<8x1xf32>
    %1207 = arith.subf %1205, %1206 : vector<8x1xf32>
    %cst_448 = arith.constant 0.000000e+00 : f32
    %1208 = vector.broadcast %cst_448 : f32 to vector<8x1xf32>
    %1209 = arith.cmpf oge, %1207, %1208 : vector<8x1xf32>
    %1210 = arith.select %1209, %1189, %1186 : vector<8x1xi1>, vector<8x1xf32>
    %c8_i32_449 = arith.constant 8 : i32
    %cst_450 = arith.constant 5.000000e-01 : f32
    %1211 = vector.broadcast %cst_450 : f32 to vector<8x1xf32>
    %1212 = arith.mulf %1188, %1211 : vector<8x1xf32>
    %1213 = arith.addf %1210, %1212 : vector<8x1xf32>
    %1214 = vector.broadcast %1213 : vector<8x1xf32> to vector<8x8xf32>
    %1215 = arith.subf %1009, %1214 : vector<8x8xf32>
    %cst_451 = arith.constant 0.000000e+00 : f32
    %1216 = vector.broadcast %cst_451 : f32 to vector<8x8xf32>
    %1217 = arith.cmpf ogt, %1215, %1216 : vector<8x8xf32>
    %cst_452 = arith.constant 1.000000e+00 : f32
    %1218 = vector.broadcast %cst_452 : f32 to vector<8x8xf32>
    %1219 = arith.select %1217, %1215, %1218 : vector<8x8xi1>, vector<8x8xf32>
    %cst_453 = arith.constant 0.000000e+00 : f32
    %1220 = vector.broadcast %cst_453 : f32 to vector<8x8xf32>
    %1221 = arith.cmpf ogt, %1215, %1220 : vector<8x8xf32>
    %1222 = math.log %1219 : vector<8x8xf32>
    %1223 = vector.broadcast %994 : f32 to vector<8x8xf32>
    %1224 = arith.mulf %1223, %1222 : vector<8x8xf32>
    %1225 = math.exp %1224 : vector<8x8xf32>
    %cst_454 = arith.constant 0.000000e+00 : f32
    %1226 = vector.broadcast %cst_454 : f32 to vector<8x8xf32>
    %1227 = arith.select %1221, %1225, %1226 : vector<8x8xi1>, vector<8x8xf32>
    %cst_455 = arith.constant dense<0.000000e+00> : vector<8xf32>
    %1228 = vector.multi_reduction <add>, %1227, %cst_455 [1] : vector<8x8xf32> to vector<8xf32>
    %1229 = vector.shape_cast %1228 : vector<8xf32> to vector<8x1xf32>
    %cst_456 = arith.constant 1.000000e+00 : f32
    %1230 = vector.broadcast %cst_456 : f32 to vector<8x1xf32>
    %1231 = arith.subf %1229, %1230 : vector<8x1xf32>
    %cst_457 = arith.constant 0.000000e+00 : f32
    %1232 = vector.broadcast %cst_457 : f32 to vector<8x1xf32>
    %1233 = arith.cmpf oge, %1231, %1232 : vector<8x1xf32>
    %1234 = arith.select %1233, %1213, %1210 : vector<8x1xi1>, vector<8x1xf32>
    %c9_i32_458 = arith.constant 9 : i32
    %cst_459 = arith.constant 5.000000e-01 : f32
    %1235 = vector.broadcast %cst_459 : f32 to vector<8x1xf32>
    %1236 = arith.mulf %1212, %1235 : vector<8x1xf32>
    %1237 = arith.addf %1234, %1236 : vector<8x1xf32>
    %1238 = vector.broadcast %1237 : vector<8x1xf32> to vector<8x8xf32>
    %1239 = arith.subf %1009, %1238 : vector<8x8xf32>
    %cst_460 = arith.constant 0.000000e+00 : f32
    %1240 = vector.broadcast %cst_460 : f32 to vector<8x8xf32>
    %1241 = arith.cmpf ogt, %1239, %1240 : vector<8x8xf32>
    %cst_461 = arith.constant 1.000000e+00 : f32
    %1242 = vector.broadcast %cst_461 : f32 to vector<8x8xf32>
    %1243 = arith.select %1241, %1239, %1242 : vector<8x8xi1>, vector<8x8xf32>
    %cst_462 = arith.constant 0.000000e+00 : f32
    %1244 = vector.broadcast %cst_462 : f32 to vector<8x8xf32>
    %1245 = arith.cmpf ogt, %1239, %1244 : vector<8x8xf32>
    %1246 = math.log %1243 : vector<8x8xf32>
    %1247 = vector.broadcast %994 : f32 to vector<8x8xf32>
    %1248 = arith.mulf %1247, %1246 : vector<8x8xf32>
    %1249 = math.exp %1248 : vector<8x8xf32>
    %cst_463 = arith.constant 0.000000e+00 : f32
    %1250 = vector.broadcast %cst_463 : f32 to vector<8x8xf32>
    %1251 = arith.select %1245, %1249, %1250 : vector<8x8xi1>, vector<8x8xf32>
    %cst_464 = arith.constant dense<0.000000e+00> : vector<8xf32>
    %1252 = vector.multi_reduction <add>, %1251, %cst_464 [1] : vector<8x8xf32> to vector<8xf32>
    %1253 = vector.shape_cast %1252 : vector<8xf32> to vector<8x1xf32>
    %cst_465 = arith.constant 1.000000e+00 : f32
    %1254 = vector.broadcast %cst_465 : f32 to vector<8x1xf32>
    %1255 = arith.subf %1253, %1254 : vector<8x1xf32>
    %cst_466 = arith.constant 0.000000e+00 : f32
    %1256 = vector.broadcast %cst_466 : f32 to vector<8x1xf32>
    %1257 = arith.cmpf oge, %1255, %1256 : vector<8x1xf32>
    %1258 = arith.select %1257, %1237, %1234 : vector<8x1xi1>, vector<8x1xf32>
    %c10_i32_467 = arith.constant 10 : i32
    %cst_468 = arith.constant 5.000000e-01 : f32
    %1259 = vector.broadcast %cst_468 : f32 to vector<8x1xf32>
    %1260 = arith.mulf %1236, %1259 : vector<8x1xf32>
    %1261 = arith.addf %1258, %1260 : vector<8x1xf32>
    %1262 = vector.broadcast %1261 : vector<8x1xf32> to vector<8x8xf32>
    %1263 = arith.subf %1009, %1262 : vector<8x8xf32>
    %cst_469 = arith.constant 0.000000e+00 : f32
    %1264 = vector.broadcast %cst_469 : f32 to vector<8x8xf32>
    %1265 = arith.cmpf ogt, %1263, %1264 : vector<8x8xf32>
    %cst_470 = arith.constant 1.000000e+00 : f32
    %1266 = vector.broadcast %cst_470 : f32 to vector<8x8xf32>
    %1267 = arith.select %1265, %1263, %1266 : vector<8x8xi1>, vector<8x8xf32>
    %cst_471 = arith.constant 0.000000e+00 : f32
    %1268 = vector.broadcast %cst_471 : f32 to vector<8x8xf32>
    %1269 = arith.cmpf ogt, %1263, %1268 : vector<8x8xf32>
    %1270 = math.log %1267 : vector<8x8xf32>
    %1271 = vector.broadcast %994 : f32 to vector<8x8xf32>
    %1272 = arith.mulf %1271, %1270 : vector<8x8xf32>
    %1273 = math.exp %1272 : vector<8x8xf32>
    %cst_472 = arith.constant 0.000000e+00 : f32
    %1274 = vector.broadcast %cst_472 : f32 to vector<8x8xf32>
    %1275 = arith.select %1269, %1273, %1274 : vector<8x8xi1>, vector<8x8xf32>
    %cst_473 = arith.constant dense<0.000000e+00> : vector<8xf32>
    %1276 = vector.multi_reduction <add>, %1275, %cst_473 [1] : vector<8x8xf32> to vector<8xf32>
    %1277 = vector.shape_cast %1276 : vector<8xf32> to vector<8x1xf32>
    %cst_474 = arith.constant 1.000000e+00 : f32
    %1278 = vector.broadcast %cst_474 : f32 to vector<8x1xf32>
    %1279 = arith.subf %1277, %1278 : vector<8x1xf32>
    %cst_475 = arith.constant 0.000000e+00 : f32
    %1280 = vector.broadcast %cst_475 : f32 to vector<8x1xf32>
    %1281 = arith.cmpf oge, %1279, %1280 : vector<8x1xf32>
    %1282 = arith.select %1281, %1261, %1258 : vector<8x1xi1>, vector<8x1xf32>
    %c11_i32_476 = arith.constant 11 : i32
    %cst_477 = arith.constant 5.000000e-01 : f32
    %1283 = vector.broadcast %cst_477 : f32 to vector<8x1xf32>
    %1284 = arith.mulf %1260, %1283 : vector<8x1xf32>
    %1285 = arith.addf %1282, %1284 : vector<8x1xf32>
    %1286 = vector.broadcast %1285 : vector<8x1xf32> to vector<8x8xf32>
    %1287 = arith.subf %1009, %1286 : vector<8x8xf32>
    %cst_478 = arith.constant 0.000000e+00 : f32
    %1288 = vector.broadcast %cst_478 : f32 to vector<8x8xf32>
    %1289 = arith.cmpf ogt, %1287, %1288 : vector<8x8xf32>
    %cst_479 = arith.constant 1.000000e+00 : f32
    %1290 = vector.broadcast %cst_479 : f32 to vector<8x8xf32>
    %1291 = arith.select %1289, %1287, %1290 : vector<8x8xi1>, vector<8x8xf32>
    %cst_480 = arith.constant 0.000000e+00 : f32
    %1292 = vector.broadcast %cst_480 : f32 to vector<8x8xf32>
    %1293 = arith.cmpf ogt, %1287, %1292 : vector<8x8xf32>
    %1294 = math.log %1291 : vector<8x8xf32>
    %1295 = vector.broadcast %994 : f32 to vector<8x8xf32>
    %1296 = arith.mulf %1295, %1294 : vector<8x8xf32>
    %1297 = math.exp %1296 : vector<8x8xf32>
    %cst_481 = arith.constant 0.000000e+00 : f32
    %1298 = vector.broadcast %cst_481 : f32 to vector<8x8xf32>
    %1299 = arith.select %1293, %1297, %1298 : vector<8x8xi1>, vector<8x8xf32>
    %cst_482 = arith.constant dense<0.000000e+00> : vector<8xf32>
    %1300 = vector.multi_reduction <add>, %1299, %cst_482 [1] : vector<8x8xf32> to vector<8xf32>
    %1301 = vector.shape_cast %1300 : vector<8xf32> to vector<8x1xf32>
    %cst_483 = arith.constant 1.000000e+00 : f32
    %1302 = vector.broadcast %cst_483 : f32 to vector<8x1xf32>
    %1303 = arith.subf %1301, %1302 : vector<8x1xf32>
    %cst_484 = arith.constant 0.000000e+00 : f32
    %1304 = vector.broadcast %cst_484 : f32 to vector<8x1xf32>
    %1305 = arith.cmpf oge, %1303, %1304 : vector<8x1xf32>
    %1306 = arith.select %1305, %1285, %1282 : vector<8x1xi1>, vector<8x1xf32>
    %c12_i32_485 = arith.constant 12 : i32
    %cst_486 = arith.constant 5.000000e-01 : f32
    %1307 = vector.broadcast %cst_486 : f32 to vector<8x1xf32>
    %1308 = arith.mulf %1284, %1307 : vector<8x1xf32>
    %1309 = arith.addf %1306, %1308 : vector<8x1xf32>
    %1310 = vector.broadcast %1309 : vector<8x1xf32> to vector<8x8xf32>
    %1311 = arith.subf %1009, %1310 : vector<8x8xf32>
    %cst_487 = arith.constant 0.000000e+00 : f32
    %1312 = vector.broadcast %cst_487 : f32 to vector<8x8xf32>
    %1313 = arith.cmpf ogt, %1311, %1312 : vector<8x8xf32>
    %cst_488 = arith.constant 1.000000e+00 : f32
    %1314 = vector.broadcast %cst_488 : f32 to vector<8x8xf32>
    %1315 = arith.select %1313, %1311, %1314 : vector<8x8xi1>, vector<8x8xf32>
    %cst_489 = arith.constant 0.000000e+00 : f32
    %1316 = vector.broadcast %cst_489 : f32 to vector<8x8xf32>
    %1317 = arith.cmpf ogt, %1311, %1316 : vector<8x8xf32>
    %1318 = math.log %1315 : vector<8x8xf32>
    %1319 = vector.broadcast %994 : f32 to vector<8x8xf32>
    %1320 = arith.mulf %1319, %1318 : vector<8x8xf32>
    %1321 = math.exp %1320 : vector<8x8xf32>
    %cst_490 = arith.constant 0.000000e+00 : f32
    %1322 = vector.broadcast %cst_490 : f32 to vector<8x8xf32>
    %1323 = arith.select %1317, %1321, %1322 : vector<8x8xi1>, vector<8x8xf32>
    %cst_491 = arith.constant dense<0.000000e+00> : vector<8xf32>
    %1324 = vector.multi_reduction <add>, %1323, %cst_491 [1] : vector<8x8xf32> to vector<8xf32>
    %1325 = vector.shape_cast %1324 : vector<8xf32> to vector<8x1xf32>
    %cst_492 = arith.constant 1.000000e+00 : f32
    %1326 = vector.broadcast %cst_492 : f32 to vector<8x1xf32>
    %1327 = arith.subf %1325, %1326 : vector<8x1xf32>
    %cst_493 = arith.constant 0.000000e+00 : f32
    %1328 = vector.broadcast %cst_493 : f32 to vector<8x1xf32>
    %1329 = arith.cmpf oge, %1327, %1328 : vector<8x1xf32>
    %1330 = arith.select %1329, %1309, %1306 : vector<8x1xi1>, vector<8x1xf32>
    %c13_i32_494 = arith.constant 13 : i32
    %cst_495 = arith.constant 5.000000e-01 : f32
    %1331 = vector.broadcast %cst_495 : f32 to vector<8x1xf32>
    %1332 = arith.mulf %1308, %1331 : vector<8x1xf32>
    %1333 = arith.addf %1330, %1332 : vector<8x1xf32>
    %1334 = vector.broadcast %1333 : vector<8x1xf32> to vector<8x8xf32>
    %1335 = arith.subf %1009, %1334 : vector<8x8xf32>
    %cst_496 = arith.constant 0.000000e+00 : f32
    %1336 = vector.broadcast %cst_496 : f32 to vector<8x8xf32>
    %1337 = arith.cmpf ogt, %1335, %1336 : vector<8x8xf32>
    %cst_497 = arith.constant 1.000000e+00 : f32
    %1338 = vector.broadcast %cst_497 : f32 to vector<8x8xf32>
    %1339 = arith.select %1337, %1335, %1338 : vector<8x8xi1>, vector<8x8xf32>
    %cst_498 = arith.constant 0.000000e+00 : f32
    %1340 = vector.broadcast %cst_498 : f32 to vector<8x8xf32>
    %1341 = arith.cmpf ogt, %1335, %1340 : vector<8x8xf32>
    %1342 = math.log %1339 : vector<8x8xf32>
    %1343 = vector.broadcast %994 : f32 to vector<8x8xf32>
    %1344 = arith.mulf %1343, %1342 : vector<8x8xf32>
    %1345 = math.exp %1344 : vector<8x8xf32>
    %cst_499 = arith.constant 0.000000e+00 : f32
    %1346 = vector.broadcast %cst_499 : f32 to vector<8x8xf32>
    %1347 = arith.select %1341, %1345, %1346 : vector<8x8xi1>, vector<8x8xf32>
    %cst_500 = arith.constant dense<0.000000e+00> : vector<8xf32>
    %1348 = vector.multi_reduction <add>, %1347, %cst_500 [1] : vector<8x8xf32> to vector<8xf32>
    %1349 = vector.shape_cast %1348 : vector<8xf32> to vector<8x1xf32>
    %cst_501 = arith.constant 1.000000e+00 : f32
    %1350 = vector.broadcast %cst_501 : f32 to vector<8x1xf32>
    %1351 = arith.subf %1349, %1350 : vector<8x1xf32>
    %cst_502 = arith.constant 0.000000e+00 : f32
    %1352 = vector.broadcast %cst_502 : f32 to vector<8x1xf32>
    %1353 = arith.cmpf oge, %1351, %1352 : vector<8x1xf32>
    %1354 = arith.select %1353, %1333, %1330 : vector<8x1xi1>, vector<8x1xf32>
    %c14_i32_503 = arith.constant 14 : i32
    %cst_504 = arith.constant 5.000000e-01 : f32
    %1355 = vector.broadcast %cst_504 : f32 to vector<8x1xf32>
    %1356 = arith.mulf %1332, %1355 : vector<8x1xf32>
    %1357 = arith.addf %1354, %1356 : vector<8x1xf32>
    %1358 = vector.broadcast %1357 : vector<8x1xf32> to vector<8x8xf32>
    %1359 = arith.subf %1009, %1358 : vector<8x8xf32>
    %cst_505 = arith.constant 0.000000e+00 : f32
    %1360 = vector.broadcast %cst_505 : f32 to vector<8x8xf32>
    %1361 = arith.cmpf ogt, %1359, %1360 : vector<8x8xf32>
    %cst_506 = arith.constant 1.000000e+00 : f32
    %1362 = vector.broadcast %cst_506 : f32 to vector<8x8xf32>
    %1363 = arith.select %1361, %1359, %1362 : vector<8x8xi1>, vector<8x8xf32>
    %cst_507 = arith.constant 0.000000e+00 : f32
    %1364 = vector.broadcast %cst_507 : f32 to vector<8x8xf32>
    %1365 = arith.cmpf ogt, %1359, %1364 : vector<8x8xf32>
    %1366 = math.log %1363 : vector<8x8xf32>
    %1367 = vector.broadcast %994 : f32 to vector<8x8xf32>
    %1368 = arith.mulf %1367, %1366 : vector<8x8xf32>
    %1369 = math.exp %1368 : vector<8x8xf32>
    %cst_508 = arith.constant 0.000000e+00 : f32
    %1370 = vector.broadcast %cst_508 : f32 to vector<8x8xf32>
    %1371 = arith.select %1365, %1369, %1370 : vector<8x8xi1>, vector<8x8xf32>
    %cst_509 = arith.constant dense<0.000000e+00> : vector<8xf32>
    %1372 = vector.multi_reduction <add>, %1371, %cst_509 [1] : vector<8x8xf32> to vector<8xf32>
    %1373 = vector.shape_cast %1372 : vector<8xf32> to vector<8x1xf32>
    %cst_510 = arith.constant 1.000000e+00 : f32
    %1374 = vector.broadcast %cst_510 : f32 to vector<8x1xf32>
    %1375 = arith.subf %1373, %1374 : vector<8x1xf32>
    %cst_511 = arith.constant 0.000000e+00 : f32
    %1376 = vector.broadcast %cst_511 : f32 to vector<8x1xf32>
    %1377 = arith.cmpf oge, %1375, %1376 : vector<8x1xf32>
    %1378 = arith.select %1377, %1357, %1354 : vector<8x1xi1>, vector<8x1xf32>
    %c15_i32_512 = arith.constant 15 : i32
    %cst_513 = arith.constant 5.000000e-01 : f32
    %1379 = vector.broadcast %cst_513 : f32 to vector<8x1xf32>
    %1380 = arith.mulf %1356, %1379 : vector<8x1xf32>
    %1381 = arith.addf %1378, %1380 : vector<8x1xf32>
    %1382 = vector.broadcast %1381 : vector<8x1xf32> to vector<8x8xf32>
    %1383 = arith.subf %1009, %1382 : vector<8x8xf32>
    %cst_514 = arith.constant 0.000000e+00 : f32
    %1384 = vector.broadcast %cst_514 : f32 to vector<8x8xf32>
    %1385 = arith.cmpf ogt, %1383, %1384 : vector<8x8xf32>
    %cst_515 = arith.constant 1.000000e+00 : f32
    %1386 = vector.broadcast %cst_515 : f32 to vector<8x8xf32>
    %1387 = arith.select %1385, %1383, %1386 : vector<8x8xi1>, vector<8x8xf32>
    %cst_516 = arith.constant 0.000000e+00 : f32
    %1388 = vector.broadcast %cst_516 : f32 to vector<8x8xf32>
    %1389 = arith.cmpf ogt, %1383, %1388 : vector<8x8xf32>
    %1390 = math.log %1387 : vector<8x8xf32>
    %1391 = vector.broadcast %994 : f32 to vector<8x8xf32>
    %1392 = arith.mulf %1391, %1390 : vector<8x8xf32>
    %1393 = math.exp %1392 : vector<8x8xf32>
    %cst_517 = arith.constant 0.000000e+00 : f32
    %1394 = vector.broadcast %cst_517 : f32 to vector<8x8xf32>
    %1395 = arith.select %1389, %1393, %1394 : vector<8x8xi1>, vector<8x8xf32>
    %cst_518 = arith.constant dense<0.000000e+00> : vector<8xf32>
    %1396 = vector.multi_reduction <add>, %1395, %cst_518 [1] : vector<8x8xf32> to vector<8xf32>
    %1397 = vector.shape_cast %1396 : vector<8xf32> to vector<8x1xf32>
    %cst_519 = arith.constant 1.000000e+00 : f32
    %1398 = vector.broadcast %cst_519 : f32 to vector<8x1xf32>
    %1399 = arith.subf %1397, %1398 : vector<8x1xf32>
    %cst_520 = arith.constant 0.000000e+00 : f32
    %1400 = vector.broadcast %cst_520 : f32 to vector<8x1xf32>
    %1401 = arith.cmpf oge, %1399, %1400 : vector<8x1xf32>
    %1402 = arith.select %1401, %1381, %1378 : vector<8x1xi1>, vector<8x1xf32>
    %1403 = vector.broadcast %1402 : vector<8x1xf32> to vector<8x8xf32>
    %1404 = arith.subf %1009, %1403 : vector<8x8xf32>
    %cst_521 = arith.constant 0.000000e+00 : f32
    %1405 = vector.broadcast %cst_521 : f32 to vector<8x8xf32>
    %1406 = arith.cmpf ogt, %1404, %1405 : vector<8x8xf32>
    %cst_522 = arith.constant 1.000000e+00 : f32
    %1407 = vector.broadcast %cst_522 : f32 to vector<8x8xf32>
    %1408 = arith.select %1406, %1404, %1407 : vector<8x8xi1>, vector<8x8xf32>
    %1409 = math.log %1408 : vector<8x8xf32>
    %1410 = vector.broadcast %994 : f32 to vector<8x8xf32>
    %1411 = arith.mulf %1410, %1409 : vector<8x8xf32>
    %1412 = math.exp %1411 : vector<8x8xf32>
    %cst_523 = arith.constant 0.000000e+00 : f32
    %1413 = vector.broadcast %cst_523 : f32 to vector<8x8xf32>
    %1414 = arith.select %1406, %1412, %1413 : vector<8x8xi1>, vector<8x8xf32>
    %cst_524 = arith.constant dense<0.000000e+00> : vector<8xf32>
    %1415 = vector.multi_reduction <add>, %1414, %cst_524 [1] : vector<8x8xf32> to vector<8xf32>
    %1416 = vector.shape_cast %1415 : vector<8xf32> to vector<8x1xf32>
    %cst_525 = arith.constant 1.000000e+00 : f32
    %1417 = vector.broadcast %cst_525 : f32 to vector<8x1xf32>
    %1418 = arith.subf %1416, %1417 : vector<8x1xf32>
    %1419 = arith.divf %1414, %1408 : vector<8x8xf32>
    %cst_526 = arith.constant 0.000000e+00 : f32
    %1420 = vector.broadcast %cst_526 : f32 to vector<8x8xf32>
    %1421 = arith.select %1406, %1419, %1420 : vector<8x8xi1>, vector<8x8xf32>
    %cst_527 = arith.constant dense<0.000000e+00> : vector<8xf32>
    %1422 = vector.multi_reduction <add>, %1421, %cst_527 [1] : vector<8x8xf32> to vector<8xf32>
    %1423 = vector.shape_cast %1422 : vector<8xf32> to vector<8x1xf32>
    %cst_528 = arith.constant 1.000000e-30 : f32
    %1424 = vector.broadcast %cst_528 : f32 to vector<8x1xf32>
    %1425 = arith.maximumf %1423, %1424 : vector<8x1xf32>
    %1426 = vector.broadcast %994 : f32 to vector<8x1xf32>
    %1427 = arith.mulf %1426, %1425 : vector<8x1xf32>
    %1428 = arith.divf %1418, %1427 : vector<8x1xf32>
    %1429 = arith.addf %1402, %1428 : vector<8x1xf32>
    %1430 = vector.broadcast %1429 : vector<8x1xf32> to vector<8x8xf32>
    %1431 = arith.subf %1009, %1430 : vector<8x8xf32>
    %cst_529 = arith.constant 0.000000e+00 : f32
    %1432 = vector.broadcast %cst_529 : f32 to vector<8x8xf32>
    %1433 = arith.cmpf ogt, %1431, %1432 : vector<8x8xf32>
    %cst_530 = arith.constant 1.000000e+00 : f32
    %1434 = vector.broadcast %cst_530 : f32 to vector<8x8xf32>
    %1435 = arith.select %1433, %1431, %1434 : vector<8x8xi1>, vector<8x8xf32>
    %1436 = math.log %1435 : vector<8x8xf32>
    %1437 = vector.broadcast %994 : f32 to vector<8x8xf32>
    %1438 = arith.mulf %1437, %1436 : vector<8x8xf32>
    %1439 = math.exp %1438 : vector<8x8xf32>
    %cst_531 = arith.constant 0.000000e+00 : f32
    %1440 = vector.broadcast %cst_531 : f32 to vector<8x8xf32>
    %1441 = arith.select %1433, %1439, %1440 : vector<8x8xi1>, vector<8x8xf32>
    %cst_532 = arith.constant dense<0.000000e+00> : vector<8xf32>
    %1442 = vector.multi_reduction <add>, %1441, %cst_532 [1] : vector<8x8xf32> to vector<8xf32>
    %1443 = vector.shape_cast %1442 : vector<8xf32> to vector<8x1xf32>
    %cst_533 = arith.constant 1.000000e+00 : f32
    %1444 = vector.broadcast %cst_533 : f32 to vector<8x1xf32>
    %1445 = arith.subf %1443, %1444 : vector<8x1xf32>
    %1446 = arith.divf %1441, %1435 : vector<8x8xf32>
    %cst_534 = arith.constant 0.000000e+00 : f32
    %1447 = vector.broadcast %cst_534 : f32 to vector<8x8xf32>
    %1448 = arith.select %1433, %1446, %1447 : vector<8x8xi1>, vector<8x8xf32>
    %cst_535 = arith.constant dense<0.000000e+00> : vector<8xf32>
    %1449 = vector.multi_reduction <add>, %1448, %cst_535 [1] : vector<8x8xf32> to vector<8xf32>
    %1450 = vector.shape_cast %1449 : vector<8xf32> to vector<8x1xf32>
    %cst_536 = arith.constant 1.000000e-30 : f32
    %1451 = vector.broadcast %cst_536 : f32 to vector<8x1xf32>
    %1452 = arith.maximumf %1450, %1451 : vector<8x1xf32>
    %1453 = vector.broadcast %994 : f32 to vector<8x1xf32>
    %1454 = arith.mulf %1453, %1452 : vector<8x1xf32>
    %1455 = arith.divf %1445, %1454 : vector<8x1xf32>
    %1456 = arith.addf %1429, %1455 : vector<8x1xf32>
    %1457 = vector.broadcast %1456 : vector<8x1xf32> to vector<8x8xf32>
    %1458 = arith.subf %1009, %1457 : vector<8x8xf32>
    %cst_537 = arith.constant 0.000000e+00 : f32
    %1459 = vector.broadcast %cst_537 : f32 to vector<8x8xf32>
    %1460 = arith.cmpf ogt, %1458, %1459 : vector<8x8xf32>
    %cst_538 = arith.constant 1.000000e+00 : f32
    %1461 = vector.broadcast %cst_538 : f32 to vector<8x8xf32>
    %1462 = arith.select %1460, %1458, %1461 : vector<8x8xi1>, vector<8x8xf32>
    %cst_539 = arith.constant 0.000000e+00 : f32
    %1463 = vector.broadcast %cst_539 : f32 to vector<8x8xf32>
    %1464 = arith.cmpf ogt, %1458, %1463 : vector<8x8xf32>
    %1465 = math.log %1462 : vector<8x8xf32>
    %1466 = vector.broadcast %994 : f32 to vector<8x8xf32>
    %1467 = arith.mulf %1466, %1465 : vector<8x8xf32>
    %1468 = math.exp %1467 : vector<8x8xf32>
    %cst_540 = arith.constant 0.000000e+00 : f32
    %1469 = vector.broadcast %cst_540 : f32 to vector<8x8xf32>
    %1470 = arith.select %1464, %1468, %1469 : vector<8x8xi1>, vector<8x8xf32>
    %cst_541 = arith.constant dense<0.000000e+00> : vector<8xf32>
    %1471 = vector.multi_reduction <add>, %1470, %cst_541 [1] : vector<8x8xf32> to vector<8xf32>
    %1472 = vector.shape_cast %1471 : vector<8xf32> to vector<8x1xf32>
    %1473 = vector.broadcast %1472 : vector<8x1xf32> to vector<8x8xf32>
    %1474 = arith.divf %1470, %1473 : vector<8x8xf32>
    %1475 = arith.truncf %1474 : vector<8x8xf32> to vector<8x8xbf16>
    %cst_542 = arith.constant dense<0.000000e+00> : vector<8x8xf32>
    %1476 = tpu.matmul %1475, %1000, %cst_542 {dimension_numbers = #tpu.dot_dimension_numbers<[1], [0], [0], [1], [0, 0, 1, 1], [], []>} : vector<8x8xbf16>, vector<8x8xbf16>, vector<8x8xf32> -> vector<8x8xf32>
    %1477 = arith.truncf %1476 : vector<8x8xf32> to vector<8x8xbf16>
    %c0_543 = arith.constant 0 : index
    %c0_544 = arith.constant 0 : index
    %c16_545 = arith.constant 16 : index
    %1478 = vector.load %arg7[%c0_543, %c0_544, %c16_545] : memref<1x8x32xbf16, #tpu.memory_space<vmem>>, vector<1x8x8xbf16>
    %1479 = vector.shape_cast %1478 : vector<1x8x8xbf16> to vector<8x8xbf16>
    %1480 = vector.shape_cast %1477 : vector<8x8xbf16> to vector<1x8x8xbf16>
    tpu.vector_store %arg7[%c0_543, %c0_544, %c16_545], %1480 {strides = array<i32>} : memref<1x8x32xbf16, #tpu.memory_space<vmem>>, vector<1x8x8xbf16>,
    %c3 = arith.constant 3 : index
    %1481 = memref.load %arg5[%c3] : memref<4xf32, #tpu.memory_space<smem>>
    %c3_546 = arith.constant 3 : index
    %1482 = memref.load %arg6[%c3_546] : memref<4xf32, #tpu.memory_space<smem>>
    %cst_547 = arith.constant 1.000000e+00 : f32
    %1483 = arith.subf %1481, %cst_547 : f32
    %cst_548 = arith.constant 9.99999974E-5 : f32
    %1484 = arith.maximumf %1483, %cst_548 : f32
    %cst_549 = arith.constant 1.000000e+00 : f32
    %1485 = arith.divf %cst_549, %1484 : f32
    %c0_550 = arith.constant 0 : index
    %c0_551 = arith.constant 0 : index
    %c24 = arith.constant 24 : index
    %1486 = vector.load %arg2[%c0_550, %c0_551, %c24] : memref<1x8x32xbf16, #tpu.memory_space<vmem>>, vector<1x8x8xbf16>
    %1487 = vector.shape_cast %1486 : vector<1x8x8xbf16> to vector<8x8xbf16>
    %c0_552 = arith.constant 0 : index
    %c0_553 = arith.constant 0 : index
    %c24_554 = arith.constant 24 : index
    %1488 = vector.load %arg3[%c0_552, %c0_553, %c24_554] : memref<1x8x32xbf16, #tpu.memory_space<vmem>>, vector<1x8x8xbf16>
    %1489 = vector.shape_cast %1488 : vector<1x8x8xbf16> to vector<8x8xbf16>
    %c0_555 = arith.constant 0 : index
    %c0_556 = arith.constant 0 : index
    %c24_557 = arith.constant 24 : index
    %1490 = vector.load %arg4[%c0_555, %c0_556, %c24_557] : memref<1x8x32xbf16, #tpu.memory_space<vmem>>, vector<1x8x8xbf16>
    %1491 = vector.shape_cast %1490 : vector<1x8x8xbf16> to vector<8x8xbf16>
    %cst_558 = arith.constant dense<0.000000e+00> : vector<8x8xf32>
    %1492 = tpu.matmul %1487, %1489, %cst_558 {dimension_numbers = #tpu.dot_dimension_numbers<[1], [1], [0], [0], [0, 0, 1, 0], [], []>} : vector<8x8xbf16>, vector<8x8xbf16>, vector<8x8xf32> -> vector<8x8xf32>
    %cst_559 = arith.constant 0.353553385 : f32
    %1493 = vector.broadcast %cst_559 : f32 to vector<8x8xf32>
    %1494 = arith.mulf %1492, %1493 : vector<8x8xf32>
    %1495 = vector.broadcast %1482 : f32 to vector<8x8xf32>
    %1496 = arith.cmpf ogt, %7, %1495 : vector<8x8xf32>
    %cst_560 = arith.constant 0xFF800000 : f32
    %1497 = vector.broadcast %cst_560 : f32 to vector<8x8xf32>
    %1498 = arith.select %1496, %1497, %1494 : vector<8x8xi1>, vector<8x8xf32>
    %1499 = vector.broadcast %1484 : f32 to vector<8x8xf32>
    %1500 = arith.mulf %1498, %1499 : vector<8x8xf32>
    %cst_561 = arith.constant dense<0xFF800000> : vector<8xf32>
    %1501 = vector.multi_reduction <maximumf>, %1500, %cst_561 [1] : vector<8x8xf32> to vector<8xf32>
    %1502 = vector.shape_cast %1501 : vector<8xf32> to vector<8x1xf32>
    %cst_562 = arith.constant 1.000000e+00 : f32
    %1503 = vector.broadcast %cst_562 : f32 to vector<8x1xf32>
    %1504 = arith.subf %1502, %1503 : vector<8x1xf32>
    %cst_563 = arith.constant -2.07944155 : f32
    %1505 = arith.mulf %1484, %cst_563 : f32
    %1506 = vector.broadcast %1505 : f32 to vector<8x1xf32>
    %1507 = math.exp %1506 : vector<8x1xf32>
    %1508 = arith.subf %1502, %1507 : vector<8x1xf32>
    %1509 = arith.subf %1508, %1504 : vector<8x1xf32>
    %c0_i32_564 = arith.constant 0 : i32
    %cst_565 = arith.constant 5.000000e-01 : f32
    %1510 = vector.broadcast %cst_565 : f32 to vector<8x1xf32>
    %1511 = arith.mulf %1509, %1510 : vector<8x1xf32>
    %1512 = arith.addf %1504, %1511 : vector<8x1xf32>
    %1513 = vector.broadcast %1512 : vector<8x1xf32> to vector<8x8xf32>
    %1514 = arith.subf %1500, %1513 : vector<8x8xf32>
    %cst_566 = arith.constant 0.000000e+00 : f32
    %1515 = vector.broadcast %cst_566 : f32 to vector<8x8xf32>
    %1516 = arith.cmpf ogt, %1514, %1515 : vector<8x8xf32>
    %cst_567 = arith.constant 1.000000e+00 : f32
    %1517 = vector.broadcast %cst_567 : f32 to vector<8x8xf32>
    %1518 = arith.select %1516, %1514, %1517 : vector<8x8xi1>, vector<8x8xf32>
    %cst_568 = arith.constant 0.000000e+00 : f32
    %1519 = vector.broadcast %cst_568 : f32 to vector<8x8xf32>
    %1520 = arith.cmpf ogt, %1514, %1519 : vector<8x8xf32>
    %1521 = math.log %1518 : vector<8x8xf32>
    %1522 = vector.broadcast %1485 : f32 to vector<8x8xf32>
    %1523 = arith.mulf %1522, %1521 : vector<8x8xf32>
    %1524 = math.exp %1523 : vector<8x8xf32>
    %cst_569 = arith.constant 0.000000e+00 : f32
    %1525 = vector.broadcast %cst_569 : f32 to vector<8x8xf32>
    %1526 = arith.select %1520, %1524, %1525 : vector<8x8xi1>, vector<8x8xf32>
    %cst_570 = arith.constant dense<0.000000e+00> : vector<8xf32>
    %1527 = vector.multi_reduction <add>, %1526, %cst_570 [1] : vector<8x8xf32> to vector<8xf32>
    %1528 = vector.shape_cast %1527 : vector<8xf32> to vector<8x1xf32>
    %cst_571 = arith.constant 1.000000e+00 : f32
    %1529 = vector.broadcast %cst_571 : f32 to vector<8x1xf32>
    %1530 = arith.subf %1528, %1529 : vector<8x1xf32>
    %cst_572 = arith.constant 0.000000e+00 : f32
    %1531 = vector.broadcast %cst_572 : f32 to vector<8x1xf32>
    %1532 = arith.cmpf oge, %1530, %1531 : vector<8x1xf32>
    %1533 = arith.select %1532, %1512, %1504 : vector<8x1xi1>, vector<8x1xf32>
    %c1_i32_573 = arith.constant 1 : i32
    %cst_574 = arith.constant 5.000000e-01 : f32
    %1534 = vector.broadcast %cst_574 : f32 to vector<8x1xf32>
    %1535 = arith.mulf %1511, %1534 : vector<8x1xf32>
    %1536 = arith.addf %1533, %1535 : vector<8x1xf32>
    %1537 = vector.broadcast %1536 : vector<8x1xf32> to vector<8x8xf32>
    %1538 = arith.subf %1500, %1537 : vector<8x8xf32>
    %cst_575 = arith.constant 0.000000e+00 : f32
    %1539 = vector.broadcast %cst_575 : f32 to vector<8x8xf32>
    %1540 = arith.cmpf ogt, %1538, %1539 : vector<8x8xf32>
    %cst_576 = arith.constant 1.000000e+00 : f32
    %1541 = vector.broadcast %cst_576 : f32 to vector<8x8xf32>
    %1542 = arith.select %1540, %1538, %1541 : vector<8x8xi1>, vector<8x8xf32>
    %cst_577 = arith.constant 0.000000e+00 : f32
    %1543 = vector.broadcast %cst_577 : f32 to vector<8x8xf32>
    %1544 = arith.cmpf ogt, %1538, %1543 : vector<8x8xf32>
    %1545 = math.log %1542 : vector<8x8xf32>
    %1546 = vector.broadcast %1485 : f32 to vector<8x8xf32>
    %1547 = arith.mulf %1546, %1545 : vector<8x8xf32>
    %1548 = math.exp %1547 : vector<8x8xf32>
    %cst_578 = arith.constant 0.000000e+00 : f32
    %1549 = vector.broadcast %cst_578 : f32 to vector<8x8xf32>
    %1550 = arith.select %1544, %1548, %1549 : vector<8x8xi1>, vector<8x8xf32>
    %cst_579 = arith.constant dense<0.000000e+00> : vector<8xf32>
    %1551 = vector.multi_reduction <add>, %1550, %cst_579 [1] : vector<8x8xf32> to vector<8xf32>
    %1552 = vector.shape_cast %1551 : vector<8xf32> to vector<8x1xf32>
    %cst_580 = arith.constant 1.000000e+00 : f32
    %1553 = vector.broadcast %cst_580 : f32 to vector<8x1xf32>
    %1554 = arith.subf %1552, %1553 : vector<8x1xf32>
    %cst_581 = arith.constant 0.000000e+00 : f32
    %1555 = vector.broadcast %cst_581 : f32 to vector<8x1xf32>
    %1556 = arith.cmpf oge, %1554, %1555 : vector<8x1xf32>
    %1557 = arith.select %1556, %1536, %1533 : vector<8x1xi1>, vector<8x1xf32>
    %c2_i32_582 = arith.constant 2 : i32
    %cst_583 = arith.constant 5.000000e-01 : f32
    %1558 = vector.broadcast %cst_583 : f32 to vector<8x1xf32>
    %1559 = arith.mulf %1535, %1558 : vector<8x1xf32>
    %1560 = arith.addf %1557, %1559 : vector<8x1xf32>
    %1561 = vector.broadcast %1560 : vector<8x1xf32> to vector<8x8xf32>
    %1562 = arith.subf %1500, %1561 : vector<8x8xf32>
    %cst_584 = arith.constant 0.000000e+00 : f32
    %1563 = vector.broadcast %cst_584 : f32 to vector<8x8xf32>
    %1564 = arith.cmpf ogt, %1562, %1563 : vector<8x8xf32>
    %cst_585 = arith.constant 1.000000e+00 : f32
    %1565 = vector.broadcast %cst_585 : f32 to vector<8x8xf32>
    %1566 = arith.select %1564, %1562, %1565 : vector<8x8xi1>, vector<8x8xf32>
    %cst_586 = arith.constant 0.000000e+00 : f32
    %1567 = vector.broadcast %cst_586 : f32 to vector<8x8xf32>
    %1568 = arith.cmpf ogt, %1562, %1567 : vector<8x8xf32>
    %1569 = math.log %1566 : vector<8x8xf32>
    %1570 = vector.broadcast %1485 : f32 to vector<8x8xf32>
    %1571 = arith.mulf %1570, %1569 : vector<8x8xf32>
    %1572 = math.exp %1571 : vector<8x8xf32>
    %cst_587 = arith.constant 0.000000e+00 : f32
    %1573 = vector.broadcast %cst_587 : f32 to vector<8x8xf32>
    %1574 = arith.select %1568, %1572, %1573 : vector<8x8xi1>, vector<8x8xf32>
    %cst_588 = arith.constant dense<0.000000e+00> : vector<8xf32>
    %1575 = vector.multi_reduction <add>, %1574, %cst_588 [1] : vector<8x8xf32> to vector<8xf32>
    %1576 = vector.shape_cast %1575 : vector<8xf32> to vector<8x1xf32>
    %cst_589 = arith.constant 1.000000e+00 : f32
    %1577 = vector.broadcast %cst_589 : f32 to vector<8x1xf32>
    %1578 = arith.subf %1576, %1577 : vector<8x1xf32>
    %cst_590 = arith.constant 0.000000e+00 : f32
    %1579 = vector.broadcast %cst_590 : f32 to vector<8x1xf32>
    %1580 = arith.cmpf oge, %1578, %1579 : vector<8x1xf32>
    %1581 = arith.select %1580, %1560, %1557 : vector<8x1xi1>, vector<8x1xf32>
    %c3_i32_591 = arith.constant 3 : i32
    %cst_592 = arith.constant 5.000000e-01 : f32
    %1582 = vector.broadcast %cst_592 : f32 to vector<8x1xf32>
    %1583 = arith.mulf %1559, %1582 : vector<8x1xf32>
    %1584 = arith.addf %1581, %1583 : vector<8x1xf32>
    %1585 = vector.broadcast %1584 : vector<8x1xf32> to vector<8x8xf32>
    %1586 = arith.subf %1500, %1585 : vector<8x8xf32>
    %cst_593 = arith.constant 0.000000e+00 : f32
    %1587 = vector.broadcast %cst_593 : f32 to vector<8x8xf32>
    %1588 = arith.cmpf ogt, %1586, %1587 : vector<8x8xf32>
    %cst_594 = arith.constant 1.000000e+00 : f32
    %1589 = vector.broadcast %cst_594 : f32 to vector<8x8xf32>
    %1590 = arith.select %1588, %1586, %1589 : vector<8x8xi1>, vector<8x8xf32>
    %cst_595 = arith.constant 0.000000e+00 : f32
    %1591 = vector.broadcast %cst_595 : f32 to vector<8x8xf32>
    %1592 = arith.cmpf ogt, %1586, %1591 : vector<8x8xf32>
    %1593 = math.log %1590 : vector<8x8xf32>
    %1594 = vector.broadcast %1485 : f32 to vector<8x8xf32>
    %1595 = arith.mulf %1594, %1593 : vector<8x8xf32>
    %1596 = math.exp %1595 : vector<8x8xf32>
    %cst_596 = arith.constant 0.000000e+00 : f32
    %1597 = vector.broadcast %cst_596 : f32 to vector<8x8xf32>
    %1598 = arith.select %1592, %1596, %1597 : vector<8x8xi1>, vector<8x8xf32>
    %cst_597 = arith.constant dense<0.000000e+00> : vector<8xf32>
    %1599 = vector.multi_reduction <add>, %1598, %cst_597 [1] : vector<8x8xf32> to vector<8xf32>
    %1600 = vector.shape_cast %1599 : vector<8xf32> to vector<8x1xf32>
    %cst_598 = arith.constant 1.000000e+00 : f32
    %1601 = vector.broadcast %cst_598 : f32 to vector<8x1xf32>
    %1602 = arith.subf %1600, %1601 : vector<8x1xf32>
    %cst_599 = arith.constant 0.000000e+00 : f32
    %1603 = vector.broadcast %cst_599 : f32 to vector<8x1xf32>
    %1604 = arith.cmpf oge, %1602, %1603 : vector<8x1xf32>
    %1605 = arith.select %1604, %1584, %1581 : vector<8x1xi1>, vector<8x1xf32>
    %c4_i32_600 = arith.constant 4 : i32
    %cst_601 = arith.constant 5.000000e-01 : f32
    %1606 = vector.broadcast %cst_601 : f32 to vector<8x1xf32>
    %1607 = arith.mulf %1583, %1606 : vector<8x1xf32>
    %1608 = arith.addf %1605, %1607 : vector<8x1xf32>
    %1609 = vector.broadcast %1608 : vector<8x1xf32> to vector<8x8xf32>
    %1610 = arith.subf %1500, %1609 : vector<8x8xf32>
    %cst_602 = arith.constant 0.000000e+00 : f32
    %1611 = vector.broadcast %cst_602 : f32 to vector<8x8xf32>
    %1612 = arith.cmpf ogt, %1610, %1611 : vector<8x8xf32>
    %cst_603 = arith.constant 1.000000e+00 : f32
    %1613 = vector.broadcast %cst_603 : f32 to vector<8x8xf32>
    %1614 = arith.select %1612, %1610, %1613 : vector<8x8xi1>, vector<8x8xf32>
    %cst_604 = arith.constant 0.000000e+00 : f32
    %1615 = vector.broadcast %cst_604 : f32 to vector<8x8xf32>
    %1616 = arith.cmpf ogt, %1610, %1615 : vector<8x8xf32>
    %1617 = math.log %1614 : vector<8x8xf32>
    %1618 = vector.broadcast %1485 : f32 to vector<8x8xf32>
    %1619 = arith.mulf %1618, %1617 : vector<8x8xf32>
    %1620 = math.exp %1619 : vector<8x8xf32>
    %cst_605 = arith.constant 0.000000e+00 : f32
    %1621 = vector.broadcast %cst_605 : f32 to vector<8x8xf32>
    %1622 = arith.select %1616, %1620, %1621 : vector<8x8xi1>, vector<8x8xf32>
    %cst_606 = arith.constant dense<0.000000e+00> : vector<8xf32>
    %1623 = vector.multi_reduction <add>, %1622, %cst_606 [1] : vector<8x8xf32> to vector<8xf32>
    %1624 = vector.shape_cast %1623 : vector<8xf32> to vector<8x1xf32>
    %cst_607 = arith.constant 1.000000e+00 : f32
    %1625 = vector.broadcast %cst_607 : f32 to vector<8x1xf32>
    %1626 = arith.subf %1624, %1625 : vector<8x1xf32>
    %cst_608 = arith.constant 0.000000e+00 : f32
    %1627 = vector.broadcast %cst_608 : f32 to vector<8x1xf32>
    %1628 = arith.cmpf oge, %1626, %1627 : vector<8x1xf32>
    %1629 = arith.select %1628, %1608, %1605 : vector<8x1xi1>, vector<8x1xf32>
    %c5_i32_609 = arith.constant 5 : i32
    %cst_610 = arith.constant 5.000000e-01 : f32
    %1630 = vector.broadcast %cst_610 : f32 to vector<8x1xf32>
    %1631 = arith.mulf %1607, %1630 : vector<8x1xf32>
    %1632 = arith.addf %1629, %1631 : vector<8x1xf32>
    %1633 = vector.broadcast %1632 : vector<8x1xf32> to vector<8x8xf32>
    %1634 = arith.subf %1500, %1633 : vector<8x8xf32>
    %cst_611 = arith.constant 0.000000e+00 : f32
    %1635 = vector.broadcast %cst_611 : f32 to vector<8x8xf32>
    %1636 = arith.cmpf ogt, %1634, %1635 : vector<8x8xf32>
    %cst_612 = arith.constant 1.000000e+00 : f32
    %1637 = vector.broadcast %cst_612 : f32 to vector<8x8xf32>
    %1638 = arith.select %1636, %1634, %1637 : vector<8x8xi1>, vector<8x8xf32>
    %cst_613 = arith.constant 0.000000e+00 : f32
    %1639 = vector.broadcast %cst_613 : f32 to vector<8x8xf32>
    %1640 = arith.cmpf ogt, %1634, %1639 : vector<8x8xf32>
    %1641 = math.log %1638 : vector<8x8xf32>
    %1642 = vector.broadcast %1485 : f32 to vector<8x8xf32>
    %1643 = arith.mulf %1642, %1641 : vector<8x8xf32>
    %1644 = math.exp %1643 : vector<8x8xf32>
    %cst_614 = arith.constant 0.000000e+00 : f32
    %1645 = vector.broadcast %cst_614 : f32 to vector<8x8xf32>
    %1646 = arith.select %1640, %1644, %1645 : vector<8x8xi1>, vector<8x8xf32>
    %cst_615 = arith.constant dense<0.000000e+00> : vector<8xf32>
    %1647 = vector.multi_reduction <add>, %1646, %cst_615 [1] : vector<8x8xf32> to vector<8xf32>
    %1648 = vector.shape_cast %1647 : vector<8xf32> to vector<8x1xf32>
    %cst_616 = arith.constant 1.000000e+00 : f32
    %1649 = vector.broadcast %cst_616 : f32 to vector<8x1xf32>
    %1650 = arith.subf %1648, %1649 : vector<8x1xf32>
    %cst_617 = arith.constant 0.000000e+00 : f32
    %1651 = vector.broadcast %cst_617 : f32 to vector<8x1xf32>
    %1652 = arith.cmpf oge, %1650, %1651 : vector<8x1xf32>
    %1653 = arith.select %1652, %1632, %1629 : vector<8x1xi1>, vector<8x1xf32>
    %c6_i32_618 = arith.constant 6 : i32
    %cst_619 = arith.constant 5.000000e-01 : f32
    %1654 = vector.broadcast %cst_619 : f32 to vector<8x1xf32>
    %1655 = arith.mulf %1631, %1654 : vector<8x1xf32>
    %1656 = arith.addf %1653, %1655 : vector<8x1xf32>
    %1657 = vector.broadcast %1656 : vector<8x1xf32> to vector<8x8xf32>
    %1658 = arith.subf %1500, %1657 : vector<8x8xf32>
    %cst_620 = arith.constant 0.000000e+00 : f32
    %1659 = vector.broadcast %cst_620 : f32 to vector<8x8xf32>
    %1660 = arith.cmpf ogt, %1658, %1659 : vector<8x8xf32>
    %cst_621 = arith.constant 1.000000e+00 : f32
    %1661 = vector.broadcast %cst_621 : f32 to vector<8x8xf32>
    %1662 = arith.select %1660, %1658, %1661 : vector<8x8xi1>, vector<8x8xf32>
    %cst_622 = arith.constant 0.000000e+00 : f32
    %1663 = vector.broadcast %cst_622 : f32 to vector<8x8xf32>
    %1664 = arith.cmpf ogt, %1658, %1663 : vector<8x8xf32>
    %1665 = math.log %1662 : vector<8x8xf32>
    %1666 = vector.broadcast %1485 : f32 to vector<8x8xf32>
    %1667 = arith.mulf %1666, %1665 : vector<8x8xf32>
    %1668 = math.exp %1667 : vector<8x8xf32>
    %cst_623 = arith.constant 0.000000e+00 : f32
    %1669 = vector.broadcast %cst_623 : f32 to vector<8x8xf32>
    %1670 = arith.select %1664, %1668, %1669 : vector<8x8xi1>, vector<8x8xf32>
    %cst_624 = arith.constant dense<0.000000e+00> : vector<8xf32>
    %1671 = vector.multi_reduction <add>, %1670, %cst_624 [1] : vector<8x8xf32> to vector<8xf32>
    %1672 = vector.shape_cast %1671 : vector<8xf32> to vector<8x1xf32>
    %cst_625 = arith.constant 1.000000e+00 : f32
    %1673 = vector.broadcast %cst_625 : f32 to vector<8x1xf32>
    %1674 = arith.subf %1672, %1673 : vector<8x1xf32>
    %cst_626 = arith.constant 0.000000e+00 : f32
    %1675 = vector.broadcast %cst_626 : f32 to vector<8x1xf32>
    %1676 = arith.cmpf oge, %1674, %1675 : vector<8x1xf32>
    %1677 = arith.select %1676, %1656, %1653 : vector<8x1xi1>, vector<8x1xf32>
    %c7_i32_627 = arith.constant 7 : i32
    %cst_628 = arith.constant 5.000000e-01 : f32
    %1678 = vector.broadcast %cst_628 : f32 to vector<8x1xf32>
    %1679 = arith.mulf %1655, %1678 : vector<8x1xf32>
    %1680 = arith.addf %1677, %1679 : vector<8x1xf32>
    %1681 = vector.broadcast %1680 : vector<8x1xf32> to vector<8x8xf32>
    %1682 = arith.subf %1500, %1681 : vector<8x8xf32>
    %cst_629 = arith.constant 0.000000e+00 : f32
    %1683 = vector.broadcast %cst_629 : f32 to vector<8x8xf32>
    %1684 = arith.cmpf ogt, %1682, %1683 : vector<8x8xf32>
    %cst_630 = arith.constant 1.000000e+00 : f32
    %1685 = vector.broadcast %cst_630 : f32 to vector<8x8xf32>
    %1686 = arith.select %1684, %1682, %1685 : vector<8x8xi1>, vector<8x8xf32>
    %cst_631 = arith.constant 0.000000e+00 : f32
    %1687 = vector.broadcast %cst_631 : f32 to vector<8x8xf32>
    %1688 = arith.cmpf ogt, %1682, %1687 : vector<8x8xf32>
    %1689 = math.log %1686 : vector<8x8xf32>
    %1690 = vector.broadcast %1485 : f32 to vector<8x8xf32>
    %1691 = arith.mulf %1690, %1689 : vector<8x8xf32>
    %1692 = math.exp %1691 : vector<8x8xf32>
    %cst_632 = arith.constant 0.000000e+00 : f32
    %1693 = vector.broadcast %cst_632 : f32 to vector<8x8xf32>
    %1694 = arith.select %1688, %1692, %1693 : vector<8x8xi1>, vector<8x8xf32>
    %cst_633 = arith.constant dense<0.000000e+00> : vector<8xf32>
    %1695 = vector.multi_reduction <add>, %1694, %cst_633 [1] : vector<8x8xf32> to vector<8xf32>
    %1696 = vector.shape_cast %1695 : vector<8xf32> to vector<8x1xf32>
    %cst_634 = arith.constant 1.000000e+00 : f32
    %1697 = vector.broadcast %cst_634 : f32 to vector<8x1xf32>
    %1698 = arith.subf %1696, %1697 : vector<8x1xf32>
    %cst_635 = arith.constant 0.000000e+00 : f32
    %1699 = vector.broadcast %cst_635 : f32 to vector<8x1xf32>
    %1700 = arith.cmpf oge, %1698, %1699 : vector<8x1xf32>
    %1701 = arith.select %1700, %1680, %1677 : vector<8x1xi1>, vector<8x1xf32>
    %c8_i32_636 = arith.constant 8 : i32
    %cst_637 = arith.constant 5.000000e-01 : f32
    %1702 = vector.broadcast %cst_637 : f32 to vector<8x1xf32>
    %1703 = arith.mulf %1679, %1702 : vector<8x1xf32>
    %1704 = arith.addf %1701, %1703 : vector<8x1xf32>
    %1705 = vector.broadcast %1704 : vector<8x1xf32> to vector<8x8xf32>
    %1706 = arith.subf %1500, %1705 : vector<8x8xf32>
    %cst_638 = arith.constant 0.000000e+00 : f32
    %1707 = vector.broadcast %cst_638 : f32 to vector<8x8xf32>
    %1708 = arith.cmpf ogt, %1706, %1707 : vector<8x8xf32>
    %cst_639 = arith.constant 1.000000e+00 : f32
    %1709 = vector.broadcast %cst_639 : f32 to vector<8x8xf32>
    %1710 = arith.select %1708, %1706, %1709 : vector<8x8xi1>, vector<8x8xf32>
    %cst_640 = arith.constant 0.000000e+00 : f32
    %1711 = vector.broadcast %cst_640 : f32 to vector<8x8xf32>
    %1712 = arith.cmpf ogt, %1706, %1711 : vector<8x8xf32>
    %1713 = math.log %1710 : vector<8x8xf32>
    %1714 = vector.broadcast %1485 : f32 to vector<8x8xf32>
    %1715 = arith.mulf %1714, %1713 : vector<8x8xf32>
    %1716 = math.exp %1715 : vector<8x8xf32>
    %cst_641 = arith.constant 0.000000e+00 : f32
    %1717 = vector.broadcast %cst_641 : f32 to vector<8x8xf32>
    %1718 = arith.select %1712, %1716, %1717 : vector<8x8xi1>, vector<8x8xf32>
    %cst_642 = arith.constant dense<0.000000e+00> : vector<8xf32>
    %1719 = vector.multi_reduction <add>, %1718, %cst_642 [1] : vector<8x8xf32> to vector<8xf32>
    %1720 = vector.shape_cast %1719 : vector<8xf32> to vector<8x1xf32>
    %cst_643 = arith.constant 1.000000e+00 : f32
    %1721 = vector.broadcast %cst_643 : f32 to vector<8x1xf32>
    %1722 = arith.subf %1720, %1721 : vector<8x1xf32>
    %cst_644 = arith.constant 0.000000e+00 : f32
    %1723 = vector.broadcast %cst_644 : f32 to vector<8x1xf32>
    %1724 = arith.cmpf oge, %1722, %1723 : vector<8x1xf32>
    %1725 = arith.select %1724, %1704, %1701 : vector<8x1xi1>, vector<8x1xf32>
    %c9_i32_645 = arith.constant 9 : i32
    %cst_646 = arith.constant 5.000000e-01 : f32
    %1726 = vector.broadcast %cst_646 : f32 to vector<8x1xf32>
    %1727 = arith.mulf %1703, %1726 : vector<8x1xf32>
    %1728 = arith.addf %1725, %1727 : vector<8x1xf32>
    %1729 = vector.broadcast %1728 : vector<8x1xf32> to vector<8x8xf32>
    %1730 = arith.subf %1500, %1729 : vector<8x8xf32>
    %cst_647 = arith.constant 0.000000e+00 : f32
    %1731 = vector.broadcast %cst_647 : f32 to vector<8x8xf32>
    %1732 = arith.cmpf ogt, %1730, %1731 : vector<8x8xf32>
    %cst_648 = arith.constant 1.000000e+00 : f32
    %1733 = vector.broadcast %cst_648 : f32 to vector<8x8xf32>
    %1734 = arith.select %1732, %1730, %1733 : vector<8x8xi1>, vector<8x8xf32>
    %cst_649 = arith.constant 0.000000e+00 : f32
    %1735 = vector.broadcast %cst_649 : f32 to vector<8x8xf32>
    %1736 = arith.cmpf ogt, %1730, %1735 : vector<8x8xf32>
    %1737 = math.log %1734 : vector<8x8xf32>
    %1738 = vector.broadcast %1485 : f32 to vector<8x8xf32>
    %1739 = arith.mulf %1738, %1737 : vector<8x8xf32>
    %1740 = math.exp %1739 : vector<8x8xf32>
    %cst_650 = arith.constant 0.000000e+00 : f32
    %1741 = vector.broadcast %cst_650 : f32 to vector<8x8xf32>
    %1742 = arith.select %1736, %1740, %1741 : vector<8x8xi1>, vector<8x8xf32>
    %cst_651 = arith.constant dense<0.000000e+00> : vector<8xf32>
    %1743 = vector.multi_reduction <add>, %1742, %cst_651 [1] : vector<8x8xf32> to vector<8xf32>
    %1744 = vector.shape_cast %1743 : vector<8xf32> to vector<8x1xf32>
    %cst_652 = arith.constant 1.000000e+00 : f32
    %1745 = vector.broadcast %cst_652 : f32 to vector<8x1xf32>
    %1746 = arith.subf %1744, %1745 : vector<8x1xf32>
    %cst_653 = arith.constant 0.000000e+00 : f32
    %1747 = vector.broadcast %cst_653 : f32 to vector<8x1xf32>
    %1748 = arith.cmpf oge, %1746, %1747 : vector<8x1xf32>
    %1749 = arith.select %1748, %1728, %1725 : vector<8x1xi1>, vector<8x1xf32>
    %c10_i32_654 = arith.constant 10 : i32
    %cst_655 = arith.constant 5.000000e-01 : f32
    %1750 = vector.broadcast %cst_655 : f32 to vector<8x1xf32>
    %1751 = arith.mulf %1727, %1750 : vector<8x1xf32>
    %1752 = arith.addf %1749, %1751 : vector<8x1xf32>
    %1753 = vector.broadcast %1752 : vector<8x1xf32> to vector<8x8xf32>
    %1754 = arith.subf %1500, %1753 : vector<8x8xf32>
    %cst_656 = arith.constant 0.000000e+00 : f32
    %1755 = vector.broadcast %cst_656 : f32 to vector<8x8xf32>
    %1756 = arith.cmpf ogt, %1754, %1755 : vector<8x8xf32>
    %cst_657 = arith.constant 1.000000e+00 : f32
    %1757 = vector.broadcast %cst_657 : f32 to vector<8x8xf32>
    %1758 = arith.select %1756, %1754, %1757 : vector<8x8xi1>, vector<8x8xf32>
    %cst_658 = arith.constant 0.000000e+00 : f32
    %1759 = vector.broadcast %cst_658 : f32 to vector<8x8xf32>
    %1760 = arith.cmpf ogt, %1754, %1759 : vector<8x8xf32>
    %1761 = math.log %1758 : vector<8x8xf32>
    %1762 = vector.broadcast %1485 : f32 to vector<8x8xf32>
    %1763 = arith.mulf %1762, %1761 : vector<8x8xf32>
    %1764 = math.exp %1763 : vector<8x8xf32>
    %cst_659 = arith.constant 0.000000e+00 : f32
    %1765 = vector.broadcast %cst_659 : f32 to vector<8x8xf32>
    %1766 = arith.select %1760, %1764, %1765 : vector<8x8xi1>, vector<8x8xf32>
    %cst_660 = arith.constant dense<0.000000e+00> : vector<8xf32>
    %1767 = vector.multi_reduction <add>, %1766, %cst_660 [1] : vector<8x8xf32> to vector<8xf32>
    %1768 = vector.shape_cast %1767 : vector<8xf32> to vector<8x1xf32>
    %cst_661 = arith.constant 1.000000e+00 : f32
    %1769 = vector.broadcast %cst_661 : f32 to vector<8x1xf32>
    %1770 = arith.subf %1768, %1769 : vector<8x1xf32>
    %cst_662 = arith.constant 0.000000e+00 : f32
    %1771 = vector.broadcast %cst_662 : f32 to vector<8x1xf32>
    %1772 = arith.cmpf oge, %1770, %1771 : vector<8x1xf32>
    %1773 = arith.select %1772, %1752, %1749 : vector<8x1xi1>, vector<8x1xf32>
    %c11_i32_663 = arith.constant 11 : i32
    %cst_664 = arith.constant 5.000000e-01 : f32
    %1774 = vector.broadcast %cst_664 : f32 to vector<8x1xf32>
    %1775 = arith.mulf %1751, %1774 : vector<8x1xf32>
    %1776 = arith.addf %1773, %1775 : vector<8x1xf32>
    %1777 = vector.broadcast %1776 : vector<8x1xf32> to vector<8x8xf32>
    %1778 = arith.subf %1500, %1777 : vector<8x8xf32>
    %cst_665 = arith.constant 0.000000e+00 : f32
    %1779 = vector.broadcast %cst_665 : f32 to vector<8x8xf32>
    %1780 = arith.cmpf ogt, %1778, %1779 : vector<8x8xf32>
    %cst_666 = arith.constant 1.000000e+00 : f32
    %1781 = vector.broadcast %cst_666 : f32 to vector<8x8xf32>
    %1782 = arith.select %1780, %1778, %1781 : vector<8x8xi1>, vector<8x8xf32>
    %cst_667 = arith.constant 0.000000e+00 : f32
    %1783 = vector.broadcast %cst_667 : f32 to vector<8x8xf32>
    %1784 = arith.cmpf ogt, %1778, %1783 : vector<8x8xf32>
    %1785 = math.log %1782 : vector<8x8xf32>
    %1786 = vector.broadcast %1485 : f32 to vector<8x8xf32>
    %1787 = arith.mulf %1786, %1785 : vector<8x8xf32>
    %1788 = math.exp %1787 : vector<8x8xf32>
    %cst_668 = arith.constant 0.000000e+00 : f32
    %1789 = vector.broadcast %cst_668 : f32 to vector<8x8xf32>
    %1790 = arith.select %1784, %1788, %1789 : vector<8x8xi1>, vector<8x8xf32>
    %cst_669 = arith.constant dense<0.000000e+00> : vector<8xf32>
    %1791 = vector.multi_reduction <add>, %1790, %cst_669 [1] : vector<8x8xf32> to vector<8xf32>
    %1792 = vector.shape_cast %1791 : vector<8xf32> to vector<8x1xf32>
    %cst_670 = arith.constant 1.000000e+00 : f32
    %1793 = vector.broadcast %cst_670 : f32 to vector<8x1xf32>
    %1794 = arith.subf %1792, %1793 : vector<8x1xf32>
    %cst_671 = arith.constant 0.000000e+00 : f32
    %1795 = vector.broadcast %cst_671 : f32 to vector<8x1xf32>
    %1796 = arith.cmpf oge, %1794, %1795 : vector<8x1xf32>
    %1797 = arith.select %1796, %1776, %1773 : vector<8x1xi1>, vector<8x1xf32>
    %c12_i32_672 = arith.constant 12 : i32
    %cst_673 = arith.constant 5.000000e-01 : f32
    %1798 = vector.broadcast %cst_673 : f32 to vector<8x1xf32>
    %1799 = arith.mulf %1775, %1798 : vector<8x1xf32>
    %1800 = arith.addf %1797, %1799 : vector<8x1xf32>
    %1801 = vector.broadcast %1800 : vector<8x1xf32> to vector<8x8xf32>
    %1802 = arith.subf %1500, %1801 : vector<8x8xf32>
    %cst_674 = arith.constant 0.000000e+00 : f32
    %1803 = vector.broadcast %cst_674 : f32 to vector<8x8xf32>
    %1804 = arith.cmpf ogt, %1802, %1803 : vector<8x8xf32>
    %cst_675 = arith.constant 1.000000e+00 : f32
    %1805 = vector.broadcast %cst_675 : f32 to vector<8x8xf32>
    %1806 = arith.select %1804, %1802, %1805 : vector<8x8xi1>, vector<8x8xf32>
    %cst_676 = arith.constant 0.000000e+00 : f32
    %1807 = vector.broadcast %cst_676 : f32 to vector<8x8xf32>
    %1808 = arith.cmpf ogt, %1802, %1807 : vector<8x8xf32>
    %1809 = math.log %1806 : vector<8x8xf32>
    %1810 = vector.broadcast %1485 : f32 to vector<8x8xf32>
    %1811 = arith.mulf %1810, %1809 : vector<8x8xf32>
    %1812 = math.exp %1811 : vector<8x8xf32>
    %cst_677 = arith.constant 0.000000e+00 : f32
    %1813 = vector.broadcast %cst_677 : f32 to vector<8x8xf32>
    %1814 = arith.select %1808, %1812, %1813 : vector<8x8xi1>, vector<8x8xf32>
    %cst_678 = arith.constant dense<0.000000e+00> : vector<8xf32>
    %1815 = vector.multi_reduction <add>, %1814, %cst_678 [1] : vector<8x8xf32> to vector<8xf32>
    %1816 = vector.shape_cast %1815 : vector<8xf32> to vector<8x1xf32>
    %cst_679 = arith.constant 1.000000e+00 : f32
    %1817 = vector.broadcast %cst_679 : f32 to vector<8x1xf32>
    %1818 = arith.subf %1816, %1817 : vector<8x1xf32>
    %cst_680 = arith.constant 0.000000e+00 : f32
    %1819 = vector.broadcast %cst_680 : f32 to vector<8x1xf32>
    %1820 = arith.cmpf oge, %1818, %1819 : vector<8x1xf32>
    %1821 = arith.select %1820, %1800, %1797 : vector<8x1xi1>, vector<8x1xf32>
    %c13_i32_681 = arith.constant 13 : i32
    %cst_682 = arith.constant 5.000000e-01 : f32
    %1822 = vector.broadcast %cst_682 : f32 to vector<8x1xf32>
    %1823 = arith.mulf %1799, %1822 : vector<8x1xf32>
    %1824 = arith.addf %1821, %1823 : vector<8x1xf32>
    %1825 = vector.broadcast %1824 : vector<8x1xf32> to vector<8x8xf32>
    %1826 = arith.subf %1500, %1825 : vector<8x8xf32>
    %cst_683 = arith.constant 0.000000e+00 : f32
    %1827 = vector.broadcast %cst_683 : f32 to vector<8x8xf32>
    %1828 = arith.cmpf ogt, %1826, %1827 : vector<8x8xf32>
    %cst_684 = arith.constant 1.000000e+00 : f32
    %1829 = vector.broadcast %cst_684 : f32 to vector<8x8xf32>
    %1830 = arith.select %1828, %1826, %1829 : vector<8x8xi1>, vector<8x8xf32>
    %cst_685 = arith.constant 0.000000e+00 : f32
    %1831 = vector.broadcast %cst_685 : f32 to vector<8x8xf32>
    %1832 = arith.cmpf ogt, %1826, %1831 : vector<8x8xf32>
    %1833 = math.log %1830 : vector<8x8xf32>
    %1834 = vector.broadcast %1485 : f32 to vector<8x8xf32>
    %1835 = arith.mulf %1834, %1833 : vector<8x8xf32>
    %1836 = math.exp %1835 : vector<8x8xf32>
    %cst_686 = arith.constant 0.000000e+00 : f32
    %1837 = vector.broadcast %cst_686 : f32 to vector<8x8xf32>
    %1838 = arith.select %1832, %1836, %1837 : vector<8x8xi1>, vector<8x8xf32>
    %cst_687 = arith.constant dense<0.000000e+00> : vector<8xf32>
    %1839 = vector.multi_reduction <add>, %1838, %cst_687 [1] : vector<8x8xf32> to vector<8xf32>
    %1840 = vector.shape_cast %1839 : vector<8xf32> to vector<8x1xf32>
    %cst_688 = arith.constant 1.000000e+00 : f32
    %1841 = vector.broadcast %cst_688 : f32 to vector<8x1xf32>
    %1842 = arith.subf %1840, %1841 : vector<8x1xf32>
    %cst_689 = arith.constant 0.000000e+00 : f32
    %1843 = vector.broadcast %cst_689 : f32 to vector<8x1xf32>
    %1844 = arith.cmpf oge, %1842, %1843 : vector<8x1xf32>
    %1845 = arith.select %1844, %1824, %1821 : vector<8x1xi1>, vector<8x1xf32>
    %c14_i32_690 = arith.constant 14 : i32
    %cst_691 = arith.constant 5.000000e-01 : f32
    %1846 = vector.broadcast %cst_691 : f32 to vector<8x1xf32>
    %1847 = arith.mulf %1823, %1846 : vector<8x1xf32>
    %1848 = arith.addf %1845, %1847 : vector<8x1xf32>
    %1849 = vector.broadcast %1848 : vector<8x1xf32> to vector<8x8xf32>
    %1850 = arith.subf %1500, %1849 : vector<8x8xf32>
    %cst_692 = arith.constant 0.000000e+00 : f32
    %1851 = vector.broadcast %cst_692 : f32 to vector<8x8xf32>
    %1852 = arith.cmpf ogt, %1850, %1851 : vector<8x8xf32>
    %cst_693 = arith.constant 1.000000e+00 : f32
    %1853 = vector.broadcast %cst_693 : f32 to vector<8x8xf32>
    %1854 = arith.select %1852, %1850, %1853 : vector<8x8xi1>, vector<8x8xf32>
    %cst_694 = arith.constant 0.000000e+00 : f32
    %1855 = vector.broadcast %cst_694 : f32 to vector<8x8xf32>
    %1856 = arith.cmpf ogt, %1850, %1855 : vector<8x8xf32>
    %1857 = math.log %1854 : vector<8x8xf32>
    %1858 = vector.broadcast %1485 : f32 to vector<8x8xf32>
    %1859 = arith.mulf %1858, %1857 : vector<8x8xf32>
    %1860 = math.exp %1859 : vector<8x8xf32>
    %cst_695 = arith.constant 0.000000e+00 : f32
    %1861 = vector.broadcast %cst_695 : f32 to vector<8x8xf32>
    %1862 = arith.select %1856, %1860, %1861 : vector<8x8xi1>, vector<8x8xf32>
    %cst_696 = arith.constant dense<0.000000e+00> : vector<8xf32>
    %1863 = vector.multi_reduction <add>, %1862, %cst_696 [1] : vector<8x8xf32> to vector<8xf32>
    %1864 = vector.shape_cast %1863 : vector<8xf32> to vector<8x1xf32>
    %cst_697 = arith.constant 1.000000e+00 : f32
    %1865 = vector.broadcast %cst_697 : f32 to vector<8x1xf32>
    %1866 = arith.subf %1864, %1865 : vector<8x1xf32>
    %cst_698 = arith.constant 0.000000e+00 : f32
    %1867 = vector.broadcast %cst_698 : f32 to vector<8x1xf32>
    %1868 = arith.cmpf oge, %1866, %1867 : vector<8x1xf32>
    %1869 = arith.select %1868, %1848, %1845 : vector<8x1xi1>, vector<8x1xf32>
    %c15_i32_699 = arith.constant 15 : i32
    %cst_700 = arith.constant 5.000000e-01 : f32
    %1870 = vector.broadcast %cst_700 : f32 to vector<8x1xf32>
    %1871 = arith.mulf %1847, %1870 : vector<8x1xf32>
    %1872 = arith.addf %1869, %1871 : vector<8x1xf32>
    %1873 = vector.broadcast %1872 : vector<8x1xf32> to vector<8x8xf32>
    %1874 = arith.subf %1500, %1873 : vector<8x8xf32>
    %cst_701 = arith.constant 0.000000e+00 : f32
    %1875 = vector.broadcast %cst_701 : f32 to vector<8x8xf32>
    %1876 = arith.cmpf ogt, %1874, %1875 : vector<8x8xf32>
    %cst_702 = arith.constant 1.000000e+00 : f32
    %1877 = vector.broadcast %cst_702 : f32 to vector<8x8xf32>
    %1878 = arith.select %1876, %1874, %1877 : vector<8x8xi1>, vector<8x8xf32>
    %cst_703 = arith.constant 0.000000e+00 : f32
    %1879 = vector.broadcast %cst_703 : f32 to vector<8x8xf32>
    %1880 = arith.cmpf ogt, %1874, %1879 : vector<8x8xf32>
    %1881 = math.log %1878 : vector<8x8xf32>
    %1882 = vector.broadcast %1485 : f32 to vector<8x8xf32>
    %1883 = arith.mulf %1882, %1881 : vector<8x8xf32>
    %1884 = math.exp %1883 : vector<8x8xf32>
    %cst_704 = arith.constant 0.000000e+00 : f32
    %1885 = vector.broadcast %cst_704 : f32 to vector<8x8xf32>
    %1886 = arith.select %1880, %1884, %1885 : vector<8x8xi1>, vector<8x8xf32>
    %cst_705 = arith.constant dense<0.000000e+00> : vector<8xf32>
    %1887 = vector.multi_reduction <add>, %1886, %cst_705 [1] : vector<8x8xf32> to vector<8xf32>
    %1888 = vector.shape_cast %1887 : vector<8xf32> to vector<8x1xf32>
    %cst_706 = arith.constant 1.000000e+00 : f32
    %1889 = vector.broadcast %cst_706 : f32 to vector<8x1xf32>
    %1890 = arith.subf %1888, %1889 : vector<8x1xf32>
    %cst_707 = arith.constant 0.000000e+00 : f32
    %1891 = vector.broadcast %cst_707 : f32 to vector<8x1xf32>
    %1892 = arith.cmpf oge, %1890, %1891 : vector<8x1xf32>
    %1893 = arith.select %1892, %1872, %1869 : vector<8x1xi1>, vector<8x1xf32>
    %1894 = vector.broadcast %1893 : vector<8x1xf32> to vector<8x8xf32>
    %1895 = arith.subf %1500, %1894 : vector<8x8xf32>
    %cst_708 = arith.constant 0.000000e+00 : f32
    %1896 = vector.broadcast %cst_708 : f32 to vector<8x8xf32>
    %1897 = arith.cmpf ogt, %1895, %1896 : vector<8x8xf32>
    %cst_709 = arith.constant 1.000000e+00 : f32
    %1898 = vector.broadcast %cst_709 : f32 to vector<8x8xf32>
    %1899 = arith.select %1897, %1895, %1898 : vector<8x8xi1>, vector<8x8xf32>
    %1900 = math.log %1899 : vector<8x8xf32>
    %1901 = vector.broadcast %1485 : f32 to vector<8x8xf32>
    %1902 = arith.mulf %1901, %1900 : vector<8x8xf32>
    %1903 = math.exp %1902 : vector<8x8xf32>
    %cst_710 = arith.constant 0.000000e+00 : f32
    %1904 = vector.broadcast %cst_710 : f32 to vector<8x8xf32>
    %1905 = arith.select %1897, %1903, %1904 : vector<8x8xi1>, vector<8x8xf32>
    %cst_711 = arith.constant dense<0.000000e+00> : vector<8xf32>
    %1906 = vector.multi_reduction <add>, %1905, %cst_711 [1] : vector<8x8xf32> to vector<8xf32>
    %1907 = vector.shape_cast %1906 : vector<8xf32> to vector<8x1xf32>
    %cst_712 = arith.constant 1.000000e+00 : f32
    %1908 = vector.broadcast %cst_712 : f32 to vector<8x1xf32>
    %1909 = arith.subf %1907, %1908 : vector<8x1xf32>
    %1910 = arith.divf %1905, %1899 : vector<8x8xf32>
    %cst_713 = arith.constant 0.000000e+00 : f32
    %1911 = vector.broadcast %cst_713 : f32 to vector<8x8xf32>
    %1912 = arith.select %1897, %1910, %1911 : vector<8x8xi1>, vector<8x8xf32>
    %cst_714 = arith.constant dense<0.000000e+00> : vector<8xf32>
    %1913 = vector.multi_reduction <add>, %1912, %cst_714 [1] : vector<8x8xf32> to vector<8xf32>
    %1914 = vector.shape_cast %1913 : vector<8xf32> to vector<8x1xf32>
    %cst_715 = arith.constant 1.000000e-30 : f32
    %1915 = vector.broadcast %cst_715 : f32 to vector<8x1xf32>
    %1916 = arith.maximumf %1914, %1915 : vector<8x1xf32>
    %1917 = vector.broadcast %1485 : f32 to vector<8x1xf32>
    %1918 = arith.mulf %1917, %1916 : vector<8x1xf32>
    %1919 = arith.divf %1909, %1918 : vector<8x1xf32>
    %1920 = arith.addf %1893, %1919 : vector<8x1xf32>
    %1921 = vector.broadcast %1920 : vector<8x1xf32> to vector<8x8xf32>
    %1922 = arith.subf %1500, %1921 : vector<8x8xf32>
    %cst_716 = arith.constant 0.000000e+00 : f32
    %1923 = vector.broadcast %cst_716 : f32 to vector<8x8xf32>
    %1924 = arith.cmpf ogt, %1922, %1923 : vector<8x8xf32>
    %cst_717 = arith.constant 1.000000e+00 : f32
    %1925 = vector.broadcast %cst_717 : f32 to vector<8x8xf32>
    %1926 = arith.select %1924, %1922, %1925 : vector<8x8xi1>, vector<8x8xf32>
    %1927 = math.log %1926 : vector<8x8xf32>
    %1928 = vector.broadcast %1485 : f32 to vector<8x8xf32>
    %1929 = arith.mulf %1928, %1927 : vector<8x8xf32>
    %1930 = math.exp %1929 : vector<8x8xf32>
    %cst_718 = arith.constant 0.000000e+00 : f32
    %1931 = vector.broadcast %cst_718 : f32 to vector<8x8xf32>
    %1932 = arith.select %1924, %1930, %1931 : vector<8x8xi1>, vector<8x8xf32>
    %cst_719 = arith.constant dense<0.000000e+00> : vector<8xf32>
    %1933 = vector.multi_reduction <add>, %1932, %cst_719 [1] : vector<8x8xf32> to vector<8xf32>
    %1934 = vector.shape_cast %1933 : vector<8xf32> to vector<8x1xf32>
    %cst_720 = arith.constant 1.000000e+00 : f32
    %1935 = vector.broadcast %cst_720 : f32 to vector<8x1xf32>
    %1936 = arith.subf %1934, %1935 : vector<8x1xf32>
    %1937 = arith.divf %1932, %1926 : vector<8x8xf32>
    %cst_721 = arith.constant 0.000000e+00 : f32
    %1938 = vector.broadcast %cst_721 : f32 to vector<8x8xf32>
    %1939 = arith.select %1924, %1937, %1938 : vector<8x8xi1>, vector<8x8xf32>
    %cst_722 = arith.constant dense<0.000000e+00> : vector<8xf32>
    %1940 = vector.multi_reduction <add>, %1939, %cst_722 [1] : vector<8x8xf32> to vector<8xf32>
    %1941 = vector.shape_cast %1940 : vector<8xf32> to vector<8x1xf32>
    %cst_723 = arith.constant 1.000000e-30 : f32
    %1942 = vector.broadcast %cst_723 : f32 to vector<8x1xf32>
    %1943 = arith.maximumf %1941, %1942 : vector<8x1xf32>
    %1944 = vector.broadcast %1485 : f32 to vector<8x1xf32>
    %1945 = arith.mulf %1944, %1943 : vector<8x1xf32>
    %1946 = arith.divf %1936, %1945 : vector<8x1xf32>
    %1947 = arith.addf %1920, %1946 : vector<8x1xf32>
    %1948 = vector.broadcast %1947 : vector<8x1xf32> to vector<8x8xf32>
    %1949 = arith.subf %1500, %1948 : vector<8x8xf32>
    %cst_724 = arith.constant 0.000000e+00 : f32
    %1950 = vector.broadcast %cst_724 : f32 to vector<8x8xf32>
    %1951 = arith.cmpf ogt, %1949, %1950 : vector<8x8xf32>
    %cst_725 = arith.constant 1.000000e+00 : f32
    %1952 = vector.broadcast %cst_725 : f32 to vector<8x8xf32>
    %1953 = arith.select %1951, %1949, %1952 : vector<8x8xi1>, vector<8x8xf32>
    %cst_726 = arith.constant 0.000000e+00 : f32
    %1954 = vector.broadcast %cst_726 : f32 to vector<8x8xf32>
    %1955 = arith.cmpf ogt, %1949, %1954 : vector<8x8xf32>
    %1956 = math.log %1953 : vector<8x8xf32>
    %1957 = vector.broadcast %1485 : f32 to vector<8x8xf32>
    %1958 = arith.mulf %1957, %1956 : vector<8x8xf32>
    %1959 = math.exp %1958 : vector<8x8xf32>
    %cst_727 = arith.constant 0.000000e+00 : f32
    %1960 = vector.broadcast %cst_727 : f32 to vector<8x8xf32>
    %1961 = arith.select %1955, %1959, %1960 : vector<8x8xi1>, vector<8x8xf32>
    %cst_728 = arith.constant dense<0.000000e+00> : vector<8xf32>
    %1962 = vector.multi_reduction <add>, %1961, %cst_728 [1] : vector<8x8xf32> to vector<8xf32>
    %1963 = vector.shape_cast %1962 : vector<8xf32> to vector<8x1xf32>
    %1964 = vector.broadcast %1963 : vector<8x1xf32> to vector<8x8xf32>
    %1965 = arith.divf %1961, %1964 : vector<8x8xf32>
    %1966 = arith.truncf %1965 : vector<8x8xf32> to vector<8x8xbf16>
    %cst_729 = arith.constant dense<0.000000e+00> : vector<8x8xf32>
    %1967 = tpu.matmul %1966, %1491, %cst_729 {dimension_numbers = #tpu.dot_dimension_numbers<[1], [0], [0], [1], [0, 0, 1, 1], [], []>} : vector<8x8xbf16>, vector<8x8xbf16>, vector<8x8xf32> -> vector<8x8xf32>
    %1968 = arith.truncf %1967 : vector<8x8xf32> to vector<8x8xbf16>
    %c0_730 = arith.constant 0 : index
    %c0_731 = arith.constant 0 : index
    %c24_732 = arith.constant 24 : index
    %1969 = vector.load %arg7[%c0_730, %c0_731, %c24_732] : memref<1x8x32xbf16, #tpu.memory_space<vmem>>, vector<1x8x8xbf16>
    %1970 = vector.shape_cast %1969 : vector<1x8x8xbf16> to vector<8x8xbf16>
    %1971 = vector.shape_cast %1968 : vector<8x8xbf16> to vector<1x8x8xbf16>
    tpu.vector_store %arg7[%c0_730, %c0_731, %c24_732], %1971 {strides = array<i32>} : memref<1x8x32xbf16, #tpu.memory_space<vmem>>, vector<1x8x8xbf16>,
    return
  }
  func.func @transform_0(%arg0: i32, %arg1: i32) -> (i32, i32, i32) {
    %c0_i32 = arith.constant 0 : i32
    %c0_i32_0 = arith.constant 0 : i32
    return %arg0, %arg1, %c0_i32 : i32, i32, i32
  }
  func.func @transform_1(%arg0: i32, %arg1: i32) -> (i32, i32, i32) {
    %c0_i32 = arith.constant 0 : i32
    %c0_i32_0 = arith.constant 0 : i32
    %c0_i32_1 = arith.constant 0 : i32
    return %arg0, %c0_i32, %c0_i32_0 : i32, i32, i32
  }
  func.func @transform_2(%arg0: i32, %arg1: i32) -> (i32, i32, i32) {
    %c0_i32 = arith.constant 0 : i32
    %c0_i32_0 = arith.constant 0 : i32
    %c0_i32_1 = arith.constant 0 : i32
    return %arg0, %c0_i32, %c0_i32_0 : i32, i32, i32
  }
  func.func @transform_3(%arg0: i32, %arg1: i32) -> i32 {
    %c0_i32 = arith.constant 0 : i32
    %c0_i32_0 = arith.constant 0 : i32
    return %c0_i32 : i32
  }
  func.func @transform_4(%arg0: i32, %arg1: i32) -> i32 {
    %c0_i32 = arith.constant 0 : i32
    %c0_i32_0 = arith.constant 0 : i32
    return %c0_i32 : i32
  }
  func.func @transform_5(%arg0: i32, %arg1: i32) -> (i32, i32, i32) {
    %c0_i32 = arith.constant 0 : i32
    %c0_i32_0 = arith.constant 0 : i32
    return %arg0, %arg1, %c0_i32 : i32, i32, i32
  }
}

</mosaic_0001>

<bundles_post_ra>
// kernel: mix_adaptive_attention_forward.5
= control target key start
LH: loop header
LB: loop body
LE: loop exit
PB: predicated region body
PF: predicated region fallthrough
CT: control target
= control target key end

     0   :  { %10 = vsyncpa [#allocation3], 0  ;;  %s389_s0 = inlined_call_operand.vmem [shape: bf16[16,32], index: 0, kind: input, shape index: {}]   ;;  %s390_s1 = inlined_call_operand.hbm [shape: f32[1,32], index: 1, kind: input, shape index: {}]   ;;  %s391_s2 = inlined_call_operand.hbm [shape: f32[1,32], index: 2, kind: input, shape index: {}]   ;;  %s392_s3 = inlined_call_operand.vmem [shape: bf16[32,32], index: 3, kind: input, shape index: {}]   ;;  %s393_s4 = inlined_call_operand.hbm [shape: f32[1,32], index: 4, kind: input, shape index: {}]   ;;  %s394_s5 = inlined_call_operand.hbm [shape: f32[16,32], index: 5, kind: output, shape index: {}]  }
   0x1   :  { %11 = vsyncpa [#allocation6], 0  ;;  %s31_s20 = sshll.u32 %s391_s2, 4  ;;  %s32_s20 = int_to_ptr.hbm [resolvable:$true] %s31_s20 }
   0x2   :  { %12 = vsyncpa [#allocation4], 0  ;;  %s324_s21 = smov [#allocation5]   ;;  %s20_s25 = sshll.u32 %s390_s1, 4  ;;  %s21_s25 = int_to_ptr.hbm [resolvable:$true] %s20_s25 }
   0x3   :  { %s33_s22 = sshll.u32 %s324_s21, 4  ;;  %s325_s26 = smov [#allocation2]   ;;  %s34_s22 = int_to_ptr.vmem [resolvable:$true] %s33_s22 }
   0x4   :  { %36 = dma.hbm_to_vmem [thread:$0]  %s32_s20, 16, %s34_s22, [#allocation6]  }
   0x5   :  { %s22_s27 = sshll.u32 %s325_s26, 4  ;;  %s44_s30 = sshll.u32 %s393_s4, 4  ;;  %s23_s27 = int_to_ptr.vmem [resolvable:$true] %s22_s27  ;;  %s45_s30 = int_to_ptr.hbm [resolvable:$true] %s44_s30 }
   0x6   :  { %25 = dma.hbm_to_vmem [thread:$0]  %s21_s25, 16, %s23_s27, [#allocation3]  }
   0x7   :  { %s326_s2 = smov [#allocation7]  }
   0x8   :  { %s46_s6 = sshll.u32 %s326_s2, 4  ;;  %s47_s6 = int_to_ptr.vmem [resolvable:$true] %s46_s6 }
   0x9   :  { %49 = dma.hbm_to_vmem [thread:$0]  %s45_s30, 16, %s47_s6, [#allocation6]  }
   0xa   :  { %318 = dma.done.wait [#allocation3], 16  }
   0xb   :  { %319 = vsyncadd [#allocation3], 4294967280 }
   0xc   :  { %320 = dma.done.wait [#allocation6], 32  }
   0xd   :  { %321 = vsyncadd [#allocation6], 4294967264  ;;  %v203_v0 = vld [vmem:[%s389_s0] sm:$0xff]   ;;  %vm67_vm0 = vcmask 261120   ;;  %v327_v5 = vmov 32.0   ;;  %v201_v22 = vld [vmem:[%s392_s3 + $0x8] sm:$0xff] }
   0xe   :  { %v204_v1 = vunpack.c.l.bf16 %v203_v0  ;;  %v205_v3 = vunpack.c.h.bf16 %v203_v0  ;;  %216 = vrcp.f32 %v327_v5  ;;  %161 = vmatpush.bf16.msra.mxu0 %v201_v22  ;;  %v200_v24 = vld [vmem:[%s392_s3] sm:$0xff]  ;;  %s328_s3 = smov [#allocation8]   ;;  %s177_s13 = sshll.u32 %s394_s5, 4  ;;  %s178_s13 = int_to_ptr.hbm [resolvable:$true] %s177_s13 }
   0xf   :  { %v213_v43 = vld [vmem:[#allocation2] ss:$0 sm:$0xff]  ;;  %v214_v48 = vld [vmem:[#allocation5] ss:$0 sm:$0xff]  ;;  %v215_v53 = vld [vmem:[#allocation7] ss:$0 sm:$0xff] }
  0x10   :  { %v68_v2 = vsel %vm67_vm0, %v204_v1, 0.0  ;;  %v71_v4 = vsel %vm67_vm0, %v205_v3, 0.0  ;;  %s175_s10 = sshll.u32 %s328_s3, 4  ;;  %s329_s14 = smov 128   ;;  %s176_s10 = int_to_ptr.vmem [resolvable:$true] %s175_s10 }
  0x11   :  { %69 = vadd.xlane.f32.xlu0 %v68_v2  ;;  %s330_s15 = smov 8  }
  0x12   :  { %162 = vmatpush.bf16.msra.mxu0 %v200_v24 }
  0x14   :  { %v217_v6 = vpop.eup %216 }
  0x15   :  { %v75_v7 = vmul.f32 32.0, %v217_v6  ;;  %vm79_vm1 = vweird.f32 %v217_v6 }
  0x17   :  { %v76_v8 = vsub.f32 1.0, %v75_v7 }
  0x19   :  { %72 = vadd.xlane.f32.xlu0 %v71_v4  ;;  %v77_v9 = vmul.f32 %v217_v6, %v76_v8 }
  0x1b   :  { %v78_v10 = vadd.f32 %v217_v6, %v77_v9 }
  0x1d   :  { %v80_v11 = vsel %vm79_vm1, %v217_v6, %v78_v10 }
  0x84   :  { %v70_v12 = vpop.xlane.xlu0 %69 }
  0x85   :  { %v81_v13 = vmul.f32 %v80_v11, %v70_v12 }
  0x87   :  { %v83_v14 = vsub.f32 %v204_v1, %v81_v13 }
  0x89   :  { %v85_v15 = vmul.f32 %v83_v14, %v83_v14 }
  0x8b   :  { %v87_v16 = vsel %vm67_vm0, %v85_v15, 0.0 }
  0x8c   :  { %88 = vadd.xlane.f32.xlu1 %v87_v16  ;;  %v73_v17 = vpop.xlane.xlu0 %72 }
  0x8d   :  { %v82_v18 = vmul.f32 %v80_v11, %v73_v17 }
  0x8f   :  { %v84_v19 = vsub.f32 %v205_v3, %v82_v18 }
  0x91   :  { %v86_v20 = vmul.f32 %v84_v19, %v84_v19 }
  0x93   :  { %v90_v21 = vsel %vm67_vm0, %v86_v20, 0.0 }
  0x94   :  { %91 = vadd.xlane.f32.xlu1 %v90_v21 }
  0xff   :  { %v89_v23 = vpop.xlane.xlu1 %88 }
 0x100   :  { %v93_v25 = vmul.f32 %v89_v23, %v80_v11 }
 0x102   :  { %v95_v26 = vadd.f32 1e-05, %v93_v25 }
 0x104   :  { %218 = vrsqrt.f32 %v95_v26  ;;  %vm103_vm3 = vweird.f32 %v95_v26 }
 0x107   :  { %v92_v27 = vpop.xlane.xlu1 %91 }
 0x108   :  { %v94_v28 = vmul.f32 %v92_v27, %v80_v11 }
 0x10a   :  { %v219_v29 = vpop.eup %218  ;;  %v96_v30 = vadd.f32 1e-05, %v94_v28 }
 0x10b   :  { %v98_v31 = vmul.f32 %v219_v29, %v95_v26  ;;  %vm104_vm2 = vweird.f32 %v219_v29 }
 0x10c   :  { %220 = vrsqrt.f32 %v96_v30  ;;  %vm105_vm4 = vmor %vm103_vm3, %vm104_vm2  ;;  %vm113_vm6 = vweird.f32 %v96_v30 }
 0x10d   :  { %v99_v32 = vmul.f32 %v219_v29, %v98_v31 }
 0x10f   :  { %v100_v33 = vmul.f32 0.5, %v99_v32 }
 0x111   :  { %v101_v34 = vsub.f32 1.5, %v100_v33 }
 0x112   :  { %v221_v35 = vpop.eup %220 }
 0x113   :  { %v102_v36 = vmul.f32 %v219_v29, %v101_v34  ;;  %v108_v37 = vmul.f32 %v221_v35, %v96_v30  ;;  %vm114_vm5 = vweird.f32 %v221_v35 }
 0x114   :  { %vm115_vm7 = vmor %vm113_vm6, %vm114_vm5 }
 0x115   :  { %v109_v38 = vmul.f32 %v221_v35, %v108_v37  ;;  %v106_v39 = vsel %vm105_vm4, %v219_v29, %v102_v36 }
 0x116   :  { %v117_v42 = vmul.f32 %v106_v39, %v83_v14 }
 0x117   :  { %v110_v40 = vmul.f32 0.5, %v109_v38 }
 0x118   :  { %v123_v47 = vmul.f32 %v213_v43, %v117_v42 }
 0x119   :  { %v111_v41 = vsub.f32 1.5, %v110_v40 }
 0x11a   :  { %v129_v50 = vadd.f32 %v214_v48, %v123_v47 }
 0x11b   :  { %v112_v44 = vmul.f32 %v221_v35, %v111_v41 }
 0x11d   :  { %v116_v45 = vsel %vm115_vm7, %v221_v35, %v112_v44 }
 0x11e   :  { %v118_v46 = vmul.f32 %v116_v45, %v84_v19 }
 0x120   :  { %v124_v49 = vmul.f32 %v213_v43, %v118_v46 }
 0x122   :  { %v130_v51 = vadd.f32 %v214_v48, %v124_v49 }
 0x124   :  { %v131_v52 = vpack.c.bf16 %v130_v51, %v129_v50 }
 0x126   :  { %199 = vmatmul.msk.bf16.vlgmr.msra.gmra.mxu0 %vm67_vm0, %v131_v52 }
 0x1a3   :  { %v164_v54 = vpop.f32.mrf.mxu0 }
 0x1a4   :  { %v165_v55 = vadd.f32 %v215_v53, %v164_v54 }
 0x1a6   :  { %169 = vst.msk [vmem:[#allocation8] sm:$0xff] %vm67_vm0, %v165_v55 }
 0x1ab   :  { %v166_v56 = vpop.f32.mrf.mxu0 }
 0x1ac   :  { %v167_v57 = vadd.f32 %v215_v53, %v166_v56 }
 0x1ae   :  { %170 = vst.msk [vmem:[#allocation8 + $0x8] sm:$0xff] %vm67_vm0, %v167_v57 }
 0x1af   :  { %183 = dma.vmem_to_hbm [thread:$0]  %s176_s10, 256, %s178_s13, [#allocation4], %s329_s14, %s329_s14, %s330_s15  }
 0x1b0   :  { %322 = dma.done.wait [#allocation4], 256  }
 0x1b1   :  { %323 = vsyncadd [#allocation4], 4294967040 }
 0x1b2   :  { %188 = vsyncpa [#allocation3], 1 }
 0x1b3   :  { %189 = vsyncpa [#allocation6], 1 }
 0x1b4   :  { %190 = vsyncpa [#allocation4], 1 }

// kernel: mix_adaptive_attention_forward.3
= control target key start
LH: loop header
LB: loop body
LE: loop exit
PB: predicated region body
PF: predicated region fallthrough
CT: control target
= control target key end

     0   :  { %11 = vsyncpa [#allocation3], 0  ;;  %s312_s0 = inlined_call_operand.hbm [shape: f32[16,32], index: 0, kind: input, shape index: {}]   ;;  %s313_s1 = inlined_call_operand.hbm [shape: bf16[32,96], index: 1, kind: input, shape index: {}]   ;;  %s314_s2 = inlined_call_operand.hbm [shape: f32[1,96], index: 2, kind: input, shape index: {}]   ;;  %s315_s3 = inlined_call_operand.vmem [shape: bf16[16,32], index: 3, kind: output, shape index: {0}]   ;;  %s316_s4 = inlined_call_operand.vmem [shape: bf16[16,32], index: 4, kind: output, shape index: {1}]   ;;  %s317_s5 = inlined_call_operand.vmem [shape: bf16[16,32], index: 5, kind: output, shape index: {2}]  }
   0x1   :  { %12 = vsyncpa [#allocation5], 0  ;;  %s30_s20 = sshll.u32 %s313_s1, 4  ;;  %s237_s21 = smov [#allocation4]   ;;  %s31_s20 = int_to_ptr.hbm [resolvable:$true] %s30_s20 }
   0x2   :  { %s32_s22 = sshll.u32 %s237_s21, 4  ;;  %s17_s25 = sshll.u32 %s312_s0, 4  ;;  %s33_s22 = int_to_ptr.vmem [resolvable:$true] %s32_s22  ;;  %s18_s25 = int_to_ptr.hbm [resolvable:$true] %s17_s25 }
   0x3   :  { %s238_s26 = smov 64   ;;  %s239_s27 = smov 4  }
   0x4   :  { %38 = dma.hbm_to_vmem [thread:$0]  %s31_s20, 256, %s33_s22, [#allocation5], %s238_s26, %s238_s26, %s239_s27  }
   0x5   :  { %s240_s28 = smov [#allocation2]   ;;  %s241_s30 = smov 128  }
   0x6   :  { %s19_s29 = sshll.u32 %s240_s28, 4  ;;  %s242_s6 = smov 8   ;;  %s20_s29 = int_to_ptr.vmem [resolvable:$true] %s19_s29 }
   0x7   :  { %25 = dma.hbm_to_vmem [thread:$0]  %s18_s25, 256, %s20_s29, [#allocation3], %s241_s30, %s241_s30, %s242_s6  }
   0x8   :  { %s44_s8 = sshll.u32 %s314_s2, 4  ;;  %s243_s9 = smov [#allocation6]   ;;  %s45_s8 = int_to_ptr.hbm [resolvable:$true] %s44_s8 }
   0x9   :  { %s46_s10 = sshll.u32 %s243_s9, 4  ;;  %s47_s10 = int_to_ptr.vmem [resolvable:$true] %s46_s10 }
   0xa   :  { %49 = dma.hbm_to_vmem [thread:$0]  %s45_s8, 16, %s47_s10, [#allocation5]  }
   0xb   :  { %233 = dma.done.wait [#allocation3], 256  }
   0xc   :  { %234 = vsyncadd [#allocation3], 4294967040 }
   0xd   :  { %235 = dma.done.wait [#allocation5], 272  }
   0xe   :  { %236 = vsyncadd [#allocation5], 4294967024  ;;  %v151_v0 = vld [vmem:[#allocation4 + $0x8] sm:$0xff]  ;;  %v150_v1 = vld [vmem:[#allocation4] sm:$0xff]  ;;  %vm86_vm0 = vcmask 261120   ;;  %vm106_vm1 = vcmask 257024  }
   0xf   :  { %96 = vmatpush.bf16.msra.mxu0 %v151_v0  ;;  %v63_v2 = vld [vmem:[#allocation2] sm:$0xff]  ;;  %v64_v3 = vld [vmem:[#allocation2 + $0x8] sm:$0xff]  ;;  %s244_s11 = smov 96  }
  0x10   :  { %v65_v4 = vpack.c.bf16 %v64_v3, %v63_v2  ;;  %v160_v5 = vld [vmem:[#allocation6] ss:$0 sm:$0xff] }
  0x13   :  { %97 = vmatpush.bf16.msra.mxu0 %v150_v1 }
  0x16   :  { %149 = vmatmul.msk.bf16.vlgmr.msra.gmra.mxu0 %vm86_vm0, %v65_v4 }
  0x93   :  { %v99_v6 = vpop.f32.mrf.mxu0 }
  0x94   :  { %v100_v7 = vadd.f32 %v160_v5, %v99_v6 }
  0x96   :  { %v104_v8 = vpack.c.bf16 %v100_v7, %v100_v7 }
  0x98   :  { %107 = vst.msk [vmem:[%s315_s3] sm:$0xf] %vm106_vm1, %v104_v8  ;;  %119 = vrot.lane.b32.xlu1 %v104_v8, %s238_s26  ;;  %111 = vrot.lane.b32.xlu0 %v104_v8, %s244_s11 }
  0x9b   :  { %v101_v9 = vpop.f32.mrf.mxu0 }
  0x9c   :  { %v102_v10 = vadd.f32 %v160_v5, %v101_v9 }
  0x9e   :  { %v105_v11 = vpack.c.bf16 %v102_v10, %v102_v10 }
  0xa0   :  { %108 = vst.msk [vmem:[%s315_s3 + $0x4] sm:$0xf] %vm106_vm1, %v105_v11  ;;  %121 = vrot.lane.b32.xlu1 %v105_v11, %s238_s26  ;;  %113 = vrot.lane.b32.xlu0 %v105_v11, %s244_s11 }
 0x10a   :  { %v120_v12 = vpop.permute.xlu1 %119  ;;  %v112_v13 = vpop.permute.xlu0 %111 }
 0x10b   :  { %125 = vst.msk [vmem:[%s317_s5] sm:$0xf] %vm106_vm1, %v120_v12 }
 0x10c   :  { %117 = vst.msk [vmem:[%s316_s4] sm:$0xf] %vm106_vm1, %v112_v13 }
 0x112   :  { %v122_v14 = vpop.permute.xlu1 %121  ;;  %v114_v15 = vpop.permute.xlu0 %113 }
 0x113   :  { %126 = vst.msk [vmem:[%s317_s5 + $0x4] sm:$0xf] %vm106_vm1, %v122_v14 }
 0x114   :  { %118 = vst.msk [vmem:[%s316_s4 + $0x4] sm:$0xf] %vm106_vm1, %v114_v15 }
 0x115   :  { %139 = vsyncpa [#allocation3], 1 }
 0x116   :  { %140 = vsyncpa [#allocation5], 1 }

// kernel: mix_adaptive_attention_forward.4
= control target key start
LH: loop header
LB: loop body
LE: loop exit
PB: predicated region body
PF: predicated region fallthrough
CT: control target
= control target key end

     0   :  { %10 = vsyncpa [#allocation3], 0  ;;  %s3734_s0 = inlined_call_operand.vmem [shape: bf16[2,8,32], index: 0, kind: input, shape index: {}]   ;;  %s3735_s1 = inlined_call_operand.vmem [shape: bf16[2,8,32], index: 1, kind: input, shape index: {}]   ;;  %s3736_s2 = inlined_call_operand.vmem [shape: bf16[2,8,32], index: 2, kind: input, shape index: {}]   ;;  %s3737_s3 = inlined_call_operand.hbm [shape: f32[4], index: 3, kind: input, shape index: {}]   ;;  %s3738_s4 = inlined_call_operand.hbm [shape: f32[4], index: 4, kind: input, shape index: {}]   ;;  %s3739_s5 = inlined_call_operand.vmem [shape: bf16[2,8,32], index: 5, kind: output, shape index: {}]  }
   0x1   :  { %11 = vsyncpa [#allocation5], 0  ;;  %s3059_s18 = smov 0   ;;  %s3061_s19 = smov 0  }
   0x2   :  { %s3063_s20 = smov 0  }
   0x3 LB: > { %s2429_s21 = sadd.s32 4294967295, %s3018_s20   ;;  %s29_s22 = sadd.s32 1, %s3014_s19  ;;  %s3018_s20 = sphi %s3063_s20, %s17_s20   ;;  %s3014_s19 = sphi %s3061_s19, %s3748_s19   ;;  %s3010_s18 = sphi %s3059_s18, %s3747_s18  }
   0x4   : > { %p31_p0 = scmp.ge.s32.totalorder %s29_s22, 2  ;;  %p2431_p1 = scmp.ge.s32.totalorder %s3018_s20, 1 }
   0x5   : > { %p184_p2 = scmp.lt.s32.totalorder %s3018_s20, 3  ;;  %p3078_p4 = scmp.eq.s32.totalorder %s2429_s21, 0 }
   0x6   : > { %s3750_s22 = smov (%p31_p0, %s29_s22), 0  ;;  %s196_s26 = sshll.u32 %s3737_s3, 4  ;;  %s197_s26 = int_to_ptr.hbm [resolvable:$true] %s196_s26 }
   0x7   : > { %p185_p3 = pnand %p2431_p1, %p184_p2  ;;  %s206_s29 = sshll.u32 %s3738_s4, 4  ;;  %s207_s29 = int_to_ptr.hbm [resolvable:$true] %s206_s29 }
   0x8   : > { %s3020_s30 = smov [#allocation2]   ;;  %s3021_s6 = smov [#allocation4]  }
   0x9   : > { %p2554_p5 = pneg %p185_p3 }
   0xa   : > { %243 = sbr.rel (%p185_p3) target bundleno = 6558 (0x199e), region = 40 }
   0xb   : > { %p2555_p6 = pnand %p3078_p4, %p2554_p5 }
   0xd   : > { %2557 = dma.hbm_to_smem (!%p2555_p6), %s197_s26, 16, %s3020_s30, [#allocation3]  }
   0xe   : > { %2560 = dma.hbm_to_smem (!%p2555_p6), %s207_s29, 16, %s3021_s6, [#allocation5]  }
   0xf   : > { %3001 = dma.done.wait (%p3078_p4), [#allocation3], 16  }
  0x10   : > { %3003 = vsyncadd (%p3078_p4), [#allocation3], 4294967280 }
  0x11   : > { %3005 = dma.done.wait (%p3078_p4), [#allocation5], 16  }
  0x12   : > { %3007 = vsyncadd (%p3078_p4), [#allocation5], 4294967280 }
  0x13   : > { %255 = sfence }
  0x14   : > { %p290_p7 = scmp.lt.s32.totalorder %s3010_s18, 1  ;;  %vm348_vm0 = vcmask 64512   ;;  %s325_s14 = sld [smem:[#allocation2]]  ;;  %v314_v6 = vlaneseq }
  0x15   : > { %s3022_s16 = smov 0.0001   ;;  %s3023_s24 = smov 120  }
  0x16   : > { %s3752_s18 = smov (!%p290_p7, %s3010_s18), 1  ;;  %v315_v11 = vshrl.u32 %v314_v6, 7  ;;  %v319_v12 = vand.u32 127, %v314_v6  ;;  %s3024_s25 = smov 112  }
  0x17   : > { %s3098_s7 = sshll.u32 %s3752_s18, 2  ;;  %s326_s18 = sld [smem:[#allocation4]] }
  0x18   : > { %s3104_s10 = scalar_lea.vmem %s3735_s1, %s3098_s7  ;;  %s3112_s13 = scalar_lea.vmem %s3734_s0, %s3098_s7  ;;  %v320_v16 = vsub.s32 %v315_v11, %v319_v12 }
  0x19   : > { %v346_v0 = vld [vmem:[%s3104_s10] sm:$0xf]  ;;  %s3025_s26 = smov 104   ;;  %s3222_s29 = scalar_lea.vmem %s3736_s2, %s3098_s7 }
  0x1a   : > { %v353_v1 = vsel %vm348_vm0, %v346_v0, 0  ;;  %v345_v2 = vld [vmem:[%s3112_s13] sm:$0xf]  ;;  %s2442_s15 = sadd.f32 -1.0, %s325_s14  ;;  %v322_v18 = vsub.s32 0, %v320_v16  ;;  %vm321_vm5 = vcmp.lt.s32.totalorder %v320_v16, 0  ;;  %s3294_s27 = scalar_lea.vmem %s3739_s5, %s3098_s7 }
  0x1b   : > { %362 = vmatpush.bf16.xpose.msra.mxu0 %v353_v1  ;;  %s2464_s30 = sld [smem:[#allocation2 + $0x1]] }
  0x1c   : > { %s3117_s17 = smax.f32 %s3022_s16, %s2442_s15  ;;  %v323_v19 = vsel %vm321_vm5, %v322_v18, %v320_v16  ;;  %s2465_s6 = sld [smem:[#allocation4 + $0x1]] }
  0x1d   : > { %v329_v3 = vstv %s3117_s17  ;;  %v3120_v20 = vcvt.s32.f32 %v323_v19  ;;  %v369_v21 = vstv %s326_s18  ;;  %s378_s21 = smul.f32 -2.0794415, %s3117_s17  ;;  %s2488_s11 = sld [smem:[#allocation2 + $0x2]] }
  0x1e   : > { %2598 = vrcp.f32 %v329_v3  ;;  %v341_v7 = vand.u32 2147483648, %v329_v3  ;;  %vm335_vm1 = vweird.f32 %v329_v3  ;;  %v339_v9 = vand.u32 2147483647, %v329_v3  ;;  %s2512_s12 = sld [smem:[#allocation2 + $0x3]] }
  0x1f   : > { %vm370_vm6 = vcmp.gt.f32.partialorder %v3120_v20, %v369_v21  ;;  %v379_v28 = vstv %s378_s21  ;;  %s2513_s18 = sld [smem:[#allocation4 + $0x3]] }
  0x20   : > { %v342_v13 = vor.u32 1.1754944e-38, %v341_v7  ;;  %vm340_vm4 = vcmp.eq.f32.partialorder %v339_v9, 8.507059e+37  ;;  %v380_v29 = vmul.f32 1.442695, %v379_v28  ;;  %s2489_s7 = sld [smem:[#allocation4 + $0x2]] }
  0x21   : > { %s2466_s8 = sadd.f32 -1.0, %s2464_s30 }
  0x22   : > { %2443 = vmatmul.msk.bf16.vlgmr.msra.gmra.mxu0 %vm348_vm0, %v345_v2  ;;  %2600 = vpow2.f32 %v380_v29 }
  0x23   : > { %s3231_s9 = smax.f32 %s3022_s16, %s2466_s8 }
  0x24   : > { %v2599_v4 = vpop.eup %2598  ;;  %s2514_s14 = sadd.f32 -1.0, %s2512_s12 }
  0x25   : > { %v331_v5 = vmul.f32 %v2599_v4, %v329_v3  ;;  %vm336_vm2 = vweird.f32 %v2599_v4 }
  0x26   : > { %vm337_vm3 = vmor %vm335_vm1, %vm336_vm2  ;;  %s3257_s17 = smax.f32 %s3022_s16, %s2514_s14 }
  0x27   : > { %v332_v8 = vsub.f32 1.0, %v331_v5  ;;  %s1870_s28 = smul.f32 -2.0794415, %s3257_s17 }
  0x28   : > { %v2601_v30 = vpop.eup %2600 }
  0x29   : > { %v333_v10 = vmul.f32 %v2599_v4, %v332_v8 }
  0x2b   : > { %v334_v14 = vadd.f32 %v2599_v4, %v333_v10 }
  0x2d   : > { %v338_v15 = vsel %vm337_vm3, %v2599_v4, %v334_v14 }
  0x2e   : > { %v343_v17 = vsel %vm340_vm4, %v342_v13, %v338_v15 }
  0x2f   : > { %2538 = vpush %v343_v17 }
  0x60   : > { %s2539_s23 = spop %2538 }
  0x61   : > { %v3129_v40 = vstv %s2539_s23 }
  0x9f   : > { %v364_v22 = vpop.f32.mrf.mxu0 }
  0xa0   : > { %v368_v23 = vmul.f32 0.35355338, %v364_v22 }
  0xa2   : > { %v371_v24 = vsel %vm370_vm6, -inf, %v368_v23 }
  0xa3   : > { %v3123_v25 = vmul.f32 %v371_v24, %v329_v3 }
  0xa5   : > { %v374_v26 = vsel %vm348_vm0, %v3123_v25, -inf }
  0xa6   : > { %375 = vmax.xlane.f32.xlu0 %v374_v26 }
  0xa7   : > { %v366_v27 = vpop.f32.mrf.mxu0 }
 0x119   : > { %v376_v31 = vpop.xlane.xlu0 %375 }
 0x11a   : > { %v2444_v32 = vadd.f32 -1.0, %v376_v31  ;;  %v382_v33 = vsub.f32 %v376_v31, %v2601_v30 }
 0x11c   : > { %v383_v34 = vsub.f32 %v382_v33, %v2444_v32 }
 0x11e   : > { %v384_v35 = vmul.f32 0.5, %v383_v34 }
 0x120   : > { %v385_v36 = vadd.f32 %v2444_v32, %v384_v35  ;;  %v402_v49 = vmul.f32 0.5, %v384_v35 }
 0x122   : > { %v386_v37 = vsub.f32 %v3123_v25, %v385_v36  ;;  %v419_v63 = vmul.f32 0.5, %v402_v49 }
 0x124   : > { %vm387_vm7 = vcmp.gt.f32.partialorder %v386_v37, 0.0  ;;  %v436_v13 = vmul.f32 0.5, %v419_v63 }
 0x125   : > { %v388_v38 = vsel %vm387_vm7, %v386_v37, 1.0 }
 0x126   : > { %2602 = vlog2.f32 %v388_v38  ;;  %v453_v29 = vmul.f32 0.5, %v436_v13 }
 0x12c   : > { %v2603_v39 = vpop.eup %2602 }
 0x12d   : > { %v390_v41 = vmul.f32 0.6931472, %v2603_v39 }
 0x12f   : > { %v392_v42 = vmul.f32 %v3129_v40, %v390_v41 }
 0x131   : > { %v393_v43 = vmul.f32 1.442695, %v392_v42 }
 0x133   : > { %2604 = vpow2.f32 %v393_v43 }
 0x139   : > { %v2605_v44 = vpop.eup %2604 }
 0x13a   : > { %v395_v45 = vsel %vm387_vm7, %v2605_v44, 0.0  ;;  %v470_v44 = vmul.f32 0.5, %v453_v29 }
 0x13b   : > { %v396_v46 = vsel %vm348_vm0, %v395_v45, 0.0 }
 0x13c   : > { %397 = vadd.xlane.f32.xlu0 %v396_v46 }
 0x1af   : > { %v398_v47 = vpop.xlane.xlu0 %397 }
 0x1b0   : > { %v2445_v48 = vadd.f32 -1.0, %v398_v47 }
 0x1b2   : > { %vm400_vm8 = vcmp.ge.f32.partialorder %v2445_v48, 0.0 }
 0x1b3   : > { %v401_v50 = vsel %vm400_vm8, %v385_v36, %v2444_v32 }
 0x1b4   : > { %v403_v51 = vadd.f32 %v402_v49, %v401_v50 }
 0x1b6   : > { %v404_v52 = vsub.f32 %v3123_v25, %v403_v51 }
 0x1b8   : > { %vm405_vm9 = vcmp.gt.f32.partialorder %v404_v52, 0.0 }
 0x1b9   : > { %v406_v53 = vsel %vm405_vm9, %v404_v52, 1.0 }
 0x1ba   : > { %2606 = vlog2.f32 %v406_v53 }
 0x1c0   : > { %v2607_v54 = vpop.eup %2606 }
 0x1c1   : > { %v408_v55 = vmul.f32 0.6931472, %v2607_v54 }
 0x1c3   : > { %v409_v56 = vmul.f32 %v408_v55, %v3129_v40 }
 0x1c5   : > { %v410_v57 = vmul.f32 1.442695, %v409_v56 }
 0x1c7   : > { %2608 = vpow2.f32 %v410_v57 }
 0x1cd   : > { %v2609_v58 = vpop.eup %2608 }
 0x1ce   : > { %v412_v59 = vsel %vm405_vm9, %v2609_v58, 0.0  ;;  %v487_v58 = vmul.f32 0.5, %v470_v44 }
 0x1cf   : > { %v413_v60 = vsel %vm348_vm0, %v412_v59, 0.0 }
 0x1d0   : > { %414 = vadd.xlane.f32.xlu1 %v413_v60 }
 0x243   : > { %v415_v61 = vpop.xlane.xlu1 %414 }
 0x244   : > { %v2446_v62 = vadd.f32 -1.0, %v415_v61 }
 0x246   : > { %vm417_vm10 = vcmp.ge.f32.partialorder %v2446_v62, 0.0 }
 0x247   : > { %v418_v0 = vsel %vm417_vm10, %v403_v51, %v401_v50 }
 0x248   : > { %v420_v1 = vadd.f32 %v419_v63, %v418_v0 }
 0x24a   : > { %v421_v2 = vsub.f32 %v3123_v25, %v420_v1 }
 0x24c   : > { %vm422_vm11 = vcmp.gt.f32.partialorder %v421_v2, 0.0 }
 0x24d   : > { %v423_v3 = vsel %vm422_vm11, %v421_v2, 1.0 }
 0x24e   : > { %2610 = vlog2.f32 %v423_v3 }
 0x254   : > { %v2611_v4 = vpop.eup %2610 }
 0x255   : > { %v425_v5 = vmul.f32 0.6931472, %v2611_v4 }
 0x257   : > { %v426_v6 = vmul.f32 %v425_v5, %v3129_v40 }
 0x259   : > { %v427_v7 = vmul.f32 1.442695, %v426_v6 }
 0x25b   : > { %2612 = vpow2.f32 %v427_v7 }
 0x261   : > { %v2613_v8 = vpop.eup %2612 }
 0x262   : > { %v429_v9 = vsel %vm422_vm11, %v2613_v8, 0.0  ;;  %v504_v8 = vmul.f32 0.5, %v487_v58 }
 0x263   : > { %v430_v10 = vsel %vm348_vm0, %v429_v9, 0.0 }
 0x264   : > { %431 = vadd.xlane.f32.xlu1 %v430_v10 }
 0x2d7   : > { %v432_v11 = vpop.xlane.xlu1 %431 }
 0x2d8   : > { %v2447_v12 = vadd.f32 -1.0, %v432_v11 }
 0x2da   : > { %vm434_vm12 = vcmp.ge.f32.partialorder %v2447_v12, 0.0 }
 0x2db   : > { %v435_v14 = vsel %vm434_vm12, %v420_v1, %v418_v0 }
 0x2dc   : > { %v437_v15 = vadd.f32 %v436_v13, %v435_v14 }
 0x2de   : > { %v438_v16 = vsub.f32 %v3123_v25, %v437_v15 }
 0x2e0   : > { %vm439_vm13 = vcmp.gt.f32.partialorder %v438_v16, 0.0 }
 0x2e1   : > { %v440_v17 = vsel %vm439_vm13, %v438_v16, 1.0 }
 0x2e2   : > { %2614 = vlog2.f32 %v440_v17 }
 0x2e8   : > { %v2615_v18 = vpop.eup %2614 }
 0x2e9   : > { %v442_v19 = vmul.f32 0.6931472, %v2615_v18 }
 0x2eb   : > { %v443_v21 = vmul.f32 %v442_v19, %v3129_v40 }
 0x2ed   : > { %v444_v22 = vmul.f32 1.442695, %v443_v21 }
 0x2ef   : > { %2616 = vpow2.f32 %v444_v22 }
 0x2f5   : > { %v2617_v23 = vpop.eup %2616 }
 0x2f6   : > { %v446_v24 = vsel %vm439_vm13, %v2617_v23, 0.0  ;;  %v521_v23 = vmul.f32 0.5, %v504_v8 }
 0x2f7   : > { %v447_v26 = vsel %vm348_vm0, %v446_v24, 0.0 }
 0x2f8   : > { %448 = vadd.xlane.f32.xlu2 %v447_v26 }
 0x36b   : > { %v449_v27 = vpop.xlane.xlu2 %448 }
 0x36c   : > { %v2448_v28 = vadd.f32 -1.0, %v449_v27 }
 0x36e   : > { %vm451_vm14 = vcmp.ge.f32.partialorder %v2448_v28, 0.0 }
 0x36f   : > { %v452_v30 = vsel %vm451_vm14, %v437_v15, %v435_v14 }
 0x370   : > { %v454_v31 = vadd.f32 %v453_v29, %v452_v30 }
 0x372   : > { %v455_v32 = vsub.f32 %v3123_v25, %v454_v31 }
 0x374   : > { %vm456_vm15 = vcmp.gt.f32.partialorder %v455_v32, 0.0 }
 0x375   : > { %v457_v33 = vsel %vm456_vm15, %v455_v32, 1.0 }
 0x376   : > { %2618 = vlog2.f32 %v457_v33 }
 0x37c   : > { %v2619_v34 = vpop.eup %2618 }
 0x37d   : > { %v459_v35 = vmul.f32 0.6931472, %v2619_v34 }
 0x37f   : > { %v460_v36 = vmul.f32 %v459_v35, %v3129_v40 }
 0x381   : > { %v461_v37 = vmul.f32 1.442695, %v460_v36 }
 0x383   : > { %2620 = vpow2.f32 %v461_v37 }
 0x389   : > { %v2621_v38 = vpop.eup %2620 }
 0x38a   : > { %v463_v39 = vsel %vm456_vm15, %v2621_v38, 0.0  ;;  %v538_v38 = vmul.f32 0.5, %v521_v23 }
 0x38b   : > { %v464_v41 = vsel %vm348_vm0, %v463_v39, 0.0 }
 0x38c   : > { %465 = vadd.xlane.f32.xlu2 %v464_v41 }
 0x3ff   : > { %v466_v42 = vpop.xlane.xlu2 %465 }
 0x400   : > { %v2449_v43 = vadd.f32 -1.0, %v466_v42 }
 0x402   : > { %vm468_vm1 = vcmp.ge.f32.partialorder %v2449_v43, 0.0 }
 0x403   : > { %v469_v45 = vsel %vm468_vm1, %v454_v31, %v452_v30 }
 0x404   : > { %v471_v46 = vadd.f32 %v470_v44, %v469_v45 }
 0x406   : > { %v472_v47 = vsub.f32 %v3123_v25, %v471_v46 }
 0x408   : > { %vm473_vm2 = vcmp.gt.f32.partialorder %v472_v47, 0.0 }
 0x409   : > { %v474_v48 = vsel %vm473_vm2, %v472_v47, 1.0 }
 0x40a   : > { %2622 = vlog2.f32 %v474_v48 }
 0x410   : > { %v2623_v49 = vpop.eup %2622 }
 0x411   : > { %v476_v50 = vmul.f32 0.6931472, %v2623_v49 }
 0x413   : > { %v477_v51 = vmul.f32 %v476_v50, %v3129_v40 }
 0x415   : > { %v478_v52 = vmul.f32 1.442695, %v477_v51 }
 0x417   : > { %2624 = vpow2.f32 %v478_v52 }
 0x41d   : > { %v2625_v53 = vpop.eup %2624 }
 0x41e   : > { %v480_v54 = vsel %vm473_vm2, %v2625_v53, 0.0  ;;  %v555_v53 = vmul.f32 0.5, %v538_v38 }
 0x41f   : > { %v481_v55 = vsel %vm348_vm0, %v480_v54, 0.0 }
 0x420   : > { %482 = vadd.xlane.f32.xlu0 %v481_v55 }
 0x493   : > { %v483_v56 = vpop.xlane.xlu0 %482 }
 0x494   : > { %v2450_v57 = vadd.f32 -1.0, %v483_v56 }
 0x496   : > { %vm485_vm3 = vcmp.ge.f32.partialorder %v2450_v57, 0.0 }
 0x497   : > { %v486_v59 = vsel %vm485_vm3, %v471_v46, %v469_v45 }
 0x498   : > { %v488_v60 = vadd.f32 %v487_v58, %v486_v59 }
 0x49a   : > { %v489_v61 = vsub.f32 %v3123_v25, %v488_v60 }
 0x49c   : > { %vm490_vm4 = vcmp.gt.f32.partialorder %v489_v61, 0.0 }
 0x49d   : > { %v491_v62 = vsel %vm490_vm4, %v489_v61, 1.0 }
 0x49e   : > { %2626 = vlog2.f32 %v491_v62 }
 0x4a4   : > { %v2627_v63 = vpop.eup %2626 }
 0x4a5   : > { %v493_v0 = vmul.f32 0.6931472, %v2627_v63 }
 0x4a7   : > { %v494_v1 = vmul.f32 %v493_v0, %v3129_v40 }
 0x4a9   : > { %v495_v2 = vmul.f32 1.442695, %v494_v1 }
 0x4ab   : > { %2628 = vpow2.f32 %v495_v2 }
 0x4b1   : > { %v2629_v3 = vpop.eup %2628 }
 0x4b2   : > { %v497_v4 = vsel %vm490_vm4, %v2629_v3, 0.0  ;;  %v572_v3 = vmul.f32 0.5, %v555_v53 }
 0x4b3   : > { %v498_v5 = vsel %vm348_vm0, %v497_v4, 0.0 }
 0x4b4   : > { %499 = vadd.xlane.f32.xlu1 %v498_v5 }
 0x527   : > { %v500_v6 = vpop.xlane.xlu1 %499 }
 0x528   : > { %v2451_v7 = vadd.f32 -1.0, %v500_v6 }
 0x52a   : > { %vm502_vm5 = vcmp.ge.f32.partialorder %v2451_v7, 0.0 }
 0x52b   : > { %v503_v9 = vsel %vm502_vm5, %v488_v60, %v486_v59 }
 0x52c   : > { %v505_v10 = vadd.f32 %v504_v8, %v503_v9 }
 0x52e   : > { %v506_v11 = vsub.f32 %v3123_v25, %v505_v10 }
 0x530   : > { %vm507_vm6 = vcmp.gt.f32.partialorder %v506_v11, 0.0 }
 0x531   : > { %v508_v12 = vsel %vm507_vm6, %v506_v11, 1.0 }
 0x532   : > { %2630 = vlog2.f32 %v508_v12 }
 0x538   : > { %v2631_v13 = vpop.eup %2630 }
 0x539   : > { %v510_v14 = vmul.f32 0.6931472, %v2631_v13 }
 0x53b   : > { %v511_v15 = vmul.f32 %v510_v14, %v3129_v40 }
 0x53d   : > { %v512_v16 = vmul.f32 1.442695, %v511_v15 }
 0x53f   : > { %2632 = vpow2.f32 %v512_v16 }
 0x545   : > { %v2633_v17 = vpop.eup %2632 }
 0x546   : > { %v514_v18 = vsel %vm507_vm6, %v2633_v17, 0.0  ;;  %v589_v17 = vmul.f32 0.5, %v572_v3 }
 0x547   : > { %v515_v19 = vsel %vm348_vm0, %v514_v18, 0.0 }
 0x548   : > { %516 = vadd.xlane.f32.xlu2 %v515_v19 }
 0x5bb   : > { %v517_v21 = vpop.xlane.xlu2 %516 }
 0x5bc   : > { %v2452_v22 = vadd.f32 -1.0, %v517_v21 }
 0x5be   : > { %vm519_vm7 = vcmp.ge.f32.partialorder %v2452_v22, 0.0 }
 0x5bf   : > { %v520_v24 = vsel %vm519_vm7, %v505_v10, %v503_v9 }
 0x5c0   : > { %v522_v26 = vadd.f32 %v521_v23, %v520_v24 }
 0x5c2   : > { %v523_v27 = vsub.f32 %v3123_v25, %v522_v26 }
 0x5c4   : > { %vm524_vm8 = vcmp.gt.f32.partialorder %v523_v27, 0.0 }
 0x5c5   : > { %v525_v28 = vsel %vm524_vm8, %v523_v27, 1.0 }
 0x5c6   : > { %2634 = vlog2.f32 %v525_v28 }
 0x5cc   : > { %v2635_v29 = vpop.eup %2634 }
 0x5cd   : > { %v527_v30 = vmul.f32 0.6931472, %v2635_v29 }
 0x5cf   : > { %v528_v31 = vmul.f32 %v527_v30, %v3129_v40 }
 0x5d1   : > { %v529_v32 = vmul.f32 1.442695, %v528_v31 }
 0x5d3   : > { %2636 = vpow2.f32 %v529_v32 }
 0x5d9   : > { %v2637_v33 = vpop.eup %2636 }
 0x5da   : > { %v531_v34 = vsel %vm524_vm8, %v2637_v33, 0.0  ;;  %v606_v33 = vmul.f32 0.5, %v589_v17 }
 0x5db   : > { %v532_v35 = vsel %vm348_vm0, %v531_v34, 0.0 }
 0x5dc   : > { %533 = vadd.xlane.f32.xlu0 %v532_v35 }
 0x64f   : > { %v534_v36 = vpop.xlane.xlu0 %533 }
 0x650   : > { %v2453_v37 = vadd.f32 -1.0, %v534_v36 }
 0x652   : > { %vm536_vm9 = vcmp.ge.f32.partialorder %v2453_v37, 0.0 }
 0x653   : > { %v537_v39 = vsel %vm536_vm9, %v522_v26, %v520_v24 }
 0x654   : > { %v539_v41 = vadd.f32 %v538_v38, %v537_v39 }
 0x656   : > { %v540_v42 = vsub.f32 %v3123_v25, %v539_v41 }
 0x658   : > { %vm541_vm10 = vcmp.gt.f32.partialorder %v540_v42, 0.0 }
 0x659   : > { %v542_v43 = vsel %vm541_vm10, %v540_v42, 1.0 }
 0x65a   : > { %2638 = vlog2.f32 %v542_v43 }
 0x660   : > { %v2639_v44 = vpop.eup %2638 }
 0x661   : > { %v544_v45 = vmul.f32 0.6931472, %v2639_v44 }
 0x663   : > { %v545_v46 = vmul.f32 %v544_v45, %v3129_v40 }
 0x665   : > { %v546_v47 = vmul.f32 1.442695, %v545_v46 }
 0x667   : > { %2640 = vpow2.f32 %v546_v47 }
 0x66d   : > { %v2641_v48 = vpop.eup %2640 }
 0x66e   : > { %v548_v49 = vsel %vm541_vm10, %v2641_v48, 0.0  ;;  %v623_v48 = vmul.f32 0.5, %v606_v33 }
 0x66f   : > { %v549_v50 = vsel %vm348_vm0, %v548_v49, 0.0 }
 0x670   : > { %550 = vadd.xlane.f32.xlu1 %v549_v50 }
 0x6e3   : > { %v551_v51 = vpop.xlane.xlu1 %550 }
 0x6e4   : > { %v2454_v52 = vadd.f32 -1.0, %v551_v51 }
 0x6e6   : > { %vm553_vm11 = vcmp.ge.f32.partialorder %v2454_v52, 0.0 }
 0x6e7   : > { %v554_v54 = vsel %vm553_vm11, %v539_v41, %v537_v39 }
 0x6e8   : > { %v556_v55 = vadd.f32 %v555_v53, %v554_v54 }
 0x6ea   : > { %v557_v56 = vsub.f32 %v3123_v25, %v556_v55 }
 0x6ec   : > { %vm558_vm12 = vcmp.gt.f32.partialorder %v557_v56, 0.0 }
 0x6ed   : > { %v559_v57 = vsel %vm558_vm12, %v557_v56, 1.0 }
 0x6ee   : > { %2642 = vlog2.f32 %v559_v57 }
 0x6f4   : > { %v2643_v58 = vpop.eup %2642 }
 0x6f5   : > { %v561_v59 = vmul.f32 0.6931472, %v2643_v58 }
 0x6f7   : > { %v562_v60 = vmul.f32 %v561_v59, %v3129_v40 }
 0x6f9   : > { %v563_v61 = vmul.f32 1.442695, %v562_v60 }
 0x6fb   : > { %2644 = vpow2.f32 %v563_v61 }
 0x701   : > { %v2645_v62 = vpop.eup %2644 }
 0x702   : > { %v565_v63 = vsel %vm558_vm12, %v2645_v62, 0.0  ;;  %v640_v62 = vmul.f32 0.5, %v623_v48 }
 0x703   : > { %v566_v0 = vsel %vm348_vm0, %v565_v63, 0.0 }
 0x704   : > { %567 = vadd.xlane.f32.xlu2 %v566_v0 }
 0x777   : > { %v568_v1 = vpop.xlane.xlu2 %567 }
 0x778   : > { %v2455_v2 = vadd.f32 -1.0, %v568_v1 }
 0x77a   : > { %vm570_vm13 = vcmp.ge.f32.partialorder %v2455_v2, 0.0 }
 0x77b   : > { %v571_v4 = vsel %vm570_vm13, %v556_v55, %v554_v54 }
 0x77c   : > { %v573_v5 = vadd.f32 %v572_v3, %v571_v4 }
 0x77e   : > { %v574_v6 = vsub.f32 %v3123_v25, %v573_v5 }
 0x780   : > { %vm575_vm14 = vcmp.gt.f32.partialorder %v574_v6, 0.0 }
 0x781   : > { %v576_v7 = vsel %vm575_vm14, %v574_v6, 1.0 }
 0x782   : > { %2646 = vlog2.f32 %v576_v7 }
 0x788   : > { %v2647_v8 = vpop.eup %2646 }
 0x789   : > { %v578_v9 = vmul.f32 0.6931472, %v2647_v8 }
 0x78b   : > { %v579_v10 = vmul.f32 %v578_v9, %v3129_v40 }
 0x78d   : > { %v580_v11 = vmul.f32 1.442695, %v579_v10 }
 0x78f   : > { %2648 = vpow2.f32 %v580_v11 }
 0x795   : > { %v2649_v12 = vpop.eup %2648 }
 0x796   : > { %v582_v13 = vsel %vm575_vm14, %v2649_v12, 0.0 }
 0x797   : > { %v583_v14 = vsel %vm348_vm0, %v582_v13, 0.0 }
 0x798   : > { %584 = vadd.xlane.f32.xlu0 %v583_v14 }
 0x80b   : > { %v585_v15 = vpop.xlane.xlu0 %584 }
 0x80c   : > { %v2456_v16 = vadd.f32 -1.0, %v585_v15 }
 0x80e   : > { %vm587_vm15 = vcmp.ge.f32.partialorder %v2456_v16, 0.0 }
 0x80f   : > { %v588_v18 = vsel %vm587_vm15, %v573_v5, %v571_v4 }
 0x810   : > { %v590_v19 = vadd.f32 %v589_v17, %v588_v18 }
 0x812   : > { %v591_v21 = vsub.f32 %v3123_v25, %v590_v19 }
 0x814   : > { %vm592_vm1 = vcmp.gt.f32.partialorder %v591_v21, 0.0 }
 0x815   : > { %v593_v22 = vsel %vm592_vm1, %v591_v21, 1.0 }
 0x816   : > { %2650 = vlog2.f32 %v593_v22 }
 0x81c   : > { %v2651_v23 = vpop.eup %2650 }
 0x81d   : > { %v595_v24 = vmul.f32 0.6931472, %v2651_v23 }
 0x81f   : > { %v596_v26 = vmul.f32 %v595_v24, %v3129_v40 }
 0x821   : > { %v597_v27 = vmul.f32 1.442695, %v596_v26 }
 0x823   : > { %2652 = vpow2.f32 %v597_v27 }
 0x829   : > { %v2653_v28 = vpop.eup %2652 }
 0x82a   : > { %v599_v29 = vsel %vm592_vm1, %v2653_v28, 0.0 }
 0x82b   : > { %v600_v30 = vsel %vm348_vm0, %v599_v29, 0.0 }
 0x82c   : > { %601 = vadd.xlane.f32.xlu1 %v600_v30 }
 0x89f   : > { %v602_v31 = vpop.xlane.xlu1 %601 }
 0x8a0   : > { %v2457_v32 = vadd.f32 -1.0, %v602_v31 }
 0x8a2   : > { %vm604_vm2 = vcmp.ge.f32.partialorder %v2457_v32, 0.0 }
 0x8a3   : > { %v605_v34 = vsel %vm604_vm2, %v590_v19, %v588_v18 }
 0x8a4   : > { %v607_v35 = vadd.f32 %v606_v33, %v605_v34 }
 0x8a6   : > { %v608_v36 = vsub.f32 %v3123_v25, %v607_v35 }
 0x8a8   : > { %vm609_vm3 = vcmp.gt.f32.partialorder %v608_v36, 0.0 }
 0x8a9   : > { %v610_v37 = vsel %vm609_vm3, %v608_v36, 1.0 }
 0x8aa   : > { %2654 = vlog2.f32 %v610_v37 }
 0x8b0   : > { %v2655_v38 = vpop.eup %2654 }
 0x8b1   : > { %v612_v39 = vmul.f32 0.6931472, %v2655_v38 }
 0x8b3   : > { %v613_v41 = vmul.f32 %v612_v39, %v3129_v40 }
 0x8b5   : > { %v614_v42 = vmul.f32 1.442695, %v613_v41 }
 0x8b7   : > { %2656 = vpow2.f32 %v614_v42 }
 0x8bd   : > { %v2657_v43 = vpop.eup %2656 }
 0x8be   : > { %v616_v44 = vsel %vm609_vm3, %v2657_v43, 0.0 }
 0x8bf   : > { %v617_v45 = vsel %vm348_vm0, %v616_v44, 0.0 }
 0x8c0   : > { %618 = vadd.xlane.f32.xlu2 %v617_v45 }
 0x933   : > { %v619_v46 = vpop.xlane.xlu2 %618 }
 0x934   : > { %v2458_v47 = vadd.f32 -1.0, %v619_v46 }
 0x936   : > { %vm621_vm4 = vcmp.ge.f32.partialorder %v2458_v47, 0.0 }
 0x937   : > { %v622_v49 = vsel %vm621_vm4, %v607_v35, %v605_v34 }
 0x938   : > { %v624_v50 = vadd.f32 %v623_v48, %v622_v49 }
 0x93a   : > { %v625_v51 = vsub.f32 %v3123_v25, %v624_v50 }
 0x93c   : > { %vm626_vm5 = vcmp.gt.f32.partialorder %v625_v51, 0.0 }
 0x93d   : > { %v627_v52 = vsel %vm626_vm5, %v625_v51, 1.0 }
 0x93e   : > { %2658 = vlog2.f32 %v627_v52 }
 0x944   : > { %v2659_v53 = vpop.eup %2658 }
 0x945   : > { %v629_v54 = vmul.f32 0.6931472, %v2659_v53 }
 0x947   : > { %v630_v55 = vmul.f32 %v629_v54, %v3129_v40 }
 0x949   : > { %v631_v56 = vmul.f32 1.442695, %v630_v55 }
 0x94b   : > { %2660 = vpow2.f32 %v631_v56 }
 0x951   : > { %v2661_v57 = vpop.eup %2660 }
 0x952   : > { %v633_v58 = vsel %vm626_vm5, %v2661_v57, 0.0 }
 0x953   : > { %v634_v59 = vsel %vm348_vm0, %v633_v58, 0.0 }
 0x954   : > { %635 = vadd.xlane.f32.xlu0 %v634_v59 }
 0x9c7   : > { %v636_v60 = vpop.xlane.xlu0 %635 }
 0x9c8   : > { %v2459_v61 = vadd.f32 -1.0, %v636_v60 }
 0x9ca   : > { %vm638_vm6 = vcmp.ge.f32.partialorder %v2459_v61, 0.0 }
 0x9cb   : > { %v639_v63 = vsel %vm638_vm6, %v624_v50, %v622_v49 }
 0x9cc   : > { %v641_v0 = vadd.f32 %v640_v62, %v639_v63 }
 0x9ce   : > { %v642_v1 = vsub.f32 %v3123_v25, %v641_v0 }
 0x9d0   : > { %vm643_vm7 = vcmp.gt.f32.partialorder %v642_v1, 0.0 }
 0x9d1   : > { %v644_v2 = vsel %vm643_vm7, %v642_v1, 1.0 }
 0x9d2   : > { %2662 = vlog2.f32 %v644_v2 }
 0x9d8   : > { %v2663_v3 = vpop.eup %2662 }
 0x9d9   : > { %v646_v4 = vmul.f32 0.6931472, %v2663_v3 }
 0x9db   : > { %v647_v5 = vmul.f32 %v646_v4, %v3129_v40 }
 0x9dd   : > { %v648_v6 = vmul.f32 1.442695, %v647_v5 }
 0x9df   : > { %2664 = vpow2.f32 %v648_v6 }
 0x9e5   : > { %v2665_v7 = vpop.eup %2664 }
 0x9e6   : > { %v650_v8 = vsel %vm643_vm7, %v2665_v7, 0.0 }
 0x9e7   : > { %v651_v9 = vsel %vm348_vm0, %v650_v8, 0.0 }
 0x9e8   : > { %652 = vadd.xlane.f32.xlu1 %v651_v9 }
 0xa5b   : > { %v653_v10 = vpop.xlane.xlu1 %652 }
 0xa5c   : > { %v2460_v11 = vadd.f32 -1.0, %v653_v10 }
 0xa5e   : > { %vm655_vm8 = vcmp.ge.f32.partialorder %v2460_v11, 0.0 }
 0xa5f   : > { %v656_v12 = vsel %vm655_vm8, %v641_v0, %v639_v63 }
 0xa60   : > { %v657_v13 = vsub.f32 %v3123_v25, %v656_v12 }
 0xa62   : > { %vm658_vm9 = vcmp.gt.f32.partialorder %v657_v13, 0.0 }
 0xa63   : > { %v659_v14 = vsel %vm658_vm9, %v657_v13, 1.0  ;;  %v828_v13 = vld [vmem:[%s3112_s13] sm:$0xf] }
 0xa64   : > { %2666 = vlog2.f32 %v659_v14  ;;  %v681_v26 = vand.u32 2147483648, %v659_v14  ;;  %vm675_vm11 = vweird.f32 %v659_v14  ;;  %v679_v27 = vand.u32 2147483647, %v659_v14 }
 0xa65   : > { %2668 = vrcp.f32 %v659_v14 }
 0xa66   : > { %v682_v29 = vor.u32 1.1754944e-38, %v681_v26  ;;  %vm680_vm13 = vcmp.eq.f32.partialorder %v679_v27, 8.507059e+37 }
 0xa6a   : > { %v2667_v15 = vpop.eup %2666 }
 0xa6b   : > { %v2669_v16 = vpop.eup %2668  ;;  %v661_v17 = vmul.f32 0.6931472, %v2667_v15  ;;  %v829_v15 = vld [vmem:[%s3104_s10] sm:$0xf] }
 0xa6c   : > { %v671_v18 = vmul.f32 %v2669_v16, %v659_v14  ;;  %vm676_vm10 = vweird.f32 %v2669_v16  ;;  %v832_v14 = vunpack.c.l.b16 %v828_v13 }
 0xa6d   : > { %v662_v19 = vmul.f32 %v661_v17, %v3129_v40  ;;  %vm677_vm12 = vmor %vm675_vm11, %vm676_vm10 }
 0xa6e   : > { %v672_v21 = vsub.f32 1.0, %v671_v18  ;;  %v833_v17 = vpack.c.b16 %v832_v14, %v832_v14 }
 0xa6f   : > { %v663_v22 = vmul.f32 1.442695, %v662_v19  ;;  %v1329_v19 = vld [vmem:[%s3104_s10] sm:$0xf] }
 0xa70   : > { %v673_v23 = vmul.f32 %v2669_v16, %v672_v21  ;;  %v1337_v21 = vunpack.c.l.b16 %v1329_v19 }
 0xa71   : > { %2670 = vpow2.f32 %v663_v22 }
 0xa72   : > { %v674_v24 = vadd.f32 %v2669_v16, %v673_v23  ;;  %v1338_v22 = vpack.c.b16 %v1337_v21, %v1337_v21 }
 0xa74   : > { %v678_v28 = vsel %vm677_vm12, %v2669_v16, %v674_v24  ;;  %v837_v16 = vunpack.c.l.b16 %v829_v15 }
 0xa75   : > { %v683_v32 = vsel %vm680_vm13, %v682_v29, %v678_v28  ;;  %vm788_vm13 = vcmask 1043456  }
 0xa76   : > { %v838_v18 = vpack.c.b16 %v837_v16, %v837_v16 }
 0xa77   : > { %v2671_v30 = vpop.eup %2670 }
 0xa78   : > { %v665_v31 = vsel %vm658_vm9, %v2671_v30, 0.0 }
 0xa79   : > { %v666_v33 = vsel %vm348_vm0, %v665_v31, 0.0  ;;  %v684_v34 = vmul.f32 %v683_v32, %v665_v31 }
 0xa7a   : > { %667 = vadd.xlane.f32.xlu0 %v666_v33 }
 0xa7b   : > { %v685_v35 = vsel %vm658_vm9, %v684_v34, 0.0 }
 0xa7c   : > { %v686_v36 = vsel %vm348_vm0, %v685_v35, 0.0 }
 0xa7d   : > { %687 = vadd.xlane.f32.xlu2 %v686_v36 }
 0xa8e   : > { %1339 = vrot.lane.b32.xlu0 %v1338_v22, %s3024_s25 }
 0xaed   : > { %v668_v47 = vpop.xlane.xlu0 %667 }
 0xaee   : > { %v2461_v50 = vadd.f32 -1.0, %v668_v47 }
 0xaf0   : > { %v688_v37 = vpop.xlane.xlu2 %687 }
 0xaf1   : > { %v689_v38 = vmax.f32 %v688_v37, 1e-30 }
 0xaf3   : > { %v690_v39 = vmul.f32 %v689_v38, %v3129_v40 }
 0xaf5   : > { %2672 = vrcp.f32 %v690_v39  ;;  %v702_v44 = vand.u32 2147483648, %v690_v39  ;;  %v700_v46 = vand.u32 2147483647, %v690_v39  ;;  %vm696_vm15 = vweird.f32 %v690_v39 }
 0xaf7   : > { %v703_v49 = vor.u32 1.1754944e-38, %v702_v44  ;;  %vm701_vm2 = vcmp.eq.f32.partialorder %v700_v46, 8.507059e+37 }
 0xafb   : > { %v2673_v41 = vpop.eup %2672 }
 0xafc   : > { %v692_v42 = vmul.f32 %v2673_v41, %v690_v39  ;;  %vm697_vm14 = vweird.f32 %v2673_v41 }
 0xafd   : > { %vm698_vm1 = vmor %vm696_vm15, %vm697_vm14 }
 0xafe   : > { %v693_v43 = vsub.f32 1.0, %v692_v42 }
 0xb00   : > { %v694_v45 = vmul.f32 %v2673_v41, %v693_v43 }
 0xb02   : > { %v695_v48 = vadd.f32 %v2673_v41, %v694_v45 }
 0xb04   : > { %v699_v51 = vsel %vm698_vm1, %v2673_v41, %v695_v48 }
 0xb05   : > { %v704_v52 = vsel %vm701_vm2, %v703_v49, %v699_v51  ;;  %v1328_v51 = vld [vmem:[%s3112_s13] sm:$0xf] }
 0xb06   : > { %v705_v53 = vmul.f32 %v2461_v50, %v704_v52  ;;  %v1829_v50 = vld [vmem:[%s3104_s10] sm:$0xf]  ;;  %s870_s10 = smul.f32 -2.0794415, %s3231_s9 }
 0xb08   : > { %v3186_v54 = vadd.f32 %v705_v53, %v656_v12  ;;  %v1837_v53 = vunpack.c.l.b16 %v1829_v50  ;;  %v1812_v50 = vstv %s3257_s17 }
 0xb0a   : > { %v707_v55 = vsub.f32 %v3123_v25, %v3186_v54 }
 0xb0c   : > { %vm708_vm3 = vcmp.gt.f32.partialorder %v707_v55, 0.0 }
 0xb0d   : > { %v709_v56 = vsel %vm708_vm3, %v707_v55, 1.0 }
 0xb0e   : > { %2674 = vlog2.f32 %v709_v56  ;;  %v731_v2 = vand.u32 2147483648, %v709_v56  ;;  %vm725_vm5 = vweird.f32 %v709_v56  ;;  %v729_v3 = vand.u32 2147483647, %v709_v56 }
 0xb0f   : > { %2676 = vrcp.f32 %v709_v56 }
 0xb10   : > { %v732_v5 = vor.u32 1.1754944e-38, %v731_v2  ;;  %vm730_vm7 = vcmp.eq.f32.partialorder %v729_v3, 8.507059e+37  ;;  %v861_v3 = vstv %s2465_s6 }
 0xb11   : > { %vm862_vm14 = vcmp.gt.f32.partialorder %v3120_v20, %v861_v3 }
 0xb14   : > { %v2675_v57 = vpop.eup %2674 }
 0xb15   : > { %v2677_v58 = vpop.eup %2676  ;;  %v711_v59 = vmul.f32 0.6931472, %v2675_v57 }
 0xb16   : > { %v721_v60 = vmul.f32 %v2677_v58, %v709_v56  ;;  %vm726_vm4 = vweird.f32 %v2677_v58 }
 0xb17   : > { %v712_v61 = vmul.f32 %v711_v59, %v3129_v40  ;;  %vm727_vm6 = vmor %vm725_vm5, %vm726_vm4  ;;  %v347_v59 = vld [vmem:[%s3222_s29] sm:$0xf] }
 0xb18   : > { %v722_v62 = vsub.f32 1.0, %v721_v60  ;;  %v790_v60 = vsel %vm788_vm13, %v347_v59, 0 }
 0xb19   : > { %v713_v63 = vmul.f32 1.442695, %v712_v61  ;;  %799 = vmatpush.bf16.msra.mxu1 %v790_v60 }
 0xb1a   : > { %v723_v0 = vmul.f32 %v2677_v58, %v722_v62 }
 0xb1b   : > { %2678 = vpow2.f32 %v713_v63  ;;  %v1340_v63 = vpop.permute.xlu0 %1339 }
 0xb1c   : > { %v724_v1 = vadd.f32 %v2677_v58, %v723_v0  ;;  %v1345_v0 = vsel %vm348_vm0, %v1340_v63, 0  ;;  %v1822_v63 = vand.u32 2147483647, %v1812_v50 }
 0xb1d   : > { %1354 = vmatpush.bf16.xpose.msrb.mxu1 %v1345_v0  ;;  %v1824_v0 = vand.u32 2147483648, %v1812_v50 }
 0xb1e   : > { %v728_v4 = vsel %vm727_vm6, %v2677_v58, %v724_v1  ;;  %v1828_v58 = vld [vmem:[%s3112_s13] sm:$0xf]  ;;  %s2490_s13 = sadd.f32 -1.0, %s2488_s11 }
 0xb1f   : > { %v733_v8 = vsel %vm730_vm7, %v732_v5, %v728_v4  ;;  %v1832_v61 = vunpack.c.l.b16 %v1828_v58  ;;  %v812_v4 = vstv %s3231_s9 }
 0xb20   : > { %vm818_vm15 = vweird.f32 %v812_v4  ;;  %v824_v15 = vand.u32 2147483648, %v812_v4  ;;  %s3254_s15 = smax.f32 %s3022_s16, %s2490_s13 }
 0xb21   : > { %v2679_v6 = vpop.eup %2678  ;;  %v1833_v62 = vpack.c.b16 %v1832_v61, %v1832_v61  ;;  %s1370_s30 = smul.f32 -2.0794415, %s3254_s15 }
 0xb22   : > { %v715_v7 = vsel %vm708_vm3, %v2679_v6, 0.0 }
 0xb23   : > { %v716_v9 = vsel %vm348_vm0, %v715_v7, 0.0  ;;  %v734_v10 = vmul.f32 %v733_v8, %v715_v7 }
 0xb24   : > { %717 = vadd.xlane.f32.xlu2 %v716_v9 }
 0xb25   : > { %v735_v11 = vsel %vm708_vm3, %v734_v10, 0.0 }
 0xb26   : > { %v736_v12 = vsel %vm348_vm0, %v735_v11, 0.0 }
 0xb27   : > { %737 = vadd.xlane.f32.xlu1 %v736_v12 }
 0xb3c   : > { %834 = vrot.lane.b32.xlu2 %v833_v17, %s3023_s24 }
 0xb40   : > { %839 = vrot.lane.b32.xlu1 %v838_v18, %s3023_s24  ;;  %v822_v18 = vand.u32 2147483647, %v812_v4 }
 0xb42   : > { %vm823_vm4 = vcmp.eq.f32.partialorder %v822_v18, 8.507059e+37 }
 0xb97   : > { %v718_v33 = vpop.xlane.xlu2 %717 }
 0xb98   : > { %v2462_v36 = vadd.f32 -1.0, %v718_v33 }
 0xb9a   : > { %v738_v23 = vpop.xlane.xlu1 %737 }
 0xb9b   : > { %v739_v24 = vmax.f32 %v738_v23, 1e-30 }
 0xb9d   : > { %v740_v26 = vmul.f32 %v739_v24, %v3129_v40  ;;  %v825_v24 = vor.u32 1.1754944e-38, %v824_v15 }
 0xb9f   : > { %2680 = vrcp.f32 %v740_v26  ;;  %v752_v30 = vand.u32 2147483648, %v740_v26  ;;  %v750_v32 = vand.u32 2147483647, %v740_v26  ;;  %vm746_vm9 = vweird.f32 %v740_v26  ;;  %v835_v46 = vpop.permute.xlu2 %834 }
 0xba1   : > { %v753_v35 = vor.u32 1.1754944e-38, %v752_v30  ;;  %vm751_vm11 = vcmp.eq.f32.partialorder %v750_v32, 8.507059e+37 }
 0xba5   : > { %v2681_v27 = vpop.eup %2680 }
 0xba6   : > { %v742_v28 = vmul.f32 %v2681_v27, %v740_v26  ;;  %vm747_vm8 = vweird.f32 %v2681_v27 }
 0xba7   : > { %vm748_vm10 = vmor %vm746_vm9, %vm747_vm8 }
 0xba8   : > { %v743_v29 = vsub.f32 1.0, %v742_v28 }
 0xbaa   : > { %v744_v31 = vmul.f32 %v2681_v27, %v743_v29 }
 0xbac   : > { %v745_v34 = vadd.f32 %v2681_v27, %v744_v31 }
 0xbae   : > { %v749_v37 = vsel %vm748_vm10, %v2681_v27, %v745_v34 }
 0xbaf   : > { %v754_v38 = vsel %vm751_vm11, %v753_v35, %v749_v37  ;;  %vm1818_vm11 = vweird.f32 %v1812_v50 }
 0xbb0   : > { %v755_v39 = vmul.f32 %v2462_v36, %v754_v38  ;;  %v871_v38 = vstv %s870_s10 }
 0xbb2   : > { %v840_v41 = vpop.permute.xlu1 %839  ;;  %v756_v42 = vadd.f32 %v755_v39, %v3186_v54  ;;  %v1332_v54 = vunpack.c.l.b16 %v1328_v51  ;;  %v872_v39 = vmul.f32 1.442695, %v871_v38 }
 0xbb3   : > { %v845_v43 = vsel %vm348_vm0, %v840_v41, 0 }
 0xbb4   : > { %854 = vmatpush.bf16.xpose.msra.mxu2 %v845_v43  ;;  %v757_v44 = vsub.f32 %v3123_v25, %v756_v42  ;;  %v1838_v25 = vpack.c.b16 %v1837_v53, %v1837_v53  ;;  %v1333_v55 = vpack.c.b16 %v1332_v54, %v1332_v54 }
 0xbb6   : > { %vm758_vm12 = vcmp.gt.f32.partialorder %v757_v44, 0.0  ;;  %1839 = vrot.lane.b32.xlu2 %v1838_v25, %s3025_s26  ;;  %1334 = vrot.lane.b32.xlu1 %v1333_v55, %s3024_s25  ;;  %v1861_v55 = vstv %s2513_s18 }
 0xbb7   : > { %v759_v45 = vsel %vm758_vm12, %v757_v44, 1.0 }
 0xbb8   : > { %2682 = vlog2.f32 %v759_v45 }
 0xbbb   : > { %2467 = vmatmul.msk.bf16.vlgmr.msra.gmra.mxu2 %vm348_vm0, %v835_v46 }
 0xbbe   : > { %v2683_v47 = vpop.eup %2682 }
 0xbbf   : > { %v761_v48 = vmul.f32 0.6931472, %v2683_v47 }
 0xbc1   : > { %v762_v49 = vmul.f32 %v761_v48, %v3129_v40 }
 0xbc3   : > { %v763_v52 = vmul.f32 1.442695, %v762_v49  ;;  %v3262_v49 = vstv %s3254_s15 }
 0xbc4   : > { %vm1318_vm9 = vweird.f32 %v3262_v49  ;;  %v1322_v61 = vand.u32 2147483647, %v3262_v49 }
 0xbc5   : > { %2684 = vpow2.f32 %v763_v52 }
 0xbc6   : > { %2686 = vrcp.f32 %v812_v4 }
 0xbcb   : > { %v2685_v56 = vpop.eup %2684 }
 0xbcc   : > { %v3214_v57 = vsel %vm758_vm12, %v2685_v56, 0.0  ;;  %v2687_v10 = vpop.eup %2686 }
 0xbcd   : > { %v766_v40 = vsel %vm348_vm0, %v3214_v57, 0.0  ;;  %v814_v13 = vmul.f32 %v2687_v10, %v812_v4  ;;  %vm819_vm1 = vweird.f32 %v2687_v10 }
 0xbce   : > { %767 = vadd.xlane.f32.xlu0 %v766_v40  ;;  %vm820_vm2 = vmor %vm818_vm15, %vm819_vm1  ;;  %v1324_v40 = vand.u32 2147483648, %v3262_v49  ;;  %vm1323_vm1 = vcmp.eq.f32.partialorder %v1322_v61, 8.507059e+37 }
 0xbcf   : > { %v815_v17 = vsub.f32 1.0, %v814_v13 }
 0xbd1   : > { %v816_v21 = vmul.f32 %v2687_v10, %v815_v17 }
 0xbd3   : > { %v817_v27 = vadd.f32 %v2687_v10, %v816_v21 }
 0xbd5   : > { %v821_v29 = vsel %vm820_vm2, %v2687_v10, %v817_v27 }
 0xbd6   : > { %v826_v31 = vsel %vm823_vm4, %v825_v24, %v821_v29  ;;  %vm806_vm4 = vcmask 60416  }
 0xbd7   : > { %2540 = vpush %v826_v31 }
 0xbe2   : > { %1834 = vrot.lane.b32.xlu0 %v1833_v62, %s3025_s26 }
 0xc08   : > { %s2541_s21 = spop %2540 }
 0xc09   : > { %v3267_v25 = vstv %s2541_s21 }
 0xc10   : > { %v1840_v1 = vpop.permute.xlu2 %1839 }
 0xc11   : > { %v1845_v2 = vsel %vm348_vm0, %v1840_v1, 0 }
 0xc12   : > { %1854 = vmatpush.bf16.xpose.msrb.mxu0 %v1845_v2 }
 0xc28   : > { %v1335_v37 = vpop.permute.xlu1 %1334 }
 0xc3e   : > { %v856_v5 = vpop.f32.mrf.mxu2 }
 0xc3f   : > { %v860_v6 = vmul.f32 0.35355338, %v856_v5  ;;  %v1325_v5 = vor.u32 1.1754944e-38, %v1324_v40 }
 0xc41   : > { %v863_v7 = vsel %vm862_vm14, -inf, %v860_v6  ;;  %v768_v8 = vpop.xlane.xlu0 %767  ;;  %vm3275_vm14 = vcmp.gt.f32.partialorder %v3120_v20, %v1861_v55 }
 0xc42   : > { %v3235_v9 = vmul.f32 %v863_v7, %v812_v4  ;;  %2688 = vrcp.f32 %v768_v8  ;;  %v780_v22 = vand.u32 2147483648, %v768_v8  ;;  %v778_v23 = vand.u32 2147483647, %v768_v8 }
 0xc43   : > { %vm774_vm5 = vweird.f32 %v768_v8  ;;  %2690 = vpow2.f32 %v872_v39 }
 0xc44   : > { %v866_v11 = vsel %vm348_vm0, %v3235_v9, -inf  ;;  %v781_v30 = vor.u32 1.1754944e-38, %v780_v22  ;;  %vm779_vm7 = vcmp.eq.f32.partialorder %v778_v23, 8.507059e+37  ;;  %2692 = vrcp.f32 %v3262_v49 }
 0xc45   : > { %867 = vmax.xlane.f32.xlu2 %v866_v11  ;;  %2694 = vrcp.f32 %v1812_v50  ;;  %v1825_v11 = vor.u32 1.1754944e-38, %v1824_v0 }
 0xc46   : > { %v858_v12 = vpop.f32.mrf.mxu2 }
 0xc48   : > { %v2689_v14 = vpop.eup %2688 }
 0xc49   : > { %v770_v16 = vmul.f32 %v2689_v14, %v768_v8  ;;  %vm775_vm3 = vweird.f32 %v2689_v14  ;;  %v2691_v41 = vpop.eup %2690 }
 0xc4a   : > { %vm776_vm6 = vmor %vm774_vm5, %vm775_vm3  ;;  %v2693_v52 = vpop.eup %2692  ;;  %vm1823_vm3 = vcmp.eq.f32.partialorder %v1822_v63, 8.507059e+37 }
 0xc4b   : > { %v771_v19 = vsub.f32 1.0, %v770_v16  ;;  %v2695_v53 = vpop.eup %2694  ;;  %vm1319_vm10 = vweird.f32 %v2693_v52 }
 0xc4c   : > { %v1814_v58 = vmul.f32 %v2695_v53, %v1812_v50  ;;  %vm1819_vm12 = vweird.f32 %v2695_v53  ;;  %vm3281_vm15 = vmor %vm1318_vm9, %vm1319_vm10 }
 0xc4d   : > { %v772_v26 = vmul.f32 %v2689_v14, %v771_v19  ;;  %vm3286_vm2 = vmor %vm1818_vm11, %vm1819_vm12 }
 0xc4e   : > { %v1815_v62 = vsub.f32 1.0, %v1814_v58 }
 0xc4f   : > { %v773_v28 = vadd.f32 %v2689_v14, %v772_v26 }
 0xc50   : > { %v1816_v6 = vmul.f32 %v2695_v53, %v1815_v62 }
 0xc51   : > { %v777_v32 = vsel %vm776_vm6, %v2689_v14, %v773_v28 }
 0xc52   : > { %v782_v33 = vsel %vm779_vm7, %v781_v30, %v777_v32  ;;  %v1817_v13 = vadd.f32 %v2695_v53, %v1816_v6  ;;  %v1361_v30 = vstv %s2489_s7 }
 0xc53   : > { %v783_v34 = vmul.f32 %v782_v33, %v3214_v57  ;;  %v1314_v57 = vmul.f32 %v2693_v52, %v3262_v49  ;;  %vm1362_vm5 = vcmp.gt.f32.partialorder %v3120_v20, %v1361_v30 }
 0xc54   : > { %v1835_v35 = vpop.permute.xlu0 %1834  ;;  %v1821_v19 = vsel %vm3286_vm2, %v2695_v53, %v1817_v13 }
 0xc55   : > { %2515 = vmatmul.msk.bf16.vlgmr.msrb.gmra.mxu0 %vm348_vm0, %v1835_v35  ;;  %v784_v36 = vpack.c.bf16 %v783_v34, %v783_v34  ;;  %v1315_v60 = vsub.f32 1.0, %v1314_v57  ;;  %v1826_v22 = vsel %vm1823_vm3, %v1825_v11, %v1821_v19 }
 0xc57   : > { %2463 = vmatmul.msk.bf16.vlgmr.msra.gmra.mxu1 %vm348_vm0, %v784_v36  ;;  %v1316_v2 = vmul.f32 %v2693_v52, %v1315_v60 }
 0xc59   : > { %v1317_v8 = vadd.f32 %v2693_v52, %v1316_v2 }
 0xc5b   : > { %v1321_v15 = vsel %vm3281_vm15, %v2693_v52, %v1317_v8 }
 0xc5c   : > { %v1326_v18 = vsel %vm1323_vm1, %v1325_v5, %v1321_v15 }
 0xc5d   : > { %2542 = vpush %v1326_v18 }
 0xc5e   : > { %2544 = vpush %v1826_v22 }
 0xc67   : > { %2491 = vmatmul.msk.bf16.vlgmr.msrb.gmra.mxu1 %vm348_vm0, %v1335_v37  ;;  %v1871_v37 = vstv %s1870_s28 }
 0xc68   : > { %v1872_v38 = vmul.f32 1.442695, %v1871_v37 }
 0xc8e   : > { %s3337_s6 = spop %2542 }
 0xc8f   : > { %s2545_s8 = spop %2544  ;;  %v3354_v18 = vstv %s3337_s6 }
 0xc90   : > { %v3341_v62 = vstv %s2545_s8 }
 0xcb8   : > { %v868_v42 = vpop.xlane.xlu2 %867 }
 0xcb9   : > { %v3244_v43 = vadd.f32 -1.0, %v868_v42  ;;  %v874_v44 = vsub.f32 %v868_v42, %v2691_v41 }
 0xcbb   : > { %v875_v45 = vsub.f32 %v874_v44, %v3244_v43 }
 0xcbd   : > { %v3247_v46 = vmul.f32 0.5, %v875_v45 }
 0xcbf   : > { %v3251_v47 = vadd.f32 %v3244_v43, %v3247_v46 }
 0xcc1   : > { %v878_v48 = vsub.f32 %v3235_v9, %v3251_v47 }
 0xcc3   : > { %vm879_vm8 = vcmp.gt.f32.partialorder %v878_v48, 0.0 }
 0xcc4   : > { %v880_v51 = vsel %vm879_vm8, %v878_v48, 1.0  ;;  %v3321_v48 = vmul.f32 0.5, %v3247_v46 }
 0xcc5   : > { %2696 = vlog2.f32 %v880_v51 }
 0xccb   : > { %v2697_v54 = vpop.eup %2696 }
 0xccc   : > { %v882_v56 = vmul.f32 0.6931472, %v2697_v54 }
 0xcce   : > { %v884_v59 = vmul.f32 %v3267_v25, %v882_v56 }
 0xcd0   : > { %v885_v1 = vmul.f32 1.442695, %v884_v59 }
 0xcd2   : > { %v1856_v7 = vpop.f32.mrf.mxu0  ;;  %2698 = vpow2.f32 %v885_v1 }
 0xcd3   : > { %v1860_v12 = vmul.f32 0.35355338, %v1856_v7  ;;  %2700 = vpow2.f32 %v1872_v38 }
 0xcd4   : > { %v801_v14 = vpop.f32.mrf.mxu1 }
 0xcd5   : > { %v1863_v16 = vsel %vm3275_vm14, -inf, %v1860_v12  ;;  %v805_v17 = vpack.c.bf16 %v801_v14, %v801_v14 }
 0xcd6   : > { %v3302_v21 = vmul.f32 %v1863_v16, %v1812_v50  ;;  %v1371_v50 = vstv %s1370_s30 }
 0xcd7   : > { %807 = vst.msk [vmem:[%s3294_s27] sm:$0xf] %vm806_vm4, %v805_v17  ;;  %v1372_v53 = vmul.f32 1.442695, %v1371_v50 }
 0xcd8   : > { %v2699_v23 = vpop.eup %2698  ;;  %v1866_v24 = vsel %vm348_vm0, %v3302_v21, -inf }
 0xcd9   : > { %1867 = vmax.xlane.f32.xlu0 %v1866_v24  ;;  %v887_v26 = vsel %vm879_vm8, %v2699_v23, 0.0  ;;  %v2701_v39 = vpop.eup %2700  ;;  %2702 = vpow2.f32 %v1372_v53 }
 0xcda   : > { %v888_v27 = vsel %vm348_vm0, %v887_v26, 0.0  ;;  %v1858_v28 = vpop.f32.mrf.mxu0 }
 0xcdb   : > { %889 = vadd.xlane.f32.xlu2 %v888_v27 }
 0xcdc   : > { %v803_v29 = vpop.f32.mrf.mxu1 }
 0xce4   : > { %v1356_v31 = vpop.f32.mrf.mxu1 }
 0xce5   : > { %v1360_v32 = vmul.f32 0.35355338, %v1356_v31 }
 0xce7   : > { %v1363_v33 = vsel %vm1362_vm5, -inf, %v1360_v32  ;;  %v911_v32 = vmul.f32 0.5, %v3321_v48 }
 0xce8   : > { %v3311_v34 = vmul.f32 %v1363_v33, %v3262_v49 }
 0xcea   : > { %v1366_v35 = vsel %vm348_vm0, %v3311_v34, -inf }
 0xceb   : > { %1367 = vmax.xlane.f32.xlu1 %v1366_v35 }
 0xcec   : > { %v1358_v36 = vpop.f32.mrf.mxu1 }
 0xd4c   : > { %v1868_v41 = vpop.xlane.xlu0 %1867 }
 0xd4d   : > { %v3317_v42 = vadd.f32 -1.0, %v1868_v41  ;;  %v1874_v20 = vsub.f32 %v1868_v41, %v2701_v39 }
 0xd4e   : > { %v890_v44 = vpop.xlane.xlu2 %889 }
 0xd4f   : > { %v1875_v45 = vsub.f32 %v1874_v20, %v3317_v42  ;;  %v2469_v49 = vadd.f32 -1.0, %v890_v44 }
 0xd51   : > { %v3323_v51 = vmul.f32 0.5, %v1875_v45  ;;  %vm892_vm6 = vcmp.ge.f32.partialorder %v2469_v49, 0.0 }
 0xd52   : > { %v893_v52 = vsel %vm892_vm6, %v3251_v47, %v3244_v43  ;;  %v2703_v43 = vpop.eup %2702 }
 0xd53   : > { %v3329_v54 = vadd.f32 %v3317_v42, %v3323_v51  ;;  %v895_v55 = vadd.f32 %v3321_v48, %v893_v52  ;;  %v1894_v35 = vmul.f32 0.5, %v3323_v51 }
 0xd55   : > { %v896_v56 = vsub.f32 %v3235_v9, %v895_v55  ;;  %v1878_v46 = vsub.f32 %v3302_v21, %v3329_v54 }
 0xd57   : > { %vm897_vm7 = vcmp.gt.f32.partialorder %v896_v56, 0.0  ;;  %vm1879_vm8 = vcmp.gt.f32.partialorder %v1878_v46, 0.0 }
 0xd58   : > { %v898_v57 = vsel %vm897_vm7, %v896_v56, 1.0  ;;  %v1880_v40 = vsel %vm1879_vm8, %v1878_v46, 1.0 }
 0xd59   : > { %2704 = vlog2.f32 %v898_v57 }
 0xd5a   : > { %2706 = vlog2.f32 %v1880_v40 }
 0xd5e   : > { %v1368_v47 = vpop.xlane.xlu1 %1367 }
 0xd5f   : > { %v2705_v58 = vpop.eup %2704  ;;  %v3339_v59 = vadd.f32 -1.0, %v1368_v47  ;;  %v1374_v60 = vsub.f32 %v1368_v47, %v2703_v43 }
 0xd60   : > { %v2707_v61 = vpop.eup %2706  ;;  %v900_v63 = vmul.f32 0.6931472, %v2705_v58 }
 0xd61   : > { %v1375_v0 = vsub.f32 %v1374_v60, %v3339_v59  ;;  %v1882_v1 = vmul.f32 0.6931472, %v2707_v61 }
 0xd62   : > { %v901_v2 = vmul.f32 %v900_v63, %v3267_v25 }
 0xd63   : > { %v1376_v3 = vmul.f32 0.5, %v1375_v0  ;;  %v1884_v4 = vmul.f32 %v3341_v62, %v1882_v1 }
 0xd64   : > { %v902_v5 = vmul.f32 1.442695, %v901_v2 }
 0xd65   : > { %v1377_v6 = vadd.f32 %v3339_v59, %v1376_v3  ;;  %v1885_v7 = vmul.f32 1.442695, %v1884_v4  ;;  %v1394_v53 = vmul.f32 0.5, %v1376_v3 }
 0xd66   : > { %2708 = vpow2.f32 %v902_v5 }
 0xd67   : > { %2710 = vpow2.f32 %v1885_v7  ;;  %v1378_v8 = vsub.f32 %v3311_v34, %v1377_v6 }
 0xd69   : > { %vm1379_vm9 = vcmp.gt.f32.partialorder %v1378_v8, 0.0 }
 0xd6a   : > { %v1380_v10 = vsel %vm1379_vm9, %v1378_v8, 1.0 }
 0xd6b   : > { %2712 = vlog2.f32 %v1380_v10 }
 0xd6c   : > { %v2709_v11 = vpop.eup %2708 }
 0xd6d   : > { %v2711_v12 = vpop.eup %2710  ;;  %v904_v13 = vsel %vm897_vm7, %v2709_v11, 0.0 }
 0xd6e   : > { %v905_v14 = vsel %vm348_vm0, %v904_v13, 0.0  ;;  %v1887_v15 = vsel %vm1879_vm8, %v2711_v12, 0.0  ;;  %v928_v12 = vmul.f32 0.5, %v911_v32 }
 0xd6f   : > { %906 = vadd.xlane.f32.xlu2 %v905_v14  ;;  %v1888_v16 = vsel %vm348_vm0, %v1887_v15, 0.0  ;;  %v1911_v14 = vmul.f32 0.5, %v1894_v35 }
 0xd70   : > { %1889 = vadd.xlane.f32.xlu0 %v1888_v16 }
 0xd71   : > { %v2713_v17 = vpop.eup %2712 }
 0xd72   : > { %v1382_v19 = vmul.f32 0.6931472, %v2713_v17 }
 0xd74   : > { %v1384_v22 = vmul.f32 %v3354_v18, %v1382_v19 }
 0xd76   : > { %v1385_v23 = vmul.f32 1.442695, %v1384_v22 }
 0xd78   : > { %2714 = vpow2.f32 %v1385_v23 }
 0xd7e   : > { %v2715_v24 = vpop.eup %2714 }
 0xd7f   : > { %v1387_v26 = vsel %vm1379_vm9, %v2715_v24, 0.0 }
 0xd80   : > { %v1388_v27 = vsel %vm348_vm0, %v1387_v26, 0.0 }
 0xd81   : > { %1389 = vadd.xlane.f32.xlu1 %v1388_v27 }
 0xde2   : > { %v907_v28 = vpop.xlane.xlu2 %906 }
 0xde3   : > { %v2470_v29 = vadd.f32 -1.0, %v907_v28  ;;  %v1890_v30 = vpop.xlane.xlu0 %1889 }
 0xde4   : > { %v2517_v31 = vadd.f32 -1.0, %v1890_v30 }
 0xde5   : > { %vm909_vm10 = vcmp.ge.f32.partialorder %v2470_v29, 0.0 }
 0xde6   : > { %v910_v33 = vsel %vm909_vm10, %v895_v55, %v893_v52  ;;  %vm1892_vm11 = vcmp.ge.f32.partialorder %v2517_v31, 0.0 }
 0xde7   : > { %v912_v36 = vadd.f32 %v911_v32, %v910_v33  ;;  %v1893_v37 = vsel %vm1892_vm11, %v3329_v54, %v3317_v42 }
 0xde8   : > { %v1895_v38 = vadd.f32 %v1894_v35, %v1893_v37 }
 0xde9   : > { %v913_v39 = vsub.f32 %v3235_v9, %v912_v36 }
 0xdea   : > { %v1896_v41 = vsub.f32 %v3302_v21, %v1895_v38 }
 0xdeb   : > { %vm914_vm12 = vcmp.gt.f32.partialorder %v913_v39, 0.0 }
 0xdec   : > { %v915_v20 = vsel %vm914_vm12, %v913_v39, 1.0  ;;  %vm1897_vm14 = vcmp.gt.f32.partialorder %v1896_v41, 0.0 }
 0xded   : > { %2716 = vlog2.f32 %v915_v20  ;;  %v1898_v44 = vsel %vm1897_vm14, %v1896_v41, 1.0 }
 0xdee   : > { %2718 = vlog2.f32 %v1898_v44 }
 0xdf3   : > { %v2717_v45 = vpop.eup %2716 }
 0xdf4   : > { %v2719_v48 = vpop.eup %2718  ;;  %v1390_v49 = vpop.xlane.xlu1 %1389  ;;  %v917_v50 = vmul.f32 0.6931472, %v2717_v45 }
 0xdf5   : > { %v2493_v51 = vadd.f32 -1.0, %v1390_v49  ;;  %v1900_v52 = vmul.f32 0.6931472, %v2719_v48 }
 0xdf6   : > { %v918_v42 = vmul.f32 %v917_v50, %v3267_v25 }
 0xdf7   : > { %vm1392_vm15 = vcmp.ge.f32.partialorder %v2493_v51, 0.0  ;;  %v1901_v54 = vmul.f32 %v1900_v52, %v3341_v62 }
 0xdf8   : > { %v1393_v55 = vsel %vm1392_vm15, %v1377_v6, %v3339_v59  ;;  %v919_v56 = vmul.f32 1.442695, %v918_v42 }
 0xdf9   : > { %v1395_v46 = vadd.f32 %v1394_v53, %v1393_v55  ;;  %v1902_v57 = vmul.f32 1.442695, %v1901_v54 }
 0xdfa   : > { %2720 = vpow2.f32 %v919_v56 }
 0xdfb   : > { %2722 = vpow2.f32 %v1902_v57  ;;  %v1396_v40 = vsub.f32 %v3311_v34, %v1395_v46 }
 0xdfd   : > { %vm1397_vm1 = vcmp.gt.f32.partialorder %v1396_v40, 0.0 }
 0xdfe   : > { %v1398_v43 = vsel %vm1397_vm1, %v1396_v40, 1.0 }
 0xdff   : > { %2724 = vlog2.f32 %v1398_v43 }
 0xe00   : > { %v2721_v47 = vpop.eup %2720 }
 0xe01   : > { %v2723_v58 = vpop.eup %2722  ;;  %v921_v60 = vsel %vm914_vm12, %v2721_v47, 0.0 }
 0xe02   : > { %v922_v61 = vsel %vm348_vm0, %v921_v60, 0.0  ;;  %v1904_v63 = vsel %vm1897_vm14, %v2723_v58, 0.0  ;;  %v945_v58 = vmul.f32 0.5, %v928_v12 }
 0xe03   : > { %923 = vadd.xlane.f32.xlu2 %v922_v61  ;;  %v1905_v59 = vsel %vm348_vm0, %v1904_v63, 0.0  ;;  %v1928_v61 = vmul.f32 0.5, %v1911_v14 }
 0xe04   : > { %1906 = vadd.xlane.f32.xlu0 %v1905_v59 }
 0xe05   : > { %v2725_v0 = vpop.eup %2724 }
 0xe06   : > { %v1400_v1 = vmul.f32 0.6931472, %v2725_v0 }
 0xe08   : > { %v1401_v2 = vmul.f32 %v1400_v1, %v3354_v18 }
 0xe0a   : > { %v1402_v3 = vmul.f32 1.442695, %v1401_v2 }
 0xe0c   : > { %2726 = vpow2.f32 %v1402_v3 }
 0xe12   : > { %v2727_v4 = vpop.eup %2726 }
 0xe13   : > { %v1404_v5 = vsel %vm1397_vm1, %v2727_v4, 0.0 }
 0xe14   : > { %v1405_v6 = vsel %vm348_vm0, %v1404_v5, 0.0 }
 0xe15   : > { %1406 = vadd.xlane.f32.xlu1 %v1405_v6 }
 0xe76   : > { %v924_v7 = vpop.xlane.xlu2 %923 }
 0xe77   : > { %v2471_v8 = vadd.f32 -1.0, %v924_v7  ;;  %v1907_v10 = vpop.xlane.xlu0 %1906 }
 0xe78   : > { %v2518_v11 = vadd.f32 -1.0, %v1907_v10 }
 0xe79   : > { %vm926_vm2 = vcmp.ge.f32.partialorder %v2471_v8, 0.0 }
 0xe7a   : > { %v927_v13 = vsel %vm926_vm2, %v912_v36, %v910_v33  ;;  %vm1909_vm3 = vcmp.ge.f32.partialorder %v2518_v11, 0.0  ;;  %v1411_v33 = vmul.f32 0.5, %v1394_v53 }
 0xe7b   : > { %v929_v15 = vadd.f32 %v928_v12, %v927_v13  ;;  %v1910_v16 = vsel %vm1909_vm3, %v1895_v38, %v1893_v37 }
 0xe7c   : > { %v1912_v17 = vadd.f32 %v1911_v14, %v1910_v16 }
 0xe7d   : > { %v930_v19 = vsub.f32 %v3235_v9, %v929_v15 }
 0xe7e   : > { %v1913_v22 = vsub.f32 %v3302_v21, %v1912_v17 }
 0xe7f   : > { %vm931_vm4 = vcmp.gt.f32.partialorder %v930_v19, 0.0 }
 0xe80   : > { %v932_v23 = vsel %vm931_vm4, %v930_v19, 1.0  ;;  %vm1914_vm5 = vcmp.gt.f32.partialorder %v1913_v22, 0.0 }
 0xe81   : > { %2728 = vlog2.f32 %v932_v23  ;;  %v1915_v24 = vsel %vm1914_vm5, %v1913_v22, 1.0 }
 0xe82   : > { %2730 = vlog2.f32 %v1915_v24 }
 0xe87   : > { %v2729_v26 = vpop.eup %2728 }
 0xe88   : > { %v2731_v27 = vpop.eup %2730  ;;  %v1407_v28 = vpop.xlane.xlu1 %1406  ;;  %v934_v29 = vmul.f32 0.6931472, %v2729_v26 }
 0xe89   : > { %v2494_v30 = vadd.f32 -1.0, %v1407_v28  ;;  %v1917_v31 = vmul.f32 0.6931472, %v2731_v27 }
 0xe8a   : > { %v935_v32 = vmul.f32 %v934_v29, %v3267_v25 }
 0xe8b   : > { %vm1409_vm6 = vcmp.ge.f32.partialorder %v2494_v30, 0.0  ;;  %v1918_v35 = vmul.f32 %v1917_v31, %v3341_v62 }
 0xe8c   : > { %v1410_v36 = vsel %vm1409_vm6, %v1395_v46, %v1393_v55  ;;  %v936_v37 = vmul.f32 1.442695, %v935_v32 }
 0xe8d   : > { %v1412_v38 = vadd.f32 %v1411_v33, %v1410_v36  ;;  %v1919_v39 = vmul.f32 1.442695, %v1918_v35 }
 0xe8e   : > { %2732 = vpow2.f32 %v936_v37 }
 0xe8f   : > { %2734 = vpow2.f32 %v1919_v39  ;;  %v1413_v41 = vsub.f32 %v3311_v34, %v1412_v38 }
 0xe91   : > { %vm1414_vm7 = vcmp.gt.f32.partialorder %v1413_v41, 0.0 }
 0xe92   : > { %v1415_v20 = vsel %vm1414_vm7, %v1413_v41, 1.0 }
 0xe93   : > { %2736 = vlog2.f32 %v1415_v20 }
 0xe94   : > { %v2733_v44 = vpop.eup %2732 }
 0xe95   : > { %v2735_v45 = vpop.eup %2734  ;;  %v938_v48 = vsel %vm931_vm4, %v2733_v44, 0.0 }
 0xe96   : > { %v939_v49 = vsel %vm348_vm0, %v938_v48, 0.0  ;;  %v1921_v50 = vsel %vm1914_vm5, %v2735_v45, 0.0  ;;  %v962_v45 = vmul.f32 0.5, %v945_v58 }
 0xe97   : > { %940 = vadd.xlane.f32.xlu2 %v939_v49  ;;  %v1922_v51 = vsel %vm348_vm0, %v1921_v50, 0.0  ;;  %v1945_v49 = vmul.f32 0.5, %v1928_v61 }
 0xe98   : > { %1923 = vadd.xlane.f32.xlu0 %v1922_v51 }
 0xe99   : > { %v2737_v52 = vpop.eup %2736 }
 0xe9a   : > { %v1417_v42 = vmul.f32 0.6931472, %v2737_v52 }
 0xe9c   : > { %v1418_v53 = vmul.f32 %v1417_v42, %v3354_v18 }
 0xe9e   : > { %v1419_v54 = vmul.f32 1.442695, %v1418_v53 }
 0xea0   : > { %2738 = vpow2.f32 %v1419_v54 }
 0xea6   : > { %v2739_v55 = vpop.eup %2738 }
 0xea7   : > { %v1421_v56 = vsel %vm1414_vm7, %v2739_v55, 0.0 }
 0xea8   : > { %v1422_v46 = vsel %vm348_vm0, %v1421_v56, 0.0 }
 0xea9   : > { %1423 = vadd.xlane.f32.xlu1 %v1422_v46 }
 0xf0a   : > { %v941_v57 = vpop.xlane.xlu2 %940 }
 0xf0b   : > { %v2472_v40 = vadd.f32 -1.0, %v941_v57  ;;  %v1924_v43 = vpop.xlane.xlu0 %1923 }
 0xf0c   : > { %v2519_v47 = vadd.f32 -1.0, %v1924_v43 }
 0xf0d   : > { %vm943_vm8 = vcmp.ge.f32.partialorder %v2472_v40, 0.0 }
 0xf0e   : > { %v944_v60 = vsel %vm943_vm8, %v929_v15, %v927_v13  ;;  %vm1926_vm9 = vcmp.ge.f32.partialorder %v2519_v47, 0.0  ;;  %v1428_v13 = vmul.f32 0.5, %v1411_v33 }
 0xf0f   : > { %v946_v63 = vadd.f32 %v945_v58, %v944_v60  ;;  %v1927_v59 = vsel %vm1926_vm9, %v1912_v17, %v1910_v16 }
 0xf10   : > { %v1929_v0 = vadd.f32 %v1928_v61, %v1927_v59 }
 0xf11   : > { %v947_v1 = vsub.f32 %v3235_v9, %v946_v63 }
 0xf12   : > { %v1930_v2 = vsub.f32 %v3302_v21, %v1929_v0 }
 0xf13   : > { %vm948_vm10 = vcmp.gt.f32.partialorder %v947_v1, 0.0 }
 0xf14   : > { %v949_v3 = vsel %vm948_vm10, %v947_v1, 1.0  ;;  %vm1931_vm11 = vcmp.gt.f32.partialorder %v1930_v2, 0.0 }
 0xf15   : > { %2740 = vlog2.f32 %v949_v3  ;;  %v1932_v4 = vsel %vm1931_vm11, %v1930_v2, 1.0 }
 0xf16   : > { %2742 = vlog2.f32 %v1932_v4 }
 0xf1b   : > { %v2741_v5 = vpop.eup %2740 }
 0xf1c   : > { %v2743_v6 = vpop.eup %2742  ;;  %v1424_v7 = vpop.xlane.xlu1 %1423  ;;  %v951_v8 = vmul.f32 0.6931472, %v2741_v5 }
 0xf1d   : > { %v2495_v10 = vadd.f32 -1.0, %v1424_v7  ;;  %v1934_v11 = vmul.f32 0.6931472, %v2743_v6 }
 0xf1e   : > { %v952_v12 = vmul.f32 %v951_v8, %v3267_v25 }
 0xf1f   : > { %vm1426_vm12 = vcmp.ge.f32.partialorder %v2495_v10, 0.0  ;;  %v1935_v14 = vmul.f32 %v1934_v11, %v3341_v62 }
 0xf20   : > { %v1427_v15 = vsel %vm1426_vm12, %v1412_v38, %v1410_v36  ;;  %v953_v16 = vmul.f32 1.442695, %v952_v12 }
 0xf21   : > { %v1429_v17 = vadd.f32 %v1428_v13, %v1427_v15  ;;  %v1936_v19 = vmul.f32 1.442695, %v1935_v14 }
 0xf22   : > { %2744 = vpow2.f32 %v953_v16 }
 0xf23   : > { %2746 = vpow2.f32 %v1936_v19  ;;  %v1430_v22 = vsub.f32 %v3311_v34, %v1429_v17 }
 0xf25   : > { %vm1431_vm14 = vcmp.gt.f32.partialorder %v1430_v22, 0.0 }
 0xf26   : > { %v1432_v23 = vsel %vm1431_vm14, %v1430_v22, 1.0 }
 0xf27   : > { %2748 = vlog2.f32 %v1432_v23 }
 0xf28   : > { %v2745_v24 = vpop.eup %2744 }
 0xf29   : > { %v2747_v26 = vpop.eup %2746  ;;  %v955_v27 = vsel %vm948_vm10, %v2745_v24, 0.0 }
 0xf2a   : > { %v956_v28 = vsel %vm348_vm0, %v955_v27, 0.0  ;;  %v1938_v29 = vsel %vm1931_vm11, %v2747_v26, 0.0  ;;  %v979_v26 = vmul.f32 0.5, %v962_v45 }
 0xf2b   : > { %957 = vadd.xlane.f32.xlu2 %v956_v28  ;;  %v1939_v30 = vsel %vm348_vm0, %v1938_v29, 0.0  ;;  %v1962_v28 = vmul.f32 0.5, %v1945_v49 }
 0xf2c   : > { %1940 = vadd.xlane.f32.xlu0 %v1939_v30 }
 0xf2d   : > { %v2749_v31 = vpop.eup %2748 }
 0xf2e   : > { %v1434_v32 = vmul.f32 0.6931472, %v2749_v31 }
 0xf30   : > { %v1435_v33 = vmul.f32 %v1434_v32, %v3354_v18 }
 0xf32   : > { %v1436_v35 = vmul.f32 1.442695, %v1435_v33 }
 0xf34   : > { %2750 = vpow2.f32 %v1436_v35 }
 0xf3a   : > { %v2751_v36 = vpop.eup %2750 }
 0xf3b   : > { %v1438_v37 = vsel %vm1431_vm14, %v2751_v36, 0.0 }
 0xf3c   : > { %v1439_v38 = vsel %vm348_vm0, %v1438_v37, 0.0 }
 0xf3d   : > { %1440 = vadd.xlane.f32.xlu1 %v1439_v38 }
 0xf9e   : > { %v958_v39 = vpop.xlane.xlu2 %957 }
 0xf9f   : > { %v2473_v41 = vadd.f32 -1.0, %v958_v39  ;;  %v1941_v20 = vpop.xlane.xlu0 %1940 }
 0xfa0   : > { %v2520_v44 = vadd.f32 -1.0, %v1941_v20 }
 0xfa1   : > { %vm960_vm15 = vcmp.ge.f32.partialorder %v2473_v41, 0.0 }
 0xfa2   : > { %v961_v48 = vsel %vm960_vm15, %v946_v63, %v944_v60  ;;  %vm1943_vm1 = vcmp.ge.f32.partialorder %v2520_v44, 0.0  ;;  %v1445_v60 = vmul.f32 0.5, %v1428_v13 }
 0xfa3   : > { %v963_v50 = vadd.f32 %v962_v45, %v961_v48  ;;  %v1944_v51 = vsel %vm1943_vm1, %v1929_v0, %v1927_v59 }
 0xfa4   : > { %v1946_v52 = vadd.f32 %v1945_v49, %v1944_v51 }
 0xfa5   : > { %v964_v42 = vsub.f32 %v3235_v9, %v963_v50 }
 0xfa6   : > { %v1947_v53 = vsub.f32 %v3302_v21, %v1946_v52 }
 0xfa7   : > { %vm965_vm2 = vcmp.gt.f32.partialorder %v964_v42, 0.0 }
 0xfa8   : > { %v966_v54 = vsel %vm965_vm2, %v964_v42, 1.0  ;;  %vm1948_vm3 = vcmp.gt.f32.partialorder %v1947_v53, 0.0 }
 0xfa9   : > { %2752 = vlog2.f32 %v966_v54  ;;  %v1949_v55 = vsel %vm1948_vm3, %v1947_v53, 1.0 }
 0xfaa   : > { %2754 = vlog2.f32 %v1949_v55 }
 0xfaf   : > { %v2753_v56 = vpop.eup %2752 }
 0xfb0   : > { %v2755_v46 = vpop.eup %2754  ;;  %v1441_v57 = vpop.xlane.xlu1 %1440  ;;  %v968_v40 = vmul.f32 0.6931472, %v2753_v56 }
 0xfb1   : > { %v2496_v43 = vadd.f32 -1.0, %v1441_v57  ;;  %v1951_v47 = vmul.f32 0.6931472, %v2755_v46 }
 0xfb2   : > { %v969_v58 = vmul.f32 %v968_v40, %v3267_v25 }
 0xfb3   : > { %vm1443_vm4 = vcmp.ge.f32.partialorder %v2496_v43, 0.0  ;;  %v1952_v61 = vmul.f32 %v1951_v47, %v3341_v62 }
 0xfb4   : > { %v1444_v63 = vsel %vm1443_vm4, %v1429_v17, %v1427_v15  ;;  %v970_v59 = vmul.f32 1.442695, %v969_v58 }
 0xfb5   : > { %v1446_v0 = vadd.f32 %v1445_v60, %v1444_v63  ;;  %v1953_v1 = vmul.f32 1.442695, %v1952_v61 }
 0xfb6   : > { %2756 = vpow2.f32 %v970_v59 }
 0xfb7   : > { %2758 = vpow2.f32 %v1953_v1  ;;  %v1447_v2 = vsub.f32 %v3311_v34, %v1446_v0 }
 0xfb9   : > { %vm1448_vm5 = vcmp.gt.f32.partialorder %v1447_v2, 0.0 }
 0xfba   : > { %v1449_v3 = vsel %vm1448_vm5, %v1447_v2, 1.0 }
 0xfbb   : > { %2760 = vlog2.f32 %v1449_v3 }
 0xfbc   : > { %v2757_v4 = vpop.eup %2756 }
 0xfbd   : > { %v2759_v5 = vpop.eup %2758  ;;  %v972_v6 = vsel %vm965_vm2, %v2757_v4, 0.0 }
 0xfbe   : > { %v973_v7 = vsel %vm348_vm0, %v972_v6, 0.0  ;;  %v1955_v8 = vsel %vm1948_vm3, %v2759_v5, 0.0  ;;  %v996_v5 = vmul.f32 0.5, %v979_v26 }
 0xfbf   : > { %974 = vadd.xlane.f32.xlu2 %v973_v7  ;;  %v1956_v10 = vsel %vm348_vm0, %v1955_v8, 0.0  ;;  %v1979_v7 = vmul.f32 0.5, %v1962_v28 }
 0xfc0   : > { %1957 = vadd.xlane.f32.xlu0 %v1956_v10 }
 0xfc1   : > { %v2761_v11 = vpop.eup %2760 }
 0xfc2   : > { %v1451_v12 = vmul.f32 0.6931472, %v2761_v11 }
 0xfc4   : > { %v1452_v13 = vmul.f32 %v1451_v12, %v3354_v18 }
 0xfc6   : > { %v1453_v14 = vmul.f32 1.442695, %v1452_v13 }
 0xfc8   : > { %2762 = vpow2.f32 %v1453_v14 }
 0xfce   : > { %v2763_v15 = vpop.eup %2762 }
 0xfcf   : > { %v1455_v16 = vsel %vm1448_vm5, %v2763_v15, 0.0 }
 0xfd0   : > { %v1456_v17 = vsel %vm348_vm0, %v1455_v16, 0.0 }
 0xfd1   : > { %1457 = vadd.xlane.f32.xlu1 %v1456_v17 }
0x1032   : > { %v975_v19 = vpop.xlane.xlu2 %974 }
0x1033   : > { %v2474_v22 = vadd.f32 -1.0, %v975_v19  ;;  %v1958_v23 = vpop.xlane.xlu0 %1957 }
0x1034   : > { %v2521_v24 = vadd.f32 -1.0, %v1958_v23 }
0x1035   : > { %vm977_vm6 = vcmp.ge.f32.partialorder %v2474_v22, 0.0 }
0x1036   : > { %v978_v27 = vsel %vm977_vm6, %v963_v50, %v961_v48  ;;  %vm1960_vm7 = vcmp.ge.f32.partialorder %v2521_v24, 0.0  ;;  %v1462_v48 = vmul.f32 0.5, %v1445_v60 }
0x1037   : > { %v980_v29 = vadd.f32 %v979_v26, %v978_v27  ;;  %v1961_v30 = vsel %vm1960_vm7, %v1946_v52, %v1944_v51 }
0x1038   : > { %v1963_v31 = vadd.f32 %v1962_v28, %v1961_v30 }
0x1039   : > { %v981_v32 = vsub.f32 %v3235_v9, %v980_v29 }
0x103a   : > { %v1964_v33 = vsub.f32 %v3302_v21, %v1963_v31 }
0x103b   : > { %vm982_vm8 = vcmp.gt.f32.partialorder %v981_v32, 0.0 }
0x103c   : > { %v983_v35 = vsel %vm982_vm8, %v981_v32, 1.0  ;;  %vm1965_vm9 = vcmp.gt.f32.partialorder %v1964_v33, 0.0 }
0x103d   : > { %2764 = vlog2.f32 %v983_v35  ;;  %v1966_v36 = vsel %vm1965_vm9, %v1964_v33, 1.0 }
0x103e   : > { %2766 = vlog2.f32 %v1966_v36 }
0x1043   : > { %v2765_v37 = vpop.eup %2764 }
0x1044   : > { %v2767_v38 = vpop.eup %2766  ;;  %v1458_v39 = vpop.xlane.xlu1 %1457  ;;  %v985_v41 = vmul.f32 0.6931472, %v2765_v37 }
0x1045   : > { %v2497_v20 = vadd.f32 -1.0, %v1458_v39  ;;  %v1968_v44 = vmul.f32 0.6931472, %v2767_v38 }
0x1046   : > { %v986_v45 = vmul.f32 %v985_v41, %v3267_v25 }
0x1047   : > { %vm1460_vm10 = vcmp.ge.f32.partialorder %v2497_v20, 0.0  ;;  %v1969_v49 = vmul.f32 %v1968_v44, %v3341_v62 }
0x1048   : > { %v1461_v50 = vsel %vm1460_vm10, %v1446_v0, %v1444_v63  ;;  %v987_v51 = vmul.f32 1.442695, %v986_v45 }
0x1049   : > { %v1463_v52 = vadd.f32 %v1462_v48, %v1461_v50  ;;  %v1970_v42 = vmul.f32 1.442695, %v1969_v49 }
0x104a   : > { %2768 = vpow2.f32 %v987_v51 }
0x104b   : > { %2770 = vpow2.f32 %v1970_v42  ;;  %v1464_v53 = vsub.f32 %v3311_v34, %v1463_v52 }
0x104d   : > { %vm1465_vm11 = vcmp.gt.f32.partialorder %v1464_v53, 0.0 }
0x104e   : > { %v1466_v54 = vsel %vm1465_vm11, %v1464_v53, 1.0 }
0x104f   : > { %2772 = vlog2.f32 %v1466_v54 }
0x1050   : > { %v2769_v55 = vpop.eup %2768 }
0x1051   : > { %v2771_v56 = vpop.eup %2770  ;;  %v989_v46 = vsel %vm982_vm8, %v2769_v55, 0.0 }
0x1052   : > { %v990_v57 = vsel %vm348_vm0, %v989_v46, 0.0  ;;  %v1972_v40 = vsel %vm1965_vm9, %v2771_v56, 0.0  ;;  %v1013_v56 = vmul.f32 0.5, %v996_v5 }
0x1053   : > { %991 = vadd.xlane.f32.xlu2 %v990_v57  ;;  %v1973_v43 = vsel %vm348_vm0, %v1972_v40, 0.0  ;;  %v1996_v57 = vmul.f32 0.5, %v1979_v7 }
0x1054   : > { %1974 = vadd.xlane.f32.xlu0 %v1973_v43 }
0x1055   : > { %v2773_v47 = vpop.eup %2772 }
0x1056   : > { %v1468_v58 = vmul.f32 0.6931472, %v2773_v47 }
0x1058   : > { %v1469_v60 = vmul.f32 %v1468_v58, %v3354_v18 }
0x105a   : > { %v1470_v61 = vmul.f32 1.442695, %v1469_v60 }
0x105c   : > { %2774 = vpow2.f32 %v1470_v61 }
0x1062   : > { %v2775_v63 = vpop.eup %2774 }
0x1063   : > { %v1472_v59 = vsel %vm1465_vm11, %v2775_v63, 0.0 }
0x1064   : > { %v1473_v0 = vsel %vm348_vm0, %v1472_v59, 0.0 }
0x1065   : > { %1474 = vadd.xlane.f32.xlu1 %v1473_v0 }
0x10c6   : > { %v992_v1 = vpop.xlane.xlu2 %991 }
0x10c7   : > { %v2475_v2 = vadd.f32 -1.0, %v992_v1  ;;  %v1975_v3 = vpop.xlane.xlu0 %1974 }
0x10c8   : > { %v2522_v4 = vadd.f32 -1.0, %v1975_v3 }
0x10c9   : > { %vm994_vm12 = vcmp.ge.f32.partialorder %v2475_v2, 0.0 }
0x10ca   : > { %v995_v6 = vsel %vm994_vm12, %v980_v29, %v978_v27  ;;  %vm1977_vm14 = vcmp.ge.f32.partialorder %v2522_v4, 0.0  ;;  %v1479_v27 = vmul.f32 0.5, %v1462_v48 }
0x10cb   : > { %v997_v8 = vadd.f32 %v996_v5, %v995_v6  ;;  %v1978_v10 = vsel %vm1977_vm14, %v1963_v31, %v1961_v30 }
0x10cc   : > { %v1980_v11 = vadd.f32 %v1979_v7, %v1978_v10 }
0x10cd   : > { %v998_v12 = vsub.f32 %v3235_v9, %v997_v8 }
0x10ce   : > { %v1981_v13 = vsub.f32 %v3302_v21, %v1980_v11 }
0x10cf   : > { %vm999_vm15 = vcmp.gt.f32.partialorder %v998_v12, 0.0 }
0x10d0   : > { %v1000_v14 = vsel %vm999_vm15, %v998_v12, 1.0  ;;  %vm1982_vm1 = vcmp.gt.f32.partialorder %v1981_v13, 0.0 }
0x10d1   : > { %2776 = vlog2.f32 %v1000_v14  ;;  %v1983_v15 = vsel %vm1982_vm1, %v1981_v13, 1.0 }
0x10d2   : > { %2778 = vlog2.f32 %v1983_v15 }
0x10d7   : > { %v2777_v16 = vpop.eup %2776 }
0x10d8   : > { %v2779_v17 = vpop.eup %2778  ;;  %v1475_v19 = vpop.xlane.xlu1 %1474  ;;  %v1002_v22 = vmul.f32 0.6931472, %v2777_v16 }
0x10d9   : > { %v2498_v23 = vadd.f32 -1.0, %v1475_v19  ;;  %v1985_v24 = vmul.f32 0.6931472, %v2779_v17 }
0x10da   : > { %v1003_v26 = vmul.f32 %v1002_v22, %v3267_v25 }
0x10db   : > { %vm1477_vm2 = vcmp.ge.f32.partialorder %v2498_v23, 0.0  ;;  %v1986_v28 = vmul.f32 %v1985_v24, %v3341_v62 }
0x10dc   : > { %v1478_v29 = vsel %vm1477_vm2, %v1463_v52, %v1461_v50  ;;  %v1004_v30 = vmul.f32 1.442695, %v1003_v26 }
0x10dd   : > { %v1480_v31 = vadd.f32 %v1479_v27, %v1478_v29  ;;  %v1987_v32 = vmul.f32 1.442695, %v1986_v28 }
0x10de   : > { %2780 = vpow2.f32 %v1004_v30 }
0x10df   : > { %2782 = vpow2.f32 %v1987_v32  ;;  %v1481_v33 = vsub.f32 %v3311_v34, %v1480_v31 }
0x10e1   : > { %vm1482_vm3 = vcmp.gt.f32.partialorder %v1481_v33, 0.0 }
0x10e2   : > { %v1483_v35 = vsel %vm1482_vm3, %v1481_v33, 1.0 }
0x10e3   : > { %2784 = vlog2.f32 %v1483_v35 }
0x10e4   : > { %v2781_v36 = vpop.eup %2780 }
0x10e5   : > { %v2783_v37 = vpop.eup %2782  ;;  %v1006_v38 = vsel %vm999_vm15, %v2781_v36, 0.0 }
0x10e6   : > { %v1007_v39 = vsel %vm348_vm0, %v1006_v38, 0.0  ;;  %v1989_v41 = vsel %vm1982_vm1, %v2783_v37, 0.0  ;;  %v1030_v37 = vmul.f32 0.5, %v1013_v56 }
0x10e7   : > { %1008 = vadd.xlane.f32.xlu2 %v1007_v39  ;;  %v1990_v20 = vsel %vm348_vm0, %v1989_v41, 0.0  ;;  %v2013_v39 = vmul.f32 0.5, %v1996_v57 }
0x10e8   : > { %1991 = vadd.xlane.f32.xlu0 %v1990_v20 }
0x10e9   : > { %v2785_v44 = vpop.eup %2784 }
0x10ea   : > { %v1485_v45 = vmul.f32 0.6931472, %v2785_v44 }
0x10ec   : > { %v1486_v48 = vmul.f32 %v1485_v45, %v3354_v18 }
0x10ee   : > { %v1487_v49 = vmul.f32 1.442695, %v1486_v48 }
0x10f0   : > { %2786 = vpow2.f32 %v1487_v49 }
0x10f6   : > { %v2787_v50 = vpop.eup %2786 }
0x10f7   : > { %v1489_v51 = vsel %vm1482_vm3, %v2787_v50, 0.0 }
0x10f8   : > { %v1490_v52 = vsel %vm348_vm0, %v1489_v51, 0.0 }
0x10f9   : > { %1491 = vadd.xlane.f32.xlu1 %v1490_v52 }
0x115a   : > { %v1009_v42 = vpop.xlane.xlu2 %1008 }
0x115b   : > { %v2476_v53 = vadd.f32 -1.0, %v1009_v42  ;;  %v1992_v54 = vpop.xlane.xlu0 %1991 }
0x115c   : > { %v2523_v55 = vadd.f32 -1.0, %v1992_v54 }
0x115d   : > { %vm1011_vm4 = vcmp.ge.f32.partialorder %v2476_v53, 0.0 }
0x115e   : > { %v1012_v46 = vsel %vm1011_vm4, %v997_v8, %v995_v6  ;;  %vm1994_vm5 = vcmp.ge.f32.partialorder %v2523_v55, 0.0  ;;  %v1496_v6 = vmul.f32 0.5, %v1479_v27 }
0x115f   : > { %v1014_v40 = vadd.f32 %v1013_v56, %v1012_v46  ;;  %v1995_v43 = vsel %vm1994_vm5, %v1980_v11, %v1978_v10 }
0x1160   : > { %v1997_v47 = vadd.f32 %v1996_v57, %v1995_v43 }
0x1161   : > { %v1015_v58 = vsub.f32 %v3235_v9, %v1014_v40 }
0x1162   : > { %v1998_v60 = vsub.f32 %v3302_v21, %v1997_v47 }
0x1163   : > { %vm1016_vm6 = vcmp.gt.f32.partialorder %v1015_v58, 0.0 }
0x1164   : > { %v1017_v61 = vsel %vm1016_vm6, %v1015_v58, 1.0  ;;  %vm1999_vm7 = vcmp.gt.f32.partialorder %v1998_v60, 0.0 }
0x1165   : > { %2788 = vlog2.f32 %v1017_v61  ;;  %v2000_v63 = vsel %vm1999_vm7, %v1998_v60, 1.0 }
0x1166   : > { %2790 = vlog2.f32 %v2000_v63 }
0x116b   : > { %v2789_v59 = vpop.eup %2788 }
0x116c   : > { %v2791_v0 = vpop.eup %2790  ;;  %v1492_v1 = vpop.xlane.xlu1 %1491  ;;  %v1019_v2 = vmul.f32 0.6931472, %v2789_v59 }
0x116d   : > { %v2499_v3 = vadd.f32 -1.0, %v1492_v1  ;;  %v2002_v4 = vmul.f32 0.6931472, %v2791_v0 }
0x116e   : > { %v1020_v5 = vmul.f32 %v1019_v2, %v3267_v25 }
0x116f   : > { %vm1494_vm8 = vcmp.ge.f32.partialorder %v2499_v3, 0.0  ;;  %v2003_v7 = vmul.f32 %v2002_v4, %v3341_v62 }
0x1170   : > { %v1495_v8 = vsel %vm1494_vm8, %v1480_v31, %v1478_v29  ;;  %v1021_v10 = vmul.f32 1.442695, %v1020_v5 }
0x1171   : > { %v1497_v11 = vadd.f32 %v1496_v6, %v1495_v8  ;;  %v2004_v12 = vmul.f32 1.442695, %v2003_v7 }
0x1172   : > { %2792 = vpow2.f32 %v1021_v10 }
0x1173   : > { %2794 = vpow2.f32 %v2004_v12  ;;  %v1498_v13 = vsub.f32 %v3311_v34, %v1497_v11 }
0x1175   : > { %vm1499_vm9 = vcmp.gt.f32.partialorder %v1498_v13, 0.0 }
0x1176   : > { %v1500_v14 = vsel %vm1499_vm9, %v1498_v13, 1.0 }
0x1177   : > { %2796 = vlog2.f32 %v1500_v14 }
0x1178   : > { %v2793_v15 = vpop.eup %2792 }
0x1179   : > { %v2795_v16 = vpop.eup %2794  ;;  %v1023_v17 = vsel %vm1016_vm6, %v2793_v15, 0.0 }
0x117a   : > { %v1024_v19 = vsel %vm348_vm0, %v1023_v17, 0.0  ;;  %v2006_v22 = vsel %vm1999_vm7, %v2795_v16, 0.0  ;;  %v1047_v16 = vmul.f32 0.5, %v1030_v37 }
0x117b   : > { %1025 = vadd.xlane.f32.xlu2 %v1024_v19  ;;  %v2007_v23 = vsel %vm348_vm0, %v2006_v22, 0.0  ;;  %v2030_v19 = vmul.f32 0.5, %v2013_v39 }
0x117c   : > { %2008 = vadd.xlane.f32.xlu0 %v2007_v23 }
0x117d   : > { %v2797_v24 = vpop.eup %2796 }
0x117e   : > { %v1502_v26 = vmul.f32 0.6931472, %v2797_v24 }
0x1180   : > { %v1503_v27 = vmul.f32 %v1502_v26, %v3354_v18 }
0x1182   : > { %v1504_v28 = vmul.f32 1.442695, %v1503_v27 }
0x1184   : > { %2798 = vpow2.f32 %v1504_v28 }
0x118a   : > { %v2799_v29 = vpop.eup %2798 }
0x118b   : > { %v1506_v30 = vsel %vm1499_vm9, %v2799_v29, 0.0 }
0x118c   : > { %v1507_v31 = vsel %vm348_vm0, %v1506_v30, 0.0 }
0x118d   : > { %1508 = vadd.xlane.f32.xlu1 %v1507_v31 }
0x11ee   : > { %v1026_v32 = vpop.xlane.xlu2 %1025 }
0x11ef   : > { %v2477_v33 = vadd.f32 -1.0, %v1026_v32  ;;  %v2009_v35 = vpop.xlane.xlu0 %2008 }
0x11f0   : > { %v2524_v36 = vadd.f32 -1.0, %v2009_v35 }
0x11f1   : > { %vm1028_vm10 = vcmp.ge.f32.partialorder %v2477_v33, 0.0 }
0x11f2   : > { %v1029_v38 = vsel %vm1028_vm10, %v1014_v40, %v1012_v46  ;;  %vm2011_vm11 = vcmp.ge.f32.partialorder %v2524_v36, 0.0  ;;  %v1513_v46 = vmul.f32 0.5, %v1496_v6 }
0x11f3   : > { %v1031_v41 = vadd.f32 %v1030_v37, %v1029_v38  ;;  %v2012_v20 = vsel %vm2011_vm11, %v1997_v47, %v1995_v43 }
0x11f4   : > { %v2014_v44 = vadd.f32 %v2013_v39, %v2012_v20 }
0x11f5   : > { %v1032_v45 = vsub.f32 %v3235_v9, %v1031_v41 }
0x11f6   : > { %v2015_v48 = vsub.f32 %v3302_v21, %v2014_v44 }
0x11f7   : > { %vm1033_vm12 = vcmp.gt.f32.partialorder %v1032_v45, 0.0 }
0x11f8   : > { %v1034_v49 = vsel %vm1033_vm12, %v1032_v45, 1.0  ;;  %vm2016_vm14 = vcmp.gt.f32.partialorder %v2015_v48, 0.0 }
0x11f9   : > { %2800 = vlog2.f32 %v1034_v49  ;;  %v2017_v50 = vsel %vm2016_vm14, %v2015_v48, 1.0 }
0x11fa   : > { %2802 = vlog2.f32 %v2017_v50 }
0x11ff   : > { %v2801_v51 = vpop.eup %2800 }
0x1200   : > { %v2803_v52 = vpop.eup %2802  ;;  %v1509_v42 = vpop.xlane.xlu1 %1508  ;;  %v1036_v53 = vmul.f32 0.6931472, %v2801_v51 }
0x1201   : > { %v2500_v54 = vadd.f32 -1.0, %v1509_v42  ;;  %v2019_v55 = vmul.f32 0.6931472, %v2803_v52 }
0x1202   : > { %v1037_v56 = vmul.f32 %v1036_v53, %v3267_v25 }
0x1203   : > { %vm1511_vm15 = vcmp.ge.f32.partialorder %v2500_v54, 0.0  ;;  %v2020_v57 = vmul.f32 %v2019_v55, %v3341_v62 }
0x1204   : > { %v1512_v40 = vsel %vm1511_vm15, %v1497_v11, %v1495_v8  ;;  %v1038_v43 = vmul.f32 1.442695, %v1037_v56 }
0x1205   : > { %v1514_v47 = vadd.f32 %v1513_v46, %v1512_v40  ;;  %v2021_v58 = vmul.f32 1.442695, %v2020_v57 }
0x1206   : > { %2804 = vpow2.f32 %v1038_v43 }
0x1207   : > { %2806 = vpow2.f32 %v2021_v58  ;;  %v1515_v60 = vsub.f32 %v3311_v34, %v1514_v47 }
0x1209   : > { %vm1516_vm1 = vcmp.gt.f32.partialorder %v1515_v60, 0.0 }
0x120a   : > { %v1517_v61 = vsel %vm1516_vm1, %v1515_v60, 1.0 }
0x120b   : > { %2808 = vlog2.f32 %v1517_v61 }
0x120c   : > { %v2805_v63 = vpop.eup %2804 }
0x120d   : > { %v2807_v59 = vpop.eup %2806  ;;  %v1040_v0 = vsel %vm1033_vm12, %v2805_v63, 0.0 }
0x120e   : > { %v1041_v1 = vsel %vm348_vm0, %v1040_v0, 0.0  ;;  %v2023_v2 = vsel %vm2016_vm14, %v2807_v59, 0.0  ;;  %v1064_v59 = vmul.f32 0.5, %v1047_v16 }
0x120f   : > { %1042 = vadd.xlane.f32.xlu2 %v1041_v1  ;;  %v2024_v3 = vsel %vm348_vm0, %v2023_v2, 0.0  ;;  %v2047_v1 = vmul.f32 0.5, %v2030_v19 }
0x1210   : > { %2025 = vadd.xlane.f32.xlu0 %v2024_v3 }
0x1211   : > { %v2809_v4 = vpop.eup %2808 }
0x1212   : > { %v1519_v5 = vmul.f32 0.6931472, %v2809_v4 }
0x1214   : > { %v1520_v6 = vmul.f32 %v1519_v5, %v3354_v18 }
0x1216   : > { %v1521_v7 = vmul.f32 1.442695, %v1520_v6 }
0x1218   : > { %2810 = vpow2.f32 %v1521_v7 }
0x121e   : > { %v2811_v8 = vpop.eup %2810 }
0x121f   : > { %v1523_v10 = vsel %vm1516_vm1, %v2811_v8, 0.0 }
0x1220   : > { %v1524_v11 = vsel %vm348_vm0, %v1523_v10, 0.0 }
0x1221   : > { %1525 = vadd.xlane.f32.xlu1 %v1524_v11 }
0x1282   : > { %v1043_v12 = vpop.xlane.xlu2 %1042 }
0x1283   : > { %v2478_v13 = vadd.f32 -1.0, %v1043_v12  ;;  %v2026_v14 = vpop.xlane.xlu0 %2025 }
0x1284   : > { %v2525_v15 = vadd.f32 -1.0, %v2026_v14 }
0x1285   : > { %vm1045_vm2 = vcmp.ge.f32.partialorder %v2478_v13, 0.0 }
0x1286   : > { %v1046_v17 = vsel %vm1045_vm2, %v1031_v41, %v1029_v38  ;;  %vm2028_vm3 = vcmp.ge.f32.partialorder %v2525_v15, 0.0  ;;  %v1530_v38 = vmul.f32 0.5, %v1513_v46 }
0x1287   : > { %v1048_v22 = vadd.f32 %v1047_v16, %v1046_v17  ;;  %v2029_v23 = vsel %vm2028_vm3, %v2014_v44, %v2012_v20 }
0x1288   : > { %v2031_v24 = vadd.f32 %v2030_v19, %v2029_v23 }
0x1289   : > { %v1049_v26 = vsub.f32 %v3235_v9, %v1048_v22 }
0x128a   : > { %v2032_v27 = vsub.f32 %v3302_v21, %v2031_v24 }
0x128b   : > { %vm1050_vm4 = vcmp.gt.f32.partialorder %v1049_v26, 0.0 }
0x128c   : > { %v1051_v28 = vsel %vm1050_vm4, %v1049_v26, 1.0  ;;  %vm2033_vm5 = vcmp.gt.f32.partialorder %v2032_v27, 0.0 }
0x128d   : > { %2812 = vlog2.f32 %v1051_v28  ;;  %v2034_v29 = vsel %vm2033_vm5, %v2032_v27, 1.0 }
0x128e   : > { %2814 = vlog2.f32 %v2034_v29 }
0x1293   : > { %v2813_v30 = vpop.eup %2812 }
0x1294   : > { %v2815_v31 = vpop.eup %2814  ;;  %v1526_v32 = vpop.xlane.xlu1 %1525  ;;  %v1053_v33 = vmul.f32 0.6931472, %v2813_v30 }
0x1295   : > { %v2501_v35 = vadd.f32 -1.0, %v1526_v32  ;;  %v2036_v36 = vmul.f32 0.6931472, %v2815_v31 }
0x1296   : > { %v1054_v37 = vmul.f32 %v1053_v33, %v3267_v25 }
0x1297   : > { %vm1528_vm6 = vcmp.ge.f32.partialorder %v2501_v35, 0.0  ;;  %v2037_v39 = vmul.f32 %v2036_v36, %v3341_v62 }
0x1298   : > { %v1529_v41 = vsel %vm1528_vm6, %v1514_v47, %v1512_v40  ;;  %v1055_v20 = vmul.f32 1.442695, %v1054_v37 }
0x1299   : > { %v1531_v44 = vadd.f32 %v1530_v38, %v1529_v41  ;;  %v2038_v45 = vmul.f32 1.442695, %v2037_v39 }
0x129a   : > { %2816 = vpow2.f32 %v1055_v20 }
0x129b   : > { %2818 = vpow2.f32 %v2038_v45  ;;  %v1532_v48 = vsub.f32 %v3311_v34, %v1531_v44 }
0x129d   : > { %vm1533_vm7 = vcmp.gt.f32.partialorder %v1532_v48, 0.0 }
0x129e   : > { %v1534_v49 = vsel %vm1533_vm7, %v1532_v48, 1.0 }
0x129f   : > { %2820 = vlog2.f32 %v1534_v49 }
0x12a0   : > { %v2817_v50 = vpop.eup %2816 }
0x12a1   : > { %v2819_v51 = vpop.eup %2818  ;;  %v1057_v52 = vsel %vm1050_vm4, %v2817_v50, 0.0 }
0x12a2   : > { %v1058_v42 = vsel %vm348_vm0, %v1057_v52, 0.0  ;;  %v2040_v53 = vsel %vm2033_vm5, %v2819_v51, 0.0  ;;  %v1081_v51 = vmul.f32 0.5, %v1064_v59 }
0x12a3   : > { %1059 = vadd.xlane.f32.xlu2 %v1058_v42  ;;  %v2041_v54 = vsel %vm348_vm0, %v2040_v53, 0.0  ;;  %v2064_v42 = vmul.f32 0.5, %v2047_v1 }
0x12a4   : > { %2042 = vadd.xlane.f32.xlu0 %v2041_v54 }
0x12a5   : > { %v2821_v55 = vpop.eup %2820 }
0x12a6   : > { %v1536_v56 = vmul.f32 0.6931472, %v2821_v55 }
0x12a8   : > { %v1537_v46 = vmul.f32 %v1536_v56, %v3354_v18 }
0x12aa   : > { %v1538_v57 = vmul.f32 1.442695, %v1537_v46 }
0x12ac   : > { %2822 = vpow2.f32 %v1538_v57 }
0x12b2   : > { %v2823_v40 = vpop.eup %2822 }
0x12b3   : > { %v1540_v43 = vsel %vm1533_vm7, %v2823_v40, 0.0 }
0x12b4   : > { %v1541_v47 = vsel %vm348_vm0, %v1540_v43, 0.0 }
0x12b5   : > { %1542 = vadd.xlane.f32.xlu1 %v1541_v47 }
0x1316   : > { %v1060_v58 = vpop.xlane.xlu2 %1059 }
0x1317   : > { %v2479_v60 = vadd.f32 -1.0, %v1060_v58  ;;  %v2043_v61 = vpop.xlane.xlu0 %2042 }
0x1318   : > { %v2526_v63 = vadd.f32 -1.0, %v2043_v61 }
0x1319   : > { %vm1062_vm8 = vcmp.ge.f32.partialorder %v2479_v60, 0.0 }
0x131a   : > { %v1063_v0 = vsel %vm1062_vm8, %v1048_v22, %v1046_v17  ;;  %vm2045_vm9 = vcmp.ge.f32.partialorder %v2526_v63, 0.0  ;;  %v1547_v17 = vmul.f32 0.5, %v1530_v38 }
0x131b   : > { %v1065_v2 = vadd.f32 %v1064_v59, %v1063_v0  ;;  %v2046_v3 = vsel %vm2045_vm9, %v2031_v24, %v2029_v23 }
0x131c   : > { %v2048_v4 = vadd.f32 %v2047_v1, %v2046_v3 }
0x131d   : > { %v1066_v5 = vsub.f32 %v3235_v9, %v1065_v2 }
0x131e   : > { %v2049_v6 = vsub.f32 %v3302_v21, %v2048_v4 }
0x131f   : > { %vm1067_vm10 = vcmp.gt.f32.partialorder %v1066_v5, 0.0 }
0x1320   : > { %v1068_v7 = vsel %vm1067_vm10, %v1066_v5, 1.0  ;;  %vm2050_vm11 = vcmp.gt.f32.partialorder %v2049_v6, 0.0 }
0x1321   : > { %2824 = vlog2.f32 %v1068_v7  ;;  %v2051_v8 = vsel %vm2050_vm11, %v2049_v6, 1.0 }
0x1322   : > { %2826 = vlog2.f32 %v2051_v8 }
0x1327   : > { %v2825_v10 = vpop.eup %2824 }
0x1328   : > { %v2827_v11 = vpop.eup %2826  ;;  %v1543_v12 = vpop.xlane.xlu1 %1542  ;;  %v1070_v13 = vmul.f32 0.6931472, %v2825_v10 }
0x1329   : > { %v2502_v14 = vadd.f32 -1.0, %v1543_v12  ;;  %v2053_v15 = vmul.f32 0.6931472, %v2827_v11 }
0x132a   : > { %v1071_v16 = vmul.f32 %v1070_v13, %v3267_v25 }
0x132b   : > { %vm1545_vm12 = vcmp.ge.f32.partialorder %v2502_v14, 0.0  ;;  %v2054_v19 = vmul.f32 %v2053_v15, %v3341_v62 }
0x132c   : > { %v1546_v22 = vsel %vm1545_vm12, %v1531_v44, %v1529_v41  ;;  %v1072_v23 = vmul.f32 1.442695, %v1071_v16 }
0x132d   : > { %v1548_v24 = vadd.f32 %v1547_v17, %v1546_v22  ;;  %v2055_v26 = vmul.f32 1.442695, %v2054_v19 }
0x132e   : > { %2828 = vpow2.f32 %v1072_v23 }
0x132f   : > { %2830 = vpow2.f32 %v2055_v26  ;;  %v1549_v27 = vsub.f32 %v3311_v34, %v1548_v24 }
0x1331   : > { %vm1550_vm14 = vcmp.gt.f32.partialorder %v1549_v27, 0.0 }
0x1332   : > { %v1551_v28 = vsel %vm1550_vm14, %v1549_v27, 1.0 }
0x1333   : > { %2832 = vlog2.f32 %v1551_v28 }
0x1334   : > { %v2829_v29 = vpop.eup %2828 }
0x1335   : > { %v2831_v30 = vpop.eup %2830  ;;  %v1074_v31 = vsel %vm1067_vm10, %v2829_v29, 0.0 }
0x1336   : > { %v1075_v32 = vsel %vm348_vm0, %v1074_v31, 0.0  ;;  %v2057_v33 = vsel %vm2050_vm11, %v2831_v30, 0.0  ;;  %v1098_v30 = vmul.f32 0.5, %v1081_v51 }
0x1337   : > { %1076 = vadd.xlane.f32.xlu2 %v1075_v32  ;;  %v2058_v35 = vsel %vm348_vm0, %v2057_v33, 0.0  ;;  %v2081_v32 = vmul.f32 0.5, %v2064_v42 }
0x1338   : > { %2059 = vadd.xlane.f32.xlu0 %v2058_v35 }
0x1339   : > { %v2833_v36 = vpop.eup %2832 }
0x133a   : > { %v1553_v37 = vmul.f32 0.6931472, %v2833_v36 }
0x133c   : > { %v1554_v38 = vmul.f32 %v1553_v37, %v3354_v18 }
0x133e   : > { %v1555_v39 = vmul.f32 1.442695, %v1554_v38 }
0x1340   : > { %2834 = vpow2.f32 %v1555_v39 }
0x1346   : > { %v2835_v41 = vpop.eup %2834 }
0x1347   : > { %v1557_v20 = vsel %vm1550_vm14, %v2835_v41, 0.0 }
0x1348   : > { %v1558_v44 = vsel %vm348_vm0, %v1557_v20, 0.0 }
0x1349   : > { %1559 = vadd.xlane.f32.xlu1 %v1558_v44 }
0x13aa   : > { %v1077_v45 = vpop.xlane.xlu2 %1076 }
0x13ab   : > { %v2480_v48 = vadd.f32 -1.0, %v1077_v45  ;;  %v2060_v49 = vpop.xlane.xlu0 %2059 }
0x13ac   : > { %v2527_v50 = vadd.f32 -1.0, %v2060_v49 }
0x13ad   : > { %vm1079_vm15 = vcmp.ge.f32.partialorder %v2480_v48, 0.0 }
0x13ae   : > { %v1080_v52 = vsel %vm1079_vm15, %v1065_v2, %v1063_v0  ;;  %vm2062_vm1 = vcmp.ge.f32.partialorder %v2527_v50, 0.0  ;;  %v1564_v0 = vmul.f32 0.5, %v1547_v17 }
0x13af   : > { %v1082_v53 = vadd.f32 %v1081_v51, %v1080_v52  ;;  %v2063_v54 = vsel %vm2062_vm1, %v2048_v4, %v2046_v3 }
0x13b0   : > { %v2065_v55 = vadd.f32 %v2064_v42, %v2063_v54 }
0x13b1   : > { %v1083_v56 = vsub.f32 %v3235_v9, %v1082_v53 }
0x13b2   : > { %v2066_v46 = vsub.f32 %v3302_v21, %v2065_v55 }
0x13b3   : > { %vm1084_vm2 = vcmp.gt.f32.partialorder %v1083_v56, 0.0 }
0x13b4   : > { %v1085_v57 = vsel %vm1084_vm2, %v1083_v56, 1.0  ;;  %vm2067_vm3 = vcmp.gt.f32.partialorder %v2066_v46, 0.0 }
0x13b5   : > { %2836 = vlog2.f32 %v1085_v57  ;;  %v2068_v40 = vsel %vm2067_vm3, %v2066_v46, 1.0 }
0x13b6   : > { %2838 = vlog2.f32 %v2068_v40 }
0x13bb   : > { %v2837_v43 = vpop.eup %2836 }
0x13bc   : > { %v2839_v47 = vpop.eup %2838  ;;  %v1560_v58 = vpop.xlane.xlu1 %1559  ;;  %v1087_v60 = vmul.f32 0.6931472, %v2837_v43 }
0x13bd   : > { %v2503_v61 = vadd.f32 -1.0, %v1560_v58  ;;  %v2070_v63 = vmul.f32 0.6931472, %v2839_v47 }
0x13be   : > { %v1088_v59 = vmul.f32 %v1087_v60, %v3267_v25 }
0x13bf   : > { %vm1562_vm4 = vcmp.ge.f32.partialorder %v2503_v61, 0.0  ;;  %v2071_v1 = vmul.f32 %v2070_v63, %v3341_v62 }
0x13c0   : > { %v1563_v2 = vsel %vm1562_vm4, %v1548_v24, %v1546_v22  ;;  %v1089_v3 = vmul.f32 1.442695, %v1088_v59 }
0x13c1   : > { %v1565_v4 = vadd.f32 %v1564_v0, %v1563_v2  ;;  %v2072_v5 = vmul.f32 1.442695, %v2071_v1 }
0x13c2   : > { %2840 = vpow2.f32 %v1089_v3 }
0x13c3   : > { %2842 = vpow2.f32 %v2072_v5  ;;  %v1566_v6 = vsub.f32 %v3311_v34, %v1565_v4 }
0x13c5   : > { %vm1567_vm5 = vcmp.gt.f32.partialorder %v1566_v6, 0.0 }
0x13c6   : > { %v1568_v7 = vsel %vm1567_vm5, %v1566_v6, 1.0 }
0x13c7   : > { %2844 = vlog2.f32 %v1568_v7 }
0x13c8   : > { %v2841_v8 = vpop.eup %2840 }
0x13c9   : > { %v2843_v10 = vpop.eup %2842  ;;  %v1091_v11 = vsel %vm1084_vm2, %v2841_v8, 0.0 }
0x13ca   : > { %v1092_v12 = vsel %vm348_vm0, %v1091_v11, 0.0  ;;  %v2074_v13 = vsel %vm2067_vm3, %v2843_v10, 0.0  ;;  %v1115_v10 = vmul.f32 0.5, %v1098_v30 }
0x13cb   : > { %1093 = vadd.xlane.f32.xlu2 %v1092_v12  ;;  %v2075_v14 = vsel %vm348_vm0, %v2074_v13, 0.0  ;;  %v2098_v12 = vmul.f32 0.5, %v2081_v32 }
0x13cc   : > { %2076 = vadd.xlane.f32.xlu0 %v2075_v14 }
0x13cd   : > { %v2845_v15 = vpop.eup %2844 }
0x13ce   : > { %v1570_v16 = vmul.f32 0.6931472, %v2845_v15 }
0x13d0   : > { %v1571_v17 = vmul.f32 %v1570_v16, %v3354_v18 }
0x13d2   : > { %v1572_v19 = vmul.f32 1.442695, %v1571_v17 }
0x13d4   : > { %2846 = vpow2.f32 %v1572_v19 }
0x13da   : > { %v2847_v22 = vpop.eup %2846 }
0x13db   : > { %v1574_v23 = vsel %vm1567_vm5, %v2847_v22, 0.0 }
0x13dc   : > { %v1575_v24 = vsel %vm348_vm0, %v1574_v23, 0.0 }
0x13dd   : > { %1576 = vadd.xlane.f32.xlu1 %v1575_v24 }
0x143e   : > { %v1094_v26 = vpop.xlane.xlu2 %1093 }
0x143f   : > { %v2481_v27 = vadd.f32 -1.0, %v1094_v26  ;;  %v2077_v28 = vpop.xlane.xlu0 %2076 }
0x1440   : > { %v2528_v29 = vadd.f32 -1.0, %v2077_v28 }
0x1441   : > { %vm1096_vm6 = vcmp.ge.f32.partialorder %v2481_v27, 0.0 }
0x1442   : > { %v1097_v31 = vsel %vm1096_vm6, %v1082_v53, %v1080_v52  ;;  %vm2079_vm7 = vcmp.ge.f32.partialorder %v2528_v29, 0.0  ;;  %v1581_v52 = vmul.f32 0.5, %v1564_v0 }
0x1443   : > { %v1099_v33 = vadd.f32 %v1098_v30, %v1097_v31  ;;  %v2080_v35 = vsel %vm2079_vm7, %v2065_v55, %v2063_v54 }
0x1444   : > { %v2082_v36 = vadd.f32 %v2081_v32, %v2080_v35 }
0x1445   : > { %v1100_v37 = vsub.f32 %v3235_v9, %v1099_v33 }
0x1446   : > { %v2083_v38 = vsub.f32 %v3302_v21, %v2082_v36 }
0x1447   : > { %vm1101_vm8 = vcmp.gt.f32.partialorder %v1100_v37, 0.0 }
0x1448   : > { %v1102_v39 = vsel %vm1101_vm8, %v1100_v37, 1.0  ;;  %vm2084_vm9 = vcmp.gt.f32.partialorder %v2083_v38, 0.0 }
0x1449   : > { %2848 = vlog2.f32 %v1102_v39  ;;  %v2085_v41 = vsel %vm2084_vm9, %v2083_v38, 1.0 }
0x144a   : > { %2850 = vlog2.f32 %v2085_v41 }
0x144f   : > { %v2849_v20 = vpop.eup %2848 }
0x1450   : > { %v2851_v44 = vpop.eup %2850  ;;  %v1577_v45 = vpop.xlane.xlu1 %1576  ;;  %v1104_v48 = vmul.f32 0.6931472, %v2849_v20 }
0x1451   : > { %v2504_v49 = vadd.f32 -1.0, %v1577_v45  ;;  %v2087_v50 = vmul.f32 0.6931472, %v2851_v44 }
0x1452   : > { %v1105_v51 = vmul.f32 %v1104_v48, %v3267_v25 }
0x1453   : > { %vm1579_vm10 = vcmp.ge.f32.partialorder %v2504_v49, 0.0  ;;  %v2088_v42 = vmul.f32 %v2087_v50, %v3341_v62 }
0x1454   : > { %v1580_v53 = vsel %vm1579_vm10, %v1565_v4, %v1563_v2  ;;  %v1106_v54 = vmul.f32 1.442695, %v1105_v51 }
0x1455   : > { %v1582_v55 = vadd.f32 %v1581_v52, %v1580_v53  ;;  %v2089_v56 = vmul.f32 1.442695, %v2088_v42 }
0x1456   : > { %2852 = vpow2.f32 %v1106_v54 }
0x1457   : > { %2854 = vpow2.f32 %v2089_v56  ;;  %v1583_v46 = vsub.f32 %v3311_v34, %v1582_v55 }
0x1459   : > { %vm1584_vm11 = vcmp.gt.f32.partialorder %v1583_v46, 0.0 }
0x145a   : > { %v1585_v57 = vsel %vm1584_vm11, %v1583_v46, 1.0 }
0x145b   : > { %2856 = vlog2.f32 %v1585_v57 }
0x145c   : > { %v2853_v40 = vpop.eup %2852 }
0x145d   : > { %v2855_v43 = vpop.eup %2854  ;;  %v1108_v47 = vsel %vm1101_vm8, %v2853_v40, 0.0 }
0x145e   : > { %v1109_v58 = vsel %vm348_vm0, %v1108_v47, 0.0  ;;  %v2091_v60 = vsel %vm2084_vm9, %v2855_v43, 0.0  ;;  %v1132_v43 = vmul.f32 0.5, %v1115_v10 }
0x145f   : > { %1110 = vadd.xlane.f32.xlu2 %v1109_v58  ;;  %v2092_v61 = vsel %vm348_vm0, %v2091_v60, 0.0  ;;  %v2115_v58 = vmul.f32 0.5, %v2098_v12 }
0x1460   : > { %2093 = vadd.xlane.f32.xlu0 %v2092_v61 }
0x1461   : > { %v2857_v63 = vpop.eup %2856 }
0x1462   : > { %v1587_v59 = vmul.f32 0.6931472, %v2857_v63 }
0x1464   : > { %v1588_v0 = vmul.f32 %v1587_v59, %v3354_v18 }
0x1466   : > { %v1589_v1 = vmul.f32 1.442695, %v1588_v0 }
0x1468   : > { %2858 = vpow2.f32 %v1589_v1 }
0x146e   : > { %v2859_v2 = vpop.eup %2858 }
0x146f   : > { %v1591_v3 = vsel %vm1584_vm11, %v2859_v2, 0.0 }
0x1470   : > { %v1592_v4 = vsel %vm348_vm0, %v1591_v3, 0.0 }
0x1471   : > { %1593 = vadd.xlane.f32.xlu1 %v1592_v4 }
0x14d2   : > { %v1111_v5 = vpop.xlane.xlu2 %1110 }
0x14d3   : > { %v2482_v6 = vadd.f32 -1.0, %v1111_v5  ;;  %v2094_v7 = vpop.xlane.xlu0 %2093 }
0x14d4   : > { %v2529_v8 = vadd.f32 -1.0, %v2094_v7 }
0x14d5   : > { %vm1113_vm12 = vcmp.ge.f32.partialorder %v2482_v6, 0.0 }
0x14d6   : > { %v1114_v11 = vsel %vm1113_vm12, %v1099_v33, %v1097_v31  ;;  %vm2096_vm14 = vcmp.ge.f32.partialorder %v2529_v8, 0.0  ;;  %v1598_v31 = vmul.f32 0.5, %v1581_v52 }
0x14d7   : > { %v1116_v13 = vadd.f32 %v1115_v10, %v1114_v11  ;;  %v2097_v14 = vsel %vm2096_vm14, %v2082_v36, %v2080_v35 }
0x14d8   : > { %v2099_v15 = vadd.f32 %v2098_v12, %v2097_v14 }
0x14d9   : > { %v1117_v16 = vsub.f32 %v3235_v9, %v1116_v13 }
0x14da   : > { %v2100_v17 = vsub.f32 %v3302_v21, %v2099_v15 }
0x14db   : > { %vm1118_vm15 = vcmp.gt.f32.partialorder %v1117_v16, 0.0 }
0x14dc   : > { %v1119_v19 = vsel %vm1118_vm15, %v1117_v16, 1.0  ;;  %vm2101_vm1 = vcmp.gt.f32.partialorder %v2100_v17, 0.0 }
0x14dd   : > { %2860 = vlog2.f32 %v1119_v19  ;;  %v2102_v22 = vsel %vm2101_vm1, %v2100_v17, 1.0 }
0x14de   : > { %2862 = vlog2.f32 %v2102_v22 }
0x14e3   : > { %v2861_v23 = vpop.eup %2860 }
0x14e4   : > { %v2863_v24 = vpop.eup %2862  ;;  %v1594_v26 = vpop.xlane.xlu1 %1593  ;;  %v1121_v27 = vmul.f32 0.6931472, %v2861_v23 }
0x14e5   : > { %v2505_v28 = vadd.f32 -1.0, %v1594_v26  ;;  %v2104_v29 = vmul.f32 0.6931472, %v2863_v24 }
0x14e6   : > { %v1122_v30 = vmul.f32 %v1121_v27, %v3267_v25 }
0x14e7   : > { %vm1596_vm2 = vcmp.ge.f32.partialorder %v2505_v28, 0.0  ;;  %v2105_v32 = vmul.f32 %v2104_v29, %v3341_v62 }
0x14e8   : > { %v1597_v33 = vsel %vm1596_vm2, %v1582_v55, %v1580_v53  ;;  %v1123_v35 = vmul.f32 1.442695, %v1122_v30 }
0x14e9   : > { %v1599_v36 = vadd.f32 %v1598_v31, %v1597_v33  ;;  %v2106_v37 = vmul.f32 1.442695, %v2105_v32 }
0x14ea   : > { %2864 = vpow2.f32 %v1123_v35 }
0x14eb   : > { %2866 = vpow2.f32 %v2106_v37  ;;  %v1600_v38 = vsub.f32 %v3311_v34, %v1599_v36 }
0x14ed   : > { %vm1601_vm3 = vcmp.gt.f32.partialorder %v1600_v38, 0.0 }
0x14ee   : > { %v1602_v39 = vsel %vm1601_vm3, %v1600_v38, 1.0 }
0x14ef   : > { %2868 = vlog2.f32 %v1602_v39 }
0x14f0   : > { %v2865_v41 = vpop.eup %2864 }
0x14f1   : > { %v2867_v20 = vpop.eup %2866  ;;  %v1125_v44 = vsel %vm1118_vm15, %v2865_v41, 0.0 }
0x14f2   : > { %v1126_v45 = vsel %vm348_vm0, %v1125_v44, 0.0  ;;  %v2108_v48 = vsel %vm2101_vm1, %v2867_v20, 0.0  ;;  %v2132_v44 = vmul.f32 0.5, %v2115_v58 }
0x14f3   : > { %1127 = vadd.xlane.f32.xlu2 %v1126_v45  ;;  %v2109_v49 = vsel %vm348_vm0, %v2108_v48, 0.0 }
0x14f4   : > { %2110 = vadd.xlane.f32.xlu0 %v2109_v49 }
0x14f5   : > { %v2869_v50 = vpop.eup %2868 }
0x14f6   : > { %v1604_v51 = vmul.f32 0.6931472, %v2869_v50 }
0x14f8   : > { %v1605_v52 = vmul.f32 %v1604_v51, %v3354_v18 }
0x14fa   : > { %v1606_v42 = vmul.f32 1.442695, %v1605_v52 }
0x14fc   : > { %2870 = vpow2.f32 %v1606_v42 }
0x1502   : > { %v2871_v53 = vpop.eup %2870 }
0x1503   : > { %v1608_v54 = vsel %vm1601_vm3, %v2871_v53, 0.0 }
0x1504   : > { %v1609_v55 = vsel %vm348_vm0, %v1608_v54, 0.0 }
0x1505   : > { %1610 = vadd.xlane.f32.xlu1 %v1609_v55 }
0x1566   : > { %v1128_v56 = vpop.xlane.xlu2 %1127 }
0x1567   : > { %v2483_v46 = vadd.f32 -1.0, %v1128_v56  ;;  %v2111_v57 = vpop.xlane.xlu0 %2110 }
0x1568   : > { %v2530_v40 = vadd.f32 -1.0, %v2111_v57 }
0x1569   : > { %vm1130_vm4 = vcmp.ge.f32.partialorder %v2483_v46, 0.0 }
0x156a   : > { %v1131_v47 = vsel %vm1130_vm4, %v1116_v13, %v1114_v11  ;;  %vm2113_vm5 = vcmp.ge.f32.partialorder %v2530_v40, 0.0  ;;  %v1615_v11 = vmul.f32 0.5, %v1598_v31 }
0x156b   : > { %v1133_v60 = vadd.f32 %v1132_v43, %v1131_v47  ;;  %v2114_v61 = vsel %vm2113_vm5, %v2099_v15, %v2097_v14 }
0x156c   : > { %v2116_v63 = vadd.f32 %v2115_v58, %v2114_v61 }
0x156d   : > { %v1134_v59 = vsub.f32 %v3235_v9, %v1133_v60 }
0x156e   : > { %v2117_v0 = vsub.f32 %v3302_v21, %v2116_v63 }
0x156f   : > { %vm1135_vm6 = vcmp.gt.f32.partialorder %v1134_v59, 0.0 }
0x1570   : > { %v1136_v1 = vsel %vm1135_vm6, %v1134_v59, 1.0  ;;  %vm2118_vm7 = vcmp.gt.f32.partialorder %v2117_v0, 0.0 }
0x1571   : > { %2872 = vlog2.f32 %v1136_v1  ;;  %v2119_v2 = vsel %vm2118_vm7, %v2117_v0, 1.0 }
0x1572   : > { %2874 = vlog2.f32 %v2119_v2 }
0x1577   : > { %v2873_v3 = vpop.eup %2872 }
0x1578   : > { %v2875_v4 = vpop.eup %2874  ;;  %v1611_v5 = vpop.xlane.xlu1 %1610  ;;  %v1138_v6 = vmul.f32 0.6931472, %v2873_v3 }
0x1579   : > { %v2506_v7 = vadd.f32 -1.0, %v1611_v5  ;;  %v2121_v8 = vmul.f32 0.6931472, %v2875_v4 }
0x157a   : > { %v1139_v10 = vmul.f32 %v1138_v6, %v3267_v25 }
0x157b   : > { %vm1613_vm8 = vcmp.ge.f32.partialorder %v2506_v7, 0.0  ;;  %v2122_v12 = vmul.f32 %v2121_v8, %v3341_v62 }
0x157c   : > { %v1614_v13 = vsel %vm1613_vm8, %v1599_v36, %v1597_v33  ;;  %v1140_v14 = vmul.f32 1.442695, %v1139_v10 }
0x157d   : > { %v1616_v15 = vadd.f32 %v1615_v11, %v1614_v13  ;;  %v2123_v16 = vmul.f32 1.442695, %v2122_v12 }
0x157e   : > { %2876 = vpow2.f32 %v1140_v14 }
0x157f   : > { %2878 = vpow2.f32 %v2123_v16  ;;  %v1617_v17 = vsub.f32 %v3311_v34, %v1616_v15 }
0x1581   : > { %vm1618_vm9 = vcmp.gt.f32.partialorder %v1617_v17, 0.0 }
0x1582   : > { %v1619_v19 = vsel %vm1618_vm9, %v1617_v17, 1.0 }
0x1583   : > { %2880 = vlog2.f32 %v1619_v19 }
0x1584   : > { %v2877_v22 = vpop.eup %2876 }
0x1585   : > { %v2879_v23 = vpop.eup %2878  ;;  %v1142_v24 = vsel %vm1135_vm6, %v2877_v22, 0.0 }
0x1586   : > { %v1143_v26 = vsel %vm348_vm0, %v1142_v24, 0.0  ;;  %v2125_v27 = vsel %vm2118_vm7, %v2879_v23, 0.0 }
0x1587   : > { %1144 = vadd.xlane.f32.xlu2 %v1143_v26  ;;  %v2126_v28 = vsel %vm348_vm0, %v2125_v27, 0.0 }
0x1588   : > { %2127 = vadd.xlane.f32.xlu0 %v2126_v28 }
0x1589   : > { %v2881_v29 = vpop.eup %2880 }
0x158a   : > { %v1621_v30 = vmul.f32 0.6931472, %v2881_v29 }
0x158c   : > { %v1622_v31 = vmul.f32 %v1621_v30, %v3354_v18 }
0x158e   : > { %v1623_v32 = vmul.f32 1.442695, %v1622_v31 }
0x1590   : > { %2882 = vpow2.f32 %v1623_v32 }
0x1596   : > { %v2883_v33 = vpop.eup %2882 }
0x1597   : > { %v1625_v35 = vsel %vm1618_vm9, %v2883_v33, 0.0 }
0x1598   : > { %v1626_v36 = vsel %vm348_vm0, %v1625_v35, 0.0 }
0x1599   : > { %1627 = vadd.xlane.f32.xlu1 %v1626_v36 }
0x15fa   : > { %v1145_v37 = vpop.xlane.xlu2 %1144 }
0x15fb   : > { %v2484_v38 = vadd.f32 -1.0, %v1145_v37  ;;  %v2128_v39 = vpop.xlane.xlu0 %2127 }
0x15fc   : > { %v2531_v41 = vadd.f32 -1.0, %v2128_v39 }
0x15fd   : > { %vm1147_vm10 = vcmp.ge.f32.partialorder %v2484_v38, 0.0 }
0x15fe   : > { %v3574_v20 = vsel %vm1147_vm10, %v1133_v60, %v1131_v47  ;;  %vm2130_vm11 = vcmp.ge.f32.partialorder %v2531_v41, 0.0  ;;  %v1632_v60 = vmul.f32 0.5, %v1615_v11 }
0x15ff   : > { %v1149_v45 = vsub.f32 %v3235_v9, %v3574_v20  ;;  %v3578_v48 = vsel %vm2130_vm11, %v2116_v63, %v2114_v61 }
0x1600   : > { %v3581_v49 = vadd.f32 %v2132_v44, %v3578_v48 }
0x1601   : > { %vm1150_vm12 = vcmp.gt.f32.partialorder %v1149_v45, 0.0 }
0x1602   : > { %v2134_v50 = vsub.f32 %v3302_v21, %v3581_v49  ;;  %v1151_v51 = vsel %vm1150_vm12, %v1149_v45, 1.0 }
0x1603   : > { %2884 = vlog2.f32 %v1151_v51  ;;  %v1173_v3 = vand.u32 2147483648, %v1151_v51  ;;  %vm1167_vm2 = vweird.f32 %v1151_v51  ;;  %v1171_v4 = vand.u32 2147483647, %v1151_v51 }
0x1604   : > { %vm2135_vm14 = vcmp.gt.f32.partialorder %v2134_v50, 0.0  ;;  %2886 = vrcp.f32 %v1151_v51 }
0x1605   : > { %v2136_v52 = vsel %vm2135_vm14, %v2134_v50, 1.0  ;;  %v1174_v7 = vor.u32 1.1754944e-38, %v1173_v3  ;;  %vm1172_vm5 = vcmp.eq.f32.partialorder %v1171_v4, 8.507059e+37 }
0x1606   : > { %2888 = vlog2.f32 %v2136_v52 }
0x1609   : > { %v2885_v42 = vpop.eup %2884 }
0x160a   : > { %v2887_v53 = vpop.eup %2886  ;;  %v1153_v54 = vmul.f32 0.6931472, %v2885_v42 }
0x160b   : > { %v1163_v55 = vmul.f32 %v2887_v53, %v1151_v51  ;;  %vm1168_vm1 = vweird.f32 %v2887_v53 }
0x160c   : > { %v2889_v56 = vpop.eup %2888  ;;  %v1628_v46 = vpop.xlane.xlu1 %1627  ;;  %v1154_v57 = vmul.f32 %v1153_v54, %v3267_v25  ;;  %vm1169_vm3 = vmor %vm1167_vm2, %vm1168_vm1 }
0x160d   : > { %v2507_v40 = vadd.f32 -1.0, %v1628_v46  ;;  %v2138_v43 = vmul.f32 0.6931472, %v2889_v56  ;;  %v1164_v47 = vsub.f32 1.0, %v1163_v55 }
0x160e   : > { %v1155_v58 = vmul.f32 1.442695, %v1154_v57 }
0x160f   : > { %vm1630_vm15 = vcmp.ge.f32.partialorder %v2507_v40, 0.0  ;;  %v2139_v61 = vmul.f32 %v2138_v43, %v3341_v62  ;;  %v1165_v63 = vmul.f32 %v2887_v53, %v1164_v47 }
0x1610   : > { %v3589_v59 = vsel %vm1630_vm15, %v1616_v15, %v1614_v13  ;;  %2890 = vpow2.f32 %v1155_v58 }
0x1611   : > { %v3592_v0 = vadd.f32 %v1632_v60, %v3589_v59  ;;  %v2140_v1 = vmul.f32 1.442695, %v2139_v61  ;;  %v1166_v2 = vadd.f32 %v2887_v53, %v1165_v63 }
0x1613   : > { %2892 = vpow2.f32 %v2140_v1  ;;  %v1634_v5 = vsub.f32 %v3311_v34, %v3592_v0  ;;  %v1170_v6 = vsel %vm1169_vm3, %v2887_v53, %v1166_v2 }
0x1614   : > { %v1175_v12 = vsel %vm1172_vm5, %v1174_v7, %v1170_v6 }
0x1615   : > { %vm1635_vm4 = vcmp.gt.f32.partialorder %v1634_v5, 0.0 }
0x1616   : > { %v2891_v8 = vpop.eup %2890  ;;  %v1636_v10 = vsel %vm1635_vm4, %v1634_v5, 1.0 }
0x1617   : > { %v1157_v11 = vsel %vm1150_vm12, %v2891_v8, 0.0  ;;  %2894 = vlog2.f32 %v1636_v10 }
0x1618   : > { %v1176_v13 = vmul.f32 %v1175_v12, %v1157_v11  ;;  %v1158_v27 = vsel %vm348_vm0, %v1157_v11, 0.0 }
0x1619   : > { %v2893_v14 = vpop.eup %2892 }
0x161a   : > { %v2142_v15 = vsel %vm2135_vm14, %v2893_v14, 0.0  ;;  %v1177_v16 = vsel %vm1150_vm12, %v1176_v13, 0.0 }
0x161b   : > { %v2143_v17 = vsel %vm348_vm0, %v2142_v15, 0.0  ;;  %v1178_v19 = vsel %vm348_vm0, %v1177_v16, 0.0 }
0x161c   : > { %2144 = vadd.xlane.f32.xlu0 %v2143_v17  ;;  %1179 = vadd.xlane.f32.xlu2 %v1178_v19 }
0x161d   : > { %v2895_v22 = vpop.eup %2894 }
0x161e   : > { %v1638_v23 = vmul.f32 0.6931472, %v2895_v22 }
0x1620   : > { %v1639_v24 = vmul.f32 %v1638_v23, %v3354_v18 }
0x1622   : > { %v1640_v26 = vmul.f32 1.442695, %v1639_v24 }
0x1624   : > { %1159 = vadd.xlane.f32.xlu2 %v1158_v27  ;;  %2896 = vpow2.f32 %v1640_v26 }
0x162a   : > { %v2897_v28 = vpop.eup %2896 }
0x162b   : > { %v1642_v29 = vsel %vm1635_vm4, %v2897_v28, 0.0 }
0x162c   : > { %v1643_v30 = vsel %vm348_vm0, %v1642_v29, 0.0 }
0x162d   : > { %1644 = vadd.xlane.f32.xlu1 %v1643_v30 }
0x168f   : > { %v2145_v31 = vpop.xlane.xlu0 %2144  ;;  %v1180_v32 = vpop.xlane.xlu2 %1179 }
0x1690   : > { %v2532_v33 = vadd.f32 -1.0, %v2145_v31  ;;  %v1181_v35 = vmax.f32 %v1180_v32, 1e-30 }
0x1692   : > { %vm2147_vm6 = vcmp.ge.f32.partialorder %v2532_v33, 0.0  ;;  %v1182_v36 = vmul.f32 %v1181_v35, %v3267_v25 }
0x1693   : > { %v3609_v37 = vsel %vm2147_vm6, %v3581_v49, %v3578_v48 }
0x1694   : > { %v2149_v38 = vsub.f32 %v3302_v21, %v3609_v37  ;;  %2898 = vrcp.f32 %v1182_v36  ;;  %v1192_v51 = vand.u32 2147483647, %v1182_v36  ;;  %v1194_v52 = vand.u32 2147483648, %v1182_v36 }
0x1695   : > { %vm1188_vm9 = vweird.f32 %v1182_v36 }
0x1696   : > { %vm2150_vm7 = vcmp.gt.f32.partialorder %v2149_v38, 0.0  ;;  %vm1193_vm11 = vcmp.eq.f32.partialorder %v1192_v51, 8.507059e+37  ;;  %v1195_v40 = vor.u32 1.1754944e-38, %v1194_v52 }
0x1697   : > { %v2151_v39 = vsel %vm2150_vm7, %v2149_v38, 1.0  ;;  %v1160_v49 = vpop.xlane.xlu2 %1159 }
0x1698   : > { %2900 = vlog2.f32 %v2151_v39  ;;  %v2485_v58 = vadd.f32 -1.0, %v1160_v49  ;;  %v2173_v5 = vand.u32 2147483648, %v2151_v39  ;;  %vm2167_vm15 = vweird.f32 %v2151_v39 }
0x1699   : > { %2902 = vrcp.f32 %v2151_v39  ;;  %v2171_v7 = vand.u32 2147483647, %v2151_v39 }
0x169a   : > { %v2899_v41 = vpop.eup %2898  ;;  %v2174_v8 = vor.u32 1.1754944e-38, %v2173_v5 }
0x169b   : > { %v1184_v44 = vmul.f32 %v2899_v41, %v1182_v36  ;;  %vm1189_vm8 = vweird.f32 %v2899_v41  ;;  %vm2172_vm3 = vcmp.eq.f32.partialorder %v2171_v7, 8.507059e+37 }
0x169c   : > { %vm1190_vm10 = vmor %vm1188_vm9, %vm1189_vm8 }
0x169d   : > { %v1185_v45 = vsub.f32 1.0, %v1184_v44 }
0x169e   : > { %v2901_v50 = vpop.eup %2900 }
0x169f   : > { %v2903_v42 = vpop.eup %2902  ;;  %v1186_v53 = vmul.f32 %v2899_v41, %v1185_v45  ;;  %v2153_v48 = vmul.f32 0.6931472, %v2901_v50 }
0x16a0   : > { %v1645_v54 = vpop.xlane.xlu1 %1644  ;;  %v2163_v55 = vmul.f32 %v2903_v42, %v2151_v39  ;;  %vm2168_vm14 = vweird.f32 %v2903_v42 }
0x16a1   : > { %v1187_v56 = vadd.f32 %v2899_v41, %v1186_v53  ;;  %v2508_v46 = vadd.f32 -1.0, %v1645_v54  ;;  %v2154_v57 = vmul.f32 %v2153_v48, %v3341_v62  ;;  %vm2169_vm2 = vmor %vm2167_vm15, %vm2168_vm14 }
0x16a2   : > { %v2164_v43 = vsub.f32 1.0, %v2163_v55 }
0x16a3   : > { %v1191_v47 = vsel %vm1190_vm10, %v2899_v41, %v1187_v56  ;;  %vm1647_vm12 = vcmp.ge.f32.partialorder %v2508_v46, 0.0  ;;  %v2155_v60 = vmul.f32 1.442695, %v2154_v57 }
0x16a4   : > { %v1196_v61 = vsel %vm1193_vm11, %v1195_v40, %v1191_v47  ;;  %v3617_v63 = vsel %vm1647_vm12, %v3592_v0, %v3589_v59  ;;  %v2165_v1 = vmul.f32 %v2903_v42, %v2164_v43 }
0x16a5   : > { %v1197_v2 = vmul.f32 %v2485_v58, %v1196_v61  ;;  %v3621_v3 = vsub.f32 %v3311_v34, %v3617_v63  ;;  %2904 = vpow2.f32 %v2155_v60 }
0x16a6   : > { %v2166_v4 = vadd.f32 %v2903_v42, %v2165_v1 }
0x16a7   : > { %v3624_v6 = vadd.f32 %v1197_v2, %v3574_v20  ;;  %vm1650_vm1 = vcmp.gt.f32.partialorder %v3621_v3, 0.0 }
0x16a8   : > { %v1651_v59 = vsel %vm1650_vm1, %v3621_v3, 1.0  ;;  %v2170_v0 = vsel %vm2169_vm2, %v2903_v42, %v2166_v4 }
0x16a9   : > { %2906 = vlog2.f32 %v1651_v59  ;;  %v3632_v10 = vsub.f32 %v3235_v9, %v3624_v6  ;;  %v2175_v12 = vsel %vm2172_vm3, %v2174_v8, %v2170_v0  ;;  %v1673_v35 = vand.u32 2147483648, %v1651_v59 }
0x16aa   : > { %2908 = vrcp.f32 %v1651_v59  ;;  %vm1667_vm6 = vweird.f32 %v1651_v59  ;;  %v1671_v39 = vand.u32 2147483647, %v1651_v59 }
0x16ab   : > { %v2905_v11 = vpop.eup %2904  ;;  %vm1200_vm4 = vcmp.gt.f32.partialorder %v3632_v10, 0.0  ;;  %v1674_v51 = vor.u32 1.1754944e-38, %v1673_v35 }
0x16ac   : > { %v2157_v20 = vsel %vm2150_vm7, %v2905_v11, 0.0  ;;  %v1201_v14 = vsel %vm1200_vm4, %v3632_v10, 1.0  ;;  %vm1672_vm9 = vcmp.eq.f32.partialorder %v1671_v39, 8.507059e+37 }
0x16ad   : > { %v2176_v13 = vmul.f32 %v2175_v12, %v2157_v20  ;;  %2910 = vlog2.f32 %v1201_v14  ;;  %v2158_v38 = vsel %vm348_vm0, %v2157_v20, 0.0  ;;  %v1223_v53 = vand.u32 2147483648, %v1201_v14 }
0x16ae   : > { %2912 = vrcp.f32 %v1201_v14  ;;  %vm1217_vm10 = vweird.f32 %v1201_v14  ;;  %v1221_v54 = vand.u32 2147483647, %v1201_v14 }
0x16af   : > { %v2907_v15 = vpop.eup %2906  ;;  %v2177_v16 = vsel %vm2150_vm7, %v2176_v13, 0.0  ;;  %v1224_v57 = vor.u32 1.1754944e-38, %v1223_v53 }
0x16b0   : > { %v2909_v17 = vpop.eup %2908  ;;  %v2178_v19 = vsel %vm348_vm0, %v2177_v16, 0.0  ;;  %v1653_v22 = vmul.f32 0.6931472, %v2907_v15  ;;  %vm1222_vm12 = vcmp.eq.f32.partialorder %v1221_v54, 8.507059e+37 }
0x16b1   : > { %2179 = vadd.xlane.f32.xlu0 %v2178_v19  ;;  %v1663_v23 = vmul.f32 %v2909_v17, %v1651_v59  ;;  %vm1668_vm5 = vweird.f32 %v2909_v17 }
0x16b2   : > { %v1654_v24 = vmul.f32 %v1653_v22, %v3354_v18  ;;  %vm1669_vm7 = vmor %vm1667_vm6, %vm1668_vm5 }
0x16b3   : > { %v1664_v26 = vsub.f32 1.0, %v1663_v23  ;;  %v2911_v27 = vpop.eup %2910 }
0x16b4   : > { %v1655_v28 = vmul.f32 1.442695, %v1654_v24  ;;  %v2913_v29 = vpop.eup %2912  ;;  %v1203_v31 = vmul.f32 0.6931472, %v2911_v27 }
0x16b5   : > { %v1665_v30 = vmul.f32 %v2909_v17, %v1664_v26  ;;  %v1213_v32 = vmul.f32 %v2913_v29, %v1201_v14  ;;  %vm1218_vm8 = vweird.f32 %v2913_v29 }
0x16b6   : > { %2914 = vpow2.f32 %v1655_v28  ;;  %v1204_v36 = vmul.f32 %v1203_v31, %v3267_v25  ;;  %vm1219_vm11 = vmor %vm1217_vm10, %vm1218_vm8 }
0x16b7   : > { %v1666_v33 = vadd.f32 %v2909_v17, %v1665_v30  ;;  %v1214_v41 = vsub.f32 1.0, %v1213_v32 }
0x16b8   : > { %v1205_v44 = vmul.f32 1.442695, %v1204_v36 }
0x16b9   : > { %2159 = vadd.xlane.f32.xlu0 %v2158_v38  ;;  %v1670_v45 = vsel %vm1669_vm7, %v2909_v17, %v1666_v33  ;;  %v1215_v50 = vmul.f32 %v2913_v29, %v1214_v41 }
0x16ba   : > { %2916 = vpow2.f32 %v1205_v44  ;;  %v1675_v49 = vsel %vm1672_vm9, %v1674_v51, %v1670_v45 }
0x16bb   : > { %v1216_v42 = vadd.f32 %v2913_v29, %v1215_v50 }
0x16bc   : > { %v2915_v52 = vpop.eup %2914 }
0x16bd   : > { %v1657_v48 = vsel %vm1650_vm1, %v2915_v52, 0.0  ;;  %v1220_v56 = vsel %vm1219_vm11, %v2913_v29, %v1216_v42 }
0x16be   : > { %v1676_v55 = vmul.f32 %v1675_v49, %v1657_v48  ;;  %v1225_v58 = vsel %vm1222_vm12, %v1224_v57, %v1220_v56  ;;  %v1658_v2 = vsel %vm348_vm0, %v1657_v48, 0.0 }
0x16c0   : > { %v1677_v46 = vsel %vm1650_vm1, %v1676_v55, 0.0  ;;  %v2917_v40 = vpop.eup %2916 }
0x16c1   : > { %v1678_v43 = vsel %vm348_vm0, %v1677_v46, 0.0  ;;  %v1207_v47 = vsel %vm1200_vm4, %v2917_v40, 0.0 }
0x16c2   : > { %1679 = vadd.xlane.f32.xlu1 %v1678_v43  ;;  %v1226_v60 = vmul.f32 %v1225_v58, %v1207_v47  ;;  %v1208_v3 = vsel %vm348_vm0, %v1207_v47, 0.0 }
0x16c4   : > { %v1227_v61 = vsel %vm1200_vm4, %v1226_v60, 0.0 }
0x16c5   : > { %v1228_v1 = vsel %vm348_vm0, %v1227_v61, 0.0 }
0x16c6   : > { %1229 = vadd.xlane.f32.xlu2 %v1228_v1 }
0x16ca   : > { %1659 = vadd.xlane.f32.xlu1 %v1658_v2 }
0x16ce   : > { %1209 = vadd.xlane.f32.xlu2 %v1208_v3 }
0x1724   : > { %v2180_v4 = vpop.xlane.xlu0 %2179 }
0x1725   : > { %v2181_v5 = vmax.f32 %v2180_v4, 1e-30 }
0x1727   : > { %v2182_v7 = vmul.f32 %v2181_v5, %v3341_v62 }
0x1729   : > { %2918 = vrcp.f32 %v2182_v7  ;;  %v2194_v11 = vand.u32 2147483648, %v2182_v7  ;;  %v2192_v20 = vand.u32 2147483647, %v2182_v7  ;;  %vm2188_vm15 = vweird.f32 %v2182_v7 }
0x172b   : > { %v2195_v16 = vor.u32 1.1754944e-38, %v2194_v11  ;;  %vm2193_vm2 = vcmp.eq.f32.partialorder %v2192_v20, 8.507059e+37 }
0x172c   : > { %v2160_v12 = vpop.xlane.xlu0 %2159 }
0x172d   : > { %v2533_v19 = vadd.f32 -1.0, %v2160_v12 }
0x172f   : > { %v2919_v59 = vpop.eup %2918 }
0x1730   : > { %v2184_v0 = vmul.f32 %v2919_v59, %v2182_v7  ;;  %vm2189_vm14 = vweird.f32 %v2919_v59 }
0x1731   : > { %vm2190_vm1 = vmor %vm2188_vm15, %vm2189_vm14 }
0x1732   : > { %v2185_v8 = vsub.f32 1.0, %v2184_v0 }
0x1734   : > { %v2186_v10 = vmul.f32 %v2919_v59, %v2185_v8 }
0x1735   : > { %v1680_v13 = vpop.xlane.xlu1 %1679 }
0x1736   : > { %v2187_v14 = vadd.f32 %v2919_v59, %v2186_v10  ;;  %v1681_v15 = vmax.f32 %v1680_v13, 1e-30 }
0x1738   : > { %v2191_v17 = vsel %vm2190_vm1, %v2919_v59, %v2187_v14  ;;  %v1682_v22 = vmul.f32 %v1681_v15, %v3354_v18 }
0x1739   : > { %v2196_v23 = vsel %vm2193_vm2, %v2195_v16, %v2191_v17  ;;  %v1230_v26 = vpop.xlane.xlu2 %1229 }
0x173a   : > { %v2197_v24 = vmul.f32 %v2533_v19, %v2196_v23  ;;  %2920 = vrcp.f32 %v1682_v22  ;;  %v1231_v27 = vmax.f32 %v1230_v26, 1e-30  ;;  %v1692_v36 = vand.u32 2147483647, %v1682_v22 }
0x173b   : > { %vm1688_vm5 = vweird.f32 %v1682_v22 }
0x173c   : > { %v3659_v28 = vadd.f32 %v2197_v24, %v3609_v37  ;;  %v1232_v29 = vmul.f32 %v1231_v27, %v3267_v25  ;;  %v1694_v37 = vand.u32 2147483648, %v1682_v22  ;;  %vm1693_vm7 = vcmp.eq.f32.partialorder %v1692_v36, 8.507059e+37 }
0x173d   : > { %v1660_v41 = vpop.xlane.xlu1 %1659 }
0x173e   : > { %v3664_v30 = vsub.f32 %v3302_v21, %v3659_v28  ;;  %2922 = vrcp.f32 %v1232_v29  ;;  %v1695_v50 = vor.u32 1.1754944e-38, %v1694_v37  ;;  %v2509_v53 = vadd.f32 -1.0, %v1660_v41 }
0x173f   : > { %v1242_v48 = vand.u32 2147483647, %v1232_v29  ;;  %v1244_v49 = vand.u32 2147483648, %v1232_v29  ;;  %vm1238_vm9 = vweird.f32 %v1232_v29 }
0x1740   : > { %v2921_v31 = vpop.eup %2920  ;;  %vm2200_vm3 = vcmp.gt.f32.partialorder %v3664_v30, 0.0 }
0x1741   : > { %v1684_v32 = vmul.f32 %v2921_v31, %v1682_v22  ;;  %v2201_v33 = vsel %vm2200_vm3, %v3664_v30, 1.0  ;;  %vm1689_vm4 = vweird.f32 %v2921_v31  ;;  %v1210_v40 = vpop.xlane.xlu2 %1209  ;;  %v1245_v61 = vor.u32 1.1754944e-38, %v1244_v49 }
0x1742   : > { %2924 = vlog2.f32 %v2201_v33  ;;  %vm1690_vm6 = vmor %vm1688_vm5, %vm1689_vm4  ;;  %vm1243_vm11 = vcmp.eq.f32.partialorder %v1242_v48, 8.507059e+37  ;;  %v2486_v3 = vadd.f32 -1.0, %v1210_v40  ;;  %v2223_v11 = vand.u32 2147483648, %v2201_v33 }
0x1743   : > { %v1685_v35 = vsub.f32 1.0, %v1684_v32  ;;  %2926 = vrcp.f32 %v2201_v33  ;;  %vm2217_vm15 = vweird.f32 %v2201_v33  ;;  %v2221_v10 = vand.u32 2147483647, %v2201_v33 }
0x1744   : > { %v2923_v38 = vpop.eup %2922  ;;  %v2224_v14 = vor.u32 1.1754944e-38, %v2223_v11 }
0x1745   : > { %v1686_v39 = vmul.f32 %v2921_v31, %v1685_v35  ;;  %v1234_v44 = vmul.f32 %v2923_v38, %v1232_v29  ;;  %vm1239_vm8 = vweird.f32 %v2923_v38  ;;  %vm2222_vm2 = vcmp.eq.f32.partialorder %v2221_v10, 8.507059e+37 }
0x1746   : > { %vm1240_vm10 = vmor %vm1238_vm9, %vm1239_vm8 }
0x1747   : > { %v1687_v45 = vadd.f32 %v2921_v31, %v1686_v39  ;;  %v1235_v51 = vsub.f32 1.0, %v1234_v44 }
0x1748   : > { %v2925_v52 = vpop.eup %2924 }
0x1749   : > { %v1691_v42 = vsel %vm1690_vm6, %v2921_v31, %v1687_v45  ;;  %v2927_v54 = vpop.eup %2926  ;;  %v1236_v56 = vmul.f32 %v2923_v38, %v1235_v51  ;;  %v2203_v46 = vmul.f32 0.6931472, %v2925_v52 }
0x174a   : > { %v1696_v55 = vsel %vm1693_vm7, %v1695_v50, %v1691_v42  ;;  %v2213_v43 = vmul.f32 %v2927_v54, %v2201_v33  ;;  %vm2218_vm12 = vweird.f32 %v2927_v54 }
0x174b   : > { %v1697_v57 = vmul.f32 %v2509_v53, %v1696_v55  ;;  %v1237_v47 = vadd.f32 %v2923_v38, %v1236_v56  ;;  %v2204_v58 = vmul.f32 %v2203_v46, %v3341_v62  ;;  %vm2219_vm1 = vmor %vm2217_vm15, %vm2218_vm12  ;;  %v830_v46 = vld [vmem:[%s3222_s29] sm:$0xf] }
0x174c   : > { %v2214_v1 = vsub.f32 1.0, %v2213_v43 }
0x174d   : > { %v3672_v60 = vadd.f32 %v1697_v57, %v3617_v63  ;;  %v1241_v2 = vsel %vm1240_vm10, %v2923_v38, %v1237_v47  ;;  %v2205_v4 = vmul.f32 1.442695, %v2204_v58  ;;  %v1278_v57 = vunpack.c.l.b16 %v830_v46 }
0x174e   : > { %v1246_v5 = vsel %vm1243_vm11, %v1245_v61, %v1241_v2  ;;  %v2215_v7 = vmul.f32 %v2927_v54, %v2214_v1 }
0x174f   : > { %v1699_v59 = vsub.f32 %v3311_v34, %v3672_v60  ;;  %v1247_v0 = vmul.f32 %v2486_v3, %v1246_v5  ;;  %2928 = vpow2.f32 %v2205_v4  ;;  %v1279_v40 = vpack.c.b16 %v1278_v57, %v1278_v57 }
0x1750   : > { %v2216_v8 = vadd.f32 %v2927_v54, %v2215_v7 }
0x1751   : > { %vm1700_vm14 = vcmp.gt.f32.partialorder %v1699_v59, 0.0  ;;  %v1248_v63 = vadd.f32 %v1247_v0, %v3624_v6 }
0x1752   : > { %v1701_v20 = vsel %vm1700_vm14, %v1699_v59, 1.0  ;;  %v2220_v12 = vsel %vm2219_vm1, %v2927_v54, %v2216_v8 }
0x1753   : > { %2930 = vlog2.f32 %v1701_v20  ;;  %v1249_v13 = vsub.f32 %v3235_v9, %v1248_v63  ;;  %v2225_v17 = vsel %vm2222_vm2, %v2224_v14, %v2220_v12  ;;  %v1723_v38 = vand.u32 2147483648, %v1701_v20 }
0x1754   : > { %2932 = vrcp.f32 %v1701_v20  ;;  %vm1717_vm6 = vweird.f32 %v1701_v20  ;;  %v1721_v30 = vand.u32 2147483647, %v1701_v20 }
0x1755   : > { %v2929_v15 = vpop.eup %2928  ;;  %vm1250_vm4 = vcmp.gt.f32.partialorder %v1249_v13, 0.0  ;;  %v1724_v50 = vor.u32 1.1754944e-38, %v1723_v38 }
0x1756   : > { %v2207_v16 = vsel %vm2200_vm3, %v2929_v15, 0.0  ;;  %v1251_v6 = vsel %vm1250_vm4, %v1249_v13, 1.0  ;;  %vm1722_vm7 = vcmp.eq.f32.partialorder %v1721_v30, 8.507059e+37 }
0x1757   : > { %v2226_v19 = vmul.f32 %v2225_v17, %v2207_v16  ;;  %2934 = vlog2.f32 %v1251_v6  ;;  %v2208_v41 = vsel %vm348_vm0, %v2207_v16, 0.0 }
0x1759   : > { %v2931_v22 = vpop.eup %2930  ;;  %v2227_v24 = vsel %vm2200_vm3, %v2226_v19, 0.0 }
0x175a   : > { %v2933_v23 = vpop.eup %2932  ;;  %v1703_v26 = vmul.f32 0.6931472, %v2931_v22  ;;  %v2228_v9 = vsel %vm348_vm0, %v2227_v24, 0.0 }
0x175b   : > { %v1713_v27 = vmul.f32 %v2933_v23, %v1701_v20  ;;  %2229 = vadd.xlane.f32.xlu0 %v2228_v9  ;;  %vm1718_vm5 = vweird.f32 %v2933_v23 }
0x175c   : > { %v1704_v29 = vmul.f32 %v1703_v26, %v3354_v18  ;;  %vm1719_vm3 = vmor %vm1717_vm6, %vm1718_vm5 }
0x175d   : > { %v1714_v31 = vsub.f32 1.0, %v1713_v27  ;;  %v2935_v32 = vpop.eup %2934 }
0x175e   : > { %v1705_v33 = vmul.f32 1.442695, %v1704_v29  ;;  %v1253_v36 = vmul.f32 0.6931472, %v2935_v32 }
0x175f   : > { %v1715_v35 = vmul.f32 %v2933_v23, %v1714_v31 }
0x1760   : > { %2936 = vpow2.f32 %v1705_v33  ;;  %v1254_v39 = vmul.f32 %v1253_v36, %v3267_v25 }
0x1761   : > { %v1716_v37 = vadd.f32 %v2933_v23, %v1715_v35 }
0x1762   : > { %v1255_v44 = vmul.f32 1.442695, %v1254_v39 }
0x1763   : > { %2209 = vadd.xlane.f32.xlu0 %v2208_v41  ;;  %v1720_v45 = vsel %vm1719_vm3, %v2933_v23, %v1716_v37 }
0x1764   : > { %2938 = vpow2.f32 %v1255_v44  ;;  %v1725_v42 = vsel %vm1722_vm7, %v1724_v50, %v1720_v45 }
0x1766   : > { %v2937_v51 = vpop.eup %2936 }
0x1767   : > { %v1707_v52 = vsel %vm1700_vm14, %v2937_v51, 0.0 }
0x1768   : > { %v1726_v53 = vmul.f32 %v1725_v42, %v1707_v52  ;;  %v1708_v56 = vsel %vm348_vm0, %v1707_v52, 0.0 }
0x176a   : > { %v1727_v48 = vsel %vm1700_vm14, %v1726_v53, 0.0  ;;  %v2939_v25 = vpop.eup %2938 }
0x176b   : > { %v1728_v49 = vsel %vm348_vm0, %v1727_v48, 0.0  ;;  %v3692_v54 = vsel %vm1250_vm4, %v2939_v25, 0.0 }
0x176c   : > { %1729 = vadd.xlane.f32.xlu1 %v1728_v49  ;;  %v1258_v55 = vsel %vm348_vm0, %v3692_v54, 0.0 }
0x176d   : > { %1259 = vadd.xlane.f32.xlu2 %v1258_v55 }
0x1774   : > { %1709 = vadd.xlane.f32.xlu1 %v1708_v56 }
0x1785   : > { %1280 = vrot.lane.b32.xlu2 %v1279_v40, %s3023_s24  ;;  %s3026_s24 = smov 8  }
0x17ce   : > { %v2230_v43 = vpop.xlane.xlu0 %2229 }
0x17cf   : > { %v2231_v47 = vmax.f32 %v2230_v43, 1e-30 }
0x17d1   : > { %v2232_v58 = vmul.f32 %v2231_v47, %v3341_v62 }
0x17d3   : > { %2940 = vrcp.f32 %v2232_v58  ;;  %v2244_v3 = vand.u32 2147483648, %v2232_v58  ;;  %v2242_v5 = vand.u32 2147483647, %v2232_v58  ;;  %vm2238_vm9 = vweird.f32 %v2232_v58 }
0x17d5   : > { %v2245_v63 = vor.u32 1.1754944e-38, %v2244_v3  ;;  %vm2243_vm11 = vcmp.eq.f32.partialorder %v2242_v5, 8.507059e+37 }
0x17d6   : > { %v2210_v59 = vpop.xlane.xlu0 %2209 }
0x17d7   : > { %v2534_v12 = vadd.f32 -1.0, %v2210_v59 }
0x17d9   : > { %v2941_v61 = vpop.eup %2940 }
0x17da   : > { %v2234_v1 = vmul.f32 %v2941_v61, %v2232_v58  ;;  %vm2239_vm8 = vweird.f32 %v2941_v61  ;;  %v1830_v58 = vld [vmem:[%s3222_s29] sm:$0xf] }
0x17db   : > { %vm2240_vm10 = vmor %vm2238_vm9, %vm2239_vm8 }
0x17dc   : > { %v2235_v2 = vsub.f32 1.0, %v2234_v1 }
0x17de   : > { %v2236_v4 = vmul.f32 %v2941_v61, %v2235_v2 }
0x17df   : > { %v1730_v7 = vpop.xlane.xlu1 %1729 }
0x17e0   : > { %v1731_v0 = vmax.f32 %v1730_v7, 1e-30  ;;  %v2237_v8 = vadd.f32 %v2941_v61, %v2236_v4  ;;  %v1260_v11 = vpop.xlane.xlu2 %1259  ;;  %v1330_v4 = vld [vmem:[%s3222_s29] sm:$0xf] }
0x17e1   : > { %2942 = vrcp.f32 %v1260_v11  ;;  %v1272_v9 = vand.u32 2147483648, %v1260_v11  ;;  %v1270_v27 = vand.u32 2147483647, %v1260_v11  ;;  %vm1266_vm15 = vweird.f32 %v1260_v11 }
0x17e2   : > { %v1732_v10 = vmul.f32 %v1731_v0, %v3354_v18  ;;  %v2241_v20 = vsel %vm2240_vm10, %v2941_v61, %v2237_v8  ;;  %v2278_v61 = vunpack.c.l.b16 %v1830_v58  ;;  %v1778_v5 = vunpack.c.l.b16 %v1330_v4 }
0x17e3   : > { %v2246_v13 = vsel %vm2243_vm11, %v2245_v63, %v2241_v20  ;;  %v1273_v36 = vor.u32 1.1754944e-38, %v1272_v9  ;;  %vm1271_vm5 = vcmp.eq.f32.partialorder %v1270_v27, 8.507059e+37 }
0x17e4   : > { %2944 = vrcp.f32 %v1732_v10  ;;  %v2247_v14 = vmul.f32 %v2534_v12, %v2246_v13  ;;  %vm1738_vm4 = vweird.f32 %v1732_v10  ;;  %v2279_v3 = vpack.c.b16 %v2278_v61, %v2278_v61 }
0x17e5   : > { %v1779_v7 = vpack.c.b16 %v1778_v5, %v1778_v5 }
0x17e6   : > { %v2248_v15 = vadd.f32 %v2247_v14, %v3659_v28  ;;  %v1744_v28 = vand.u32 2147483648, %v1732_v10 }
0x17e7   : > { %v2943_v16 = vpop.eup %2942  ;;  %v1710_v37 = vpop.xlane.xlu1 %1709 }
0x17e8   : > { %v1262_v17 = vmul.f32 %v2943_v16, %v1260_v11  ;;  %v1281_v6 = vpop.permute.xlu2 %1280  ;;  %v2249_v19 = vsub.f32 %v3302_v21, %v2248_v15  ;;  %vm1267_vm14 = vweird.f32 %v2943_v16  ;;  %v1742_v21 = vand.u32 2147483647, %v1732_v10 }
0x17e9   : > { %v1286_v23 = vsel %vm788_vm13, %v1281_v6, 0  ;;  %vm1268_vm2 = vmor %vm1266_vm15, %vm1267_vm14  ;;  %v1745_v30 = vor.u32 1.1754944e-38, %v1744_v28  ;;  %v2510_v50 = vadd.f32 -1.0, %v1710_v37 }
0x17ea   : > { %v2945_v22 = vpop.eup %2944  ;;  %v1263_v24 = vsub.f32 1.0, %v1262_v17  ;;  %1295 = vmatpush.bf16.msra.mxu3 %v1286_v23  ;;  %vm2250_vm12 = vcmp.gt.f32.partialorder %v2249_v19, 0.0  ;;  %vm1743_vm3 = vcmp.eq.f32.partialorder %v1742_v21, 8.507059e+37 }
0x17eb   : > { %v1734_v26 = vmul.f32 %v2945_v22, %v1732_v10  ;;  %v2251_v29 = vsel %vm2250_vm12, %v2249_v19, 1.0  ;;  %vm1739_vm1 = vweird.f32 %v2945_v22 }
0x17ec   : > { %v1264_v31 = vmul.f32 %v2943_v16, %v1263_v24  ;;  %2946 = vlog2.f32 %v2251_v29  ;;  %vm1740_vm6 = vmor %vm1738_vm4, %vm1739_vm1  ;;  %vm2306_vm4 = vcmask 257216  }
0x17ed   : > { %v1735_v32 = vsub.f32 1.0, %v1734_v26 }
0x17ee   : > { %v1265_v35 = vadd.f32 %v2943_v16, %v1264_v31 }
0x17ef   : > { %v1736_v33 = vmul.f32 %v2945_v22, %v1735_v32 }
0x17f0   : > { %v1269_v39 = vsel %vm1268_vm2, %v2943_v16, %v1265_v35  ;;  %vm1306_vm2 = vcmask 126016  }
0x17f1   : > { %v1737_v38 = vadd.f32 %v2945_v22, %v1736_v33  ;;  %v1274_v41 = vsel %vm1271_vm5, %v1273_v36, %v1269_v39 }
0x17f2   : > { %v2947_v44 = vpop.eup %2946  ;;  %v1275_v51 = vmul.f32 %v1274_v41, %v3692_v54 }
0x17f3   : > { %v1741_v45 = vsel %vm1740_vm6, %v2945_v22, %v1737_v38  ;;  %v2253_v42 = vmul.f32 0.6931472, %v2947_v44 }
0x17f4   : > { %v1746_v52 = vsel %vm1743_vm3, %v1745_v30, %v1741_v45  ;;  %v1276_v48 = vpack.c.bf16 %v1275_v51, %v1275_v51 }
0x17f5   : > { %v1747_v53 = vmul.f32 %v2510_v50, %v1746_v52  ;;  %v2254_v25 = vmul.f32 %v2253_v42, %v3341_v62 }
0x17f6   : > { %2487 = vmatmul.msk.bf16.vlgmr.msra.gmra.mxu3 %vm348_vm0, %v1276_v48 }
0x17f7   : > { %v1748_v49 = vadd.f32 %v1747_v53, %v3672_v60  ;;  %v2255_v55 = vmul.f32 1.442695, %v2254_v25 }
0x17f9   : > { %v1749_v56 = vsub.f32 %v3311_v34, %v1748_v49  ;;  %2948 = vpow2.f32 %v2255_v55 }
0x17fb   : > { %vm1750_vm7 = vcmp.gt.f32.partialorder %v1749_v56, 0.0 }
0x17fc   : > { %v1751_v46 = vsel %vm1750_vm7, %v1749_v56, 1.0 }
0x17fd   : > { %2950 = vlog2.f32 %v1751_v46 }
0x17ff   : > { %v2949_v57 = vpop.eup %2948 }
0x1800   : > { %v2257_v54 = vsel %vm2250_vm12, %v2949_v57, 0.0 }
0x1801   : > { %v2258_v40 = vsel %vm348_vm0, %v2257_v54, 0.0 }
0x1802   : > { %2259 = vadd.xlane.f32.xlu0 %v2258_v40 }
0x1803   : > { %v2951_v43 = vpop.eup %2950 }
0x1804   : > { %v1753_v62 = vmul.f32 0.6931472, %v2951_v43 }
0x1806   : > { %v1754_v60 = vmul.f32 %v1753_v62, %v3354_v18 }
0x1808   : > { %v1755_v47 = vmul.f32 1.442695, %v1754_v60 }
0x180a   : > { %2952 = vpow2.f32 %v1755_v47 }
0x1810   : > { %v2953_v34 = vpop.eup %2952 }
0x1811   : > { %v1757_v1 = vsel %vm1750_vm7, %v2953_v34, 0.0 }
0x1812   : > { %v1758_v2 = vsel %vm348_vm0, %v1757_v1, 0.0 }
0x1813   : > { %1759 = vadd.xlane.f32.xlu1 %v1758_v2 }
0x1816   : > { %2280 = vrot.lane.b32.xlu0 %v2279_v3, %s3025_s26  ;;  %s3028_s26 = smov 16  }
0x182c   : > { %1780 = vrot.lane.b32.xlu1 %v1779_v7, %s3024_s25  ;;  %s3027_s25 = smov 24  }
0x1875   : > { %v2260_v59 = vpop.xlane.xlu0 %2259 }
0x1876   : > { %2954 = vrcp.f32 %v2260_v59  ;;  %v2272_v20 = vand.u32 2147483648, %v2260_v59  ;;  %v2270_v13 = vand.u32 2147483647, %v2260_v59  ;;  %vm2266_vm9 = vweird.f32 %v2260_v59 }
0x1878   : > { %v2273_v15 = vor.u32 1.1754944e-38, %v2272_v20  ;;  %vm2271_vm11 = vcmp.eq.f32.partialorder %v2270_v13, 8.507059e+37 }
0x1879   : > { %v1297_v18 = vpop.f32.mrf.mxu3 }
0x187a   : > { %v1301_v0 = vpack.c.bf16 %v1297_v18, %v1297_v18 }
0x187c   : > { %v2955_v8 = vpop.eup %2954  ;;  %1303 = vrot.lane.b32.xlu2 %v1301_v0, %s3026_s24 }
0x187d   : > { %v2262_v11 = vmul.f32 %v2955_v8, %v2260_v59  ;;  %vm2267_vm8 = vweird.f32 %v2955_v8 }
0x187e   : > { %vm2268_vm10 = vmor %vm2266_vm9, %vm2267_vm8 }
0x187f   : > { %v2263_v63 = vsub.f32 1.0, %v2262_v11 }
0x1881   : > { %v2264_v10 = vmul.f32 %v2955_v8, %v2263_v63  ;;  %v1299_v12 = vpop.f32.mrf.mxu3 }
0x1883   : > { %v2265_v14 = vadd.f32 %v2955_v8, %v2264_v10 }
0x1885   : > { %v2269_v17 = vsel %vm2268_vm10, %v2955_v8, %v2265_v14 }
0x1886   : > { %v1760_v16 = vpop.xlane.xlu1 %1759  ;;  %v2274_v6 = vsel %vm2271_vm11, %v2273_v15, %v2269_v17 }
0x1887   : > { %2956 = vrcp.f32 %v1760_v16  ;;  %v2275_v22 = vmul.f32 %v2274_v6, %v2257_v54  ;;  %v1772_v32 = vand.u32 2147483648, %v1760_v16  ;;  %vm1766_vm14 = vweird.f32 %v1760_v16 }
0x1888   : > { %v2281_v19 = vpop.permute.xlu0 %2280  ;;  %v1770_v28 = vand.u32 2147483647, %v1760_v16 }
0x1889   : > { %v2286_v23 = vsel %vm788_vm13, %v2281_v19, 0  ;;  %v2276_v24 = vpack.c.bf16 %v2275_v22, %v2275_v22  ;;  %v1773_v21 = vor.u32 1.1754944e-38, %v1772_v32 }
0x188a   : > { %2295 = vmatpush.bf16.msrb.mxu2 %v2286_v23  ;;  %vm1771_vm1 = vcmp.eq.f32.partialorder %v1770_v28, 8.507059e+37 }
0x188d   : > { %v2957_v26 = vpop.eup %2956  ;;  %2535 = vmatmul.msk.bf16.vlgmr.msrb.gmra.mxu2 %vm348_vm0, %v2276_v24 }
0x188e   : > { %v1762_v9 = vmul.f32 %v2957_v26, %v1760_v16  ;;  %vm1767_vm12 = vweird.f32 %v2957_v26 }
0x188f   : > { %vm1768_vm15 = vmor %vm1766_vm14, %vm1767_vm12 }
0x1890   : > { %v1763_v27 = vsub.f32 1.0, %v1762_v9 }
0x1892   : > { %v1764_v29 = vmul.f32 %v2957_v26, %v1763_v27 }
0x1894   : > { %v1765_v31 = vadd.f32 %v2957_v26, %v1764_v29 }
0x1896   : > { %v1769_v33 = vsel %vm1768_vm15, %v2957_v26, %v1765_v31 }
0x1897   : > { %v1774_v35 = vsel %vm1771_vm1, %v1773_v21, %v1769_v33 }
0x1898   : > { %v1775_v36 = vmul.f32 %v1774_v35, %v1757_v1 }
0x189a   : > { %v1776_v39 = vpack.c.bf16 %v1775_v36, %v1775_v36 }
0x189e   : > { %v1781_v37 = vpop.permute.xlu1 %1780 }
0x189f   : > { %v1786_v38 = vsel %vm788_vm13, %v1781_v37, 0  ;;  %vm1806_vm13 = vcmask 191616  }
0x18a0   : > { %1795 = vmatpush.bf16.msrb.mxu3 %v1786_v38 }
0x18a3   : > { %2511 = vmatmul.msk.bf16.vlgmr.msrb.gmra.mxu3 %vm348_vm0, %v1776_v39 }
0x18d6   : > { %v1304_v30 = vpop.permute.xlu2 %1303 }
0x18d7   : > { %1307 = vst.msk [vmem:[%s3294_s27] sm:$0xf] %vm1306_vm2, %v1304_v30 }
0x1910   : > { %v2297_v41 = vpop.f32.mrf.mxu2 }
0x1911   : > { %v2301_v44 = vpack.c.bf16 %v2297_v41, %v2297_v41 }
0x1913   : > { %2303 = vrot.lane.b32.xlu1 %v2301_v44, %s3027_s25 }
0x1918   : > { %v2299_v45 = vpop.f32.mrf.mxu2 }
0x1926   : > { %v1797_v50 = vpop.f32.mrf.mxu3 }
0x1927   : > { %v1801_v51 = vpack.c.bf16 %v1797_v50, %v1797_v50 }
0x1929   : > { %1803 = vrot.lane.b32.xlu0 %v1801_v51, %s3028_s26 }
0x192e   : > { %v1799_v52 = vpop.f32.mrf.mxu3 }
0x1985   : > { %v2304_v53 = vpop.permute.xlu1 %2303 }
0x199b   : > { %v1804_v42 = vpop.permute.xlu0 %1803 }
0x199c   : > { %1807 = vst.msk [vmem:[%s3294_s27] sm:$0xf] %vm1806_vm13, %v1804_v42 }
0x199d   : > { %2307 = vst.msk [vmem:[%s3294_s27] sm:$0xf] %vm2306_vm4, %v2304_v53 }
0x199e PF: > { %s17_s20 = sadd.s32 1, %s3018_s20   ;;  %s3747_s18 = smov %s3014_s19 }
0x199f   : > { %p14_p8 = scmp.ge.s32.totalorder %s17_s20, 4   ;;  %s3748_s19 = smov %s3750_s22 }
0x19a1   :  { %16 = sbr.rel (!%p14_p8) target bundleno = 3 (0x3), region = 85 }
0x19a6   :  { %2333 = vsyncpa [#allocation3], 1 }
0x19a7   :  { %2335 = vsyncpa [#allocation3 + $0x1], 1 }
0x19a8   :  { %2336 = vsyncpa [#allocation5], 1 }

</bundles_post_ra>
